<compile_context>
chip_gen: v7x
topology: tpu7x:2x2x1
jax: 0.10.0
libtpu: 0.0.40
codegen_flags: <defaults>
</compile_context>

<pallas_src>
import functools

import jax
import jax.numpy as jnp
import numpy as np
from jax.experimental import pallas as pl
from jax.experimental.pallas import tpu as pltpu

_PAD = 18  # largest dilation in ASPP


# ----------------------------------------------------------------------------
# Pallas kernel: 25 fused tap-matmuls accumulated into one lane-dense tile,
# plus one broadcast add of the per-image constant (pooled branch + biases).
# ----------------------------------------------------------------------------
def _make_kernel(offsets, out_rows):
    def kernel(const_ref, xp_ref, wt_ref, o_ref):
        acc = None
        for t, off in enumerate(offsets):                       # static, unrolled
            lhs = xp_ref[0, off:off + out_rows, :]               # (L, Cin)
            part = jnp.dot(lhs, wt_ref[t],
                           preferred_element_type=jnp.float32)   # (L, Dp) f32
            acc = part if acc is None else acc + part
        o_ref[0] = (acc + const_ref[0]).astype(o_ref.dtype)
    return kernel


def _w_1x1(w):  # (D, Cin, 1, 1) -> (Cin, D)
    return jnp.transpose(w[:, :, 0, 0], (1, 0))


# ----------------------------------------------------------------------------
# Wrapper: padding/flattening, offline weight folding, pallas_call.
# ----------------------------------------------------------------------------
def aspp_forward(x_nchw, p, *, compute_dtype=jnp.bfloat16):
    N, Cin, H, W = x_nchw.shape
    D = p['b_out'].shape[0]
    Dp = ((D + 127) // 128) * 128            # lane-dense output channels
    Wp = W + 2 * _PAD
    Hp = H + 2 * _PAD + 1                    # +1 guard row keeps every tap slice in-bounds
    L = H * Wp                               # output rows per image (padded-width layout)
    Lp = Hp * Wp

    x_nhwc = jnp.transpose(x_nchw, (0, 2, 3, 1)).astype(jnp.float32)
    pooled = jnp.mean(x_nhwc, axis=(1, 2))   # (N, Cin) == AdaptiveAvgPool2d((1,1))

    # single zero-pad by the largest dilation, flattened to a per-image slab
    xp = jnp.pad(x_nhwc, ((0, 0), (_PAD, _PAD + 1), (_PAD, _PAD), (0, 0)))
    xp_flat = xp.reshape(N, Lp, Cin).astype(compute_dtype)

    # ---- offline weight folding into the output 1x1 conv -------------------
    wo = jnp.transpose(p['w_out'][:, :, 0, 0], (1, 0))           # (5D, D)
    wo_img, wo_1, wo_6, wo_12, wo_18 = (wo[i * D:(i + 1) * D] for i in range(5))

    # pooled branch + all biases -> one per-image constant (f32, tiny)
    b_fused = (p['b_conv'][None, :] @ wo_img
               + p['b_a1'][None, :] @ wo_1
               + p['b_a6'][None, :] @ wo_6
               + p['b_a12'][None, :] @ wo_12
               + p['b_a18'][None, :] @ wo_18
               + p['b_out'][None, :])                            # (1, D)
    const = pooled @ (_w_1x1(p['w_conv']) @ wo_img) + b_fused    # (N, D)

    # tap table: {flattened row offset -> fused (Cin, D) weight}; same-offset taps merge
    taps = {}

    def add_tap(off, w):
        taps[off] = (taps[off] + w) if off in taps else w

    center = _PAD * Wp + _PAD
    add_tap(center, _w_1x1(p['w_a1']) @ wo_1)                    # atrous_block1 (1x1 conv)
    for d, wkey, wo_s in ((6, 'w_a6', wo_6), (12, 'w_a12', wo_12), (18, 'w_a18', wo_18)):
        w = p[wkey]                                              # (D, Cin, 3, 3)
        for kh in range(3):
            for kw in range(3):
                off = ((_PAD - d) + kh * d) * Wp + ((_PAD - d) + kw * d)
                add_tap(off, jnp.transpose(w[:, :, kh, kw], (1, 0)) @ wo_s)

    offsets = sorted(taps)                                       # 25 distinct taps
    T = len(offsets)
    wt = jnp.stack([taps[o] for o in offsets], axis=0)           # (T, Cin, D)
    wt = jnp.pad(wt, ((0, 0), (0, 0), (0, Dp - D))).astype(compute_dtype)
    const_p = jnp.pad(const, ((0, 0), (0, Dp - D))).reshape(N, 1, Dp).astype(jnp.float32)

    # ---- fused Pallas kernel: one grid step per image -----------------------
    out_flat = pl.pallas_call(
        _make_kernel(offsets, L),
        out_shape=jax.ShapeDtypeStruct((N, L, Dp), jnp.float32),
        grid=(N,),
        in_specs=[
            pl.BlockSpec((1, 1, Dp), lambda n: (n, 0, 0)),       # per-image constant
            pl.BlockSpec((1, Lp, Cin), lambda n: (n, 0, 0)),     # padded input slab
            pl.BlockSpec((T, Cin, Dp), lambda n: (0, 0, 0)),     # fused tap weights (resident)
        ],
        out_specs=pl.BlockSpec((1, L, Dp), lambda n: (n, 0, 0)),
        compiler_params=pltpu.CompilerParams(dimension_semantics=("parallel",)),
    )(const_p, xp_flat, wt)

    # padded-width / padded-channel layout -> NCHW, valid region only
    out = out_flat.reshape(N, H, Wp, Dp)[:, :, :W, :D]
    return jnp.transpose(out, (0, 3, 1, 2))


# ----------------------------------------------------------------------------
# Pure-JAX reference (matches PyTorch semantics) for correctness check.
# ----------------------------------------------------------------------------
def _conv2d_ref(x, w, b, dilation=1, padding=0):
    out = jax.lax.conv_general_dilated(
        x, w, window_strides=(1, 1),
        padding=[(padding, padding), (padding, padding)],
        rhs_dilation=(dilation, dilation),
        dimension_numbers=('NCHW', 'OIHW', 'NCHW'))
    return out + b.reshape(1, -1, 1, 1)


def aspp_reference(x, p):
    N, Cin, H, W = x.shape
    pooled = jnp.mean(x, axis=(2, 3), keepdims=True)
    imgf = _conv2d_ref(pooled, p['w_conv'], p['b_conv'])
    imgf = jnp.broadcast_to(imgf, (N, imgf.shape[1], H, W))  # bilinear upsample of 1x1 = const
    a1 = _conv2d_ref(x, p['w_a1'], p['b_a1'])
    a6 = _conv2d_ref(x, p['w_a6'], p['b_a6'], dilation=6, padding=6)
    a12 = _conv2d_ref(x, p['w_a12'], p['b_a12'], dilation=12, padding=12)
    a18 = _conv2d_ref(x, p['w_a18'], p['b_a18'], dilation=18, padding=18)
    cat = jnp.concatenate([imgf, a1, a6, a12, a18], axis=1)
    return _conv2d_ref(cat, p['w_out'], p['b_out'])


# ----------------------------------------------------------------------------
if __name__ == "__main__":
    key = jax.random.PRNGKey(0)
    N, Cin, D, H, W = 2, 16, 8, 16, 16   # small shapes consistent with ASPP(in_channel, depth)

    ks = jax.random.split(key, 13)
    s = 0.05
    params = {
        'w_conv': s * jax.random.normal(ks[0], (D, Cin, 1, 1), jnp.float32),
        'b_conv': s * jax.random.normal(ks[1], (D,), jnp.float32),
        'w_a1':   s * jax.random.normal(ks[2], (D, Cin, 1, 1), jnp.float32),
        'b_a1':   s * jax.random.normal(ks[3], (D,), jnp.float32),
        'w_a6':   s * jax.random.normal(ks[4], (D, Cin, 3, 3), jnp.float32),
        'b_a6':   s * jax.random.normal(ks[5], (D,), jnp.float32),
        'w_a12':  s * jax.random.normal(ks[6], (D, Cin, 3, 3), jnp.float32),
        'b_a12':  s * jax.random.normal(ks[7], (D,), jnp.float32),
        'w_a18':  s * jax.random.normal(ks[8], (D, Cin, 3, 3), jnp.float32),
        'b_a18':  s * jax.random.normal(ks[9], (D,), jnp.float32),
        'w_out':  s * jax.random.normal(ks[10], (D, 5 * D, 1, 1), jnp.float32),
        'b_out':  s * jax.random.normal(ks[11], (D,), jnp.float32),
    }
    x = jax.random.normal(ks[12], (N, Cin, H, W), jnp.float32)

    fwd = jax.jit(aspp_forward, static_argnames=('compute_dtype',))
    ref = jax.block_until_ready(aspp_reference(x, params))

    # f32 path: tight correctness check (only weight-folding reassociation differs)
    out_f32 = jax.block_until_ready(fwd(x, params, compute_dtype=jnp.float32))
    assert out_f32.shape == (N, D, H, W), out_f32.shape
    err32 = float(np.max(np.abs(np.asarray(out_f32) - np.asarray(ref))))
    assert np.allclose(np.asarray(out_f32), np.asarray(ref), rtol=1e-4, atol=1e-4), err32

    # bf16 fast path (f32 accumulation): looser tolerance
    out_bf16 = jax.block_until_ready(fwd(x, params, compute_dtype=jnp.bfloat16))
    assert out_bf16.shape == (N, D, H, W), out_bf16.shape
    err16 = float(np.max(np.abs(np.asarray(out_bf16) - np.asarray(ref))))
    assert np.allclose(np.asarray(out_bf16), np.asarray(ref), rtol=2e-2, atol=2e-2), err16

    print("KERNEL_OK")
</pallas_src>

<mosaic_0001>
module attributes {stable_mosaic.version = 11 : i64} {
  func.func @kernel(%arg0: i32, %arg1: memref<1x1x128xf32, #tpu.memory_space<vmem>>, %arg2: memref<1x2756x16xf32, #tpu.memory_space<vmem>>, %arg3: memref<25x16x128xf32, #tpu.memory_space<vmem>>, %arg4: memref<1x832x128xf32, #tpu.memory_space<vmem>>) attributes {dimension_semantics = [#tpu.dimension_semantics<parallel>], iteration_bounds = array<i64: 2>, scalar_prefetch = 0 : i64, scratch_operands = 0 : i64, tpu.core_type = #tpu.core_type<tc>, window_params = [{transform_indices = @transform_0, window_bounds = array<i64: 1, 1, 128>}, {transform_indices = @transform_1, window_bounds = array<i64: 1, 2756, 16>}, {pipeline_mode = #tpu.pipeline_mode<synchronous>, transform_indices = @transform_2, window_bounds = array<i64: 25, 16, 128>}, {transform_indices = @transform_3, window_bounds = array<i64: 1, 832, 128>}]} {
    %c0 = arith.constant 0 : index
    %c0_0 = arith.constant 0 : index
    %c0_1 = arith.constant 0 : index
    %0 = vector.load %arg2[%c0, %c0_0, %c0_1] : memref<1x2756x16xf32, #tpu.memory_space<vmem>>, vector<1x832x16xf32>
    %1 = vector.shape_cast %0 : vector<1x832x16xf32> to vector<832x16xf32>
    %c0_2 = arith.constant 0 : index
    %c0_3 = arith.constant 0 : index
    %c0_4 = arith.constant 0 : index
    %2 = vector.load %arg3[%c0_2, %c0_3, %c0_4] : memref<25x16x128xf32, #tpu.memory_space<vmem>>, vector<1x16x128xf32>
    %3 = vector.shape_cast %2 : vector<1x16x128xf32> to vector<16x128xf32>
    %cst = arith.constant dense<0.000000e+00> : vector<832x128xf32>
    %4 = tpu.matmul %1, %3, %cst {dimension_numbers = #tpu.dot_dimension_numbers<[1], [0], [0], [1], [0, 0, 1, 1], [], []>} : vector<832x16xf32>, vector<16x128xf32>, vector<832x128xf32> -> vector<832x128xf32>
    %c0_5 = arith.constant 0 : index
    %c18 = arith.constant 18 : index
    %c0_6 = arith.constant 0 : index
    %5 = vector.load %arg2[%c0_5, %c18, %c0_6] : memref<1x2756x16xf32, #tpu.memory_space<vmem>>, vector<1x832x16xf32>
    %6 = vector.shape_cast %5 : vector<1x832x16xf32> to vector<832x16xf32>
    %c1 = arith.constant 1 : index
    %c0_7 = arith.constant 0 : index
    %c0_8 = arith.constant 0 : index
    %7 = vector.load %arg3[%c1, %c0_7, %c0_8] : memref<25x16x128xf32, #tpu.memory_space<vmem>>, vector<1x16x128xf32>
    %8 = vector.shape_cast %7 : vector<1x16x128xf32> to vector<16x128xf32>
    %cst_9 = arith.constant dense<0.000000e+00> : vector<832x128xf32>
    %9 = tpu.matmul %6, %8, %cst_9 {dimension_numbers = #tpu.dot_dimension_numbers<[1], [0], [0], [1], [0, 0, 1, 1], [], []>} : vector<832x16xf32>, vector<16x128xf32>, vector<832x128xf32> -> vector<832x128xf32>
    %10 = arith.addf %4, %9 : vector<832x128xf32>
    %c0_10 = arith.constant 0 : index
    %c36 = arith.constant 36 : index
    %c0_11 = arith.constant 0 : index
    %11 = vector.load %arg2[%c0_10, %c36, %c0_11] : memref<1x2756x16xf32, #tpu.memory_space<vmem>>, vector<1x832x16xf32>
    %12 = vector.shape_cast %11 : vector<1x832x16xf32> to vector<832x16xf32>
    %c2 = arith.constant 2 : index
    %c0_12 = arith.constant 0 : index
    %c0_13 = arith.constant 0 : index
    %13 = vector.load %arg3[%c2, %c0_12, %c0_13] : memref<25x16x128xf32, #tpu.memory_space<vmem>>, vector<1x16x128xf32>
    %14 = vector.shape_cast %13 : vector<1x16x128xf32> to vector<16x128xf32>
    %cst_14 = arith.constant dense<0.000000e+00> : vector<832x128xf32>
    %15 = tpu.matmul %12, %14, %cst_14 {dimension_numbers = #tpu.dot_dimension_numbers<[1], [0], [0], [1], [0, 0, 1, 1], [], []>} : vector<832x16xf32>, vector<16x128xf32>, vector<832x128xf32> -> vector<832x128xf32>
    %16 = arith.addf %10, %15 : vector<832x128xf32>
    %c0_15 = arith.constant 0 : index
    %c318 = arith.constant 318 : index
    %c0_16 = arith.constant 0 : index
    %17 = vector.load %arg2[%c0_15, %c318, %c0_16] : memref<1x2756x16xf32, #tpu.memory_space<vmem>>, vector<1x832x16xf32>
    %18 = vector.shape_cast %17 : vector<1x832x16xf32> to vector<832x16xf32>
    %c3 = arith.constant 3 : index
    %c0_17 = arith.constant 0 : index
    %c0_18 = arith.constant 0 : index
    %19 = vector.load %arg3[%c3, %c0_17, %c0_18] : memref<25x16x128xf32, #tpu.memory_space<vmem>>, vector<1x16x128xf32>
    %20 = vector.shape_cast %19 : vector<1x16x128xf32> to vector<16x128xf32>
    %cst_19 = arith.constant dense<0.000000e+00> : vector<832x128xf32>
    %21 = tpu.matmul %18, %20, %cst_19 {dimension_numbers = #tpu.dot_dimension_numbers<[1], [0], [0], [1], [0, 0, 1, 1], [], []>} : vector<832x16xf32>, vector<16x128xf32>, vector<832x128xf32> -> vector<832x128xf32>
    %22 = arith.addf %16, %21 : vector<832x128xf32>
    %c0_20 = arith.constant 0 : index
    %c330 = arith.constant 330 : index
    %c0_21 = arith.constant 0 : index
    %23 = vector.load %arg2[%c0_20, %c330, %c0_21] : memref<1x2756x16xf32, #tpu.memory_space<vmem>>, vector<1x832x16xf32>
    %24 = vector.shape_cast %23 : vector<1x832x16xf32> to vector<832x16xf32>
    %c4 = arith.constant 4 : index
    %c0_22 = arith.constant 0 : index
    %c0_23 = arith.constant 0 : index
    %25 = vector.load %arg3[%c4, %c0_22, %c0_23] : memref<25x16x128xf32, #tpu.memory_space<vmem>>, vector<1x16x128xf32>
    %26 = vector.shape_cast %25 : vector<1x16x128xf32> to vector<16x128xf32>
    %cst_24 = arith.constant dense<0.000000e+00> : vector<832x128xf32>
    %27 = tpu.matmul %24, %26, %cst_24 {dimension_numbers = #tpu.dot_dimension_numbers<[1], [0], [0], [1], [0, 0, 1, 1], [], []>} : vector<832x16xf32>, vector<16x128xf32>, vector<832x128xf32> -> vector<832x128xf32>
    %28 = arith.addf %22, %27 : vector<832x128xf32>
    %c0_25 = arith.constant 0 : index
    %c342 = arith.constant 342 : index
    %c0_26 = arith.constant 0 : index
    %29 = vector.load %arg2[%c0_25, %c342, %c0_26] : memref<1x2756x16xf32, #tpu.memory_space<vmem>>, vector<1x832x16xf32>
    %30 = vector.shape_cast %29 : vector<1x832x16xf32> to vector<832x16xf32>
    %c5 = arith.constant 5 : index
    %c0_27 = arith.constant 0 : index
    %c0_28 = arith.constant 0 : index
    %31 = vector.load %arg3[%c5, %c0_27, %c0_28] : memref<25x16x128xf32, #tpu.memory_space<vmem>>, vector<1x16x128xf32>
    %32 = vector.shape_cast %31 : vector<1x16x128xf32> to vector<16x128xf32>
    %cst_29 = arith.constant dense<0.000000e+00> : vector<832x128xf32>
    %33 = tpu.matmul %30, %32, %cst_29 {dimension_numbers = #tpu.dot_dimension_numbers<[1], [0], [0], [1], [0, 0, 1, 1], [], []>} : vector<832x16xf32>, vector<16x128xf32>, vector<832x128xf32> -> vector<832x128xf32>
    %34 = arith.addf %28, %33 : vector<832x128xf32>
    %c0_30 = arith.constant 0 : index
    %c636 = arith.constant 636 : index
    %c0_31 = arith.constant 0 : index
    %35 = vector.load %arg2[%c0_30, %c636, %c0_31] : memref<1x2756x16xf32, #tpu.memory_space<vmem>>, vector<1x832x16xf32>
    %36 = vector.shape_cast %35 : vector<1x832x16xf32> to vector<832x16xf32>
    %c6 = arith.constant 6 : index
    %c0_32 = arith.constant 0 : index
    %c0_33 = arith.constant 0 : index
    %37 = vector.load %arg3[%c6, %c0_32, %c0_33] : memref<25x16x128xf32, #tpu.memory_space<vmem>>, vector<1x16x128xf32>
    %38 = vector.shape_cast %37 : vector<1x16x128xf32> to vector<16x128xf32>
    %cst_34 = arith.constant dense<0.000000e+00> : vector<832x128xf32>
    %39 = tpu.matmul %36, %38, %cst_34 {dimension_numbers = #tpu.dot_dimension_numbers<[1], [0], [0], [1], [0, 0, 1, 1], [], []>} : vector<832x16xf32>, vector<16x128xf32>, vector<832x128xf32> -> vector<832x128xf32>
    %40 = arith.addf %34, %39 : vector<832x128xf32>
    %c0_35 = arith.constant 0 : index
    %c642 = arith.constant 642 : index
    %c0_36 = arith.constant 0 : index
    %41 = vector.load %arg2[%c0_35, %c642, %c0_36] : memref<1x2756x16xf32, #tpu.memory_space<vmem>>, vector<1x832x16xf32>
    %42 = vector.shape_cast %41 : vector<1x832x16xf32> to vector<832x16xf32>
    %c7 = arith.constant 7 : index
    %c0_37 = arith.constant 0 : index
    %c0_38 = arith.constant 0 : index
    %43 = vector.load %arg3[%c7, %c0_37, %c0_38] : memref<25x16x128xf32, #tpu.memory_space<vmem>>, vector<1x16x128xf32>
    %44 = vector.shape_cast %43 : vector<1x16x128xf32> to vector<16x128xf32>
    %cst_39 = arith.constant dense<0.000000e+00> : vector<832x128xf32>
    %45 = tpu.matmul %42, %44, %cst_39 {dimension_numbers = #tpu.dot_dimension_numbers<[1], [0], [0], [1], [0, 0, 1, 1], [], []>} : vector<832x16xf32>, vector<16x128xf32>, vector<832x128xf32> -> vector<832x128xf32>
    %46 = arith.addf %40, %45 : vector<832x128xf32>
    %c0_40 = arith.constant 0 : index
    %c648 = arith.constant 648 : index
    %c0_41 = arith.constant 0 : index
    %47 = vector.load %arg2[%c0_40, %c648, %c0_41] : memref<1x2756x16xf32, #tpu.memory_space<vmem>>, vector<1x832x16xf32>
    %48 = vector.shape_cast %47 : vector<1x832x16xf32> to vector<832x16xf32>
    %c8 = arith.constant 8 : index
    %c0_42 = arith.constant 0 : index
    %c0_43 = arith.constant 0 : index
    %49 = vector.load %arg3[%c8, %c0_42, %c0_43] : memref<25x16x128xf32, #tpu.memory_space<vmem>>, vector<1x16x128xf32>
    %50 = vector.shape_cast %49 : vector<1x16x128xf32> to vector<16x128xf32>
    %cst_44 = arith.constant dense<0.000000e+00> : vector<832x128xf32>
    %51 = tpu.matmul %48, %50, %cst_44 {dimension_numbers = #tpu.dot_dimension_numbers<[1], [0], [0], [1], [0, 0, 1, 1], [], []>} : vector<832x16xf32>, vector<16x128xf32>, vector<832x128xf32> -> vector<832x128xf32>
    %52 = arith.addf %46, %51 : vector<832x128xf32>
    %c0_45 = arith.constant 0 : index
    %c936 = arith.constant 936 : index
    %c0_46 = arith.constant 0 : index
    %53 = vector.load %arg2[%c0_45, %c936, %c0_46] : memref<1x2756x16xf32, #tpu.memory_space<vmem>>, vector<1x832x16xf32>
    %54 = vector.shape_cast %53 : vector<1x832x16xf32> to vector<832x16xf32>
    %c9 = arith.constant 9 : index
    %c0_47 = arith.constant 0 : index
    %c0_48 = arith.constant 0 : index
    %55 = vector.load %arg3[%c9, %c0_47, %c0_48] : memref<25x16x128xf32, #tpu.memory_space<vmem>>, vector<1x16x128xf32>
    %56 = vector.shape_cast %55 : vector<1x16x128xf32> to vector<16x128xf32>
    %cst_49 = arith.constant dense<0.000000e+00> : vector<832x128xf32>
    %57 = tpu.matmul %54, %56, %cst_49 {dimension_numbers = #tpu.dot_dimension_numbers<[1], [0], [0], [1], [0, 0, 1, 1], [], []>} : vector<832x16xf32>, vector<16x128xf32>, vector<832x128xf32> -> vector<832x128xf32>
    %58 = arith.addf %52, %57 : vector<832x128xf32>
    %c0_50 = arith.constant 0 : index
    %c942 = arith.constant 942 : index
    %c0_51 = arith.constant 0 : index
    %59 = vector.load %arg2[%c0_50, %c942, %c0_51] : memref<1x2756x16xf32, #tpu.memory_space<vmem>>, vector<1x832x16xf32>
    %60 = vector.shape_cast %59 : vector<1x832x16xf32> to vector<832x16xf32>
    %c10 = arith.constant 10 : index
    %c0_52 = arith.constant 0 : index
    %c0_53 = arith.constant 0 : index
    %61 = vector.load %arg3[%c10, %c0_52, %c0_53] : memref<25x16x128xf32, #tpu.memory_space<vmem>>, vector<1x16x128xf32>
    %62 = vector.shape_cast %61 : vector<1x16x128xf32> to vector<16x128xf32>
    %cst_54 = arith.constant dense<0.000000e+00> : vector<832x128xf32>
    %63 = tpu.matmul %60, %62, %cst_54 {dimension_numbers = #tpu.dot_dimension_numbers<[1], [0], [0], [1], [0, 0, 1, 1], [], []>} : vector<832x16xf32>, vector<16x128xf32>, vector<832x128xf32> -> vector<832x128xf32>
    %64 = arith.addf %58, %63 : vector<832x128xf32>
    %c0_55 = arith.constant 0 : index
    %c948 = arith.constant 948 : index
    %c0_56 = arith.constant 0 : index
    %65 = vector.load %arg2[%c0_55, %c948, %c0_56] : memref<1x2756x16xf32, #tpu.memory_space<vmem>>, vector<1x832x16xf32>
    %66 = vector.shape_cast %65 : vector<1x832x16xf32> to vector<832x16xf32>
    %c11 = arith.constant 11 : index
    %c0_57 = arith.constant 0 : index
    %c0_58 = arith.constant 0 : index
    %67 = vector.load %arg3[%c11, %c0_57, %c0_58] : memref<25x16x128xf32, #tpu.memory_space<vmem>>, vector<1x16x128xf32>
    %68 = vector.shape_cast %67 : vector<1x16x128xf32> to vector<16x128xf32>
    %cst_59 = arith.constant dense<0.000000e+00> : vector<832x128xf32>
    %69 = tpu.matmul %66, %68, %cst_59 {dimension_numbers = #tpu.dot_dimension_numbers<[1], [0], [0], [1], [0, 0, 1, 1], [], []>} : vector<832x16xf32>, vector<16x128xf32>, vector<832x128xf32> -> vector<832x128xf32>
    %70 = arith.addf %64, %69 : vector<832x128xf32>
    %c0_60 = arith.constant 0 : index
    %c954 = arith.constant 954 : index
    %c0_61 = arith.constant 0 : index
    %71 = vector.load %arg2[%c0_60, %c954, %c0_61] : memref<1x2756x16xf32, #tpu.memory_space<vmem>>, vector<1x832x16xf32>
    %72 = vector.shape_cast %71 : vector<1x832x16xf32> to vector<832x16xf32>
    %c12 = arith.constant 12 : index
    %c0_62 = arith.constant 0 : index
    %c0_63 = arith.constant 0 : index
    %73 = vector.load %arg3[%c12, %c0_62, %c0_63] : memref<25x16x128xf32, #tpu.memory_space<vmem>>, vector<1x16x128xf32>
    %74 = vector.shape_cast %73 : vector<1x16x128xf32> to vector<16x128xf32>
    %cst_64 = arith.constant dense<0.000000e+00> : vector<832x128xf32>
    %75 = tpu.matmul %72, %74, %cst_64 {dimension_numbers = #tpu.dot_dimension_numbers<[1], [0], [0], [1], [0, 0, 1, 1], [], []>} : vector<832x16xf32>, vector<16x128xf32>, vector<832x128xf32> -> vector<832x128xf32>
    %76 = arith.addf %70, %75 : vector<832x128xf32>
    %c0_65 = arith.constant 0 : index
    %c960 = arith.constant 960 : index
    %c0_66 = arith.constant 0 : index
    %77 = vector.load %arg2[%c0_65, %c960, %c0_66] : memref<1x2756x16xf32, #tpu.memory_space<vmem>>, vector<1x832x16xf32>
    %78 = vector.shape_cast %77 : vector<1x832x16xf32> to vector<832x16xf32>
    %c13 = arith.constant 13 : index
    %c0_67 = arith.constant 0 : index
    %c0_68 = arith.constant 0 : index
    %79 = vector.load %arg3[%c13, %c0_67, %c0_68] : memref<25x16x128xf32, #tpu.memory_space<vmem>>, vector<1x16x128xf32>
    %80 = vector.shape_cast %79 : vector<1x16x128xf32> to vector<16x128xf32>
    %cst_69 = arith.constant dense<0.000000e+00> : vector<832x128xf32>
    %81 = tpu.matmul %78, %80, %cst_69 {dimension_numbers = #tpu.dot_dimension_numbers<[1], [0], [0], [1], [0, 0, 1, 1], [], []>} : vector<832x16xf32>, vector<16x128xf32>, vector<832x128xf32> -> vector<832x128xf32>
    %82 = arith.addf %76, %81 : vector<832x128xf32>
    %c0_70 = arith.constant 0 : index
    %c966 = arith.constant 966 : index
    %c0_71 = arith.constant 0 : index
    %83 = vector.load %arg2[%c0_70, %c966, %c0_71] : memref<1x2756x16xf32, #tpu.memory_space<vmem>>, vector<1x832x16xf32>
    %84 = vector.shape_cast %83 : vector<1x832x16xf32> to vector<832x16xf32>
    %c14 = arith.constant 14 : index
    %c0_72 = arith.constant 0 : index
    %c0_73 = arith.constant 0 : index
    %85 = vector.load %arg3[%c14, %c0_72, %c0_73] : memref<25x16x128xf32, #tpu.memory_space<vmem>>, vector<1x16x128xf32>
    %86 = vector.shape_cast %85 : vector<1x16x128xf32> to vector<16x128xf32>
    %cst_74 = arith.constant dense<0.000000e+00> : vector<832x128xf32>
    %87 = tpu.matmul %84, %86, %cst_74 {dimension_numbers = #tpu.dot_dimension_numbers<[1], [0], [0], [1], [0, 0, 1, 1], [], []>} : vector<832x16xf32>, vector<16x128xf32>, vector<832x128xf32> -> vector<832x128xf32>
    %88 = arith.addf %82, %87 : vector<832x128xf32>
    %c0_75 = arith.constant 0 : index
    %c972 = arith.constant 972 : index
    %c0_76 = arith.constant 0 : index
    %89 = vector.load %arg2[%c0_75, %c972, %c0_76] : memref<1x2756x16xf32, #tpu.memory_space<vmem>>, vector<1x832x16xf32>
    %90 = vector.shape_cast %89 : vector<1x832x16xf32> to vector<832x16xf32>
    %c15 = arith.constant 15 : index
    %c0_77 = arith.constant 0 : index
    %c0_78 = arith.constant 0 : index
    %91 = vector.load %arg3[%c15, %c0_77, %c0_78] : memref<25x16x128xf32, #tpu.memory_space<vmem>>, vector<1x16x128xf32>
    %92 = vector.shape_cast %91 : vector<1x16x128xf32> to vector<16x128xf32>
    %cst_79 = arith.constant dense<0.000000e+00> : vector<832x128xf32>
    %93 = tpu.matmul %90, %92, %cst_79 {dimension_numbers = #tpu.dot_dimension_numbers<[1], [0], [0], [1], [0, 0, 1, 1], [], []>} : vector<832x16xf32>, vector<16x128xf32>, vector<832x128xf32> -> vector<832x128xf32>
    %94 = arith.addf %88, %93 : vector<832x128xf32>
    %c0_80 = arith.constant 0 : index
    %c1260 = arith.constant 1260 : index
    %c0_81 = arith.constant 0 : index
    %95 = vector.load %arg2[%c0_80, %c1260, %c0_81] : memref<1x2756x16xf32, #tpu.memory_space<vmem>>, vector<1x832x16xf32>
    %96 = vector.shape_cast %95 : vector<1x832x16xf32> to vector<832x16xf32>
    %c16 = arith.constant 16 : index
    %c0_82 = arith.constant 0 : index
    %c0_83 = arith.constant 0 : index
    %97 = vector.load %arg3[%c16, %c0_82, %c0_83] : memref<25x16x128xf32, #tpu.memory_space<vmem>>, vector<1x16x128xf32>
    %98 = vector.shape_cast %97 : vector<1x16x128xf32> to vector<16x128xf32>
    %cst_84 = arith.constant dense<0.000000e+00> : vector<832x128xf32>
    %99 = tpu.matmul %96, %98, %cst_84 {dimension_numbers = #tpu.dot_dimension_numbers<[1], [0], [0], [1], [0, 0, 1, 1], [], []>} : vector<832x16xf32>, vector<16x128xf32>, vector<832x128xf32> -> vector<832x128xf32>
    %100 = arith.addf %94, %99 : vector<832x128xf32>
    %c0_85 = arith.constant 0 : index
    %c1266 = arith.constant 1266 : index
    %c0_86 = arith.constant 0 : index
    %101 = vector.load %arg2[%c0_85, %c1266, %c0_86] : memref<1x2756x16xf32, #tpu.memory_space<vmem>>, vector<1x832x16xf32>
    %102 = vector.shape_cast %101 : vector<1x832x16xf32> to vector<832x16xf32>
    %c17 = arith.constant 17 : index
    %c0_87 = arith.constant 0 : index
    %c0_88 = arith.constant 0 : index
    %103 = vector.load %arg3[%c17, %c0_87, %c0_88] : memref<25x16x128xf32, #tpu.memory_space<vmem>>, vector<1x16x128xf32>
    %104 = vector.shape_cast %103 : vector<1x16x128xf32> to vector<16x128xf32>
    %cst_89 = arith.constant dense<0.000000e+00> : vector<832x128xf32>
    %105 = tpu.matmul %102, %104, %cst_89 {dimension_numbers = #tpu.dot_dimension_numbers<[1], [0], [0], [1], [0, 0, 1, 1], [], []>} : vector<832x16xf32>, vector<16x128xf32>, vector<832x128xf32> -> vector<832x128xf32>
    %106 = arith.addf %100, %105 : vector<832x128xf32>
    %c0_90 = arith.constant 0 : index
    %c1272 = arith.constant 1272 : index
    %c0_91 = arith.constant 0 : index
    %107 = vector.load %arg2[%c0_90, %c1272, %c0_91] : memref<1x2756x16xf32, #tpu.memory_space<vmem>>, vector<1x832x16xf32>
    %108 = vector.shape_cast %107 : vector<1x832x16xf32> to vector<832x16xf32>
    %c18_92 = arith.constant 18 : index
    %c0_93 = arith.constant 0 : index
    %c0_94 = arith.constant 0 : index
    %109 = vector.load %arg3[%c18_92, %c0_93, %c0_94] : memref<25x16x128xf32, #tpu.memory_space<vmem>>, vector<1x16x128xf32>
    %110 = vector.shape_cast %109 : vector<1x16x128xf32> to vector<16x128xf32>
    %cst_95 = arith.constant dense<0.000000e+00> : vector<832x128xf32>
    %111 = tpu.matmul %108, %110, %cst_95 {dimension_numbers = #tpu.dot_dimension_numbers<[1], [0], [0], [1], [0, 0, 1, 1], [], []>} : vector<832x16xf32>, vector<16x128xf32>, vector<832x128xf32> -> vector<832x128xf32>
    %112 = arith.addf %106, %111 : vector<832x128xf32>
    %c0_96 = arith.constant 0 : index
    %c1566 = arith.constant 1566 : index
    %c0_97 = arith.constant 0 : index
    %113 = vector.load %arg2[%c0_96, %c1566, %c0_97] : memref<1x2756x16xf32, #tpu.memory_space<vmem>>, vector<1x832x16xf32>
    %114 = vector.shape_cast %113 : vector<1x832x16xf32> to vector<832x16xf32>
    %c19 = arith.constant 19 : index
    %c0_98 = arith.constant 0 : index
    %c0_99 = arith.constant 0 : index
    %115 = vector.load %arg3[%c19, %c0_98, %c0_99] : memref<25x16x128xf32, #tpu.memory_space<vmem>>, vector<1x16x128xf32>
    %116 = vector.shape_cast %115 : vector<1x16x128xf32> to vector<16x128xf32>
    %cst_100 = arith.constant dense<0.000000e+00> : vector<832x128xf32>
    %117 = tpu.matmul %114, %116, %cst_100 {dimension_numbers = #tpu.dot_dimension_numbers<[1], [0], [0], [1], [0, 0, 1, 1], [], []>} : vector<832x16xf32>, vector<16x128xf32>, vector<832x128xf32> -> vector<832x128xf32>
    %118 = arith.addf %112, %117 : vector<832x128xf32>
    %c0_101 = arith.constant 0 : index
    %c1578 = arith.constant 1578 : index
    %c0_102 = arith.constant 0 : index
    %119 = vector.load %arg2[%c0_101, %c1578, %c0_102] : memref<1x2756x16xf32, #tpu.memory_space<vmem>>, vector<1x832x16xf32>
    %120 = vector.shape_cast %119 : vector<1x832x16xf32> to vector<832x16xf32>
    %c20 = arith.constant 20 : index
    %c0_103 = arith.constant 0 : index
    %c0_104 = arith.constant 0 : index
    %121 = vector.load %arg3[%c20, %c0_103, %c0_104] : memref<25x16x128xf32, #tpu.memory_space<vmem>>, vector<1x16x128xf32>
    %122 = vector.shape_cast %121 : vector<1x16x128xf32> to vector<16x128xf32>
    %cst_105 = arith.constant dense<0.000000e+00> : vector<832x128xf32>
    %123 = tpu.matmul %120, %122, %cst_105 {dimension_numbers = #tpu.dot_dimension_numbers<[1], [0], [0], [1], [0, 0, 1, 1], [], []>} : vector<832x16xf32>, vector<16x128xf32>, vector<832x128xf32> -> vector<832x128xf32>
    %124 = arith.addf %118, %123 : vector<832x128xf32>
    %c0_106 = arith.constant 0 : index
    %c1590 = arith.constant 1590 : index
    %c0_107 = arith.constant 0 : index
    %125 = vector.load %arg2[%c0_106, %c1590, %c0_107] : memref<1x2756x16xf32, #tpu.memory_space<vmem>>, vector<1x832x16xf32>
    %126 = vector.shape_cast %125 : vector<1x832x16xf32> to vector<832x16xf32>
    %c21 = arith.constant 21 : index
    %c0_108 = arith.constant 0 : index
    %c0_109 = arith.constant 0 : index
    %127 = vector.load %arg3[%c21, %c0_108, %c0_109] : memref<25x16x128xf32, #tpu.memory_space<vmem>>, vector<1x16x128xf32>
    %128 = vector.shape_cast %127 : vector<1x16x128xf32> to vector<16x128xf32>
    %cst_110 = arith.constant dense<0.000000e+00> : vector<832x128xf32>
    %129 = tpu.matmul %126, %128, %cst_110 {dimension_numbers = #tpu.dot_dimension_numbers<[1], [0], [0], [1], [0, 0, 1, 1], [], []>} : vector<832x16xf32>, vector<16x128xf32>, vector<832x128xf32> -> vector<832x128xf32>
    %130 = arith.addf %124, %129 : vector<832x128xf32>
    %c0_111 = arith.constant 0 : index
    %c1872 = arith.constant 1872 : index
    %c0_112 = arith.constant 0 : index
    %131 = vector.load %arg2[%c0_111, %c1872, %c0_112] : memref<1x2756x16xf32, #tpu.memory_space<vmem>>, vector<1x832x16xf32>
    %132 = vector.shape_cast %131 : vector<1x832x16xf32> to vector<832x16xf32>
    %c22 = arith.constant 22 : index
    %c0_113 = arith.constant 0 : index
    %c0_114 = arith.constant 0 : index
    %133 = vector.load %arg3[%c22, %c0_113, %c0_114] : memref<25x16x128xf32, #tpu.memory_space<vmem>>, vector<1x16x128xf32>
    %134 = vector.shape_cast %133 : vector<1x16x128xf32> to vector<16x128xf32>
    %cst_115 = arith.constant dense<0.000000e+00> : vector<832x128xf32>
    %135 = tpu.matmul %132, %134, %cst_115 {dimension_numbers = #tpu.dot_dimension_numbers<[1], [0], [0], [1], [0, 0, 1, 1], [], []>} : vector<832x16xf32>, vector<16x128xf32>, vector<832x128xf32> -> vector<832x128xf32>
    %136 = arith.addf %130, %135 : vector<832x128xf32>
    %c0_116 = arith.constant 0 : index
    %c1890 = arith.constant 1890 : index
    %c0_117 = arith.constant 0 : index
    %137 = vector.load %arg2[%c0_116, %c1890, %c0_117] : memref<1x2756x16xf32, #tpu.memory_space<vmem>>, vector<1x832x16xf32>
    %138 = vector.shape_cast %137 : vector<1x832x16xf32> to vector<832x16xf32>
    %c23 = arith.constant 23 : index
    %c0_118 = arith.constant 0 : index
    %c0_119 = arith.constant 0 : index
    %139 = vector.load %arg3[%c23, %c0_118, %c0_119] : memref<25x16x128xf32, #tpu.memory_space<vmem>>, vector<1x16x128xf32>
    %140 = vector.shape_cast %139 : vector<1x16x128xf32> to vector<16x128xf32>
    %cst_120 = arith.constant dense<0.000000e+00> : vector<832x128xf32>
    %141 = tpu.matmul %138, %140, %cst_120 {dimension_numbers = #tpu.dot_dimension_numbers<[1], [0], [0], [1], [0, 0, 1, 1], [], []>} : vector<832x16xf32>, vector<16x128xf32>, vector<832x128xf32> -> vector<832x128xf32>
    %142 = arith.addf %136, %141 : vector<832x128xf32>
    %c0_121 = arith.constant 0 : index
    %c1908 = arith.constant 1908 : index
    %c0_122 = arith.constant 0 : index
    %143 = vector.load %arg2[%c0_121, %c1908, %c0_122] : memref<1x2756x16xf32, #tpu.memory_space<vmem>>, vector<1x832x16xf32>
    %144 = vector.shape_cast %143 : vector<1x832x16xf32> to vector<832x16xf32>
    %c24 = arith.constant 24 : index
    %c0_123 = arith.constant 0 : index
    %c0_124 = arith.constant 0 : index
    %145 = vector.load %arg3[%c24, %c0_123, %c0_124] : memref<25x16x128xf32, #tpu.memory_space<vmem>>, vector<1x16x128xf32>
    %146 = vector.shape_cast %145 : vector<1x16x128xf32> to vector<16x128xf32>
    %cst_125 = arith.constant dense<0.000000e+00> : vector<832x128xf32>
    %147 = tpu.matmul %144, %146, %cst_125 {dimension_numbers = #tpu.dot_dimension_numbers<[1], [0], [0], [1], [0, 0, 1, 1], [], []>} : vector<832x16xf32>, vector<16x128xf32>, vector<832x128xf32> -> vector<832x128xf32>
    %148 = arith.addf %142, %147 : vector<832x128xf32>
    %c0_126 = arith.constant 0 : index
    %c0_127 = arith.constant 0 : index
    %c0_128 = arith.constant 0 : index
    %149 = vector.load %arg1[%c0_126, %c0_127, %c0_128] : memref<1x1x128xf32, #tpu.memory_space<vmem>>, vector<1x1x128xf32>
    %150 = vector.shape_cast %149 : vector<1x1x128xf32> to vector<1x128xf32>
    %151 = vector.broadcast %150 : vector<1x128xf32> to vector<832x128xf32>
    %152 = arith.addf %148, %151 : vector<832x128xf32>
    %c0_129 = arith.constant 0 : index
    %c0_130 = arith.constant 0 : index
    %c0_131 = arith.constant 0 : index
    %153 = vector.load %arg4[%c0_129, %c0_130, %c0_131] : memref<1x832x128xf32, #tpu.memory_space<vmem>>, vector<1x832x128xf32>
    %154 = vector.shape_cast %153 : vector<1x832x128xf32> to vector<832x128xf32>
    %155 = vector.shape_cast %152 : vector<832x128xf32> to vector<1x832x128xf32>
    tpu.vector_store %arg4[%c0_129, %c0_130, %c0_131], %155 {strides = array<i32>} : memref<1x832x128xf32, #tpu.memory_space<vmem>>, vector<1x832x128xf32>,
    return
  }
  func.func @transform_0(%arg0: i32) -> (i32, i32, i32) {
    %c0_i32 = arith.constant 0 : i32
    %c0_i32_0 = arith.constant 0 : i32
    %c0_i32_1 = arith.constant 0 : i32
    return %arg0, %c0_i32, %c0_i32_0 : i32, i32, i32
  }
  func.func @transform_1(%arg0: i32) -> (i32, i32, i32) {
    %c0_i32 = arith.constant 0 : i32
    %c0_i32_0 = arith.constant 0 : i32
    %c0_i32_1 = arith.constant 0 : i32
    return %arg0, %c0_i32, %c0_i32_0 : i32, i32, i32
  }
  func.func @transform_2(%arg0: i32) -> (i32, i32, i32) {
    %c0_i32 = arith.constant 0 : i32
    %c0_i32_0 = arith.constant 0 : i32
    %c0_i32_1 = arith.constant 0 : i32
    %c0_i32_2 = arith.constant 0 : i32
    return %c0_i32, %c0_i32_0, %c0_i32_1 : i32, i32, i32
  }
  func.func @transform_3(%arg0: i32) -> (i32, i32, i32) {
    %c0_i32 = arith.constant 0 : i32
    %c0_i32_0 = arith.constant 0 : i32
    %c0_i32_1 = arith.constant 0 : i32
    return %arg0, %c0_i32, %c0_i32_0 : i32, i32, i32
  }
}

</mosaic_0001>

<bundles_post_ra>
// kernel: aspp_forward.1
= control target key start
LH: loop header
LB: loop body
LE: loop exit
PB: predicated region body
PF: predicated region fallthrough
CT: control target
= control target key end

     0   :  { %s39900_s12 = smov 0   ;;  %s46143_s0 = inlined_call_operand.vmem [shape: f32[2,1,128], index: 0, kind: input, shape index: {}]   ;;  %s46144_s1 = inlined_call_operand.vmem [shape: f32[2,2756,16], index: 1, kind: input, shape index: {}]   ;;  %s46145_s2 = inlined_call_operand.vmem [shape: f32[25,16,128], index: 2, kind: input, shape index: {}]   ;;  %s46146_s3 = inlined_call_operand.vmem [shape: f32[2,832,128], index: 3, kind: output, shape index: {}]  }
   0x1 LB: > { %s27956_s13 = sadd.s32 4294967295, %s39878_s12   ;;  %p27960_p0 = scmp.ge.s32.totalorder %s39878_s12, 1  ;;  %s39878_s12 = sphi %s39900_s12, %s13_s12  }
   0x2   : > { %p145_p1 = scmp.lt.s32.totalorder %s39878_s12, 3 }
   0x4   : > { %p146_p2 = pnand %p27960_p0, %p145_p1 }
   0x6   : > { %149 = sbr.rel (%p146_p2) target bundleno = 2835 (0xb13), region = 32 }
   0xd   : > { %v27963_v0 = vld [vmem:[%s46145_s2 + $0x10] sm:$0xff]  ;;  %v27964_v1 = vld [vmem:[%s46145_s2 + $0x18] sm:$0xff]  ;;  %v29233_v2 = vld [vmem:[%s46145_s2 + $0xc0] sm:$0xff]  ;;  %p172_p3 = scmp.lt.s32.totalorder %s27956_s13, 1  ;;  %vm398_vm0 = vcmask 130048  }
   0xe   : > { %v37264_v3 = vpack.c.bf16 %v27964_v1, %v27963_v0  ;;  %v29234_v4 = vld [vmem:[%s46145_s2 + $0xc8] sm:$0xff]  ;;  %v289_v5 = vld [vmem:[%s46145_s2] sm:$0xff]  ;;  %v29339_v9 = vld [vmem:[%s46145_s2 + $0xd0] sm:$0xff] }
   0xf   : > { %v290_v6 = vld [vmem:[%s46145_s2 + $0x8] sm:$0xff]  ;;  %v39926_v7 = vpack.c.bf16 %v29234_v4, %v29233_v2  ;;  %s46215_s13 = smov (!%p172_p3, %s27956_s13), 1  ;;  %v29340_v10 = vld [vmem:[%s46145_s2 + $0xd8] sm:$0xff]  ;;  %v29445_v12 = vld [vmem:[%s46145_s2 + $0xe0] sm:$0xff] }
  0x10   : > { %v37268_v8 = vpack.c.bf16 %v290_v6, %v289_v5  ;;  %37265 = vmatprep.subr.bf16.mxu1 %v37264_v3  ;;  %v37316_v11 = vpack.c.bf16 %v29340_v10, %v29339_v9  ;;  %s39862_s30 = smul.u32 2760, %s46215_s13  ;;  %v29446_v13 = vld [vmem:[%s46145_s2 + $0xe8] sm:$0xff]  ;;  %s174_s23 = scalar_lea.vmem %s46143_s0, %s46215_s13 }
  0x11   : > { %46170 = vst [vmem:[#allocation2_spill] sm:$0xff] %v39926_v7  ;;  %37313 = vmatprep.subr.bf16.mxu0 %v39926_v7  ;;  %37267 = vmatpush3.bf16.msra.mxu1 %v37264_v3  ;;  %v39958_v20 = vpack.c.bf16 %v29446_v13, %v29445_v12  ;;  %s39863_s24 = smul.u32 832, %s46215_s13 }
  0x12   : > { %37315 = vmatpush3.bf16.msra.mxu0 %v39926_v7  ;;  %37269 = vmatprep.subr.bf16.mxu1 %v37268_v8  ;;  %s39948_s10 = scalar_lea.vmem %s46144_s1, %s39862_s30 }
  0x13   : > { %37317 = vmatprep.subr.bf16.mxu0 %v37316_v11  ;;  %v291_v14 = vld [vmem:[%s39948_s10 + $0x12] sm:$0xff]  ;;  %v13273_v15 = vld [vmem:[%s39948_s10 + $0x3ba] sm:$0xff]  ;;  %v13274_v17 = vld [vmem:[%s39948_s10 + $0x3c2] sm:$0xff]  ;;  %s45879_s26 = scalar_lea.vmem %s46146_s3, %s39863_s24 }
  0x14   : > { %v292_v16 = vld [vmem:[%s39948_s10 + $0x1a] sm:$0xff]  ;;  %33268 = vmatprep.mubr.msk.f32.mxu1 %vm398_vm0, %v291_v14  ;;  %35188 = vmatprep.mubr.msk.f32.mxu0 %vm398_vm0, %v13273_v15  ;;  %v293_v18 = vld [vmem:[%s39948_s10 + $0x22] sm:$0xff]  ;;  %v13275_v19 = vld [vmem:[%s39948_s10 + $0x3ca] sm:$0xff] }
  0x15   : > { %33269 = vmatmul.mubr.msk.f32.vlgmr.msra.gmra.mrb[0].mxu1 %vm398_vm0, %v292_v16  ;;  %35189 = vmatmul.mubr.msk.f32.vlgmr.msra.gmra.mrb[0].mxu0 %vm398_vm0, %v13274_v17  ;;  %v294_v21 = vld [vmem:[%s39948_s10 + $0x2a] sm:$0xff]  ;;  %v13276_v22 = vld [vmem:[%s39948_s10 + $0x3d2] sm:$0xff]  ;;  %v13277_v24 = vld [vmem:[%s39948_s10 + $0x3da] sm:$0xff] }
  0x16   : > { %37271 = vmatpush3.bf16.msra.mxu1 %v37268_v8  ;;  %37319 = vmatpush3.bf16.msra.mxu0 %v37316_v11  ;;  %v295_v23 = vld [vmem:[%s39948_s10 + $0x32] sm:$0xff]  ;;  %v296_v25 = vld [vmem:[%s39948_s10 + $0x3a] sm:$0xff]  ;;  %v13278_v26 = vld [vmem:[%s39948_s10 + $0x3e2] sm:$0xff] }
  0x17   : > { %33271 = vmatprep.mubr.msk.f32.mxu1 %vm398_vm0, %v293_v18  ;;  %35191 = vmatprep.mubr.msk.f32.mxu0 %vm398_vm0, %v13275_v19  ;;  %v297_v27 = vld [vmem:[%s39948_s10 + $0x42] sm:$0xff]  ;;  %v13279_v28 = vld [vmem:[%s39948_s10 + $0x3ea] sm:$0xff]  ;;  %v13280_v30 = vld [vmem:[%s39948_s10 + $0x3f2] sm:$0xff] }
  0x18   : > { %37321 = vmatprep.subr.bf16.mxu0 %v39958_v20  ;;  %v298_v29 = vld [vmem:[%s39948_s10 + $0x4a] sm:$0xff]  ;;  %v299_v31 = vld [vmem:[%s39948_s10 + $0x52] sm:$0xff]  ;;  %v13281_v32 = vld [vmem:[%s39948_s10 + $0x3fa] sm:$0xff] }
  0x19   : > { %33272 = vmatmul.mubr.msk.f32.gmra.mrb[2].mxu1 %vm398_vm0, %v294_v21  ;;  %35192 = vmatmul.mubr.msk.f32.gmra.mrb[2].mxu0 %vm398_vm0, %v13276_v22  ;;  %v300_v33 = vld [vmem:[%s39948_s10 + $0x5a] sm:$0xff]  ;;  %v13282_v34 = vld [vmem:[%s39948_s10 + $0x402] sm:$0xff]  ;;  %v13283_v36 = vld [vmem:[%s39948_s10 + $0x40a] sm:$0xff] }
  0x1a   : > { %33274 = vmatprep.mubr.msk.f32.mxu1 %vm398_vm0, %v295_v23  ;;  %35194 = vmatprep.mubr.msk.f32.mxu0 %vm398_vm0, %v13277_v24  ;;  %v301_v35 = vld [vmem:[%s39948_s10 + $0x62] sm:$0xff]  ;;  %v302_v37 = vld [vmem:[%s39948_s10 + $0x6a] sm:$0xff]  ;;  %v13284_v38 = vld [vmem:[%s39948_s10 + $0x412] sm:$0xff] }
  0x1b   : > { %v303_v39 = vld [vmem:[%s39948_s10 + $0x72] sm:$0xff]  ;;  %v13285_v40 = vld [vmem:[%s39948_s10 + $0x41a] sm:$0xff]  ;;  %v13286_v42 = vld [vmem:[%s39948_s10 + $0x422] sm:$0xff] }
  0x1c   : > { %v304_v41 = vld [vmem:[%s39948_s10 + $0x7a] sm:$0xff]  ;;  %v305_v43 = vld [vmem:[%s39948_s10 + $0x82] sm:$0xff]  ;;  %v13287_v44 = vld [vmem:[%s39948_s10 + $0x42a] sm:$0xff] }
  0x1d   : > { %33275 = vmatmul.mubr.msk.f32.gmra.mrb[4].mxu1 %vm398_vm0, %v296_v25  ;;  %35195 = vmatmul.mubr.msk.f32.gmra.mrb[4].mxu0 %vm398_vm0, %v13278_v26  ;;  %v306_v45 = vld [vmem:[%s39948_s10 + $0x8a] sm:$0xff]  ;;  %v13288_v46 = vld [vmem:[%s39948_s10 + $0x432] sm:$0xff]  ;;  %v13289_v48 = vld [vmem:[%s39948_s10 + $0x43a] sm:$0xff] }
  0x1e   : > { %33277 = vmatprep.mubr.msk.f32.mxu1 %vm398_vm0, %v297_v27  ;;  %35197 = vmatprep.mubr.msk.f32.mxu0 %vm398_vm0, %v13279_v28  ;;  %v307_v47 = vld [vmem:[%s39948_s10 + $0x92] sm:$0xff]  ;;  %v308_v49 = vld [vmem:[%s39948_s10 + $0x9a] sm:$0xff]  ;;  %v13290_v50 = vld [vmem:[%s39948_s10 + $0x442] sm:$0xff] }
  0x1f   : > { %v309_v51 = vld [vmem:[%s39948_s10 + $0xa2] sm:$0xff]  ;;  %v13291_v52 = vld [vmem:[%s39948_s10 + $0x44a] sm:$0xff]  ;;  %v13292_v54 = vld [vmem:[%s39948_s10 + $0x452] sm:$0xff] }
  0x20   : > { %v310_v53 = vld [vmem:[%s39948_s10 + $0xaa] sm:$0xff]  ;;  %v311_v55 = vld [vmem:[%s39948_s10 + $0xb2] sm:$0xff]  ;;  %v13293_v56 = vld [vmem:[%s39948_s10 + $0x45a] sm:$0xff] }
  0x21   : > { %33278 = vmatmul.mubr.msk.f32.gmra.mrb[6].mxu1 %vm398_vm0, %v298_v29  ;;  %35198 = vmatmul.mubr.msk.f32.gmra.mrb[6].mxu0 %vm398_vm0, %v13280_v30  ;;  %v312_v57 = vld [vmem:[%s39948_s10 + $0xba] sm:$0xff]  ;;  %v13294_v58 = vld [vmem:[%s39948_s10 + $0x462] sm:$0xff]  ;;  %v13295_v60 = vld [vmem:[%s39948_s10 + $0x46a] sm:$0xff] }
  0x22   : > { %33280 = vmatprep.mubr.msk.f32.mxu1 %vm398_vm0, %v299_v31  ;;  %35200 = vmatprep.mubr.msk.f32.mxu0 %vm398_vm0, %v13281_v32  ;;  %v313_v59 = vld [vmem:[%s39948_s10 + $0xc2] sm:$0xff]  ;;  %v314_v61 = vld [vmem:[%s39948_s10 + $0xca] sm:$0xff]  ;;  %v13296_v62 = vld [vmem:[%s39948_s10 + $0x472] sm:$0xff] }
  0x23   : > { %v315_v63 = vld [vmem:[%s39948_s10 + $0xd2] sm:$0xff]  ;;  %v13297_v0 = vld [vmem:[%s39948_s10 + $0x47a] sm:$0xff]  ;;  %v13298_v2 = vld [vmem:[%s39948_s10 + $0x482] sm:$0xff] }
  0x24   : > { %v316_v1 = vld [vmem:[%s39948_s10 + $0xda] sm:$0xff]  ;;  %v317_v3 = vld [vmem:[%s39948_s10 + $0xe2] sm:$0xff]  ;;  %v13299_v4 = vld [vmem:[%s39948_s10 + $0x48a] sm:$0xff] }
  0x25   : > { %33281 = vmatmul.mubr.msk.f32.gmra.mrb[8].mxu1 %vm398_vm0, %v300_v33  ;;  %35201 = vmatmul.mubr.msk.f32.gmra.mrb[8].mxu0 %vm398_vm0, %v13282_v34  ;;  %v318_v5 = vld [vmem:[%s39948_s10 + $0xea] sm:$0xff]  ;;  %v13300_v6 = vld [vmem:[%s39948_s10 + $0x492] sm:$0xff]  ;;  %v13301_v9 = vld [vmem:[%s39948_s10 + $0x49a] sm:$0xff] }
  0x26   : > { %33283 = vmatprep.mubr.msk.f32.mxu1 %vm398_vm0, %v301_v35  ;;  %35203 = vmatprep.mubr.msk.f32.mxu0 %vm398_vm0, %v13283_v36  ;;  %v319_v8 = vld [vmem:[%s39948_s10 + $0xf2] sm:$0xff]  ;;  %v320_v10 = vld [vmem:[%s39948_s10 + $0xfa] sm:$0xff]  ;;  %v13302_v11 = vld [vmem:[%s39948_s10 + $0x4a2] sm:$0xff] }
  0x27   : > { %v321_v12 = vld [vmem:[%s39948_s10 + $0x102] sm:$0xff]  ;;  %v13303_v13 = vld [vmem:[%s39948_s10 + $0x4aa] sm:$0xff]  ;;  %v13304_v15 = vld [vmem:[%s39948_s10 + $0x4b2] sm:$0xff] }
  0x28   : > { %v322_v14 = vld [vmem:[%s39948_s10 + $0x10a] sm:$0xff]  ;;  %v323_v16 = vld [vmem:[%s39948_s10 + $0x112] sm:$0xff]  ;;  %v13305_v17 = vld [vmem:[%s39948_s10 + $0x4ba] sm:$0xff] }
  0x29   : > { %33284 = vmatmul.mubr.msk.f32.gmra.mrb[10].mxu1 %vm398_vm0, %v302_v37  ;;  %35204 = vmatmul.mubr.msk.f32.gmra.mrb[10].mxu0 %vm398_vm0, %v13284_v38  ;;  %v324_v18 = vld [vmem:[%s39948_s10 + $0x11a] sm:$0xff]  ;;  %v13306_v19 = vld [vmem:[%s39948_s10 + $0x4c2] sm:$0xff]  ;;  %v13307_v22 = vld [vmem:[%s39948_s10 + $0x4ca] sm:$0xff] }
  0x2a   : > { %33286 = vmatprep.mubr.msk.f32.mxu1 %vm398_vm0, %v303_v39  ;;  %35206 = vmatprep.mubr.msk.f32.mxu0 %vm398_vm0, %v13285_v40  ;;  %v325_v21 = vld [vmem:[%s39948_s10 + $0x122] sm:$0xff]  ;;  %v326_v23 = vld [vmem:[%s39948_s10 + $0x12a] sm:$0xff]  ;;  %v13308_v24 = vld [vmem:[%s39948_s10 + $0x4d2] sm:$0xff] }
  0x2b   : > { %v327_v25 = vld [vmem:[%s39948_s10 + $0x132] sm:$0xff]  ;;  %v13309_v26 = vld [vmem:[%s39948_s10 + $0x4da] sm:$0xff]  ;;  %v13310_v28 = vld [vmem:[%s39948_s10 + $0x4e2] sm:$0xff] }
  0x2c   : > { %v328_v27 = vld [vmem:[%s39948_s10 + $0x13a] sm:$0xff]  ;;  %v329_v29 = vld [vmem:[%s39948_s10 + $0x142] sm:$0xff]  ;;  %v13311_v30 = vld [vmem:[%s39948_s10 + $0x4ea] sm:$0xff] }
  0x2d   : > { %33287 = vmatmul.mubr.msk.f32.gmra.mrb[12].mxu1 %vm398_vm0, %v304_v41  ;;  %35207 = vmatmul.mubr.msk.f32.gmra.mrb[12].mxu0 %vm398_vm0, %v13286_v42  ;;  %v330_v31 = vld [vmem:[%s39948_s10 + $0x14a] sm:$0xff]  ;;  %v13312_v32 = vld [vmem:[%s39948_s10 + $0x4f2] sm:$0xff]  ;;  %v13313_v34 = vld [vmem:[%s39948_s10 + $0x4fa] sm:$0xff] }
  0x2e   : > { %33289 = vmatprep.mubr.msk.f32.mxu1 %vm398_vm0, %v305_v43  ;;  %35209 = vmatprep.mubr.msk.f32.mxu0 %vm398_vm0, %v13287_v44  ;;  %v331_v33 = vld [vmem:[%s39948_s10 + $0x152] sm:$0xff]  ;;  %v332_v35 = vld [vmem:[%s39948_s10 + $0x15a] sm:$0xff]  ;;  %v13314_v36 = vld [vmem:[%s39948_s10 + $0x502] sm:$0xff] }
  0x2f   : > { %v28173_v37 = vld [vmem:[%s46145_s2 + $0x20] sm:$0xff]  ;;  %v28174_v38 = vld [vmem:[%s46145_s2 + $0x28] sm:$0xff]  ;;  %v13316_v43 = vld [vmem:[%s39948_s10 + $0x512] sm:$0xff] }
  0x30   : > { %v333_v39 = vld [vmem:[%s39948_s10 + $0x162] sm:$0xff]  ;;  %v13315_v40 = vld [vmem:[%s39948_s10 + $0x50a] sm:$0xff]  ;;  %v40127_v41 = vpack.c.bf16 %v28174_v38, %v28173_v37  ;;  %v335_v44 = vld [vmem:[%s39948_s10 + $0x172] sm:$0xff] }
  0x31   : > { %33290 = vmatmul.mubr.msk.f32.gmra.mrb[14].mxu1 %vm398_vm0, %v306_v45  ;;  %35210 = vmatmul.mubr.msk.f32.gmra.mrb[14].mxu0 %vm398_vm0, %v13288_v46  ;;  %v334_v42 = vld [vmem:[%s39948_s10 + $0x16a] sm:$0xff]  ;;  %v13317_v45 = vld [vmem:[%s39948_s10 + $0x51a] sm:$0xff]  ;;  %v363_v37 = vld [vmem:[%s39948_s10 + $0x252] sm:$0xff] }
  0x32   : > { %33292 = vmatprep.mubr.msk.f32.mxu1 %vm398_vm0, %v307_v47  ;;  %35212 = vmatprep.mubr.msk.f32.mxu0 %vm398_vm0, %v13289_v48  ;;  %v336_v46 = vld [vmem:[%s39948_s10 + $0x17a] sm:$0xff]  ;;  %v13318_v47 = vld [vmem:[%s39948_s10 + $0x522] sm:$0xff]  ;;  %v3343_v7 = vld [vmem:[%s39948_s10 + $0x28e] sm:$0xff] }
  0x33   : > { %37273 = vmatprep.subr.bf16.mxu1 %v40127_v41  ;;  %v337_v48 = vld [vmem:[%s39948_s10 + $0x182] sm:$0xff] }
  0x34   : > { %v14401_v38 = vld [vmem:[%s39948_s10 + $0x460] sm:$0xff] }
  0x35   : > { %33293 = vmatmul.mubr.msk.f32.gmra.mrb[16].mxu1 %vm398_vm0, %v308_v49  ;;  %35213 = vmatmul.mubr.msk.f32.gmra.mrb[16].mxu0 %vm398_vm0, %v13290_v50  ;;  %v13319_v49 = vld [vmem:[%s39948_s10 + $0x52a] sm:$0xff] }
  0x36   : > { %33295 = vmatprep.mubr.msk.f32.mxu1 %vm398_vm0, %v309_v51  ;;  %35215 = vmatprep.mubr.msk.f32.mxu0 %vm398_vm0, %v13291_v52  ;;  %v338_v50 = vld [vmem:[%s39948_s10 + $0x18a] sm:$0xff]  ;;  %v13320_v51 = vld [vmem:[%s39948_s10 + $0x532] sm:$0xff] }
  0x37   : > { %v339_v52 = vld [vmem:[%s39948_s10 + $0x192] sm:$0xff] }
  0x39   : > { %33296 = vmatmul.mubr.msk.f32.gmra.mrb[18].mxu1 %vm398_vm0, %v310_v53  ;;  %35216 = vmatmul.mubr.msk.f32.gmra.mrb[18].mxu0 %vm398_vm0, %v13292_v54  ;;  %v13321_v53 = vld [vmem:[%s39948_s10 + $0x53a] sm:$0xff] }
  0x3a   : > { %33298 = vmatprep.mubr.msk.f32.mxu1 %vm398_vm0, %v311_v55  ;;  %35218 = vmatprep.mubr.msk.f32.mxu0 %vm398_vm0, %v13293_v56  ;;  %v340_v54 = vld [vmem:[%s39948_s10 + $0x19a] sm:$0xff]  ;;  %v13322_v55 = vld [vmem:[%s39948_s10 + $0x542] sm:$0xff] }
  0x3b   : > { %v341_v56 = vld [vmem:[%s39948_s10 + $0x1a2] sm:$0xff] }
  0x3d   : > { %33299 = vmatmul.mubr.msk.f32.gmra.mrb[20].mxu1 %vm398_vm0, %v312_v57  ;;  %35219 = vmatmul.mubr.msk.f32.gmra.mrb[20].mxu0 %vm398_vm0, %v13294_v58  ;;  %v13323_v57 = vld [vmem:[%s39948_s10 + $0x54a] sm:$0xff] }
  0x3e   : > { %33301 = vmatprep.mubr.msk.f32.mxu1 %vm398_vm0, %v313_v59  ;;  %35221 = vmatprep.mubr.msk.f32.mxu0 %vm398_vm0, %v13295_v60  ;;  %v342_v58 = vld [vmem:[%s39948_s10 + $0x1aa] sm:$0xff]  ;;  %v13324_v59 = vld [vmem:[%s39948_s10 + $0x552] sm:$0xff] }
  0x3f   : > { %v343_v60 = vld [vmem:[%s39948_s10 + $0x1b2] sm:$0xff] }
  0x41   : > { %33302 = vmatmul.mubr.msk.f32.gmra.mrb[22].mxu1 %vm398_vm0, %v314_v61  ;;  %35222 = vmatmul.mubr.msk.f32.gmra.mrb[22].mxu0 %vm398_vm0, %v13296_v62  ;;  %v14381_v61 = vld [vmem:[%s39948_s10 + $0x3c0] sm:$0xff] }
  0x42   : > { %33304 = vmatprep.mubr.msk.f32.mxu1 %vm398_vm0, %v315_v63  ;;  %35224 = vmatprep.mubr.msk.f32.mxu0 %vm398_vm0, %v13297_v0  ;;  %v344_v62 = vld [vmem:[%s39948_s10 + $0x1ba] sm:$0xff]  ;;  %v14382_v63 = vld [vmem:[%s39948_s10 + $0x3c8] sm:$0xff] }
  0x43   : > { %v345_v0 = vld [vmem:[%s39948_s10 + $0x1c2] sm:$0xff] }
  0x45   : > { %33305 = vmatmul.mubr.msk.f32.gmra.mrb[24].mxu1 %vm398_vm0, %v316_v1  ;;  %35225 = vmatmul.mubr.msk.f32.gmra.mrb[24].mxu0 %vm398_vm0, %v13298_v2  ;;  %v14383_v1 = vld [vmem:[%s39948_s10 + $0x3d0] sm:$0xff] }
  0x46   : > { %33307 = vmatprep.mubr.msk.f32.mxu1 %vm398_vm0, %v317_v3  ;;  %35227 = vmatprep.mubr.msk.f32.mxu0 %vm398_vm0, %v13299_v4  ;;  %v346_v2 = vld [vmem:[%s39948_s10 + $0x1ca] sm:$0xff]  ;;  %v14384_v3 = vld [vmem:[%s39948_s10 + $0x3d8] sm:$0xff] }
  0x47   : > { %v347_v4 = vld [vmem:[%s39948_s10 + $0x1d2] sm:$0xff] }
  0x49   : > { %33308 = vmatmul.mubr.msk.f32.gmra.mrb[26].mxu1 %vm398_vm0, %v318_v5  ;;  %35228 = vmatmul.mubr.msk.f32.gmra.mrb[26].mxu0 %vm398_vm0, %v13300_v6  ;;  %v14385_v5 = vld [vmem:[%s39948_s10 + $0x3e0] sm:$0xff]  ;;  %v14386_v6 = vld [vmem:[%s39948_s10 + $0x3e8] sm:$0xff] }
  0x4a   : > { %33310 = vmatprep.mubr.msk.f32.mxu1 %vm398_vm0, %v319_v8  ;;  %35230 = vmatprep.mubr.msk.f32.mxu0 %vm398_vm0, %v13301_v9  ;;  %v349_v8 = vld [vmem:[%s39948_s10 + $0x1e2] sm:$0xff]  ;;  %v14387_v9 = vld [vmem:[%s39948_s10 + $0x3f0] sm:$0xff] }
  0x4d   : > { %33311 = vmatmul.mubr.msk.f32.gmra.mrb[28].mxu1 %vm398_vm0, %v320_v10  ;;  %35231 = vmatmul.mubr.msk.f32.gmra.mrb[28].mxu0 %vm398_vm0, %v13302_v11  ;;  %v350_v10 = vld [vmem:[%s39948_s10 + $0x1ea] sm:$0xff]  ;;  %v14388_v11 = vld [vmem:[%s39948_s10 + $0x3f8] sm:$0xff] }
  0x4e   : > { %33313 = vmatprep.mubr.msk.f32.mxu1 %vm398_vm0, %v321_v12  ;;  %35233 = vmatprep.mubr.msk.f32.mxu0 %vm398_vm0, %v13303_v13  ;;  %v351_v12 = vld [vmem:[%s39948_s10 + $0x1f2] sm:$0xff]  ;;  %v14389_v13 = vld [vmem:[%s39948_s10 + $0x400] sm:$0xff] }
  0x51   : > { %33314 = vmatmul.mubr.msk.f32.gmra.mrb[30].mxu1 %vm398_vm0, %v322_v14  ;;  %35234 = vmatmul.mubr.msk.f32.gmra.mrb[30].mxu0 %vm398_vm0, %v13304_v15  ;;  %v352_v14 = vld [vmem:[%s39948_s10 + $0x1fa] sm:$0xff]  ;;  %v14390_v15 = vld [vmem:[%s39948_s10 + $0x408] sm:$0xff] }
  0x52   : > { %33316 = vmatprep.mubr.msk.f32.mxu1 %vm398_vm0, %v323_v16  ;;  %35236 = vmatprep.mubr.msk.f32.mxu0 %vm398_vm0, %v13305_v17  ;;  %v353_v16 = vld [vmem:[%s39948_s10 + $0x202] sm:$0xff]  ;;  %v14391_v17 = vld [vmem:[%s39948_s10 + $0x410] sm:$0xff] }
  0x55   : > { %33317 = vmatmul.mubr.msk.f32.gmra.mrb[32].mxu1 %vm398_vm0, %v324_v18  ;;  %35237 = vmatmul.mubr.msk.f32.gmra.mrb[32].mxu0 %vm398_vm0, %v13306_v19  ;;  %v354_v18 = vld [vmem:[%s39948_s10 + $0x20a] sm:$0xff]  ;;  %v14392_v19 = vld [vmem:[%s39948_s10 + $0x418] sm:$0xff] }
  0x56   : > { %33319 = vmatprep.mubr.msk.f32.mxu1 %vm398_vm0, %v325_v21  ;;  %35239 = vmatprep.mubr.msk.f32.mxu0 %vm398_vm0, %v13307_v22  ;;  %v355_v21 = vld [vmem:[%s39948_s10 + $0x212] sm:$0xff]  ;;  %v14393_v22 = vld [vmem:[%s39948_s10 + $0x420] sm:$0xff] }
  0x59   : > { %33320 = vmatmul.mubr.msk.f32.gmra.mrb[34].mxu1 %vm398_vm0, %v326_v23  ;;  %35240 = vmatmul.mubr.msk.f32.gmra.mrb[34].mxu0 %vm398_vm0, %v13308_v24  ;;  %v356_v23 = vld [vmem:[%s39948_s10 + $0x21a] sm:$0xff]  ;;  %v14394_v24 = vld [vmem:[%s39948_s10 + $0x428] sm:$0xff] }
  0x5a   : > { %33322 = vmatprep.mubr.msk.f32.mxu1 %vm398_vm0, %v327_v25  ;;  %35242 = vmatprep.mubr.msk.f32.mxu0 %vm398_vm0, %v13309_v26  ;;  %v357_v25 = vld [vmem:[%s39948_s10 + $0x222] sm:$0xff]  ;;  %v14395_v26 = vld [vmem:[%s39948_s10 + $0x430] sm:$0xff] }
  0x5d   : > { %33323 = vmatmul.mubr.msk.f32.gmra.mrb[36].mxu1 %vm398_vm0, %v328_v27  ;;  %35243 = vmatmul.mubr.msk.f32.gmra.mrb[36].mxu0 %vm398_vm0, %v13310_v28  ;;  %v358_v27 = vld [vmem:[%s39948_s10 + $0x22a] sm:$0xff]  ;;  %v14396_v28 = vld [vmem:[%s39948_s10 + $0x438] sm:$0xff] }
  0x5e   : > { %33325 = vmatprep.mubr.msk.f32.mxu1 %vm398_vm0, %v329_v29  ;;  %35245 = vmatprep.mubr.msk.f32.mxu0 %vm398_vm0, %v13311_v30  ;;  %v359_v29 = vld [vmem:[%s39948_s10 + $0x232] sm:$0xff]  ;;  %v14397_v30 = vld [vmem:[%s39948_s10 + $0x440] sm:$0xff] }
  0x61   : > { %33326 = vmatmul.mubr.msk.f32.gmra.mrb[38].mxu1 %vm398_vm0, %v330_v31  ;;  %35246 = vmatmul.mubr.msk.f32.gmra.mrb[38].mxu0 %vm398_vm0, %v13312_v32  ;;  %v360_v31 = vld [vmem:[%s39948_s10 + $0x23a] sm:$0xff]  ;;  %v14398_v32 = vld [vmem:[%s39948_s10 + $0x448] sm:$0xff] }
  0x62   : > { %33328 = vmatprep.mubr.msk.f32.mxu1 %vm398_vm0, %v331_v33  ;;  %35248 = vmatprep.mubr.msk.f32.mxu0 %vm398_vm0, %v13313_v34  ;;  %v361_v33 = vld [vmem:[%s39948_s10 + $0x242] sm:$0xff]  ;;  %v14399_v34 = vld [vmem:[%s39948_s10 + $0x450] sm:$0xff] }
  0x65   : > { %33329 = vmatmul.mubr.msk.f32.gmra.mrb[40].mxu1 %vm398_vm0, %v332_v35  ;;  %35249 = vmatmul.mubr.msk.f32.gmra.mrb[40].mxu0 %vm398_vm0, %v13314_v36  ;;  %v362_v35 = vld [vmem:[%s39948_s10 + $0x24a] sm:$0xff]  ;;  %v14400_v36 = vld [vmem:[%s39948_s10 + $0x458] sm:$0xff] }
  0x66   : > { %33331 = vmatprep.mubr.msk.f32.mxu1 %vm398_vm0, %v333_v39  ;;  %35251 = vmatprep.mubr.msk.f32.mxu0 %vm398_vm0, %v13315_v40  ;;  %v364_v39 = vld [vmem:[%s39948_s10 + $0x25a] sm:$0xff]  ;;  %v14402_v40 = vld [vmem:[%s39948_s10 + $0x468] sm:$0xff] }
  0x69   : > { %33332 = vmatmul.mubr.msk.f32.gmra.mrb[42].mxu1 %vm398_vm0, %v334_v42  ;;  %35252 = vmatmul.mubr.msk.f32.gmra.mrb[42].mxu0 %vm398_vm0, %v13316_v43  ;;  %v365_v42 = vld [vmem:[%s39948_s10 + $0x262] sm:$0xff]  ;;  %v14403_v43 = vld [vmem:[%s39948_s10 + $0x470] sm:$0xff] }
  0x6a   : > { %33334 = vmatprep.mubr.msk.f32.mxu1 %vm398_vm0, %v335_v44  ;;  %35254 = vmatprep.mubr.msk.f32.mxu0 %vm398_vm0, %v13317_v45  ;;  %v366_v44 = vld [vmem:[%s39948_s10 + $0x26a] sm:$0xff]  ;;  %v14404_v45 = vld [vmem:[%s39948_s10 + $0x478] sm:$0xff] }
  0x6d   : > { %33335 = vmatmul.mubr.msk.f32.gmra.mrb[44].mxu1 %vm398_vm0, %v336_v46  ;;  %35255 = vmatmul.mubr.msk.f32.gmra.mrb[44].mxu0 %vm398_vm0, %v13318_v47  ;;  %v367_v46 = vld [vmem:[%s39948_s10 + $0x272] sm:$0xff]  ;;  %v14405_v47 = vld [vmem:[%s39948_s10 + $0x480] sm:$0xff] }
  0x6e   : > { %33337 = vmatprep.mubr.msk.f32.mxu1 %vm398_vm0, %v337_v48  ;;  %35257 = vmatprep.mubr.msk.f32.mxu0 %vm398_vm0, %v13319_v49  ;;  %v368_v48 = vld [vmem:[%s39948_s10 + $0x27a] sm:$0xff]  ;;  %v14406_v49 = vld [vmem:[%s39948_s10 + $0x488] sm:$0xff] }
  0x71   : > { %33338 = vmatmul.mubr.msk.f32.gmra.mrb[46].mxu1 %vm398_vm0, %v338_v50  ;;  %35258 = vmatmul.mubr.msk.f32.gmra.mrb[46].mxu0 %vm398_vm0, %v13320_v51  ;;  %v369_v50 = vld [vmem:[%s39948_s10 + $0x282] sm:$0xff]  ;;  %v14407_v51 = vld [vmem:[%s39948_s10 + $0x490] sm:$0xff] }
  0x72   : > { %33340 = vmatprep.mubr.msk.f32.mxu1 %vm398_vm0, %v339_v52  ;;  %35260 = vmatprep.mubr.msk.f32.mxu0 %vm398_vm0, %v13321_v53  ;;  %v370_v52 = vld [vmem:[%s39948_s10 + $0x28a] sm:$0xff]  ;;  %v14408_v53 = vld [vmem:[%s39948_s10 + $0x498] sm:$0xff] }
  0x75   : > { %33341 = vmatmul.mubr.msk.f32.gmra.mrb[48].mxu1 %vm398_vm0, %v340_v54  ;;  %35261 = vmatmul.mubr.msk.f32.gmra.mrb[48].mxu0 %vm398_vm0, %v13322_v55  ;;  %v371_v54 = vld [vmem:[%s39948_s10 + $0x292] sm:$0xff]  ;;  %v14409_v55 = vld [vmem:[%s39948_s10 + $0x4a0] sm:$0xff] }
  0x76   : > { %33343 = vmatprep.mubr.msk.f32.mxu1 %vm398_vm0, %v341_v56  ;;  %35263 = vmatprep.mubr.msk.f32.mxu0 %vm398_vm0, %v13323_v57  ;;  %v372_v56 = vld [vmem:[%s39948_s10 + $0x29a] sm:$0xff]  ;;  %v14410_v57 = vld [vmem:[%s39948_s10 + $0x4a8] sm:$0xff] }
  0x79   : > { %33344 = vmatmul.mubr.msk.f32.gmra.mrb[50].mxu1 %vm398_vm0, %v342_v58  ;;  %35264 = vmatmul.mubr.msk.f32.gmra.mrb[50].mxu0 %vm398_vm0, %v13324_v59  ;;  %v373_v58 = vld [vmem:[%s39948_s10 + $0x2a2] sm:$0xff]  ;;  %v14411_v59 = vld [vmem:[%s39948_s10 + $0x4b0] sm:$0xff] }
  0x7a   : > { %33346 = vmatprep.mubr.msk.f32.mxu1 %vm398_vm0, %v343_v60  ;;  %35348 = vmatprep.mubr.msk.f32.mxu0 %vm398_vm0, %v14381_v61  ;;  %v374_v60 = vld [vmem:[%s39948_s10 + $0x2aa] sm:$0xff]  ;;  %v14412_v61 = vld [vmem:[%s39948_s10 + $0x4b8] sm:$0xff] }
  0x7d   : > { %33347 = vmatmul.mubr.msk.f32.gmra.mrb[52].mxu1 %vm398_vm0, %v344_v62  ;;  %35349 = vmatmul.mubr.msk.f32.vlgmr.msra.gmra.mrb[0].mxu0 %vm398_vm0, %v14382_v63  ;;  %v375_v62 = vld [vmem:[%s39948_s10 + $0x2b2] sm:$0xff]  ;;  %v14413_v63 = vld [vmem:[%s39948_s10 + $0x4c0] sm:$0xff] }
  0x7e   : > { %37323 = vmatpush3.bf16.msra.mxu0 %v39958_v20  ;;  %33349 = vmatprep.mubr.msk.f32.mxu1 %vm398_vm0, %v345_v0  ;;  %v348_v20 = vld [vmem:[%s39948_s10 + $0x1da] sm:$0xff] }
  0x7f   : > { %35351 = vmatprep.mubr.msk.f32.mxu0 %vm398_vm0, %v14383_v1  ;;  %v376_v0 = vld [vmem:[%s39948_s10 + $0x2ba] sm:$0xff]  ;;  %v14414_v1 = vld [vmem:[%s39948_s10 + $0x4c8] sm:$0xff] }
  0x81   : > { %33350 = vmatmul.mubr.msk.f32.gmra.mrb[54].mxu1 %vm398_vm0, %v346_v2  ;;  %35352 = vmatmul.mubr.msk.f32.gmra.mrb[2].mxu0 %vm398_vm0, %v14384_v3  ;;  %v377_v2 = vld [vmem:[%s39948_s10 + $0x2c2] sm:$0xff]  ;;  %v14415_v3 = vld [vmem:[%s39948_s10 + $0x4d0] sm:$0xff] }
  0x82   : > { %33352 = vmatprep.mubr.msk.f32.mxu1 %vm398_vm0, %v347_v4  ;;  %35354 = vmatprep.mubr.msk.f32.mxu0 %vm398_vm0, %v14385_v5  ;;  %v378_v4 = vld [vmem:[%s39948_s10 + $0x2ca] sm:$0xff]  ;;  %v14416_v5 = vld [vmem:[%s39948_s10 + $0x4d8] sm:$0xff] }
  0x85   : > { %33353 = vmatmul.mubr.msk.f32.gmra.mrb[56].mxu1 %vm398_vm0, %v348_v20  ;;  %35355 = vmatmul.mubr.msk.f32.gmra.mrb[4].mxu0 %vm398_vm0, %v14386_v6  ;;  %v379_v20 = vld [vmem:[%s39948_s10 + $0x2d2] sm:$0xff]  ;;  %v14417_v6 = vld [vmem:[%s39948_s10 + $0x4e0] sm:$0xff] }
  0x86   : > { %33355 = vmatprep.mubr.msk.f32.mxu1 %vm398_vm0, %v349_v8  ;;  %35357 = vmatprep.mubr.msk.f32.mxu0 %vm398_vm0, %v14387_v9  ;;  %v380_v8 = vld [vmem:[%s39948_s10 + $0x2da] sm:$0xff]  ;;  %v14418_v9 = vld [vmem:[%s39948_s10 + $0x4e8] sm:$0xff] }
  0x89   : > { %33356 = vmatmul.mubr.msk.f32.gmra.mrb[58].mxu1 %vm398_vm0, %v350_v10  ;;  %35358 = vmatmul.mubr.msk.f32.gmra.mrb[6].mxu0 %vm398_vm0, %v14388_v11  ;;  %v381_v10 = vld [vmem:[%s39948_s10 + $0x2e2] sm:$0xff]  ;;  %v14419_v11 = vld [vmem:[%s39948_s10 + $0x4f0] sm:$0xff] }
  0x8a   : > { %33358 = vmatprep.mubr.msk.f32.mxu1 %vm398_vm0, %v351_v12  ;;  %35360 = vmatprep.mubr.msk.f32.mxu0 %vm398_vm0, %v14389_v13  ;;  %v382_v12 = vld [vmem:[%s39948_s10 + $0x2ea] sm:$0xff]  ;;  %v14420_v13 = vld [vmem:[%s39948_s10 + $0x4f8] sm:$0xff] }
  0x8d   : > { %33359 = vmatmul.mubr.msk.f32.gmra.mrb[60].mxu1 %vm398_vm0, %v352_v14  ;;  %35361 = vmatmul.mubr.msk.f32.gmra.mrb[8].mxu0 %vm398_vm0, %v14390_v15  ;;  %v383_v14 = vld [vmem:[%s39948_s10 + $0x2f2] sm:$0xff]  ;;  %v14421_v15 = vld [vmem:[%s39948_s10 + $0x500] sm:$0xff] }
  0x8e   : > { %33361 = vmatprep.mubr.msk.f32.mxu1 %vm398_vm0, %v353_v16  ;;  %35363 = vmatprep.mubr.msk.f32.mxu0 %vm398_vm0, %v14391_v17  ;;  %v384_v16 = vld [vmem:[%s39948_s10 + $0x2fa] sm:$0xff]  ;;  %v14422_v17 = vld [vmem:[%s39948_s10 + $0x508] sm:$0xff] }
  0x91   : > { %33362 = vmatmul.mubr.msk.f32.gmra.mrb[62].mxu1 %vm398_vm0, %v354_v18  ;;  %35364 = vmatmul.mubr.msk.f32.gmra.mrb[10].mxu0 %vm398_vm0, %v14392_v19  ;;  %v29551_v18 = vld [vmem:[%s46145_s2 + $0xf0] sm:$0xff]  ;;  %v29552_v19 = vld [vmem:[%s46145_s2 + $0xf8] sm:$0xff] }
  0x92   : > { %33364 = vmatprep.mubr.msk.f32.mxu1 %vm398_vm0, %v355_v21  ;;  %35366 = vmatprep.mubr.msk.f32.mxu0 %vm398_vm0, %v14393_v22  ;;  %v385_v21 = vld [vmem:[%s39948_s10 + $0x302] sm:$0xff]  ;;  %v14423_v22 = vld [vmem:[%s39948_s10 + $0x510] sm:$0xff] }
  0x95   : > { %33365 = vmatmul.mubr.msk.f32.gmra.mrb[64].mxu1 %vm398_vm0, %v356_v23  ;;  %35367 = vmatmul.mubr.msk.f32.gmra.mrb[12].mxu0 %vm398_vm0, %v14394_v24  ;;  %v40345_v23 = vpack.c.bf16 %v29552_v19, %v29551_v18  ;;  %v386_v24 = vld [vmem:[%s39948_s10 + $0x30a] sm:$0xff]  ;;  %v205_v18 = vld [vmem:[%s39948_s10 + $0xa0] sm:$0xff] }
  0x96   : > { %33367 = vmatprep.mubr.msk.f32.mxu1 %vm398_vm0, %v357_v25  ;;  %35369 = vmatprep.mubr.msk.f32.mxu0 %vm398_vm0, %v14395_v26  ;;  %v14424_v25 = vld [vmem:[%s39948_s10 + $0x518] sm:$0xff]  ;;  %v14453_v19 = vld [vmem:[%s39948_s10 + $0x600] sm:$0xff] }
  0x97   : > { %v387_v26 = vld [vmem:[%s39948_s10 + $0x312] sm:$0xff]  ;;  %37325 = vmatprep.subr.bf16.mxu0 %v40345_v23 }
  0x99   : > { %33368 = vmatmul.mubr.msk.f32.gmra.mrb[66].mxu1 %vm398_vm0, %v358_v27  ;;  %35370 = vmatmul.mubr.msk.f32.gmra.mrb[14].mxu0 %vm398_vm0, %v14396_v28  ;;  %v14425_v27 = vld [vmem:[%s39948_s10 + $0x520] sm:$0xff] }
  0x9a   : > { %33370 = vmatprep.mubr.msk.f32.mxu1 %vm398_vm0, %v359_v29  ;;  %35372 = vmatprep.mubr.msk.f32.mxu0 %vm398_vm0, %v14397_v30  ;;  %v388_v28 = vld [vmem:[%s39948_s10 + $0x31a] sm:$0xff]  ;;  %v14426_v29 = vld [vmem:[%s39948_s10 + $0x528] sm:$0xff] }
  0x9b   : > { %v389_v30 = vld [vmem:[%s39948_s10 + $0x322] sm:$0xff] }
  0x9d   : > { %33371 = vmatmul.mubr.msk.f32.gmra.mrb[68].mxu1 %vm398_vm0, %v360_v31  ;;  %35373 = vmatmul.mubr.msk.f32.gmra.mrb[16].mxu0 %vm398_vm0, %v14398_v32  ;;  %v14427_v31 = vld [vmem:[%s39948_s10 + $0x530] sm:$0xff] }
  0x9e   : > { %33373 = vmatprep.mubr.msk.f32.mxu1 %vm398_vm0, %v361_v33  ;;  %35375 = vmatprep.mubr.msk.f32.mxu0 %vm398_vm0, %v14399_v34  ;;  %v390_v32 = vld [vmem:[%s39948_s10 + $0x32a] sm:$0xff]  ;;  %v14428_v33 = vld [vmem:[%s39948_s10 + $0x538] sm:$0xff] }
  0x9f   : > { %v391_v34 = vld [vmem:[%s39948_s10 + $0x332] sm:$0xff] }
  0xa1   : > { %33374 = vmatmul.mubr.msk.f32.gmra.mrb[70].mxu1 %vm398_vm0, %v362_v35  ;;  %35376 = vmatmul.mubr.msk.f32.gmra.mrb[18].mxu0 %vm398_vm0, %v14400_v36  ;;  %v14429_v35 = vld [vmem:[%s39948_s10 + $0x540] sm:$0xff] }
  0xa2   : > { %33376 = vmatprep.mubr.msk.f32.mxu1 %vm398_vm0, %v363_v37  ;;  %35378 = vmatprep.mubr.msk.f32.mxu0 %vm398_vm0, %v14401_v38  ;;  %v392_v36 = vld [vmem:[%s39948_s10 + $0x33a] sm:$0xff]  ;;  %v14430_v37 = vld [vmem:[%s39948_s10 + $0x548] sm:$0xff] }
  0xa3   : > { %v393_v38 = vld [vmem:[%s39948_s10 + $0x342] sm:$0xff] }
  0xa5   : > { %33377 = vmatmul.mubr.msk.f32.gmra.mrb[72].mxu1 %vm398_vm0, %v364_v39  ;;  %35379 = vmatmul.mubr.msk.f32.gmra.mrb[20].mxu0 %vm398_vm0, %v14402_v40  ;;  %v14431_v39 = vld [vmem:[%s39948_s10 + $0x550] sm:$0xff] }
  0xa6   : > { %33379 = vmatprep.mubr.msk.f32.mxu1 %vm398_vm0, %v365_v42  ;;  %35381 = vmatprep.mubr.msk.f32.mxu0 %vm398_vm0, %v14403_v43  ;;  %v394_v40 = vld [vmem:[%s39948_s10 + $0x34a] sm:$0xff]  ;;  %v14432_v42 = vld [vmem:[%s39948_s10 + $0x558] sm:$0xff]  ;;  %v185_v43 = vld [vmem:[%s39948_s10] sm:$0xff] }
  0xa9   : > { %33380 = vmatmul.mubr.msk.f32.gmra.mrb[74].mxu1 %vm398_vm0, %v366_v44  ;;  %35382 = vmatmul.mubr.msk.f32.gmra.mrb[22].mxu0 %vm398_vm0, %v14404_v45  ;;  %v14433_v44 = vld [vmem:[%s39948_s10 + $0x560] sm:$0xff]  ;;  %v186_v45 = vld [vmem:[%s39948_s10 + $0x8] sm:$0xff] }
  0xaa   : > { %33382 = vmatprep.mubr.msk.f32.mxu1 %vm398_vm0, %v367_v46  ;;  %35384 = vmatprep.mubr.msk.f32.mxu0 %vm398_vm0, %v14405_v47  ;;  %v14434_v46 = vld [vmem:[%s39948_s10 + $0x568] sm:$0xff]  ;;  %v187_v47 = vld [vmem:[%s39948_s10 + $0x10] sm:$0xff] }
  0xad   : > { %33383 = vmatmul.mubr.msk.f32.gmra.mrb[76].mxu1 %vm398_vm0, %v368_v48  ;;  %35385 = vmatmul.mubr.msk.f32.gmra.mrb[24].mxu0 %vm398_vm0, %v14406_v49  ;;  %v14435_v48 = vld [vmem:[%s39948_s10 + $0x570] sm:$0xff]  ;;  %v188_v49 = vld [vmem:[%s39948_s10 + $0x18] sm:$0xff] }
  0xae   : > { %33385 = vmatprep.mubr.msk.f32.mxu1 %vm398_vm0, %v369_v50  ;;  %35387 = vmatprep.mubr.msk.f32.mxu0 %vm398_vm0, %v14407_v51  ;;  %v14436_v50 = vld [vmem:[%s39948_s10 + $0x578] sm:$0xff]  ;;  %v189_v51 = vld [vmem:[%s39948_s10 + $0x20] sm:$0xff] }
  0xb1   : > { %33386 = vmatmul.mubr.msk.f32.gmra.mrb[78].mxu1 %vm398_vm0, %v370_v52  ;;  %35388 = vmatmul.mubr.msk.f32.gmra.mrb[26].mxu0 %vm398_vm0, %v14408_v53  ;;  %v14437_v52 = vld [vmem:[%s39948_s10 + $0x580] sm:$0xff]  ;;  %v14438_v53 = vld [vmem:[%s39948_s10 + $0x588] sm:$0xff] }
  0xb2   : > { %33388 = vmatprep.mubr.msk.f32.mxu1 %vm398_vm0, %v371_v54  ;;  %35390 = vmatprep.mubr.msk.f32.mxu0 %vm398_vm0, %v14409_v55  ;;  %v191_v54 = vld [vmem:[%s39948_s10 + $0x30] sm:$0xff] }
  0xb3   : > { %v14439_v55 = vld [vmem:[%s39948_s10 + $0x590] sm:$0xff] }
  0xb5   : > { %33389 = vmatmul.mubr.msk.f32.gmra.mrb[80].mxu1 %vm398_vm0, %v372_v56  ;;  %35391 = vmatmul.mubr.msk.f32.gmra.mrb[28].mxu0 %vm398_vm0, %v14410_v57  ;;  %v192_v56 = vld [vmem:[%s39948_s10 + $0x38] sm:$0xff] }
  0xb6   : > { %33391 = vmatprep.mubr.msk.f32.mxu1 %vm398_vm0, %v373_v58  ;;  %35393 = vmatprep.mubr.msk.f32.mxu0 %vm398_vm0, %v14411_v59  ;;  %v14440_v57 = vld [vmem:[%s39948_s10 + $0x598] sm:$0xff]  ;;  %v193_v58 = vld [vmem:[%s39948_s10 + $0x40] sm:$0xff] }
  0xb7   : > { %v14441_v59 = vld [vmem:[%s39948_s10 + $0x5a0] sm:$0xff] }
  0xb9   : > { %33392 = vmatmul.mubr.msk.f32.gmra.mrb[82].mxu1 %vm398_vm0, %v374_v60  ;;  %35394 = vmatmul.mubr.msk.f32.gmra.mrb[30].mxu0 %vm398_vm0, %v14412_v61  ;;  %v194_v60 = vld [vmem:[%s39948_s10 + $0x48] sm:$0xff] }
  0xba   : > { %33394 = vmatprep.mubr.msk.f32.mxu1 %vm398_vm0, %v375_v62  ;;  %35396 = vmatprep.mubr.msk.f32.mxu0 %vm398_vm0, %v14413_v63  ;;  %v14442_v61 = vld [vmem:[%s39948_s10 + $0x5a8] sm:$0xff]  ;;  %v195_v62 = vld [vmem:[%s39948_s10 + $0x50] sm:$0xff] }
  0xbb   : > { %v14443_v63 = vld [vmem:[%s39948_s10 + $0x5b0] sm:$0xff] }
  0xbd   : > { %33395 = vmatmul.mubr.msk.f32.gmra.mrb[84].mxu1 %vm398_vm0, %v376_v0  ;;  %35397 = vmatmul.mubr.msk.f32.gmra.mrb[32].mxu0 %vm398_vm0, %v14414_v1  ;;  %v196_v0 = vld [vmem:[%s39948_s10 + $0x58] sm:$0xff] }
  0xbe   : > { %33397 = vmatprep.mubr.msk.f32.mxu1 %vm398_vm0, %v377_v2  ;;  %35399 = vmatprep.mubr.msk.f32.mxu0 %vm398_vm0, %v14415_v3  ;;  %v14444_v1 = vld [vmem:[%s39948_s10 + $0x5b8] sm:$0xff]  ;;  %v197_v2 = vld [vmem:[%s39948_s10 + $0x60] sm:$0xff] }
  0xbf   : > { %v14445_v3 = vld [vmem:[%s39948_s10 + $0x5c0] sm:$0xff] }
  0xc1   : > { %33398 = vmatmul.mubr.msk.f32.gmra.mrb[86].mxu1 %vm398_vm0, %v378_v4  ;;  %35400 = vmatmul.mubr.msk.f32.gmra.mrb[34].mxu0 %vm398_vm0, %v14416_v5  ;;  %v198_v4 = vld [vmem:[%s39948_s10 + $0x68] sm:$0xff] }
  0xc2   : > { %33400 = vmatprep.mubr.msk.f32.mxu1 %vm398_vm0, %v379_v20  ;;  %35402 = vmatprep.mubr.msk.f32.mxu0 %vm398_vm0, %v14417_v6  ;;  %v14446_v5 = vld [vmem:[%s39948_s10 + $0x5c8] sm:$0xff]  ;;  %v199_v20 = vld [vmem:[%s39948_s10 + $0x70] sm:$0xff] }
  0xc3   : > { %v14447_v6 = vld [vmem:[%s39948_s10 + $0x5d0] sm:$0xff] }
  0xc5   : > { %33401 = vmatmul.mubr.msk.f32.gmra.mrb[88].mxu1 %vm398_vm0, %v380_v8  ;;  %35403 = vmatmul.mubr.msk.f32.gmra.mrb[36].mxu0 %vm398_vm0, %v14418_v9  ;;  %v200_v8 = vld [vmem:[%s39948_s10 + $0x78] sm:$0xff] }
  0xc6   : > { %33403 = vmatprep.mubr.msk.f32.mxu1 %vm398_vm0, %v381_v10  ;;  %35405 = vmatprep.mubr.msk.f32.mxu0 %vm398_vm0, %v14419_v11  ;;  %v14448_v9 = vld [vmem:[%s39948_s10 + $0x5d8] sm:$0xff]  ;;  %v201_v10 = vld [vmem:[%s39948_s10 + $0x80] sm:$0xff] }
  0xc7   : > { %v14449_v11 = vld [vmem:[%s39948_s10 + $0x5e0] sm:$0xff] }
  0xc9   : > { %33404 = vmatmul.mubr.msk.f32.gmra.mrb[90].mxu1 %vm398_vm0, %v382_v12  ;;  %35406 = vmatmul.mubr.msk.f32.gmra.mrb[38].mxu0 %vm398_vm0, %v14420_v13  ;;  %v202_v12 = vld [vmem:[%s39948_s10 + $0x88] sm:$0xff] }
  0xca   : > { %33406 = vmatprep.mubr.msk.f32.mxu1 %vm398_vm0, %v383_v14  ;;  %35408 = vmatprep.mubr.msk.f32.mxu0 %vm398_vm0, %v14421_v15  ;;  %v14450_v13 = vld [vmem:[%s39948_s10 + $0x5e8] sm:$0xff]  ;;  %v203_v14 = vld [vmem:[%s39948_s10 + $0x90] sm:$0xff] }
  0xcb   : > { %v14451_v15 = vld [vmem:[%s39948_s10 + $0x5f0] sm:$0xff] }
  0xcd   : > { %33407 = vmatmul.mubr.msk.f32.gmra.mrb[92].mxu1 %vm398_vm0, %v384_v16  ;;  %35409 = vmatmul.mubr.msk.f32.gmra.mrb[40].mxu0 %vm398_vm0, %v14422_v17  ;;  %v204_v16 = vld [vmem:[%s39948_s10 + $0x98] sm:$0xff] }
  0xce   : > { %33409 = vmatprep.mubr.msk.f32.mxu1 %vm398_vm0, %v385_v21  ;;  %35411 = vmatprep.mubr.msk.f32.mxu0 %vm398_vm0, %v14423_v22  ;;  %v14452_v17 = vld [vmem:[%s39948_s10 + $0x5f8] sm:$0xff]  ;;  %v206_v21 = vld [vmem:[%s39948_s10 + $0xa8] sm:$0xff] }
  0xcf   : > { %v14454_v22 = vld [vmem:[%s39948_s10 + $0x608] sm:$0xff] }
  0xd1   : > { %33410 = vmatmul.mubr.msk.f32.gmra.mrb[94].mxu1 %vm398_vm0, %v386_v24  ;;  %35412 = vmatmul.mubr.msk.f32.gmra.mrb[42].mxu0 %vm398_vm0, %v14424_v25  ;;  %v207_v24 = vld [vmem:[%s39948_s10 + $0xb0] sm:$0xff] }
  0xd2   : > { %33412 = vmatprep.mubr.msk.f32.mxu1 %vm398_vm0, %v387_v26  ;;  %35414 = vmatprep.mubr.msk.f32.mxu0 %vm398_vm0, %v14425_v27  ;;  %v14455_v25 = vld [vmem:[%s39948_s10 + $0x610] sm:$0xff]  ;;  %v208_v26 = vld [vmem:[%s39948_s10 + $0xb8] sm:$0xff] }
  0xd3   : > { %v14456_v27 = vld [vmem:[%s39948_s10 + $0x618] sm:$0xff] }
  0xd5   : > { %33413 = vmatmul.mubr.msk.f32.gmra.mrb[96].mxu1 %vm398_vm0, %v388_v28  ;;  %35415 = vmatmul.mubr.msk.f32.gmra.mrb[44].mxu0 %vm398_vm0, %v14426_v29  ;;  %v209_v28 = vld [vmem:[%s39948_s10 + $0xc0] sm:$0xff] }
  0xd6   : > { %33415 = vmatprep.mubr.msk.f32.mxu1 %vm398_vm0, %v389_v30  ;;  %35417 = vmatprep.mubr.msk.f32.mxu0 %vm398_vm0, %v14427_v31  ;;  %v14457_v29 = vld [vmem:[%s39948_s10 + $0x620] sm:$0xff]  ;;  %v210_v30 = vld [vmem:[%s39948_s10 + $0xc8] sm:$0xff] }
  0xd7   : > { %v14458_v31 = vld [vmem:[%s39948_s10 + $0x628] sm:$0xff] }
  0xd9   : > { %33416 = vmatmul.mubr.msk.f32.gmra.mrb[98].mxu1 %vm398_vm0, %v390_v32  ;;  %35418 = vmatmul.mubr.msk.f32.gmra.mrb[46].mxu0 %vm398_vm0, %v14428_v33  ;;  %v211_v32 = vld [vmem:[%s39948_s10 + $0xd0] sm:$0xff] }
  0xda   : > { %33418 = vmatprep.mubr.msk.f32.mxu1 %vm398_vm0, %v391_v34  ;;  %35420 = vmatprep.mubr.msk.f32.mxu0 %vm398_vm0, %v14429_v35  ;;  %v14459_v33 = vld [vmem:[%s39948_s10 + $0x630] sm:$0xff]  ;;  %v212_v34 = vld [vmem:[%s39948_s10 + $0xd8] sm:$0xff] }
  0xdb   : > { %v14460_v35 = vld [vmem:[%s39948_s10 + $0x638] sm:$0xff] }
  0xdd   : > { %33419 = vmatmul.mubr.msk.f32.gmra.mrb[100].mxu1 %vm398_vm0, %v392_v36  ;;  %35421 = vmatmul.mubr.msk.f32.gmra.mrb[48].mxu0 %vm398_vm0, %v14430_v37  ;;  %v213_v36 = vld [vmem:[%s39948_s10 + $0xe0] sm:$0xff] }
  0xde   : > { %33421 = vmatprep.mubr.msk.f32.mxu1 %vm398_vm0, %v393_v38  ;;  %35423 = vmatprep.mubr.msk.f32.mxu0 %vm398_vm0, %v14431_v39  ;;  %v14461_v37 = vld [vmem:[%s39948_s10 + $0x640] sm:$0xff]  ;;  %v214_v38 = vld [vmem:[%s39948_s10 + $0xe8] sm:$0xff] }
  0xdf   : > { %v14462_v39 = vld [vmem:[%s39948_s10 + $0x648] sm:$0xff] }
  0xe1   : > { %33422 = vmatmul.mubr.msk.f32.gmra.mrb[102].mxu1 %vm398_vm0, %v394_v40  ;;  %35424 = vmatmul.mubr.msk.f32.gmra.mrb[50].mxu0 %vm398_vm0, %v14432_v42  ;;  %v215_v40 = vld [vmem:[%s39948_s10 + $0xf0] sm:$0xff] }
  0xe2   : > { %33428 = vmatprep.mubr.msk.f32.mxu1 %vm398_vm0, %v185_v43  ;;  %35426 = vmatprep.mubr.msk.f32.mxu0 %vm398_vm0, %v14433_v44  ;;  %v14463_v42 = vld [vmem:[%s39948_s10 + $0x650] sm:$0xff]  ;;  %v216_v43 = vld [vmem:[%s39948_s10 + $0xf8] sm:$0xff] }
  0xe3   : > { %v14464_v44 = vld [vmem:[%s39948_s10 + $0x658] sm:$0xff] }
  0xe5   : > { %33429 = vmatmul.mubr.msk.f32.vlgmr.msra.gmra.mrb[0].mxu1 %vm398_vm0, %v186_v45  ;;  %35427 = vmatmul.mubr.msk.f32.gmra.mrb[52].mxu0 %vm398_vm0, %v14434_v46  ;;  %v217_v45 = vld [vmem:[%s39948_s10 + $0x100] sm:$0xff] }
  0xe6   : > { %37275 = vmatpush3.bf16.msra.mxu1 %v40127_v41  ;;  %33431 = vmatprep.mubr.msk.f32.mxu1 %vm398_vm0, %v187_v47  ;;  %v190_v41 = vld [vmem:[%s39948_s10 + $0x28] sm:$0xff]  ;;  %v14465_v46 = vld [vmem:[%s39948_s10 + $0x660] sm:$0xff] }
  0xe7   : > { %35429 = vmatprep.mubr.msk.f32.mxu0 %vm398_vm0, %v14435_v48  ;;  %v218_v47 = vld [vmem:[%s39948_s10 + $0x108] sm:$0xff] }
  0xe8   : > { %v14466_v48 = vld [vmem:[%s39948_s10 + $0x668] sm:$0xff] }
  0xe9   : > { %33432 = vmatmul.mubr.msk.f32.gmra.mrb[2].mxu1 %vm398_vm0, %v188_v49  ;;  %35430 = vmatmul.mubr.msk.f32.gmra.mrb[54].mxu0 %vm398_vm0, %v14436_v50  ;;  %v219_v49 = vld [vmem:[%s39948_s10 + $0x110] sm:$0xff] }
  0xea   : > { %33434 = vmatprep.mubr.msk.f32.mxu1 %vm398_vm0, %v189_v51  ;;  %35432 = vmatprep.mubr.msk.f32.mxu0 %vm398_vm0, %v14437_v52  ;;  %v14467_v50 = vld [vmem:[%s39948_s10 + $0x670] sm:$0xff]  ;;  %v220_v51 = vld [vmem:[%s39948_s10 + $0x118] sm:$0xff] }
  0xeb   : > { %v14468_v52 = vld [vmem:[%s39948_s10 + $0x678] sm:$0xff] }
  0xed   : > { %33435 = vmatmul.mubr.msk.f32.gmra.mrb[4].mxu1 %vm398_vm0, %v190_v41  ;;  %35433 = vmatmul.mubr.msk.f32.gmra.mrb[56].mxu0 %vm398_vm0, %v14438_v53  ;;  %v221_v41 = vld [vmem:[%s39948_s10 + $0x120] sm:$0xff] }
  0xee   : > { %33437 = vmatprep.mubr.msk.f32.mxu1 %vm398_vm0, %v191_v54  ;;  %35435 = vmatprep.mubr.msk.f32.mxu0 %vm398_vm0, %v14439_v55  ;;  %v14469_v53 = vld [vmem:[%s39948_s10 + $0x680] sm:$0xff]  ;;  %v222_v54 = vld [vmem:[%s39948_s10 + $0x128] sm:$0xff] }
  0xef   : > { %v14470_v55 = vld [vmem:[%s39948_s10 + $0x688] sm:$0xff] }
  0xf1   : > { %33438 = vmatmul.mubr.msk.f32.gmra.mrb[6].mxu1 %vm398_vm0, %v192_v56  ;;  %35436 = vmatmul.mubr.msk.f32.gmra.mrb[58].mxu0 %vm398_vm0, %v14440_v57  ;;  %v223_v56 = vld [vmem:[%s39948_s10 + $0x130] sm:$0xff] }
  0xf2   : > { %33440 = vmatprep.mubr.msk.f32.mxu1 %vm398_vm0, %v193_v58  ;;  %35438 = vmatprep.mubr.msk.f32.mxu0 %vm398_vm0, %v14441_v59  ;;  %v14471_v57 = vld [vmem:[%s39948_s10 + $0x690] sm:$0xff]  ;;  %v224_v58 = vld [vmem:[%s39948_s10 + $0x138] sm:$0xff] }
  0xf3   : > { %v14472_v59 = vld [vmem:[%s39948_s10 + $0x698] sm:$0xff] }
  0xf5   : > { %33441 = vmatmul.mubr.msk.f32.gmra.mrb[8].mxu1 %vm398_vm0, %v194_v60  ;;  %35439 = vmatmul.mubr.msk.f32.gmra.mrb[60].mxu0 %vm398_vm0, %v14442_v61  ;;  %v225_v60 = vld [vmem:[%s39948_s10 + $0x140] sm:$0xff] }
  0xf6   : > { %33443 = vmatprep.mubr.msk.f32.mxu1 %vm398_vm0, %v195_v62  ;;  %35441 = vmatprep.mubr.msk.f32.mxu0 %vm398_vm0, %v14443_v63  ;;  %v14473_v61 = vld [vmem:[%s39948_s10 + $0x6a0] sm:$0xff]  ;;  %v226_v62 = vld [vmem:[%s39948_s10 + $0x148] sm:$0xff] }
  0xf7   : > { %v14474_v63 = vld [vmem:[%s39948_s10 + $0x6a8] sm:$0xff] }
  0xf9   : > { %33444 = vmatmul.mubr.msk.f32.gmra.mrb[10].mxu1 %vm398_vm0, %v196_v0  ;;  %35442 = vmatmul.mubr.msk.f32.gmra.mrb[62].mxu0 %vm398_vm0, %v14444_v1  ;;  %v28279_v0 = vld [vmem:[%s46145_s2 + $0x30] sm:$0xff]  ;;  %v28280_v1 = vld [vmem:[%s46145_s2 + $0x38] sm:$0xff] }
  0xfa   : > { %33446 = vmatprep.mubr.msk.f32.mxu1 %vm398_vm0, %v197_v2  ;;  %35444 = vmatprep.mubr.msk.f32.mxu0 %vm398_vm0, %v14445_v3  ;;  %v227_v2 = vld [vmem:[%s39948_s10 + $0x150] sm:$0xff] }
  0xfb   : > { %v14475_v3 = vld [vmem:[%s39948_s10 + $0x6b0] sm:$0xff] }
  0xfd   : > { %33447 = vmatmul.mubr.msk.f32.gmra.mrb[12].mxu1 %vm398_vm0, %v198_v4  ;;  %35445 = vmatmul.mubr.msk.f32.gmra.mrb[64].mxu0 %vm398_vm0, %v14446_v5  ;;  %v40563_v4 = vpack.c.bf16 %v28280_v1, %v28279_v0  ;;  %v228_v5 = vld [vmem:[%s39948_s10 + $0x158] sm:$0xff]  ;;  %v257_v0 = vld [vmem:[%s39948_s10 + $0x240] sm:$0xff] }
  0xfe   : > { %33449 = vmatprep.mubr.msk.f32.mxu1 %vm398_vm0, %v199_v20  ;;  %35447 = vmatprep.mubr.msk.f32.mxu0 %vm398_vm0, %v14447_v6  ;;  %v14476_v20 = vld [vmem:[%s39948_s10 + $0x6b8] sm:$0xff]  ;;  %v229_v6 = vld [vmem:[%s39948_s10 + $0x160] sm:$0xff] }
  0xff   : > { %37277 = vmatprep.subr.bf16.mxu1 %v40563_v4  ;;  %v15509_v1 = vld [vmem:[%s39948_s10 + $0x466] sm:$0xff] }
 0x101   : > { %33450 = vmatmul.mubr.msk.f32.gmra.mrb[14].mxu1 %vm398_vm0, %v200_v8  ;;  %35448 = vmatmul.mubr.msk.f32.gmra.mrb[66].mxu0 %vm398_vm0, %v14448_v9  ;;  %v14477_v8 = vld [vmem:[%s39948_s10 + $0x6c0] sm:$0xff]  ;;  %v230_v9 = vld [vmem:[%s39948_s10 + $0x168] sm:$0xff] }
 0x102   : > { %33452 = vmatprep.mubr.msk.f32.mxu1 %vm398_vm0, %v201_v10  ;;  %35450 = vmatprep.mubr.msk.f32.mxu0 %vm398_vm0, %v14449_v11  ;;  %v14478_v10 = vld [vmem:[%s39948_s10 + $0x6c8] sm:$0xff]  ;;  %v231_v11 = vld [vmem:[%s39948_s10 + $0x170] sm:$0xff] }
 0x105   : > { %33453 = vmatmul.mubr.msk.f32.gmra.mrb[16].mxu1 %vm398_vm0, %v202_v12  ;;  %35451 = vmatmul.mubr.msk.f32.gmra.mrb[68].mxu0 %vm398_vm0, %v14450_v13  ;;  %v14479_v12 = vld [vmem:[%s39948_s10 + $0x6d0] sm:$0xff]  ;;  %v232_v13 = vld [vmem:[%s39948_s10 + $0x178] sm:$0xff] }
 0x106   : > { %33455 = vmatprep.mubr.msk.f32.mxu1 %vm398_vm0, %v203_v14  ;;  %35453 = vmatprep.mubr.msk.f32.mxu0 %vm398_vm0, %v14451_v15  ;;  %v14480_v14 = vld [vmem:[%s39948_s10 + $0x6d8] sm:$0xff]  ;;  %v233_v15 = vld [vmem:[%s39948_s10 + $0x180] sm:$0xff] }
 0x109   : > { %33456 = vmatmul.mubr.msk.f32.gmra.mrb[18].mxu1 %vm398_vm0, %v204_v16  ;;  %35454 = vmatmul.mubr.msk.f32.gmra.mrb[70].mxu0 %vm398_vm0, %v14452_v17  ;;  %v14481_v16 = vld [vmem:[%s39948_s10 + $0x6e0] sm:$0xff]  ;;  %v234_v17 = vld [vmem:[%s39948_s10 + $0x188] sm:$0xff] }
 0x10a   : > { %33458 = vmatprep.mubr.msk.f32.mxu1 %vm398_vm0, %v205_v18  ;;  %35456 = vmatprep.mubr.msk.f32.mxu0 %vm398_vm0, %v14453_v19  ;;  %v14482_v18 = vld [vmem:[%s39948_s10 + $0x6e8] sm:$0xff]  ;;  %v235_v19 = vld [vmem:[%s39948_s10 + $0x190] sm:$0xff] }
 0x10d   : > { %33459 = vmatmul.mubr.msk.f32.gmra.mrb[20].mxu1 %vm398_vm0, %v206_v21  ;;  %35457 = vmatmul.mubr.msk.f32.gmra.mrb[72].mxu0 %vm398_vm0, %v14454_v22  ;;  %v14483_v21 = vld [vmem:[%s39948_s10 + $0x6f0] sm:$0xff]  ;;  %v236_v22 = vld [vmem:[%s39948_s10 + $0x198] sm:$0xff] }
 0x10e   : > { %33461 = vmatprep.mubr.msk.f32.mxu1 %vm398_vm0, %v207_v24  ;;  %35459 = vmatprep.mubr.msk.f32.mxu0 %vm398_vm0, %v14455_v25  ;;  %v14484_v24 = vld [vmem:[%s39948_s10 + $0x6f8] sm:$0xff]  ;;  %v237_v25 = vld [vmem:[%s39948_s10 + $0x1a0] sm:$0xff] }
 0x111   : > { %33462 = vmatmul.mubr.msk.f32.gmra.mrb[22].mxu1 %vm398_vm0, %v208_v26  ;;  %35460 = vmatmul.mubr.msk.f32.gmra.mrb[74].mxu0 %vm398_vm0, %v14456_v27  ;;  %v15489_v26 = vld [vmem:[%s39948_s10 + $0x3c6] sm:$0xff] }
 0x112   : > { %33464 = vmatprep.mubr.msk.f32.mxu1 %vm398_vm0, %v209_v28  ;;  %35462 = vmatprep.mubr.msk.f32.mxu0 %vm398_vm0, %v14457_v29  ;;  %v238_v27 = vld [vmem:[%s39948_s10 + $0x1a8] sm:$0xff]  ;;  %v239_v29 = vld [vmem:[%s39948_s10 + $0x1b0] sm:$0xff] }
 0x113   : > { %v15490_v28 = vld [vmem:[%s39948_s10 + $0x3ce] sm:$0xff] }
 0x115   : > { %33465 = vmatmul.mubr.msk.f32.gmra.mrb[24].mxu1 %vm398_vm0, %v210_v30  ;;  %35463 = vmatmul.mubr.msk.f32.gmra.mrb[76].mxu0 %vm398_vm0, %v14458_v31  ;;  %v15491_v30 = vld [vmem:[%s39948_s10 + $0x3d6] sm:$0xff] }
 0x116   : > { %33467 = vmatprep.mubr.msk.f32.mxu1 %vm398_vm0, %v211_v32  ;;  %35465 = vmatprep.mubr.msk.f32.mxu0 %vm398_vm0, %v14459_v33  ;;  %v240_v31 = vld [vmem:[%s39948_s10 + $0x1b8] sm:$0xff]  ;;  %v241_v33 = vld [vmem:[%s39948_s10 + $0x1c0] sm:$0xff] }
 0x117   : > { %v15492_v32 = vld [vmem:[%s39948_s10 + $0x3de] sm:$0xff] }
 0x119   : > { %33468 = vmatmul.mubr.msk.f32.gmra.mrb[26].mxu1 %vm398_vm0, %v212_v34  ;;  %35466 = vmatmul.mubr.msk.f32.gmra.mrb[78].mxu0 %vm398_vm0, %v14460_v35  ;;  %v15493_v34 = vld [vmem:[%s39948_s10 + $0x3e6] sm:$0xff]  ;;  %v15494_v35 = vld [vmem:[%s39948_s10 + $0x3ee] sm:$0xff] }
 0x11a   : > { %33470 = vmatprep.mubr.msk.f32.mxu1 %vm398_vm0, %v213_v36  ;;  %35468 = vmatprep.mubr.msk.f32.mxu0 %vm398_vm0, %v14461_v37  ;;  %v243_v36 = vld [vmem:[%s39948_s10 + $0x1d0] sm:$0xff] }
 0x11b   : > { %v15495_v37 = vld [vmem:[%s39948_s10 + $0x3f6] sm:$0xff] }
 0x11d   : > { %33471 = vmatmul.mubr.msk.f32.gmra.mrb[28].mxu1 %vm398_vm0, %v214_v38  ;;  %35469 = vmatmul.mubr.msk.f32.gmra.mrb[80].mxu0 %vm398_vm0, %v14462_v39  ;;  %v244_v38 = vld [vmem:[%s39948_s10 + $0x1d8] sm:$0xff] }
 0x11e   : > { %33473 = vmatprep.mubr.msk.f32.mxu1 %vm398_vm0, %v215_v40  ;;  %35471 = vmatprep.mubr.msk.f32.mxu0 %vm398_vm0, %v14463_v42  ;;  %v15496_v39 = vld [vmem:[%s39948_s10 + $0x3fe] sm:$0xff]  ;;  %v15497_v42 = vld [vmem:[%s39948_s10 + $0x406] sm:$0xff] }
 0x11f   : > { %v245_v40 = vld [vmem:[%s39948_s10 + $0x1e0] sm:$0xff] }
 0x121   : > { %33474 = vmatmul.mubr.msk.f32.gmra.mrb[30].mxu1 %vm398_vm0, %v216_v43  ;;  %35472 = vmatmul.mubr.msk.f32.gmra.mrb[82].mxu0 %vm398_vm0, %v14464_v44  ;;  %v246_v43 = vld [vmem:[%s39948_s10 + $0x1e8] sm:$0xff] }
 0x122   : > { %33476 = vmatprep.mubr.msk.f32.mxu1 %vm398_vm0, %v217_v45  ;;  %35474 = vmatprep.mubr.msk.f32.mxu0 %vm398_vm0, %v14465_v46  ;;  %v15498_v44 = vld [vmem:[%s39948_s10 + $0x40e] sm:$0xff]  ;;  %v15499_v46 = vld [vmem:[%s39948_s10 + $0x416] sm:$0xff] }
 0x123   : > { %v247_v45 = vld [vmem:[%s39948_s10 + $0x1f0] sm:$0xff] }
 0x125   : > { %33477 = vmatmul.mubr.msk.f32.gmra.mrb[32].mxu1 %vm398_vm0, %v218_v47  ;;  %35475 = vmatmul.mubr.msk.f32.gmra.mrb[84].mxu0 %vm398_vm0, %v14466_v48  ;;  %v248_v47 = vld [vmem:[%s39948_s10 + $0x1f8] sm:$0xff] }
 0x126   : > { %33479 = vmatprep.mubr.msk.f32.mxu1 %vm398_vm0, %v219_v49  ;;  %35477 = vmatprep.mubr.msk.f32.mxu0 %vm398_vm0, %v14467_v50  ;;  %v15500_v48 = vld [vmem:[%s39948_s10 + $0x41e] sm:$0xff]  ;;  %v15501_v50 = vld [vmem:[%s39948_s10 + $0x426] sm:$0xff] }
 0x127   : > { %v249_v49 = vld [vmem:[%s39948_s10 + $0x200] sm:$0xff] }
 0x129   : > { %33480 = vmatmul.mubr.msk.f32.gmra.mrb[34].mxu1 %vm398_vm0, %v220_v51  ;;  %35478 = vmatmul.mubr.msk.f32.gmra.mrb[86].mxu0 %vm398_vm0, %v14468_v52  ;;  %v250_v51 = vld [vmem:[%s39948_s10 + $0x208] sm:$0xff] }
 0x12a   : > { %33482 = vmatprep.mubr.msk.f32.mxu1 %vm398_vm0, %v221_v41  ;;  %35480 = vmatprep.mubr.msk.f32.mxu0 %vm398_vm0, %v14469_v53  ;;  %v15502_v52 = vld [vmem:[%s39948_s10 + $0x42e] sm:$0xff]  ;;  %v15503_v53 = vld [vmem:[%s39948_s10 + $0x436] sm:$0xff] }
 0x12b   : > { %v251_v41 = vld [vmem:[%s39948_s10 + $0x210] sm:$0xff] }
 0x12d   : > { %33483 = vmatmul.mubr.msk.f32.gmra.mrb[36].mxu1 %vm398_vm0, %v222_v54  ;;  %35481 = vmatmul.mubr.msk.f32.gmra.mrb[88].mxu0 %vm398_vm0, %v14470_v55  ;;  %v252_v54 = vld [vmem:[%s39948_s10 + $0x218] sm:$0xff] }
 0x12e   : > { %33485 = vmatprep.mubr.msk.f32.mxu1 %vm398_vm0, %v223_v56  ;;  %35483 = vmatprep.mubr.msk.f32.mxu0 %vm398_vm0, %v14471_v57  ;;  %v15504_v55 = vld [vmem:[%s39948_s10 + $0x43e] sm:$0xff]  ;;  %v15505_v57 = vld [vmem:[%s39948_s10 + $0x446] sm:$0xff] }
 0x12f   : > { %v253_v56 = vld [vmem:[%s39948_s10 + $0x220] sm:$0xff] }
 0x131   : > { %33486 = vmatmul.mubr.msk.f32.gmra.mrb[38].mxu1 %vm398_vm0, %v224_v58  ;;  %35484 = vmatmul.mubr.msk.f32.gmra.mrb[90].mxu0 %vm398_vm0, %v14472_v59  ;;  %v254_v58 = vld [vmem:[%s39948_s10 + $0x228] sm:$0xff] }
 0x132   : > { %33488 = vmatprep.mubr.msk.f32.mxu1 %vm398_vm0, %v225_v60  ;;  %35486 = vmatprep.mubr.msk.f32.mxu0 %vm398_vm0, %v14473_v61  ;;  %v15506_v59 = vld [vmem:[%s39948_s10 + $0x44e] sm:$0xff]  ;;  %v15507_v61 = vld [vmem:[%s39948_s10 + $0x456] sm:$0xff] }
 0x133   : > { %v255_v60 = vld [vmem:[%s39948_s10 + $0x230] sm:$0xff] }
 0x135   : > { %33489 = vmatmul.mubr.msk.f32.gmra.mrb[40].mxu1 %vm398_vm0, %v226_v62  ;;  %35487 = vmatmul.mubr.msk.f32.gmra.mrb[92].mxu0 %vm398_vm0, %v14474_v63  ;;  %v256_v62 = vld [vmem:[%s39948_s10 + $0x238] sm:$0xff] }
 0x136   : > { %33491 = vmatprep.mubr.msk.f32.mxu1 %vm398_vm0, %v227_v2  ;;  %35489 = vmatprep.mubr.msk.f32.mxu0 %vm398_vm0, %v14475_v3  ;;  %v15508_v63 = vld [vmem:[%s39948_s10 + $0x45e] sm:$0xff]  ;;  %v258_v2 = vld [vmem:[%s39948_s10 + $0x248] sm:$0xff] }
 0x137   : > { %v15510_v3 = vld [vmem:[%s39948_s10 + $0x46e] sm:$0xff] }
 0x139   : > { %33492 = vmatmul.mubr.msk.f32.gmra.mrb[42].mxu1 %vm398_vm0, %v228_v5  ;;  %35490 = vmatmul.mubr.msk.f32.gmra.mrb[94].mxu0 %vm398_vm0, %v14476_v20  ;;  %v259_v5 = vld [vmem:[%s39948_s10 + $0x250] sm:$0xff] }
 0x13a   : > { %33494 = vmatprep.mubr.msk.f32.mxu1 %vm398_vm0, %v229_v6  ;;  %35492 = vmatprep.mubr.msk.f32.mxu0 %vm398_vm0, %v14477_v8  ;;  %v15511_v20 = vld [vmem:[%s39948_s10 + $0x476] sm:$0xff]  ;;  %v15512_v8 = vld [vmem:[%s39948_s10 + $0x47e] sm:$0xff] }
 0x13b   : > { %v260_v6 = vld [vmem:[%s39948_s10 + $0x258] sm:$0xff] }
 0x13d   : > { %33495 = vmatmul.mubr.msk.f32.gmra.mrb[44].mxu1 %vm398_vm0, %v230_v9  ;;  %35493 = vmatmul.mubr.msk.f32.gmra.mrb[96].mxu0 %vm398_vm0, %v14478_v10  ;;  %v261_v9 = vld [vmem:[%s39948_s10 + $0x260] sm:$0xff] }
 0x13e   : > { %33497 = vmatprep.mubr.msk.f32.mxu1 %vm398_vm0, %v231_v11  ;;  %35495 = vmatprep.mubr.msk.f32.mxu0 %vm398_vm0, %v14479_v12  ;;  %v15513_v10 = vld [vmem:[%s39948_s10 + $0x486] sm:$0xff]  ;;  %v15514_v12 = vld [vmem:[%s39948_s10 + $0x48e] sm:$0xff] }
 0x13f   : > { %v262_v11 = vld [vmem:[%s39948_s10 + $0x268] sm:$0xff] }
 0x141   : > { %33498 = vmatmul.mubr.msk.f32.gmra.mrb[46].mxu1 %vm398_vm0, %v232_v13  ;;  %35496 = vmatmul.mubr.msk.f32.gmra.mrb[98].mxu0 %vm398_vm0, %v14480_v14  ;;  %v263_v13 = vld [vmem:[%s39948_s10 + $0x270] sm:$0xff] }
 0x142   : > { %33500 = vmatprep.mubr.msk.f32.mxu1 %vm398_vm0, %v233_v15  ;;  %35498 = vmatprep.mubr.msk.f32.mxu0 %vm398_vm0, %v14481_v16  ;;  %v15515_v14 = vld [vmem:[%s39948_s10 + $0x496] sm:$0xff]  ;;  %v15516_v16 = vld [vmem:[%s39948_s10 + $0x49e] sm:$0xff] }
 0x143   : > { %v264_v15 = vld [vmem:[%s39948_s10 + $0x278] sm:$0xff] }
 0x145   : > { %33501 = vmatmul.mubr.msk.f32.gmra.mrb[48].mxu1 %vm398_vm0, %v234_v17  ;;  %35499 = vmatmul.mubr.msk.f32.gmra.mrb[100].mxu0 %vm398_vm0, %v14482_v18  ;;  %v265_v17 = vld [vmem:[%s39948_s10 + $0x280] sm:$0xff] }
 0x146   : > { %33503 = vmatprep.mubr.msk.f32.mxu1 %vm398_vm0, %v235_v19  ;;  %35501 = vmatprep.mubr.msk.f32.mxu0 %vm398_vm0, %v14483_v21  ;;  %v15517_v18 = vld [vmem:[%s39948_s10 + $0x4a6] sm:$0xff]  ;;  %v15518_v21 = vld [vmem:[%s39948_s10 + $0x4ae] sm:$0xff] }
 0x147   : > { %v266_v19 = vld [vmem:[%s39948_s10 + $0x288] sm:$0xff] }
 0x149   : > { %33504 = vmatmul.mubr.msk.f32.gmra.mrb[50].mxu1 %vm398_vm0, %v236_v22  ;;  %35502 = vmatmul.mubr.msk.f32.gmra.mrb[102].mxu0 %vm398_vm0, %v14484_v24  ;;  %v267_v22 = vld [vmem:[%s39948_s10 + $0x290] sm:$0xff] }
 0x14a   : > { %33506 = vmatprep.mubr.msk.f32.mxu1 %vm398_vm0, %v237_v25  ;;  %35508 = vmatprep.mubr.msk.f32.mxu0 %vm398_vm0, %v15489_v26  ;;  %v15519_v24 = vld [vmem:[%s39948_s10 + $0x4b6] sm:$0xff]  ;;  %v15520_v26 = vld [vmem:[%s39948_s10 + $0x4be] sm:$0xff] }
 0x14b   : > { %v268_v25 = vld [vmem:[%s39948_s10 + $0x298] sm:$0xff] }
 0x14d   : > { %33507 = vmatmul.mubr.msk.f32.gmra.mrb[52].mxu1 %vm398_vm0, %v238_v27  ;;  %35509 = vmatmul.mubr.msk.f32.vlgmr.msra.gmra.mrb[0].mxu0 %vm398_vm0, %v15490_v28  ;;  %v269_v27 = vld [vmem:[%s39948_s10 + $0x2a0] sm:$0xff] }
 0x14e   : > { %37327 = vmatpush3.bf16.msra.mxu0 %v40345_v23  ;;  %33509 = vmatprep.mubr.msk.f32.mxu1 %vm398_vm0, %v239_v29  ;;  %v242_v23 = vld [vmem:[%s39948_s10 + $0x1c8] sm:$0xff] }
 0x14f   : > { %35511 = vmatprep.mubr.msk.f32.mxu0 %vm398_vm0, %v15491_v30  ;;  %v15521_v28 = vld [vmem:[%s39948_s10 + $0x4c6] sm:$0xff]  ;;  %v15522_v30 = vld [vmem:[%s39948_s10 + $0x4ce] sm:$0xff] }
 0x150   : > { %v270_v29 = vld [vmem:[%s39948_s10 + $0x2a8] sm:$0xff] }
 0x151   : > { %33510 = vmatmul.mubr.msk.f32.gmra.mrb[54].mxu1 %vm398_vm0, %v240_v31  ;;  %35512 = vmatmul.mubr.msk.f32.gmra.mrb[2].mxu0 %vm398_vm0, %v15492_v32  ;;  %v271_v31 = vld [vmem:[%s39948_s10 + $0x2b0] sm:$0xff] }
 0x152   : > { %33512 = vmatprep.mubr.msk.f32.mxu1 %vm398_vm0, %v241_v33  ;;  %35514 = vmatprep.mubr.msk.f32.mxu0 %vm398_vm0, %v15493_v34  ;;  %v15523_v32 = vld [vmem:[%s39948_s10 + $0x4d6] sm:$0xff]  ;;  %v15524_v34 = vld [vmem:[%s39948_s10 + $0x4de] sm:$0xff] }
 0x153   : > { %v272_v33 = vld [vmem:[%s39948_s10 + $0x2b8] sm:$0xff] }
 0x155   : > { %33513 = vmatmul.mubr.msk.f32.gmra.mrb[56].mxu1 %vm398_vm0, %v242_v23  ;;  %35515 = vmatmul.mubr.msk.f32.gmra.mrb[4].mxu0 %vm398_vm0, %v15494_v35  ;;  %v273_v23 = vld [vmem:[%s39948_s10 + $0x2c0] sm:$0xff] }
 0x156   : > { %33515 = vmatprep.mubr.msk.f32.mxu1 %vm398_vm0, %v243_v36  ;;  %35517 = vmatprep.mubr.msk.f32.mxu0 %vm398_vm0, %v15495_v37  ;;  %v15525_v35 = vld [vmem:[%s39948_s10 + $0x4e6] sm:$0xff]  ;;  %v15526_v37 = vld [vmem:[%s39948_s10 + $0x4ee] sm:$0xff] }
 0x157   : > { %v274_v36 = vld [vmem:[%s39948_s10 + $0x2c8] sm:$0xff] }
 0x159   : > { %33516 = vmatmul.mubr.msk.f32.gmra.mrb[58].mxu1 %vm398_vm0, %v244_v38  ;;  %35518 = vmatmul.mubr.msk.f32.gmra.mrb[6].mxu0 %vm398_vm0, %v15496_v39  ;;  %v275_v38 = vld [vmem:[%s39948_s10 + $0x2d0] sm:$0xff] }
 0x15a   : > { %33518 = vmatprep.mubr.msk.f32.mxu1 %vm398_vm0, %v245_v40  ;;  %35520 = vmatprep.mubr.msk.f32.mxu0 %vm398_vm0, %v15497_v42  ;;  %v15527_v39 = vld [vmem:[%s39948_s10 + $0x4f6] sm:$0xff]  ;;  %v15528_v42 = vld [vmem:[%s39948_s10 + $0x4fe] sm:$0xff] }
 0x15b   : > { %v276_v40 = vld [vmem:[%s39948_s10 + $0x2d8] sm:$0xff] }
 0x15d   : > { %33519 = vmatmul.mubr.msk.f32.gmra.mrb[60].mxu1 %vm398_vm0, %v246_v43  ;;  %35521 = vmatmul.mubr.msk.f32.gmra.mrb[8].mxu0 %vm398_vm0, %v15498_v44  ;;  %v277_v43 = vld [vmem:[%s39948_s10 + $0x2e0] sm:$0xff] }
 0x15e   : > { %33521 = vmatprep.mubr.msk.f32.mxu1 %vm398_vm0, %v247_v45  ;;  %35523 = vmatprep.mubr.msk.f32.mxu0 %vm398_vm0, %v15499_v46  ;;  %v15529_v44 = vld [vmem:[%s39948_s10 + $0x506] sm:$0xff]  ;;  %v15530_v46 = vld [vmem:[%s39948_s10 + $0x50e] sm:$0xff] }
 0x15f   : > { %v278_v45 = vld [vmem:[%s39948_s10 + $0x2e8] sm:$0xff] }
 0x161   : > { %33522 = vmatmul.mubr.msk.f32.gmra.mrb[62].mxu1 %vm398_vm0, %v248_v47  ;;  %35524 = vmatmul.mubr.msk.f32.gmra.mrb[10].mxu0 %vm398_vm0, %v15500_v48  ;;  %v29657_v47 = vld [vmem:[%s46145_s2 + $0x100] sm:$0xff]  ;;  %v29658_v48 = vld [vmem:[%s46145_s2 + $0x108] sm:$0xff] }
 0x162   : > { %33524 = vmatprep.mubr.msk.f32.mxu1 %vm398_vm0, %v249_v49  ;;  %35526 = vmatprep.mubr.msk.f32.mxu0 %vm398_vm0, %v15501_v50  ;;  %v279_v49 = vld [vmem:[%s39948_s10 + $0x2f0] sm:$0xff] }
 0x163   : > { %v15531_v50 = vld [vmem:[%s39948_s10 + $0x516] sm:$0xff] }
 0x165   : > { %33525 = vmatmul.mubr.msk.f32.gmra.mrb[64].mxu1 %vm398_vm0, %v250_v51  ;;  %35527 = vmatmul.mubr.msk.f32.gmra.mrb[12].mxu0 %vm398_vm0, %v15502_v52  ;;  %v40781_v51 = vpack.c.bf16 %v29658_v48, %v29657_v47  ;;  %v280_v52 = vld [vmem:[%s39948_s10 + $0x2f8] sm:$0xff]  ;;  %v2213_v47 = vld [vmem:[%s39948_s10 + $0xc4] sm:$0xff] }
 0x166   : > { %33527 = vmatprep.mubr.msk.f32.mxu1 %vm398_vm0, %v251_v41  ;;  %35529 = vmatprep.mubr.msk.f32.mxu0 %vm398_vm0, %v15503_v53  ;;  %v15532_v41 = vld [vmem:[%s39948_s10 + $0x51e] sm:$0xff]  ;;  %v15561_v48 = vld [vmem:[%s39948_s10 + $0x606] sm:$0xff] }
 0x167   : > { %v281_v53 = vld [vmem:[%s39948_s10 + $0x300] sm:$0xff]  ;;  %37329 = vmatprep.subr.bf16.mxu0 %v40781_v51 }
 0x169   : > { %33528 = vmatmul.mubr.msk.f32.gmra.mrb[66].mxu1 %vm398_vm0, %v252_v54  ;;  %35530 = vmatmul.mubr.msk.f32.gmra.mrb[14].mxu0 %vm398_vm0, %v15504_v55  ;;  %v15533_v54 = vld [vmem:[%s39948_s10 + $0x526] sm:$0xff] }
 0x16a   : > { %33530 = vmatprep.mubr.msk.f32.mxu1 %vm398_vm0, %v253_v56  ;;  %35532 = vmatprep.mubr.msk.f32.mxu0 %vm398_vm0, %v15505_v57  ;;  %v282_v55 = vld [vmem:[%s39948_s10 + $0x308] sm:$0xff]  ;;  %v283_v57 = vld [vmem:[%s39948_s10 + $0x310] sm:$0xff] }
 0x16b   : > { %v15534_v56 = vld [vmem:[%s39948_s10 + $0x52e] sm:$0xff] }
 0x16d   : > { %33531 = vmatmul.mubr.msk.f32.gmra.mrb[68].mxu1 %vm398_vm0, %v254_v58  ;;  %35533 = vmatmul.mubr.msk.f32.gmra.mrb[16].mxu0 %vm398_vm0, %v15506_v59  ;;  %v15535_v58 = vld [vmem:[%s39948_s10 + $0x536] sm:$0xff] }
 0x16e   : > { %33533 = vmatprep.mubr.msk.f32.mxu1 %vm398_vm0, %v255_v60  ;;  %35535 = vmatprep.mubr.msk.f32.mxu0 %vm398_vm0, %v15507_v61  ;;  %v284_v59 = vld [vmem:[%s39948_s10 + $0x318] sm:$0xff]  ;;  %v285_v61 = vld [vmem:[%s39948_s10 + $0x320] sm:$0xff] }
 0x16f   : > { %v15536_v60 = vld [vmem:[%s39948_s10 + $0x53e] sm:$0xff] }
 0x171   : > { %33534 = vmatmul.mubr.msk.f32.gmra.mrb[70].mxu1 %vm398_vm0, %v256_v62  ;;  %35536 = vmatmul.mubr.msk.f32.gmra.mrb[18].mxu0 %vm398_vm0, %v15508_v63  ;;  %v15537_v62 = vld [vmem:[%s39948_s10 + $0x546] sm:$0xff] }
 0x172   : > { %33536 = vmatprep.mubr.msk.f32.mxu1 %vm398_vm0, %v257_v0  ;;  %35538 = vmatprep.mubr.msk.f32.mxu0 %vm398_vm0, %v15509_v1  ;;  %v286_v63 = vld [vmem:[%s39948_s10 + $0x328] sm:$0xff]  ;;  %v287_v1 = vld [vmem:[%s39948_s10 + $0x330] sm:$0xff] }
 0x173   : > { %v15538_v0 = vld [vmem:[%s39948_s10 + $0x54e] sm:$0xff] }
 0x175   : > { %33537 = vmatmul.mubr.msk.f32.gmra.mrb[72].mxu1 %vm398_vm0, %v258_v2  ;;  %35539 = vmatmul.mubr.msk.f32.gmra.mrb[20].mxu0 %vm398_vm0, %v15510_v3  ;;  %v15539_v2 = vld [vmem:[%s39948_s10 + $0x556] sm:$0xff] }
 0x176   : > { %33539 = vmatprep.mubr.msk.f32.mxu1 %vm398_vm0, %v259_v5  ;;  %35541 = vmatprep.mubr.msk.f32.mxu0 %vm398_vm0, %v15511_v20  ;;  %v288_v3 = vld [vmem:[%s39948_s10 + $0x338] sm:$0xff]  ;;  %v2193_v20 = vld [vmem:[%s39948_s10 + $0x24] sm:$0xff] }
 0x177   : > { %v15540_v5 = vld [vmem:[%s39948_s10 + $0x55e] sm:$0xff] }
 0x179   : > { %33540 = vmatmul.mubr.msk.f32.gmra.mrb[74].mxu1 %vm398_vm0, %v260_v6  ;;  %35542 = vmatmul.mubr.msk.f32.gmra.mrb[22].mxu0 %vm398_vm0, %v15512_v8  ;;  %v15541_v6 = vld [vmem:[%s39948_s10 + $0x566] sm:$0xff] }
 0x17a   : > { %33542 = vmatprep.mubr.msk.f32.mxu1 %vm398_vm0, %v261_v9  ;;  %35544 = vmatprep.mubr.msk.f32.mxu0 %vm398_vm0, %v15513_v10  ;;  %v2194_v8 = vld [vmem:[%s39948_s10 + $0x2c] sm:$0xff]  ;;  %v2195_v10 = vld [vmem:[%s39948_s10 + $0x34] sm:$0xff] }
 0x17b   : > { %v15542_v9 = vld [vmem:[%s39948_s10 + $0x56e] sm:$0xff] }
 0x17d   : > { %33543 = vmatmul.mubr.msk.f32.gmra.mrb[76].mxu1 %vm398_vm0, %v262_v11  ;;  %35545 = vmatmul.mubr.msk.f32.gmra.mrb[24].mxu0 %vm398_vm0, %v15514_v12  ;;  %v15543_v11 = vld [vmem:[%s39948_s10 + $0x576] sm:$0xff] }
 0x17e   : > { %33545 = vmatprep.mubr.msk.f32.mxu1 %vm398_vm0, %v263_v13  ;;  %35547 = vmatprep.mubr.msk.f32.mxu0 %vm398_vm0, %v15515_v14  ;;  %v2196_v12 = vld [vmem:[%s39948_s10 + $0x3c] sm:$0xff]  ;;  %v2197_v14 = vld [vmem:[%s39948_s10 + $0x44] sm:$0xff] }
 0x17f   : > { %v15544_v13 = vld [vmem:[%s39948_s10 + $0x57e] sm:$0xff] }
 0x181   : > { %33546 = vmatmul.mubr.msk.f32.gmra.mrb[78].mxu1 %vm398_vm0, %v264_v15  ;;  %35548 = vmatmul.mubr.msk.f32.gmra.mrb[26].mxu0 %vm398_vm0, %v15516_v16  ;;  %v15545_v15 = vld [vmem:[%s39948_s10 + $0x586] sm:$0xff]  ;;  %v15546_v16 = vld [vmem:[%s39948_s10 + $0x58e] sm:$0xff] }
 0x182   : > { %33548 = vmatprep.mubr.msk.f32.mxu1 %vm398_vm0, %v265_v17  ;;  %35550 = vmatprep.mubr.msk.f32.mxu0 %vm398_vm0, %v15517_v18  ;;  %v2199_v17 = vld [vmem:[%s39948_s10 + $0x54] sm:$0xff] }
 0x183   : > { %v15547_v18 = vld [vmem:[%s39948_s10 + $0x596] sm:$0xff] }
 0x185   : > { %33549 = vmatmul.mubr.msk.f32.gmra.mrb[80].mxu1 %vm398_vm0, %v266_v19  ;;  %35551 = vmatmul.mubr.msk.f32.gmra.mrb[28].mxu0 %vm398_vm0, %v15518_v21  ;;  %v2200_v19 = vld [vmem:[%s39948_s10 + $0x5c] sm:$0xff] }
 0x186   : > { %33551 = vmatprep.mubr.msk.f32.mxu1 %vm398_vm0, %v267_v22  ;;  %35553 = vmatprep.mubr.msk.f32.mxu0 %vm398_vm0, %v15519_v24  ;;  %v15548_v21 = vld [vmem:[%s39948_s10 + $0x59e] sm:$0xff]  ;;  %v15549_v24 = vld [vmem:[%s39948_s10 + $0x5a6] sm:$0xff] }
 0x187   : > { %v2201_v22 = vld [vmem:[%s39948_s10 + $0x64] sm:$0xff] }
 0x189   : > { %33552 = vmatmul.mubr.msk.f32.gmra.mrb[82].mxu1 %vm398_vm0, %v268_v25  ;;  %35554 = vmatmul.mubr.msk.f32.gmra.mrb[30].mxu0 %vm398_vm0, %v15520_v26  ;;  %v2202_v25 = vld [vmem:[%s39948_s10 + $0x6c] sm:$0xff] }
 0x18a   : > { %33554 = vmatprep.mubr.msk.f32.mxu1 %vm398_vm0, %v269_v27  ;;  %35556 = vmatprep.mubr.msk.f32.mxu0 %vm398_vm0, %v15521_v28  ;;  %v15550_v26 = vld [vmem:[%s39948_s10 + $0x5ae] sm:$0xff]  ;;  %v15551_v28 = vld [vmem:[%s39948_s10 + $0x5b6] sm:$0xff] }
 0x18b   : > { %v2203_v27 = vld [vmem:[%s39948_s10 + $0x74] sm:$0xff] }
 0x18d   : > { %33555 = vmatmul.mubr.msk.f32.gmra.mrb[84].mxu1 %vm398_vm0, %v270_v29  ;;  %35557 = vmatmul.mubr.msk.f32.gmra.mrb[32].mxu0 %vm398_vm0, %v15522_v30  ;;  %v2204_v29 = vld [vmem:[%s39948_s10 + $0x7c] sm:$0xff] }
 0x18e   : > { %33557 = vmatprep.mubr.msk.f32.mxu1 %vm398_vm0, %v271_v31  ;;  %35559 = vmatprep.mubr.msk.f32.mxu0 %vm398_vm0, %v15523_v32  ;;  %v15552_v30 = vld [vmem:[%s39948_s10 + $0x5be] sm:$0xff]  ;;  %v15553_v32 = vld [vmem:[%s39948_s10 + $0x5c6] sm:$0xff] }
 0x18f   : > { %v2205_v31 = vld [vmem:[%s39948_s10 + $0x84] sm:$0xff] }
 0x191   : > { %33558 = vmatmul.mubr.msk.f32.gmra.mrb[86].mxu1 %vm398_vm0, %v272_v33  ;;  %35560 = vmatmul.mubr.msk.f32.gmra.mrb[34].mxu0 %vm398_vm0, %v15524_v34  ;;  %v2206_v33 = vld [vmem:[%s39948_s10 + $0x8c] sm:$0xff] }
 0x192   : > { %33560 = vmatprep.mubr.msk.f32.mxu1 %vm398_vm0, %v273_v23  ;;  %35562 = vmatprep.mubr.msk.f32.mxu0 %vm398_vm0, %v15525_v35  ;;  %v15554_v34 = vld [vmem:[%s39948_s10 + $0x5ce] sm:$0xff]  ;;  %v15555_v35 = vld [vmem:[%s39948_s10 + $0x5d6] sm:$0xff] }
 0x193   : > { %v2207_v23 = vld [vmem:[%s39948_s10 + $0x94] sm:$0xff] }
 0x195   : > { %33561 = vmatmul.mubr.msk.f32.gmra.mrb[88].mxu1 %vm398_vm0, %v274_v36  ;;  %35563 = vmatmul.mubr.msk.f32.gmra.mrb[36].mxu0 %vm398_vm0, %v15526_v37  ;;  %v2208_v36 = vld [vmem:[%s39948_s10 + $0x9c] sm:$0xff] }
 0x196   : > { %33563 = vmatprep.mubr.msk.f32.mxu1 %vm398_vm0, %v275_v38  ;;  %35565 = vmatprep.mubr.msk.f32.mxu0 %vm398_vm0, %v15527_v39  ;;  %v15556_v37 = vld [vmem:[%s39948_s10 + $0x5de] sm:$0xff]  ;;  %v15557_v39 = vld [vmem:[%s39948_s10 + $0x5e6] sm:$0xff] }
 0x197   : > { %v2209_v38 = vld [vmem:[%s39948_s10 + $0xa4] sm:$0xff] }
 0x199   : > { %33564 = vmatmul.mubr.msk.f32.gmra.mrb[90].mxu1 %vm398_vm0, %v276_v40  ;;  %35566 = vmatmul.mubr.msk.f32.gmra.mrb[38].mxu0 %vm398_vm0, %v15528_v42  ;;  %v2210_v40 = vld [vmem:[%s39948_s10 + $0xac] sm:$0xff] }
 0x19a   : > { %33566 = vmatprep.mubr.msk.f32.mxu1 %vm398_vm0, %v277_v43  ;;  %35568 = vmatprep.mubr.msk.f32.mxu0 %vm398_vm0, %v15529_v44  ;;  %v15558_v42 = vld [vmem:[%s39948_s10 + $0x5ee] sm:$0xff]  ;;  %v15559_v44 = vld [vmem:[%s39948_s10 + $0x5f6] sm:$0xff] }
 0x19b   : > { %v2211_v43 = vld [vmem:[%s39948_s10 + $0xb4] sm:$0xff] }
 0x19d   : > { %33567 = vmatmul.mubr.msk.f32.gmra.mrb[92].mxu1 %vm398_vm0, %v278_v45  ;;  %35569 = vmatmul.mubr.msk.f32.gmra.mrb[40].mxu0 %vm398_vm0, %v15530_v46  ;;  %v2212_v45 = vld [vmem:[%s39948_s10 + $0xbc] sm:$0xff] }
 0x19e   : > { %33569 = vmatprep.mubr.msk.f32.mxu1 %vm398_vm0, %v279_v49  ;;  %35571 = vmatprep.mubr.msk.f32.mxu0 %vm398_vm0, %v15531_v50  ;;  %v15560_v46 = vld [vmem:[%s39948_s10 + $0x5fe] sm:$0xff]  ;;  %v2214_v49 = vld [vmem:[%s39948_s10 + $0xcc] sm:$0xff] }
 0x19f   : > { %v15562_v50 = vld [vmem:[%s39948_s10 + $0x60e] sm:$0xff] }
 0x1a1   : > { %33570 = vmatmul.mubr.msk.f32.gmra.mrb[94].mxu1 %vm398_vm0, %v280_v52  ;;  %35572 = vmatmul.mubr.msk.f32.gmra.mrb[42].mxu0 %vm398_vm0, %v15532_v41  ;;  %v2215_v52 = vld [vmem:[%s39948_s10 + $0xd4] sm:$0xff] }
 0x1a2   : > { %33572 = vmatprep.mubr.msk.f32.mxu1 %vm398_vm0, %v281_v53  ;;  %35574 = vmatprep.mubr.msk.f32.mxu0 %vm398_vm0, %v15533_v54  ;;  %v15563_v41 = vld [vmem:[%s39948_s10 + $0x616] sm:$0xff]  ;;  %v15564_v54 = vld [vmem:[%s39948_s10 + $0x61e] sm:$0xff] }
 0x1a3   : > { %v2216_v53 = vld [vmem:[%s39948_s10 + $0xdc] sm:$0xff] }
 0x1a5   : > { %33573 = vmatmul.mubr.msk.f32.gmra.mrb[96].mxu1 %vm398_vm0, %v282_v55  ;;  %35575 = vmatmul.mubr.msk.f32.gmra.mrb[44].mxu0 %vm398_vm0, %v15534_v56  ;;  %v2217_v55 = vld [vmem:[%s39948_s10 + $0xe4] sm:$0xff] }
 0x1a6   : > { %33575 = vmatprep.mubr.msk.f32.mxu1 %vm398_vm0, %v283_v57  ;;  %35577 = vmatprep.mubr.msk.f32.mxu0 %vm398_vm0, %v15535_v58  ;;  %v15565_v56 = vld [vmem:[%s39948_s10 + $0x626] sm:$0xff]  ;;  %v15566_v58 = vld [vmem:[%s39948_s10 + $0x62e] sm:$0xff] }
 0x1a7   : > { %v2218_v57 = vld [vmem:[%s39948_s10 + $0xec] sm:$0xff] }
 0x1a9   : > { %33576 = vmatmul.mubr.msk.f32.gmra.mrb[98].mxu1 %vm398_vm0, %v284_v59  ;;  %35578 = vmatmul.mubr.msk.f32.gmra.mrb[46].mxu0 %vm398_vm0, %v15536_v60  ;;  %v2219_v59 = vld [vmem:[%s39948_s10 + $0xf4] sm:$0xff] }
 0x1aa   : > { %33578 = vmatprep.mubr.msk.f32.mxu1 %vm398_vm0, %v285_v61  ;;  %35580 = vmatprep.mubr.msk.f32.mxu0 %vm398_vm0, %v15537_v62  ;;  %v15567_v60 = vld [vmem:[%s39948_s10 + $0x636] sm:$0xff]  ;;  %v15568_v62 = vld [vmem:[%s39948_s10 + $0x63e] sm:$0xff] }
 0x1ab   : > { %v2220_v61 = vld [vmem:[%s39948_s10 + $0xfc] sm:$0xff] }
 0x1ad   : > { %33579 = vmatmul.mubr.msk.f32.gmra.mrb[100].mxu1 %vm398_vm0, %v286_v63  ;;  %35581 = vmatmul.mubr.msk.f32.gmra.mrb[48].mxu0 %vm398_vm0, %v15538_v0  ;;  %v2221_v63 = vld [vmem:[%s39948_s10 + $0x104] sm:$0xff] }
 0x1ae   : > { %33581 = vmatprep.mubr.msk.f32.mxu1 %vm398_vm0, %v287_v1  ;;  %35583 = vmatprep.mubr.msk.f32.mxu0 %vm398_vm0, %v15539_v2  ;;  %v15569_v0 = vld [vmem:[%s39948_s10 + $0x646] sm:$0xff]  ;;  %v15570_v2 = vld [vmem:[%s39948_s10 + $0x64e] sm:$0xff] }
 0x1af   : > { %v2222_v1 = vld [vmem:[%s39948_s10 + $0x10c] sm:$0xff] }
 0x1b1   : > { %33582 = vmatmul.mubr.msk.f32.gmra.mrb[102].mxu1 %vm398_vm0, %v288_v3  ;;  %35584 = vmatmul.mubr.msk.f32.gmra.mrb[50].mxu0 %vm398_vm0, %v15540_v5  ;;  %v2223_v3 = vld [vmem:[%s39948_s10 + $0x114] sm:$0xff] }
 0x1b2   : > { %33588 = vmatprep.mubr.msk.f32.mxu1 %vm398_vm0, %v2193_v20  ;;  %35586 = vmatprep.mubr.msk.f32.mxu0 %vm398_vm0, %v15541_v6  ;;  %v15571_v5 = vld [vmem:[%s39948_s10 + $0x656] sm:$0xff]  ;;  %v15572_v6 = vld [vmem:[%s39948_s10 + $0x65e] sm:$0xff] }
 0x1b3   : > { %v2224_v20 = vld [vmem:[%s39948_s10 + $0x11c] sm:$0xff] }
 0x1b5   : > { %33589 = vmatmul.mubr.msk.f32.vlgmr.msra.gmra.mrb[0].mxu1 %vm398_vm0, %v2194_v8  ;;  %35587 = vmatmul.mubr.msk.f32.gmra.mrb[52].mxu0 %vm398_vm0, %v15542_v9  ;;  %v2225_v8 = vld [vmem:[%s39948_s10 + $0x124] sm:$0xff] }
 0x1b6   : > { %37279 = vmatpush3.bf16.msra.mxu1 %v40563_v4  ;;  %33591 = vmatprep.mubr.msk.f32.mxu1 %vm398_vm0, %v2195_v10  ;;  %v2198_v4 = vld [vmem:[%s39948_s10 + $0x4c] sm:$0xff] }
 0x1b7   : > { %35589 = vmatprep.mubr.msk.f32.mxu0 %vm398_vm0, %v15543_v11  ;;  %v15573_v9 = vld [vmem:[%s39948_s10 + $0x666] sm:$0xff]  ;;  %v15574_v11 = vld [vmem:[%s39948_s10 + $0x66e] sm:$0xff] }
 0x1b8   : > { %v2226_v10 = vld [vmem:[%s39948_s10 + $0x12c] sm:$0xff] }
 0x1b9   : > { %33592 = vmatmul.mubr.msk.f32.gmra.mrb[2].mxu1 %vm398_vm0, %v2196_v12  ;;  %35590 = vmatmul.mubr.msk.f32.gmra.mrb[54].mxu0 %vm398_vm0, %v15544_v13  ;;  %v2227_v12 = vld [vmem:[%s39948_s10 + $0x134] sm:$0xff] }
 0x1ba   : > { %33594 = vmatprep.mubr.msk.f32.mxu1 %vm398_vm0, %v2197_v14  ;;  %35592 = vmatprep.mubr.msk.f32.mxu0 %vm398_vm0, %v15545_v15  ;;  %v15575_v13 = vld [vmem:[%s39948_s10 + $0x676] sm:$0xff]  ;;  %v15576_v15 = vld [vmem:[%s39948_s10 + $0x67e] sm:$0xff] }
 0x1bb   : > { %v2228_v14 = vld [vmem:[%s39948_s10 + $0x13c] sm:$0xff] }
 0x1bd   : > { %33595 = vmatmul.mubr.msk.f32.gmra.mrb[4].mxu1 %vm398_vm0, %v2198_v4  ;;  %35593 = vmatmul.mubr.msk.f32.gmra.mrb[56].mxu0 %vm398_vm0, %v15546_v16  ;;  %v2229_v4 = vld [vmem:[%s39948_s10 + $0x144] sm:$0xff] }
 0x1be   : > { %33597 = vmatprep.mubr.msk.f32.mxu1 %vm398_vm0, %v2199_v17  ;;  %35595 = vmatprep.mubr.msk.f32.mxu0 %vm398_vm0, %v15547_v18  ;;  %v15577_v16 = vld [vmem:[%s39948_s10 + $0x686] sm:$0xff]  ;;  %v15578_v18 = vld [vmem:[%s39948_s10 + $0x68e] sm:$0xff] }
 0x1bf   : > { %v2230_v17 = vld [vmem:[%s39948_s10 + $0x14c] sm:$0xff] }
 0x1c1   : > { %33598 = vmatmul.mubr.msk.f32.gmra.mrb[6].mxu1 %vm398_vm0, %v2200_v19  ;;  %35596 = vmatmul.mubr.msk.f32.gmra.mrb[58].mxu0 %vm398_vm0, %v15548_v21  ;;  %v2231_v19 = vld [vmem:[%s39948_s10 + $0x154] sm:$0xff] }
 0x1c2   : > { %33600 = vmatprep.mubr.msk.f32.mxu1 %vm398_vm0, %v2201_v22  ;;  %35598 = vmatprep.mubr.msk.f32.mxu0 %vm398_vm0, %v15549_v24  ;;  %v15579_v21 = vld [vmem:[%s39948_s10 + $0x696] sm:$0xff]  ;;  %v15580_v24 = vld [vmem:[%s39948_s10 + $0x69e] sm:$0xff] }
 0x1c3   : > { %v2232_v22 = vld [vmem:[%s39948_s10 + $0x15c] sm:$0xff] }
 0x1c5   : > { %33601 = vmatmul.mubr.msk.f32.gmra.mrb[8].mxu1 %vm398_vm0, %v2202_v25  ;;  %35599 = vmatmul.mubr.msk.f32.gmra.mrb[60].mxu0 %vm398_vm0, %v15550_v26  ;;  %v2233_v25 = vld [vmem:[%s39948_s10 + $0x164] sm:$0xff] }
 0x1c6   : > { %33603 = vmatprep.mubr.msk.f32.mxu1 %vm398_vm0, %v2203_v27  ;;  %35601 = vmatprep.mubr.msk.f32.mxu0 %vm398_vm0, %v15551_v28  ;;  %v15581_v26 = vld [vmem:[%s39948_s10 + $0x6a6] sm:$0xff]  ;;  %v15582_v28 = vld [vmem:[%s39948_s10 + $0x6ae] sm:$0xff] }
 0x1c7   : > { %v2234_v27 = vld [vmem:[%s39948_s10 + $0x16c] sm:$0xff] }
 0x1c9   : > { %33604 = vmatmul.mubr.msk.f32.gmra.mrb[10].mxu1 %vm398_vm0, %v2204_v29  ;;  %35602 = vmatmul.mubr.msk.f32.gmra.mrb[62].mxu0 %vm398_vm0, %v15552_v30  ;;  %v28385_v29 = vld [vmem:[%s46145_s2 + $0x40] sm:$0xff]  ;;  %v28386_v30 = vld [vmem:[%s46145_s2 + $0x48] sm:$0xff] }
 0x1ca   : > { %33606 = vmatprep.mubr.msk.f32.mxu1 %vm398_vm0, %v2205_v31  ;;  %35604 = vmatprep.mubr.msk.f32.mxu0 %vm398_vm0, %v15553_v32  ;;  %v2235_v31 = vld [vmem:[%s39948_s10 + $0x174] sm:$0xff] }
 0x1cb   : > { %v15583_v32 = vld [vmem:[%s39948_s10 + $0x6b6] sm:$0xff] }
 0x1cd   : > { %33607 = vmatmul.mubr.msk.f32.gmra.mrb[12].mxu1 %vm398_vm0, %v2206_v33  ;;  %35605 = vmatmul.mubr.msk.f32.gmra.mrb[64].mxu0 %vm398_vm0, %v15554_v34  ;;  %v40999_v33 = vpack.c.bf16 %v28386_v30, %v28385_v29  ;;  %v2236_v34 = vld [vmem:[%s39948_s10 + $0x17c] sm:$0xff]  ;;  %v2265_v29 = vld [vmem:[%s39948_s10 + $0x264] sm:$0xff]  ;;  %v16617_v30 = vld [vmem:[%s39948_s10 + $0x46c] sm:$0xff] }
 0x1ce   : > { %33609 = vmatprep.mubr.msk.f32.mxu1 %vm398_vm0, %v2207_v23  ;;  %35607 = vmatprep.mubr.msk.f32.mxu0 %vm398_vm0, %v15555_v35  ;;  %v15584_v23 = vld [vmem:[%s39948_s10 + $0x6be] sm:$0xff] }
 0x1cf   : > { %v2237_v35 = vld [vmem:[%s39948_s10 + $0x184] sm:$0xff]  ;;  %37281 = vmatprep.subr.bf16.mxu1 %v40999_v33 }
 0x1d1   : > { %33610 = vmatmul.mubr.msk.f32.gmra.mrb[14].mxu1 %vm398_vm0, %v2208_v36  ;;  %35608 = vmatmul.mubr.msk.f32.gmra.mrb[66].mxu0 %vm398_vm0, %v15556_v37  ;;  %v15585_v36 = vld [vmem:[%s39948_s10 + $0x6c6] sm:$0xff] }
 0x1d2   : > { %33612 = vmatprep.mubr.msk.f32.mxu1 %vm398_vm0, %v2209_v38  ;;  %35610 = vmatprep.mubr.msk.f32.mxu0 %vm398_vm0, %v15557_v39  ;;  %v2238_v37 = vld [vmem:[%s39948_s10 + $0x18c] sm:$0xff]  ;;  %v2239_v39 = vld [vmem:[%s39948_s10 + $0x194] sm:$0xff] }
 0x1d3   : > { %v15586_v38 = vld [vmem:[%s39948_s10 + $0x6ce] sm:$0xff] }
 0x1d5   : > { %33613 = vmatmul.mubr.msk.f32.gmra.mrb[16].mxu1 %vm398_vm0, %v2210_v40  ;;  %35611 = vmatmul.mubr.msk.f32.gmra.mrb[68].mxu0 %vm398_vm0, %v15558_v42  ;;  %v15587_v40 = vld [vmem:[%s39948_s10 + $0x6d6] sm:$0xff] }
 0x1d6   : > { %33615 = vmatprep.mubr.msk.f32.mxu1 %vm398_vm0, %v2211_v43  ;;  %35613 = vmatprep.mubr.msk.f32.mxu0 %vm398_vm0, %v15559_v44  ;;  %v2240_v42 = vld [vmem:[%s39948_s10 + $0x19c] sm:$0xff]  ;;  %v2241_v44 = vld [vmem:[%s39948_s10 + $0x1a4] sm:$0xff] }
 0x1d7   : > { %v15588_v43 = vld [vmem:[%s39948_s10 + $0x6de] sm:$0xff] }
 0x1d9   : > { %33616 = vmatmul.mubr.msk.f32.gmra.mrb[18].mxu1 %vm398_vm0, %v2212_v45  ;;  %35614 = vmatmul.mubr.msk.f32.gmra.mrb[70].mxu0 %vm398_vm0, %v15560_v46  ;;  %v15589_v45 = vld [vmem:[%s39948_s10 + $0x6e6] sm:$0xff] }
 0x1da   : > { %33618 = vmatprep.mubr.msk.f32.mxu1 %vm398_vm0, %v2213_v47  ;;  %35616 = vmatprep.mubr.msk.f32.mxu0 %vm398_vm0, %v15561_v48  ;;  %v2242_v46 = vld [vmem:[%s39948_s10 + $0x1ac] sm:$0xff]  ;;  %v2243_v48 = vld [vmem:[%s39948_s10 + $0x1b4] sm:$0xff] }
 0x1db   : > { %v15590_v47 = vld [vmem:[%s39948_s10 + $0x6ee] sm:$0xff] }
 0x1dd   : > { %33619 = vmatmul.mubr.msk.f32.gmra.mrb[20].mxu1 %vm398_vm0, %v2214_v49  ;;  %35617 = vmatmul.mubr.msk.f32.gmra.mrb[72].mxu0 %vm398_vm0, %v15562_v50  ;;  %v15591_v49 = vld [vmem:[%s39948_s10 + $0x6f6] sm:$0xff] }
 0x1de   : > { %33621 = vmatprep.mubr.msk.f32.mxu1 %vm398_vm0, %v2215_v52  ;;  %35619 = vmatprep.mubr.msk.f32.mxu0 %vm398_vm0, %v15563_v41  ;;  %v2244_v50 = vld [vmem:[%s39948_s10 + $0x1bc] sm:$0xff]  ;;  %v2245_v41 = vld [vmem:[%s39948_s10 + $0x1c4] sm:$0xff] }
 0x1df   : > { %v15592_v52 = vld [vmem:[%s39948_s10 + $0x6fe] sm:$0xff] }
 0x1e1   : > { %33622 = vmatmul.mubr.msk.f32.gmra.mrb[22].mxu1 %vm398_vm0, %v2216_v53  ;;  %35620 = vmatmul.mubr.msk.f32.gmra.mrb[74].mxu0 %vm398_vm0, %v15564_v54  ;;  %v16597_v53 = vld [vmem:[%s39948_s10 + $0x3cc] sm:$0xff] }
 0x1e2   : > { %33624 = vmatprep.mubr.msk.f32.mxu1 %vm398_vm0, %v2217_v55  ;;  %35622 = vmatprep.mubr.msk.f32.mxu0 %vm398_vm0, %v15565_v56  ;;  %v2246_v54 = vld [vmem:[%s39948_s10 + $0x1cc] sm:$0xff]  ;;  %v16598_v55 = vld [vmem:[%s39948_s10 + $0x3d4] sm:$0xff] }
 0x1e3   : > { %v2247_v56 = vld [vmem:[%s39948_s10 + $0x1d4] sm:$0xff] }
 0x1e5   : > { %33625 = vmatmul.mubr.msk.f32.gmra.mrb[24].mxu1 %vm398_vm0, %v2218_v57  ;;  %35623 = vmatmul.mubr.msk.f32.gmra.mrb[76].mxu0 %vm398_vm0, %v15566_v58  ;;  %v16599_v57 = vld [vmem:[%s39948_s10 + $0x3dc] sm:$0xff] }
 0x1e6   : > { %33627 = vmatprep.mubr.msk.f32.mxu1 %vm398_vm0, %v2219_v59  ;;  %35625 = vmatprep.mubr.msk.f32.mxu0 %vm398_vm0, %v15567_v60  ;;  %v2248_v58 = vld [vmem:[%s39948_s10 + $0x1dc] sm:$0xff]  ;;  %v16600_v59 = vld [vmem:[%s39948_s10 + $0x3e4] sm:$0xff] }
 0x1e7   : > { %v2249_v60 = vld [vmem:[%s39948_s10 + $0x1e4] sm:$0xff] }
 0x1e9   : > { %33628 = vmatmul.mubr.msk.f32.gmra.mrb[26].mxu1 %vm398_vm0, %v2220_v61  ;;  %35626 = vmatmul.mubr.msk.f32.gmra.mrb[78].mxu0 %vm398_vm0, %v15568_v62  ;;  %v16601_v61 = vld [vmem:[%s39948_s10 + $0x3ec] sm:$0xff]  ;;  %v16602_v62 = vld [vmem:[%s39948_s10 + $0x3f4] sm:$0xff] }
 0x1ea   : > { %33630 = vmatprep.mubr.msk.f32.mxu1 %vm398_vm0, %v2221_v63  ;;  %35628 = vmatprep.mubr.msk.f32.mxu0 %vm398_vm0, %v15569_v0  ;;  %v2251_v63 = vld [vmem:[%s39948_s10 + $0x1f4] sm:$0xff]  ;;  %v16603_v0 = vld [vmem:[%s39948_s10 + $0x3fc] sm:$0xff] }
 0x1ed   : > { %33631 = vmatmul.mubr.msk.f32.gmra.mrb[28].mxu1 %vm398_vm0, %v2222_v1  ;;  %35629 = vmatmul.mubr.msk.f32.gmra.mrb[80].mxu0 %vm398_vm0, %v15570_v2  ;;  %v2252_v1 = vld [vmem:[%s39948_s10 + $0x1fc] sm:$0xff]  ;;  %v16604_v2 = vld [vmem:[%s39948_s10 + $0x404] sm:$0xff] }
 0x1ee   : > { %33633 = vmatprep.mubr.msk.f32.mxu1 %vm398_vm0, %v2223_v3  ;;  %35631 = vmatprep.mubr.msk.f32.mxu0 %vm398_vm0, %v15571_v5  ;;  %v2253_v3 = vld [vmem:[%s39948_s10 + $0x204] sm:$0xff]  ;;  %v16605_v5 = vld [vmem:[%s39948_s10 + $0x40c] sm:$0xff] }
 0x1f1   : > { %33634 = vmatmul.mubr.msk.f32.gmra.mrb[30].mxu1 %vm398_vm0, %v2224_v20  ;;  %35632 = vmatmul.mubr.msk.f32.gmra.mrb[82].mxu0 %vm398_vm0, %v15572_v6  ;;  %v2254_v20 = vld [vmem:[%s39948_s10 + $0x20c] sm:$0xff]  ;;  %v16606_v6 = vld [vmem:[%s39948_s10 + $0x414] sm:$0xff] }
 0x1f2   : > { %33636 = vmatprep.mubr.msk.f32.mxu1 %vm398_vm0, %v2225_v8  ;;  %35634 = vmatprep.mubr.msk.f32.mxu0 %vm398_vm0, %v15573_v9  ;;  %v2255_v8 = vld [vmem:[%s39948_s10 + $0x214] sm:$0xff]  ;;  %v16607_v9 = vld [vmem:[%s39948_s10 + $0x41c] sm:$0xff] }
 0x1f5   : > { %33637 = vmatmul.mubr.msk.f32.gmra.mrb[32].mxu1 %vm398_vm0, %v2226_v10  ;;  %35635 = vmatmul.mubr.msk.f32.gmra.mrb[84].mxu0 %vm398_vm0, %v15574_v11  ;;  %v2256_v10 = vld [vmem:[%s39948_s10 + $0x21c] sm:$0xff]  ;;  %v16608_v11 = vld [vmem:[%s39948_s10 + $0x424] sm:$0xff] }
 0x1f6   : > { %33639 = vmatprep.mubr.msk.f32.mxu1 %vm398_vm0, %v2227_v12  ;;  %35637 = vmatprep.mubr.msk.f32.mxu0 %vm398_vm0, %v15575_v13  ;;  %v2257_v12 = vld [vmem:[%s39948_s10 + $0x224] sm:$0xff]  ;;  %v16609_v13 = vld [vmem:[%s39948_s10 + $0x42c] sm:$0xff] }
 0x1f9   : > { %33640 = vmatmul.mubr.msk.f32.gmra.mrb[34].mxu1 %vm398_vm0, %v2228_v14  ;;  %35638 = vmatmul.mubr.msk.f32.gmra.mrb[86].mxu0 %vm398_vm0, %v15576_v15  ;;  %v2258_v14 = vld [vmem:[%s39948_s10 + $0x22c] sm:$0xff]  ;;  %v16610_v15 = vld [vmem:[%s39948_s10 + $0x434] sm:$0xff] }
 0x1fa   : > { %33642 = vmatprep.mubr.msk.f32.mxu1 %vm398_vm0, %v2229_v4  ;;  %35640 = vmatprep.mubr.msk.f32.mxu0 %vm398_vm0, %v15577_v16  ;;  %v2259_v4 = vld [vmem:[%s39948_s10 + $0x234] sm:$0xff]  ;;  %v16611_v16 = vld [vmem:[%s39948_s10 + $0x43c] sm:$0xff] }
 0x1fd   : > { %33643 = vmatmul.mubr.msk.f32.gmra.mrb[36].mxu1 %vm398_vm0, %v2230_v17  ;;  %35641 = vmatmul.mubr.msk.f32.gmra.mrb[88].mxu0 %vm398_vm0, %v15578_v18  ;;  %v2260_v17 = vld [vmem:[%s39948_s10 + $0x23c] sm:$0xff]  ;;  %v16612_v18 = vld [vmem:[%s39948_s10 + $0x444] sm:$0xff] }
 0x1fe   : > { %33645 = vmatprep.mubr.msk.f32.mxu1 %vm398_vm0, %v2231_v19  ;;  %35643 = vmatprep.mubr.msk.f32.mxu0 %vm398_vm0, %v15579_v21  ;;  %v2261_v19 = vld [vmem:[%s39948_s10 + $0x244] sm:$0xff]  ;;  %v16613_v21 = vld [vmem:[%s39948_s10 + $0x44c] sm:$0xff] }
 0x201   : > { %33646 = vmatmul.mubr.msk.f32.gmra.mrb[38].mxu1 %vm398_vm0, %v2232_v22  ;;  %35644 = vmatmul.mubr.msk.f32.gmra.mrb[90].mxu0 %vm398_vm0, %v15580_v24  ;;  %v2262_v22 = vld [vmem:[%s39948_s10 + $0x24c] sm:$0xff]  ;;  %v16614_v24 = vld [vmem:[%s39948_s10 + $0x454] sm:$0xff] }
 0x202   : > { %33648 = vmatprep.mubr.msk.f32.mxu1 %vm398_vm0, %v2233_v25  ;;  %35646 = vmatprep.mubr.msk.f32.mxu0 %vm398_vm0, %v15581_v26  ;;  %v2263_v25 = vld [vmem:[%s39948_s10 + $0x254] sm:$0xff]  ;;  %v16615_v26 = vld [vmem:[%s39948_s10 + $0x45c] sm:$0xff] }
 0x205   : > { %33649 = vmatmul.mubr.msk.f32.gmra.mrb[40].mxu1 %vm398_vm0, %v2234_v27  ;;  %35647 = vmatmul.mubr.msk.f32.gmra.mrb[92].mxu0 %vm398_vm0, %v15582_v28  ;;  %v2264_v27 = vld [vmem:[%s39948_s10 + $0x25c] sm:$0xff]  ;;  %v16616_v28 = vld [vmem:[%s39948_s10 + $0x464] sm:$0xff] }
 0x206   : > { %33651 = vmatprep.mubr.msk.f32.mxu1 %vm398_vm0, %v2235_v31  ;;  %35649 = vmatprep.mubr.msk.f32.mxu0 %vm398_vm0, %v15583_v32  ;;  %v2266_v31 = vld [vmem:[%s39948_s10 + $0x26c] sm:$0xff]  ;;  %v16618_v32 = vld [vmem:[%s39948_s10 + $0x474] sm:$0xff] }
 0x209   : > { %33652 = vmatmul.mubr.msk.f32.gmra.mrb[42].mxu1 %vm398_vm0, %v2236_v34  ;;  %35650 = vmatmul.mubr.msk.f32.gmra.mrb[94].mxu0 %vm398_vm0, %v15584_v23  ;;  %v2267_v34 = vld [vmem:[%s39948_s10 + $0x274] sm:$0xff]  ;;  %v16619_v23 = vld [vmem:[%s39948_s10 + $0x47c] sm:$0xff] }
 0x20a   : > { %33654 = vmatprep.mubr.msk.f32.mxu1 %vm398_vm0, %v2237_v35  ;;  %35652 = vmatprep.mubr.msk.f32.mxu0 %vm398_vm0, %v15585_v36  ;;  %v2268_v35 = vld [vmem:[%s39948_s10 + $0x27c] sm:$0xff]  ;;  %v16620_v36 = vld [vmem:[%s39948_s10 + $0x484] sm:$0xff] }
 0x20d   : > { %33655 = vmatmul.mubr.msk.f32.gmra.mrb[44].mxu1 %vm398_vm0, %v2238_v37  ;;  %35653 = vmatmul.mubr.msk.f32.gmra.mrb[96].mxu0 %vm398_vm0, %v15586_v38  ;;  %v2269_v37 = vld [vmem:[%s39948_s10 + $0x284] sm:$0xff]  ;;  %v16621_v38 = vld [vmem:[%s39948_s10 + $0x48c] sm:$0xff] }
 0x20e   : > { %33657 = vmatprep.mubr.msk.f32.mxu1 %vm398_vm0, %v2239_v39  ;;  %35655 = vmatprep.mubr.msk.f32.mxu0 %vm398_vm0, %v15587_v40  ;;  %v2270_v39 = vld [vmem:[%s39948_s10 + $0x28c] sm:$0xff]  ;;  %v16622_v40 = vld [vmem:[%s39948_s10 + $0x494] sm:$0xff] }
 0x211   : > { %33658 = vmatmul.mubr.msk.f32.gmra.mrb[46].mxu1 %vm398_vm0, %v2240_v42  ;;  %35656 = vmatmul.mubr.msk.f32.gmra.mrb[98].mxu0 %vm398_vm0, %v15588_v43  ;;  %v2271_v42 = vld [vmem:[%s39948_s10 + $0x294] sm:$0xff]  ;;  %v16623_v43 = vld [vmem:[%s39948_s10 + $0x49c] sm:$0xff] }
 0x212   : > { %33660 = vmatprep.mubr.msk.f32.mxu1 %vm398_vm0, %v2241_v44  ;;  %35658 = vmatprep.mubr.msk.f32.mxu0 %vm398_vm0, %v15589_v45  ;;  %v2272_v44 = vld [vmem:[%s39948_s10 + $0x29c] sm:$0xff]  ;;  %v16624_v45 = vld [vmem:[%s39948_s10 + $0x4a4] sm:$0xff] }
 0x215   : > { %33661 = vmatmul.mubr.msk.f32.gmra.mrb[48].mxu1 %vm398_vm0, %v2242_v46  ;;  %35659 = vmatmul.mubr.msk.f32.gmra.mrb[100].mxu0 %vm398_vm0, %v15590_v47  ;;  %v2273_v46 = vld [vmem:[%s39948_s10 + $0x2a4] sm:$0xff]  ;;  %v16625_v47 = vld [vmem:[%s39948_s10 + $0x4ac] sm:$0xff] }
 0x216   : > { %33663 = vmatprep.mubr.msk.f32.mxu1 %vm398_vm0, %v2243_v48  ;;  %35661 = vmatprep.mubr.msk.f32.mxu0 %vm398_vm0, %v15591_v49  ;;  %v2274_v48 = vld [vmem:[%s39948_s10 + $0x2ac] sm:$0xff]  ;;  %v16626_v49 = vld [vmem:[%s39948_s10 + $0x4b4] sm:$0xff] }
 0x219   : > { %33664 = vmatmul.mubr.msk.f32.gmra.mrb[50].mxu1 %vm398_vm0, %v2244_v50  ;;  %35662 = vmatmul.mubr.msk.f32.gmra.mrb[102].mxu0 %vm398_vm0, %v15592_v52  ;;  %v2275_v50 = vld [vmem:[%s39948_s10 + $0x2b4] sm:$0xff]  ;;  %v16627_v52 = vld [vmem:[%s39948_s10 + $0x4bc] sm:$0xff] }
 0x21a   : > { %33666 = vmatprep.mubr.msk.f32.mxu1 %vm398_vm0, %v2245_v41  ;;  %35668 = vmatprep.mubr.msk.f32.mxu0 %vm398_vm0, %v16597_v53  ;;  %v2276_v41 = vld [vmem:[%s39948_s10 + $0x2bc] sm:$0xff]  ;;  %v16628_v53 = vld [vmem:[%s39948_s10 + $0x4c4] sm:$0xff] }
 0x21d   : > { %33667 = vmatmul.mubr.msk.f32.gmra.mrb[52].mxu1 %vm398_vm0, %v2246_v54  ;;  %35669 = vmatmul.mubr.msk.f32.vlgmr.msra.gmra.mrb[0].mxu0 %vm398_vm0, %v16598_v55  ;;  %v2277_v54 = vld [vmem:[%s39948_s10 + $0x2c4] sm:$0xff]  ;;  %v16629_v55 = vld [vmem:[%s39948_s10 + $0x4cc] sm:$0xff] }
 0x21e   : > { %37331 = vmatpush3.bf16.msra.mxu0 %v40781_v51  ;;  %33669 = vmatprep.mubr.msk.f32.mxu1 %vm398_vm0, %v2247_v56  ;;  %v2250_v51 = vld [vmem:[%s39948_s10 + $0x1ec] sm:$0xff] }
 0x21f   : > { %35671 = vmatprep.mubr.msk.f32.mxu0 %vm398_vm0, %v16599_v57  ;;  %v2278_v56 = vld [vmem:[%s39948_s10 + $0x2cc] sm:$0xff]  ;;  %v16630_v57 = vld [vmem:[%s39948_s10 + $0x4d4] sm:$0xff] }
 0x221   : > { %33670 = vmatmul.mubr.msk.f32.gmra.mrb[54].mxu1 %vm398_vm0, %v2248_v58  ;;  %35672 = vmatmul.mubr.msk.f32.gmra.mrb[2].mxu0 %vm398_vm0, %v16600_v59  ;;  %v2279_v58 = vld [vmem:[%s39948_s10 + $0x2d4] sm:$0xff]  ;;  %v16631_v59 = vld [vmem:[%s39948_s10 + $0x4dc] sm:$0xff] }
 0x222   : > { %33672 = vmatprep.mubr.msk.f32.mxu1 %vm398_vm0, %v2249_v60  ;;  %35674 = vmatprep.mubr.msk.f32.mxu0 %vm398_vm0, %v16601_v61  ;;  %v2280_v60 = vld [vmem:[%s39948_s10 + $0x2dc] sm:$0xff]  ;;  %v16632_v61 = vld [vmem:[%s39948_s10 + $0x4e4] sm:$0xff] }
 0x225   : > { %33673 = vmatmul.mubr.msk.f32.gmra.mrb[56].mxu1 %vm398_vm0, %v2250_v51  ;;  %35675 = vmatmul.mubr.msk.f32.gmra.mrb[4].mxu0 %vm398_vm0, %v16602_v62  ;;  %v2281_v51 = vld [vmem:[%s39948_s10 + $0x2e4] sm:$0xff]  ;;  %v41187_v62 = vld [vmem:[%s39948_s10 + $0x4ec] sm:$0xff] }
 0x226   : > { %33675 = vmatprep.mubr.msk.f32.mxu1 %vm398_vm0, %v2251_v63  ;;  %35677 = vmatprep.mubr.msk.f32.mxu0 %vm398_vm0, %v16603_v0  ;;  %v2282_v63 = vld [vmem:[%s39948_s10 + $0x2ec] sm:$0xff]  ;;  %v41196_v0 = vld [vmem:[%s39948_s10 + $0x4f4] sm:$0xff] }
 0x229   : > { %33676 = vmatmul.mubr.msk.f32.gmra.mrb[58].mxu1 %vm398_vm0, %v2252_v1  ;;  %35678 = vmatmul.mubr.msk.f32.gmra.mrb[6].mxu0 %vm398_vm0, %v16604_v2  ;;  %v2283_v1 = vld [vmem:[%s39948_s10 + $0x2f4] sm:$0xff]  ;;  %v41200_v2 = vld [vmem:[%s39948_s10 + $0x4fc] sm:$0xff] }
 0x22a   : > { %33678 = vmatprep.mubr.msk.f32.mxu1 %vm398_vm0, %v2253_v3  ;;  %35680 = vmatprep.mubr.msk.f32.mxu0 %vm398_vm0, %v16605_v5  ;;  %v2284_v3 = vld [vmem:[%s39948_s10 + $0x2fc] sm:$0xff]  ;;  %v41210_v5 = vld [vmem:[%s39948_s10 + $0x504] sm:$0xff] }
 0x22d   : > { %33679 = vmatmul.mubr.msk.f32.gmra.mrb[60].mxu1 %vm398_vm0, %v2254_v20  ;;  %35681 = vmatmul.mubr.msk.f32.gmra.mrb[8].mxu0 %vm398_vm0, %v16606_v6  ;;  %v2285_v20 = vld [vmem:[%s39948_s10 + $0x304] sm:$0xff]  ;;  %v41214_v6 = vld [vmem:[%s39948_s10 + $0x50c] sm:$0xff] }
 0x22e   : > { %33681 = vmatprep.mubr.msk.f32.mxu1 %vm398_vm0, %v2255_v8  ;;  %35683 = vmatprep.mubr.msk.f32.mxu0 %vm398_vm0, %v16607_v9  ;;  %v2286_v8 = vld [vmem:[%s39948_s10 + $0x30c] sm:$0xff]  ;;  %v41224_v9 = vld [vmem:[%s39948_s10 + $0x514] sm:$0xff] }
 0x231   : > { %33682 = vmatmul.mubr.msk.f32.gmra.mrb[62].mxu1 %vm398_vm0, %v2256_v10  ;;  %35684 = vmatmul.mubr.msk.f32.gmra.mrb[10].mxu0 %vm398_vm0, %v16608_v11  ;;  %v29763_v10 = vld [vmem:[%s46145_s2 + $0x110] sm:$0xff]  ;;  %v29764_v11 = vld [vmem:[%s46145_s2 + $0x118] sm:$0xff] }
 0x232   : > { %33684 = vmatprep.mubr.msk.f32.mxu1 %vm398_vm0, %v2257_v12  ;;  %35686 = vmatprep.mubr.msk.f32.mxu0 %vm398_vm0, %v16609_v13  ;;  %v2287_v12 = vld [vmem:[%s39948_s10 + $0x314] sm:$0xff]  ;;  %v41234_v13 = vld [vmem:[%s39948_s10 + $0x51c] sm:$0xff] }
 0x235   : > { %33685 = vmatmul.mubr.msk.f32.gmra.mrb[64].mxu1 %vm398_vm0, %v2258_v14  ;;  %35687 = vmatmul.mubr.msk.f32.gmra.mrb[12].mxu0 %vm398_vm0, %v16610_v15  ;;  %v41236_v14 = vpack.c.bf16 %v29764_v11, %v29763_v10  ;;  %v2288_v15 = vld [vmem:[%s39948_s10 + $0x31c] sm:$0xff]  ;;  %v3318_v10 = vld [vmem:[%s39948_s10 + $0x1c6] sm:$0xff]  ;;  %v41430_v11 = vld [vmem:[%s39948_s10 + $0x5f4] sm:$0xff] }
 0x236   : > { %33687 = vmatprep.mubr.msk.f32.mxu1 %vm398_vm0, %v2259_v4  ;;  %35689 = vmatprep.mubr.msk.f32.mxu0 %vm398_vm0, %v16611_v16  ;;  %v41246_v4 = vld [vmem:[%s39948_s10 + $0x524] sm:$0xff] }
 0x237   : > { %v2289_v16 = vld [vmem:[%s39948_s10 + $0x324] sm:$0xff]  ;;  %37333 = vmatprep.subr.bf16.mxu0 %v41236_v14 }
 0x239   : > { %33688 = vmatmul.mubr.msk.f32.gmra.mrb[66].mxu1 %vm398_vm0, %v2260_v17  ;;  %35690 = vmatmul.mubr.msk.f32.gmra.mrb[14].mxu0 %vm398_vm0, %v16612_v18  ;;  %v41250_v17 = vld [vmem:[%s39948_s10 + $0x52c] sm:$0xff] }
 0x23a   : > { %33690 = vmatprep.mubr.msk.f32.mxu1 %vm398_vm0, %v2261_v19  ;;  %35692 = vmatprep.mubr.msk.f32.mxu0 %vm398_vm0, %v16613_v21  ;;  %v2290_v18 = vld [vmem:[%s39948_s10 + $0x32c] sm:$0xff]  ;;  %v41261_v19 = vld [vmem:[%s39948_s10 + $0x534] sm:$0xff] }
 0x23b   : > { %v2291_v21 = vld [vmem:[%s39948_s10 + $0x334] sm:$0xff] }
 0x23d   : > { %33691 = vmatmul.mubr.msk.f32.gmra.mrb[68].mxu1 %vm398_vm0, %v2262_v22  ;;  %35693 = vmatmul.mubr.msk.f32.gmra.mrb[16].mxu0 %vm398_vm0, %v16614_v24  ;;  %v41265_v22 = vld [vmem:[%s39948_s10 + $0x53c] sm:$0xff] }
 0x23e   : > { %33693 = vmatprep.mubr.msk.f32.mxu1 %vm398_vm0, %v2263_v25  ;;  %35695 = vmatprep.mubr.msk.f32.mxu0 %vm398_vm0, %v16615_v26  ;;  %v2292_v24 = vld [vmem:[%s39948_s10 + $0x33c] sm:$0xff]  ;;  %v41275_v25 = vld [vmem:[%s39948_s10 + $0x544] sm:$0xff] }
 0x23f   : > { %v2293_v26 = vld [vmem:[%s39948_s10 + $0x344] sm:$0xff] }
 0x241   : > { %33694 = vmatmul.mubr.msk.f32.gmra.mrb[70].mxu1 %vm398_vm0, %v2264_v27  ;;  %35696 = vmatmul.mubr.msk.f32.gmra.mrb[18].mxu0 %vm398_vm0, %v16616_v28  ;;  %v41279_v27 = vld [vmem:[%s39948_s10 + $0x54c] sm:$0xff] }
 0x242   : > { %33696 = vmatprep.mubr.msk.f32.mxu1 %vm398_vm0, %v2265_v29  ;;  %35698 = vmatprep.mubr.msk.f32.mxu0 %vm398_vm0, %v16617_v30  ;;  %v2294_v28 = vld [vmem:[%s39948_s10 + $0x34c] sm:$0xff]  ;;  %v41289_v29 = vld [vmem:[%s39948_s10 + $0x554] sm:$0xff] }
 0x243   : > { %v2295_v30 = vld [vmem:[%s39948_s10 + $0x354] sm:$0xff] }
 0x245   : > { %33697 = vmatmul.mubr.msk.f32.gmra.mrb[72].mxu1 %vm398_vm0, %v2266_v31  ;;  %35699 = vmatmul.mubr.msk.f32.gmra.mrb[20].mxu0 %vm398_vm0, %v16618_v32  ;;  %v41293_v31 = vld [vmem:[%s39948_s10 + $0x55c] sm:$0xff] }
 0x246   : > { %33699 = vmatprep.mubr.msk.f32.mxu1 %vm398_vm0, %v2267_v34  ;;  %35701 = vmatprep.mubr.msk.f32.mxu0 %vm398_vm0, %v16619_v23  ;;  %v2296_v32 = vld [vmem:[%s39948_s10 + $0x35c] sm:$0xff]  ;;  %v41303_v34 = vld [vmem:[%s39948_s10 + $0x564] sm:$0xff] }
 0x247   : > { %v3301_v23 = vld [vmem:[%s39948_s10 + $0x13e] sm:$0xff] }
 0x249   : > { %33700 = vmatmul.mubr.msk.f32.gmra.mrb[74].mxu1 %vm398_vm0, %v2268_v35  ;;  %35702 = vmatmul.mubr.msk.f32.gmra.mrb[22].mxu0 %vm398_vm0, %v16620_v36  ;;  %v41307_v35 = vld [vmem:[%s39948_s10 + $0x56c] sm:$0xff] }
 0x24a   : > { %33702 = vmatprep.mubr.msk.f32.mxu1 %vm398_vm0, %v2269_v37  ;;  %35704 = vmatprep.mubr.msk.f32.mxu0 %vm398_vm0, %v16621_v38  ;;  %v3302_v36 = vld [vmem:[%s39948_s10 + $0x146] sm:$0xff]  ;;  %v41317_v37 = vld [vmem:[%s39948_s10 + $0x574] sm:$0xff] }
 0x24b   : > { %v3303_v38 = vld [vmem:[%s39948_s10 + $0x14e] sm:$0xff] }
 0x24d   : > { %33703 = vmatmul.mubr.msk.f32.gmra.mrb[76].mxu1 %vm398_vm0, %v2270_v39  ;;  %35705 = vmatmul.mubr.msk.f32.gmra.mrb[24].mxu0 %vm398_vm0, %v16622_v40  ;;  %v41321_v39 = vld [vmem:[%s39948_s10 + $0x57c] sm:$0xff] }
 0x24e   : > { %33705 = vmatprep.mubr.msk.f32.mxu1 %vm398_vm0, %v2271_v42  ;;  %35707 = vmatprep.mubr.msk.f32.mxu0 %vm398_vm0, %v16623_v43  ;;  %v3304_v40 = vld [vmem:[%s39948_s10 + $0x156] sm:$0xff]  ;;  %v41330_v42 = vld [vmem:[%s39948_s10 + $0x584] sm:$0xff] }
 0x24f   : > { %v3305_v43 = vld [vmem:[%s39948_s10 + $0x15e] sm:$0xff] }
 0x251   : > { %33706 = vmatmul.mubr.msk.f32.gmra.mrb[78].mxu1 %vm398_vm0, %v2272_v44  ;;  %35708 = vmatmul.mubr.msk.f32.gmra.mrb[26].mxu0 %vm398_vm0, %v16624_v45  ;;  %v41336_v44 = vld [vmem:[%s39948_s10 + $0x58c] sm:$0xff]  ;;  %v41346_v45 = vld [vmem:[%s39948_s10 + $0x594] sm:$0xff] }
 0x252   : > { %33708 = vmatprep.mubr.msk.f32.mxu1 %vm398_vm0, %v2273_v46  ;;  %35710 = vmatprep.mubr.msk.f32.mxu0 %vm398_vm0, %v16625_v47  ;;  %v3307_v46 = vld [vmem:[%s39948_s10 + $0x16e] sm:$0xff]  ;;  %v41350_v47 = vld [vmem:[%s39948_s10 + $0x59c] sm:$0xff] }
 0x255   : > { %33709 = vmatmul.mubr.msk.f32.gmra.mrb[80].mxu1 %vm398_vm0, %v2274_v48  ;;  %35711 = vmatmul.mubr.msk.f32.gmra.mrb[28].mxu0 %vm398_vm0, %v16626_v49  ;;  %v3308_v48 = vld [vmem:[%s39948_s10 + $0x176] sm:$0xff]  ;;  %v41360_v49 = vld [vmem:[%s39948_s10 + $0x5a4] sm:$0xff] }
 0x256   : > { %33711 = vmatprep.mubr.msk.f32.mxu1 %vm398_vm0, %v2275_v50  ;;  %35713 = vmatprep.mubr.msk.f32.mxu0 %vm398_vm0, %v16627_v52  ;;  %v3309_v50 = vld [vmem:[%s39948_s10 + $0x17e] sm:$0xff]  ;;  %v41364_v52 = vld [vmem:[%s39948_s10 + $0x5ac] sm:$0xff] }
 0x259   : > { %33712 = vmatmul.mubr.msk.f32.gmra.mrb[82].mxu1 %vm398_vm0, %v2276_v41  ;;  %35714 = vmatmul.mubr.msk.f32.gmra.mrb[30].mxu0 %vm398_vm0, %v16628_v53  ;;  %v3310_v41 = vld [vmem:[%s39948_s10 + $0x186] sm:$0xff]  ;;  %v41374_v53 = vld [vmem:[%s39948_s10 + $0x5b4] sm:$0xff] }
 0x25a   : > { %33714 = vmatprep.mubr.msk.f32.mxu1 %vm398_vm0, %v2277_v54  ;;  %35716 = vmatprep.mubr.msk.f32.mxu0 %vm398_vm0, %v16629_v55  ;;  %v3311_v54 = vld [vmem:[%s39948_s10 + $0x18e] sm:$0xff]  ;;  %v41378_v55 = vld [vmem:[%s39948_s10 + $0x5bc] sm:$0xff] }
 0x25d   : > { %33715 = vmatmul.mubr.msk.f32.gmra.mrb[84].mxu1 %vm398_vm0, %v2278_v56  ;;  %35717 = vmatmul.mubr.msk.f32.gmra.mrb[32].mxu0 %vm398_vm0, %v16630_v57  ;;  %v3312_v56 = vld [vmem:[%s39948_s10 + $0x196] sm:$0xff]  ;;  %v41388_v57 = vld [vmem:[%s39948_s10 + $0x5c4] sm:$0xff] }
 0x25e   : > { %33717 = vmatprep.mubr.msk.f32.mxu1 %vm398_vm0, %v2279_v58  ;;  %35719 = vmatprep.mubr.msk.f32.mxu0 %vm398_vm0, %v16631_v59  ;;  %v3313_v58 = vld [vmem:[%s39948_s10 + $0x19e] sm:$0xff]  ;;  %v41392_v59 = vld [vmem:[%s39948_s10 + $0x5cc] sm:$0xff] }
 0x261   : > { %33718 = vmatmul.mubr.msk.f32.gmra.mrb[86].mxu1 %vm398_vm0, %v2280_v60  ;;  %35720 = vmatmul.mubr.msk.f32.gmra.mrb[34].mxu0 %vm398_vm0, %v16632_v61  ;;  %v3314_v60 = vld [vmem:[%s39948_s10 + $0x1a6] sm:$0xff]  ;;  %v41402_v61 = vld [vmem:[%s39948_s10 + $0x5d4] sm:$0xff] }
 0x262   : > { %33720 = vmatprep.mubr.msk.f32.mxu1 %vm398_vm0, %v2281_v51  ;;  %35722 = vmatprep.mubr.msk.f32.mxu0 %vm398_vm0, %v41187_v62  ;;  %v3315_v51 = vld [vmem:[%s39948_s10 + $0x1ae] sm:$0xff] }
 0x265   : > { %33721 = vmatmul.mubr.msk.f32.gmra.mrb[88].mxu1 %vm398_vm0, %v2282_v63  ;;  %35723 = vmatmul.mubr.msk.f32.gmra.mrb[36].mxu0 %vm398_vm0, %v41196_v0  ;;  %v41406_v63 = vld [vmem:[%s39948_s10 + $0x5dc] sm:$0xff] }
 0x266   : > { %33723 = vmatprep.mubr.msk.f32.mxu1 %vm398_vm0, %v2283_v1  ;;  %35725 = vmatprep.mubr.msk.f32.mxu0 %vm398_vm0, %v41200_v2  ;;  %v3316_v1 = vld [vmem:[%s39948_s10 + $0x1b6] sm:$0xff] }
 0x269   : > { %33724 = vmatmul.mubr.msk.f32.gmra.mrb[90].mxu1 %vm398_vm0, %v2284_v3  ;;  %35726 = vmatmul.mubr.msk.f32.gmra.mrb[38].mxu0 %vm398_vm0, %v41210_v5  ;;  %v41416_v3 = vld [vmem:[%s39948_s10 + $0x5e4] sm:$0xff] }
 0x26a   : > { %33726 = vmatprep.mubr.msk.f32.mxu1 %vm398_vm0, %v2285_v20  ;;  %35728 = vmatprep.mubr.msk.f32.mxu0 %vm398_vm0, %v41214_v6  ;;  %v3317_v20 = vld [vmem:[%s39948_s10 + $0x1be] sm:$0xff] }
 0x26d   : > { %33727 = vmatmul.mubr.msk.f32.gmra.mrb[92].mxu1 %vm398_vm0, %v2286_v8  ;;  %35729 = vmatmul.mubr.msk.f32.gmra.mrb[40].mxu0 %vm398_vm0, %v41224_v9  ;;  %v41420_v8 = vld [vmem:[%s39948_s10 + $0x5ec] sm:$0xff] }
 0x26e   : > { %33729 = vmatprep.mubr.msk.f32.mxu1 %vm398_vm0, %v2287_v12  ;;  %35731 = vmatprep.mubr.msk.f32.mxu0 %vm398_vm0, %v41234_v13  ;;  %v3319_v12 = vld [vmem:[%s39948_s10 + $0x1ce] sm:$0xff] }
 0x271   : > { %33730 = vmatmul.mubr.msk.f32.gmra.mrb[94].mxu1 %vm398_vm0, %v2288_v15  ;;  %35732 = vmatmul.mubr.msk.f32.gmra.mrb[42].mxu0 %vm398_vm0, %v41246_v4  ;;  %v41434_v15 = vld [vmem:[%s39948_s10 + $0x5fc] sm:$0xff] }
 0x272   : > { %33732 = vmatprep.mubr.msk.f32.mxu1 %vm398_vm0, %v2289_v16  ;;  %35734 = vmatprep.mubr.msk.f32.mxu0 %vm398_vm0, %v41250_v17  ;;  %v3320_v16 = vld [vmem:[%s39948_s10 + $0x1d6] sm:$0xff] }
 0x275   : > { %33733 = vmatmul.mubr.msk.f32.gmra.mrb[96].mxu1 %vm398_vm0, %v2290_v18  ;;  %35735 = vmatmul.mubr.msk.f32.gmra.mrb[44].mxu0 %vm398_vm0, %v41261_v19  ;;  %v41444_v18 = vld [vmem:[%s39948_s10 + $0x604] sm:$0xff] }
 0x276   : > { %33735 = vmatprep.mubr.msk.f32.mxu1 %vm398_vm0, %v2291_v21  ;;  %35737 = vmatprep.mubr.msk.f32.mxu0 %vm398_vm0, %v41265_v22  ;;  %v3321_v21 = vld [vmem:[%s39948_s10 + $0x1de] sm:$0xff] }
 0x279   : > { %33736 = vmatmul.mubr.msk.f32.gmra.mrb[98].mxu1 %vm398_vm0, %v2292_v24  ;;  %35738 = vmatmul.mubr.msk.f32.gmra.mrb[46].mxu0 %vm398_vm0, %v41275_v25  ;;  %v41448_v24 = vld [vmem:[%s39948_s10 + $0x60c] sm:$0xff] }
 0x27a   : > { %33738 = vmatprep.mubr.msk.f32.mxu1 %vm398_vm0, %v2293_v26  ;;  %35740 = vmatprep.mubr.msk.f32.mxu0 %vm398_vm0, %v41279_v27  ;;  %v3322_v26 = vld [vmem:[%s39948_s10 + $0x1e6] sm:$0xff] }
 0x27d   : > { %33739 = vmatmul.mubr.msk.f32.gmra.mrb[100].mxu1 %vm398_vm0, %v2294_v28  ;;  %35741 = vmatmul.mubr.msk.f32.gmra.mrb[48].mxu0 %vm398_vm0, %v41289_v29  ;;  %v41458_v28 = vld [vmem:[%s39948_s10 + $0x614] sm:$0xff] }
 0x27e   : > { %33741 = vmatprep.mubr.msk.f32.mxu1 %vm398_vm0, %v2295_v30  ;;  %35743 = vmatprep.mubr.msk.f32.mxu0 %vm398_vm0, %v41293_v31  ;;  %v3323_v30 = vld [vmem:[%s39948_s10 + $0x1ee] sm:$0xff] }
 0x281   : > { %33742 = vmatmul.mubr.msk.f32.gmra.mrb[102].mxu1 %vm398_vm0, %v2296_v32  ;;  %35744 = vmatmul.mubr.msk.f32.gmra.mrb[50].mxu0 %vm398_vm0, %v41303_v34  ;;  %v41462_v32 = vld [vmem:[%s39948_s10 + $0x61c] sm:$0xff] }
 0x282   : > { %33748 = vmatprep.mubr.msk.f32.mxu1 %vm398_vm0, %v3301_v23  ;;  %35746 = vmatprep.mubr.msk.f32.mxu0 %vm398_vm0, %v41307_v35  ;;  %v3324_v23 = vld [vmem:[%s39948_s10 + $0x1f6] sm:$0xff] }
 0x285   : > { %33749 = vmatmul.mubr.msk.f32.vlgmr.msra.gmra.mrb[0].mxu1 %vm398_vm0, %v3302_v36  ;;  %35747 = vmatmul.mubr.msk.f32.gmra.mrb[52].mxu0 %vm398_vm0, %v41317_v37  ;;  %v41472_v36 = vld [vmem:[%s39948_s10 + $0x624] sm:$0xff] }
 0x286   : > { %37283 = vmatpush3.bf16.msra.mxu1 %v40999_v33  ;;  %33751 = vmatprep.mubr.msk.f32.mxu1 %vm398_vm0, %v3303_v38  ;;  %v3306_v33 = vld [vmem:[%s39948_s10 + $0x166] sm:$0xff]  ;;  %v3325_v38 = vld [vmem:[%s39948_s10 + $0x1fe] sm:$0xff] }
 0x287   : > { %35749 = vmatprep.mubr.msk.f32.mxu0 %vm398_vm0, %v41321_v39 }
 0x289   : > { %33752 = vmatmul.mubr.msk.f32.gmra.mrb[2].mxu1 %vm398_vm0, %v3304_v40  ;;  %35750 = vmatmul.mubr.msk.f32.gmra.mrb[54].mxu0 %vm398_vm0, %v41330_v42  ;;  %v41476_v40 = vld [vmem:[%s39948_s10 + $0x62c] sm:$0xff] }
 0x28a   : > { %33754 = vmatprep.mubr.msk.f32.mxu1 %vm398_vm0, %v3305_v43  ;;  %35752 = vmatprep.mubr.msk.f32.mxu0 %vm398_vm0, %v41336_v44  ;;  %v3326_v43 = vld [vmem:[%s39948_s10 + $0x206] sm:$0xff] }
 0x28d   : > { %33755 = vmatmul.mubr.msk.f32.gmra.mrb[4].mxu1 %vm398_vm0, %v3306_v33  ;;  %35753 = vmatmul.mubr.msk.f32.gmra.mrb[56].mxu0 %vm398_vm0, %v41346_v45  ;;  %v41486_v33 = vld [vmem:[%s39948_s10 + $0x634] sm:$0xff] }
 0x28e   : > { %33757 = vmatprep.mubr.msk.f32.mxu1 %vm398_vm0, %v3307_v46  ;;  %35755 = vmatprep.mubr.msk.f32.mxu0 %vm398_vm0, %v41350_v47  ;;  %v3327_v46 = vld [vmem:[%s39948_s10 + $0x20e] sm:$0xff] }
 0x291   : > { %33758 = vmatmul.mubr.msk.f32.gmra.mrb[6].mxu1 %vm398_vm0, %v3308_v48  ;;  %35756 = vmatmul.mubr.msk.f32.gmra.mrb[58].mxu0 %vm398_vm0, %v41360_v49  ;;  %v41490_v48 = vld [vmem:[%s39948_s10 + $0x63c] sm:$0xff] }
 0x292   : > { %33760 = vmatprep.mubr.msk.f32.mxu1 %vm398_vm0, %v3309_v50  ;;  %35758 = vmatprep.mubr.msk.f32.mxu0 %vm398_vm0, %v41364_v52  ;;  %v3328_v50 = vld [vmem:[%s39948_s10 + $0x216] sm:$0xff] }
 0x295   : > { %33761 = vmatmul.mubr.msk.f32.gmra.mrb[8].mxu1 %vm398_vm0, %v3310_v41  ;;  %35759 = vmatmul.mubr.msk.f32.gmra.mrb[60].mxu0 %vm398_vm0, %v41374_v53  ;;  %v41500_v41 = vld [vmem:[%s39948_s10 + $0x644] sm:$0xff] }
 0x296   : > { %33763 = vmatprep.mubr.msk.f32.mxu1 %vm398_vm0, %v3311_v54  ;;  %35761 = vmatprep.mubr.msk.f32.mxu0 %vm398_vm0, %v41378_v55  ;;  %v3329_v54 = vld [vmem:[%s39948_s10 + $0x21e] sm:$0xff] }
 0x299   : > { %33764 = vmatmul.mubr.msk.f32.gmra.mrb[10].mxu1 %vm398_vm0, %v3312_v56  ;;  %35762 = vmatmul.mubr.msk.f32.gmra.mrb[62].mxu0 %vm398_vm0, %v41388_v57  ;;  %v41504_v56 = vld [vmem:[%s39948_s10 + $0x64c] sm:$0xff] }
 0x29a   : > { %33766 = vmatprep.mubr.msk.f32.mxu1 %vm398_vm0, %v3313_v58  ;;  %35764 = vmatprep.mubr.msk.f32.mxu0 %vm398_vm0, %v41392_v59  ;;  %v3330_v58 = vld [vmem:[%s39948_s10 + $0x226] sm:$0xff] }
 0x29d   : > { %33767 = vmatmul.mubr.msk.f32.gmra.mrb[12].mxu1 %vm398_vm0, %v3314_v60  ;;  %35765 = vmatmul.mubr.msk.f32.gmra.mrb[64].mxu0 %vm398_vm0, %v41402_v61  ;;  %v41514_v60 = vld [vmem:[%s39948_s10 + $0x654] sm:$0xff] }
 0x29e   : > { %33769 = vmatprep.mubr.msk.f32.mxu1 %vm398_vm0, %v3315_v51  ;;  %35767 = vmatprep.mubr.msk.f32.mxu0 %vm398_vm0, %v41406_v63  ;;  %v3331_v51 = vld [vmem:[%s39948_s10 + $0x22e] sm:$0xff] }
 0x2a1   : > { %33770 = vmatmul.mubr.msk.f32.gmra.mrb[14].mxu1 %vm398_vm0, %v3316_v1  ;;  %35768 = vmatmul.mubr.msk.f32.gmra.mrb[66].mxu0 %vm398_vm0, %v41416_v3  ;;  %v41518_v1 = vld [vmem:[%s39948_s10 + $0x65c] sm:$0xff] }
 0x2a2   : > { %33772 = vmatprep.mubr.msk.f32.mxu1 %vm398_vm0, %v3317_v20  ;;  %35770 = vmatprep.mubr.msk.f32.mxu0 %vm398_vm0, %v41420_v8  ;;  %v3332_v20 = vld [vmem:[%s39948_s10 + $0x236] sm:$0xff] }
 0x2a5   : > { %33773 = vmatmul.mubr.msk.f32.gmra.mrb[16].mxu1 %vm398_vm0, %v3318_v10  ;;  %35771 = vmatmul.mubr.msk.f32.gmra.mrb[68].mxu0 %vm398_vm0, %v41430_v11  ;;  %v41528_v10 = vld [vmem:[%s39948_s10 + $0x664] sm:$0xff] }
 0x2a6   : > { %33775 = vmatprep.mubr.msk.f32.mxu1 %vm398_vm0, %v3319_v12  ;;  %35773 = vmatprep.mubr.msk.f32.mxu0 %vm398_vm0, %v41434_v15  ;;  %v3333_v12 = vld [vmem:[%s39948_s10 + $0x23e] sm:$0xff] }
 0x2a9   : > { %33776 = vmatmul.mubr.msk.f32.gmra.mrb[18].mxu1 %vm398_vm0, %v3320_v16  ;;  %35774 = vmatmul.mubr.msk.f32.gmra.mrb[70].mxu0 %vm398_vm0, %v41444_v18  ;;  %v41532_v16 = vld [vmem:[%s39948_s10 + $0x66c] sm:$0xff] }
 0x2aa   : > { %33778 = vmatprep.mubr.msk.f32.mxu1 %vm398_vm0, %v3321_v21  ;;  %35776 = vmatprep.mubr.msk.f32.mxu0 %vm398_vm0, %v41448_v24  ;;  %v3334_v21 = vld [vmem:[%s39948_s10 + $0x246] sm:$0xff] }
 0x2ad   : > { %33779 = vmatmul.mubr.msk.f32.gmra.mrb[20].mxu1 %vm398_vm0, %v3322_v26  ;;  %35777 = vmatmul.mubr.msk.f32.gmra.mrb[72].mxu0 %vm398_vm0, %v41458_v28  ;;  %v41542_v26 = vld [vmem:[%s39948_s10 + $0x674] sm:$0xff] }
 0x2ae   : > { %33781 = vmatprep.mubr.msk.f32.mxu1 %vm398_vm0, %v3323_v30  ;;  %35779 = vmatprep.mubr.msk.f32.mxu0 %vm398_vm0, %v41462_v32  ;;  %v3335_v30 = vld [vmem:[%s39948_s10 + $0x24e] sm:$0xff] }
 0x2b1   : > { %33782 = vmatmul.mubr.msk.f32.gmra.mrb[22].mxu1 %vm398_vm0, %v3324_v23  ;;  %35780 = vmatmul.mubr.msk.f32.gmra.mrb[74].mxu0 %vm398_vm0, %v41472_v36  ;;  %v41546_v23 = vld [vmem:[%s39948_s10 + $0x67c] sm:$0xff] }
 0x2b2   : > { %33784 = vmatprep.mubr.msk.f32.mxu1 %vm398_vm0, %v3325_v38  ;;  %35782 = vmatprep.mubr.msk.f32.mxu0 %vm398_vm0, %v41476_v40  ;;  %v3336_v38 = vld [vmem:[%s39948_s10 + $0x256] sm:$0xff] }
 0x2b5   : > { %33785 = vmatmul.mubr.msk.f32.gmra.mrb[24].mxu1 %vm398_vm0, %v3326_v43  ;;  %35783 = vmatmul.mubr.msk.f32.gmra.mrb[76].mxu0 %vm398_vm0, %v41486_v33  ;;  %v41556_v43 = vld [vmem:[%s39948_s10 + $0x684] sm:$0xff] }
 0x2b6   : > { %33787 = vmatprep.mubr.msk.f32.mxu1 %vm398_vm0, %v3327_v46  ;;  %35785 = vmatprep.mubr.msk.f32.mxu0 %vm398_vm0, %v41490_v48  ;;  %v3337_v46 = vld [vmem:[%s39948_s10 + $0x25e] sm:$0xff] }
 0x2b9   : > { %33788 = vmatmul.mubr.msk.f32.gmra.mrb[26].mxu1 %vm398_vm0, %v3328_v50  ;;  %35786 = vmatmul.mubr.msk.f32.gmra.mrb[78].mxu0 %vm398_vm0, %v41500_v41  ;;  %v41560_v50 = vld [vmem:[%s39948_s10 + $0x68c] sm:$0xff] }
 0x2ba   : > { %33790 = vmatprep.mubr.msk.f32.mxu1 %vm398_vm0, %v3329_v54  ;;  %35788 = vmatprep.mubr.msk.f32.mxu0 %vm398_vm0, %v41504_v56  ;;  %v3338_v54 = vld [vmem:[%s39948_s10 + $0x266] sm:$0xff] }
 0x2bd   : > { %33791 = vmatmul.mubr.msk.f32.gmra.mrb[28].mxu1 %vm398_vm0, %v3330_v58  ;;  %35789 = vmatmul.mubr.msk.f32.gmra.mrb[80].mxu0 %vm398_vm0, %v41514_v60  ;;  %v41570_v58 = vld [vmem:[%s39948_s10 + $0x694] sm:$0xff] }
 0x2be   : > { %33793 = vmatprep.mubr.msk.f32.mxu1 %vm398_vm0, %v3331_v51  ;;  %35791 = vmatprep.mubr.msk.f32.mxu0 %vm398_vm0, %v41518_v1  ;;  %46171 = vst [vmem:[#allocation3_spill] sm:$0xff] %v41570_v58  ;;  %v3339_v51 = vld [vmem:[%s39948_s10 + $0x26e] sm:$0xff] }
 0x2c1   : > { %33794 = vmatmul.mubr.msk.f32.gmra.mrb[30].mxu1 %vm398_vm0, %v3332_v20  ;;  %35792 = vmatmul.mubr.msk.f32.gmra.mrb[82].mxu0 %vm398_vm0, %v41528_v10  ;;  %v41574_v20 = vld [vmem:[%s39948_s10 + $0x69c] sm:$0xff] }
 0x2c2   : > { %33796 = vmatprep.mubr.msk.f32.mxu1 %vm398_vm0, %v3333_v12  ;;  %35794 = vmatprep.mubr.msk.f32.mxu0 %vm398_vm0, %v41532_v16  ;;  %46172 = vst [vmem:[#allocation4_spill] sm:$0xff] %v41574_v20  ;;  %v3340_v12 = vld [vmem:[%s39948_s10 + $0x276] sm:$0xff] }
 0x2c5   : > { %33797 = vmatmul.mubr.msk.f32.gmra.mrb[32].mxu1 %vm398_vm0, %v3334_v21  ;;  %35795 = vmatmul.mubr.msk.f32.gmra.mrb[84].mxu0 %vm398_vm0, %v41542_v26  ;;  %v41584_v21 = vld [vmem:[%s39948_s10 + $0x6a4] sm:$0xff] }
 0x2c6   : > { %33799 = vmatprep.mubr.msk.f32.mxu1 %vm398_vm0, %v3335_v30  ;;  %35797 = vmatprep.mubr.msk.f32.mxu0 %vm398_vm0, %v41546_v23  ;;  %46173 = vst [vmem:[#allocation5_spill] sm:$0xff] %v41584_v21  ;;  %v3341_v30 = vld [vmem:[%s39948_s10 + $0x27e] sm:$0xff] }
 0x2c9   : > { %33800 = vmatmul.mubr.msk.f32.gmra.mrb[34].mxu1 %vm398_vm0, %v3336_v38  ;;  %35798 = vmatmul.mubr.msk.f32.gmra.mrb[86].mxu0 %vm398_vm0, %v41556_v43  ;;  %v41588_v38 = vld [vmem:[%s39948_s10 + $0x6ac] sm:$0xff] }
 0x2ca   : > { %33802 = vmatprep.mubr.msk.f32.mxu1 %vm398_vm0, %v3337_v46  ;;  %35800 = vmatprep.mubr.msk.f32.mxu0 %vm398_vm0, %v41560_v50  ;;  %46174 = vst [vmem:[#allocation6_spill] sm:$0xff] %v41588_v38  ;;  %v3342_v46 = vld [vmem:[%s39948_s10 + $0x286] sm:$0xff] }
 0x2cd   : > { %33803 = vmatmul.mubr.msk.f32.gmra.mrb[36].mxu1 %vm398_vm0, %v3338_v54  ;;  %35801 = vmatmul.mubr.msk.f32.gmra.mrb[88].mxu0 %vm398_vm0, %v41570_v58  ;;  %v41598_v54 = vld [vmem:[%s39948_s10 + $0x6b4] sm:$0xff]  ;;  %v3345_v58 = vld [vmem:[%s39948_s10 + $0x29e] sm:$0xff] }
 0x2ce   : > { %33805 = vmatprep.mubr.msk.f32.mxu1 %vm398_vm0, %v3339_v51  ;;  %35803 = vmatprep.mubr.msk.f32.mxu0 %vm398_vm0, %v41574_v20  ;;  %v28491_v51 = vld [vmem:[%s46145_s2 + $0x50] sm:$0xff] }
 0x2d1   : > { %33806 = vmatmul.mubr.msk.f32.gmra.mrb[38].mxu1 %vm398_vm0, %v3340_v12  ;;  %35804 = vmatmul.mubr.msk.f32.gmra.mrb[90].mxu0 %vm398_vm0, %v41584_v21  ;;  %v28492_v12 = vld [vmem:[%s46145_s2 + $0x58] sm:$0xff] }
 0x2d2   : > { %33808 = vmatprep.mubr.msk.f32.mxu1 %vm398_vm0, %v3341_v30  ;;  %35806 = vmatprep.mubr.msk.f32.mxu0 %vm398_vm0, %v41588_v38  ;;  %v41608_v21 = vld [vmem:[%s39948_s10 + $0x6bc] sm:$0xff]  ;;  %v41610_v20 = vpack.c.bf16 %v28492_v12, %v28491_v51  ;;  %v41620_v38 = vld [vmem:[%s39948_s10 + $0x6c4] sm:$0xff]  ;;  %v41624_v51 = vld [vmem:[%s39948_s10 + $0x6cc] sm:$0xff] }
 0x2d3   : > { %46175 = vst [vmem:[#allocation7_spill] sm:$0xff] %v41608_v21  ;;  %v3344_v30 = vld [vmem:[%s39948_s10 + $0x296] sm:$0xff]  ;;  %46176 = vst [vmem:[#allocation8_spill] sm:$0xff] %v41620_v38  ;;  %v3347_v12 = vld [vmem:[%s39948_s10 + $0x2ae] sm:$0xff] }
 0x2d4   : > { %46177 = vst [vmem:[#allocation9_spill] sm:$0xff] %v41624_v51  ;;  %37285 = vmatprep.subr.bf16.mxu1 %v41610_v20 }
 0x2d5   : > { %33809 = vmatmul.mubr.msk.f32.gmra.mrb[40].mxu1 %vm398_vm0, %v3342_v46  ;;  %35807 = vmatmul.mubr.msk.f32.gmra.mrb[92].mxu0 %vm398_vm0, %v41598_v54  ;;  %v41635_v46 = vld [vmem:[%s39948_s10 + $0x6d4] sm:$0xff] }
 0x2d6   : > { %33811 = vmatprep.mubr.msk.f32.mxu1 %vm398_vm0, %v3343_v7  ;;  %35809 = vmatprep.mubr.msk.f32.mxu0 %vm398_vm0, %v41608_v21  ;;  %v3346_v7 = vld [vmem:[%s39948_s10 + $0x2a6] sm:$0xff]  ;;  %46178 = vst [vmem:[#allocation10_spill] sm:$0xff] %v41635_v46  ;;  %v41639_v21 = vld [vmem:[%s39948_s10 + $0x6dc] sm:$0xff] }
 0x2d7   : > { %46179 = vst [vmem:[#allocation11_spill] sm:$0xff] %v41639_v21 }
 0x2d9   : > { %33812 = vmatmul.mubr.msk.f32.gmra.mrb[42].mxu1 %vm398_vm0, %v3344_v30  ;;  %35810 = vmatmul.mubr.msk.f32.gmra.mrb[94].mxu0 %vm398_vm0, %v41620_v38  ;;  %v41649_v30 = vld [vmem:[%s39948_s10 + $0x6e4] sm:$0xff]  ;;  %v41653_v38 = vld [vmem:[%s39948_s10 + $0x6ec] sm:$0xff] }
 0x2da   : > { %33814 = vmatprep.mubr.msk.f32.mxu1 %vm398_vm0, %v3345_v58  ;;  %35812 = vmatprep.mubr.msk.f32.mxu0 %vm398_vm0, %v41624_v51  ;;  %v3348_v58 = vld [vmem:[%s39948_s10 + $0x2b6] sm:$0xff]  ;;  %v3349_v51 = vld [vmem:[%s39948_s10 + $0x2be] sm:$0xff]  ;;  %46180 = vst [vmem:[#allocation12_spill] sm:$0xff] %v41653_v38 }
 0x2dd   : > { %33815 = vmatmul.mubr.msk.f32.gmra.mrb[44].mxu1 %vm398_vm0, %v3346_v7  ;;  %35813 = vmatmul.mubr.msk.f32.gmra.mrb[96].mxu0 %vm398_vm0, %v41635_v46  ;;  %v3350_v7 = vld [vmem:[%s39948_s10 + $0x2c6] sm:$0xff]  ;;  %v41667_v46 = vld [vmem:[%s39948_s10 + $0x6fc] sm:$0xff] }
 0x2de   : > { %33817 = vmatprep.mubr.msk.f32.mxu1 %vm398_vm0, %v3347_v12  ;;  %35815 = vmatprep.mubr.msk.f32.mxu0 %vm398_vm0, %v41639_v21  ;;  %v41663_v12 = vld [vmem:[%s39948_s10 + $0x6f4] sm:$0xff] }
 0x2df   : > { %v3351_v21 = vld [vmem:[%s39948_s10 + $0x2ce] sm:$0xff] }
 0x2e1   : > { %33818 = vmatmul.mubr.msk.f32.gmra.mrb[46].mxu1 %vm398_vm0, %v3348_v58  ;;  %35816 = vmatmul.mubr.msk.f32.gmra.mrb[98].mxu0 %vm398_vm0, %v41649_v30  ;;  %v41677_v58 = vld [vmem:[%s39948_s10 + $0x704] sm:$0xff] }
 0x2e2   : > { %33820 = vmatprep.mubr.msk.f32.mxu1 %vm398_vm0, %v3349_v51  ;;  %35818 = vmatprep.mubr.msk.f32.mxu0 %vm398_vm0, %v41653_v38  ;;  %v3352_v51 = vld [vmem:[%s39948_s10 + $0x2d6] sm:$0xff]  ;;  %v3353_v38 = vld [vmem:[%s39948_s10 + $0x2de] sm:$0xff] }
 0x2e5   : > { %33821 = vmatmul.mubr.msk.f32.gmra.mrb[48].mxu1 %vm398_vm0, %v3350_v7  ;;  %35819 = vmatmul.mubr.msk.f32.gmra.mrb[100].mxu0 %vm398_vm0, %v41663_v12  ;;  %v3355_v7 = vld [vmem:[%s39948_s10 + $0x2ee] sm:$0xff] }
 0x2e6   : > { %33823 = vmatprep.mubr.msk.f32.mxu1 %vm398_vm0, %v3351_v21  ;;  %35821 = vmatprep.mubr.msk.f32.mxu0 %vm398_vm0, %v41667_v46  ;;  %v3354_v21 = vld [vmem:[%s39948_s10 + $0x2e6] sm:$0xff] }
 0x2e9   : > { %33824 = vmatmul.mubr.msk.f32.gmra.mrb[50].mxu1 %vm398_vm0, %v3352_v51  ;;  %35822 = vmatmul.mubr.msk.f32.gmra.mrb[102].mxu0 %vm398_vm0, %v41677_v58  ;;  %v3356_v51 = vld [vmem:[%s39948_s10 + $0x2f6] sm:$0xff] }
 0x2ea   : > { %33826 = vmatprep.mubr.msk.f32.mxu1 %vm398_vm0, %v3353_v38  ;;  %35828 = vmatprep.mubr.msk.f32.mxu0 %vm398_vm0, %v41187_v62  ;;  %v3357_v38 = vld [vmem:[%s39948_s10 + $0x2fe] sm:$0xff]  ;;  %v3358_v62 = vld [vmem:[%s39948_s10 + $0x306] sm:$0xff] }
 0x2ed   : > { %33827 = vmatmul.mubr.msk.f32.gmra.mrb[52].mxu1 %vm398_vm0, %v3354_v21  ;;  %35829 = vmatmul.mubr.msk.f32.vlgmr.msra.gmra.mrb[0].mxu0 %vm398_vm0, %v41196_v0  ;;  %v3359_v0 = vld [vmem:[%s39948_s10 + $0x30e] sm:$0xff] }
 0x2ee   : > { %37335 = vmatpush3.bf16.msra.mxu0 %v41236_v14  ;;  %33829 = vmatprep.mubr.msk.f32.mxu1 %vm398_vm0, %v3355_v7  ;;  %v3365_v14 = vld [vmem:[%s39948_s10 + $0x33e] sm:$0xff]  ;;  %v3399_v7 = vld [vmem:[%s39948_s10 + $0x44e] sm:$0xff] }
 0x2ef   : > { %35831 = vmatprep.mubr.msk.f32.mxu0 %vm398_vm0, %v41200_v2  ;;  %v3360_v2 = vld [vmem:[%s39948_s10 + $0x316] sm:$0xff] }
 0x2f1   : > { %33830 = vmatmul.mubr.msk.f32.gmra.mrb[54].mxu1 %vm398_vm0, %v3356_v51  ;;  %35832 = vmatmul.mubr.msk.f32.gmra.mrb[2].mxu0 %vm398_vm0, %v41210_v5  ;;  %v3361_v5 = vld [vmem:[%s39948_s10 + $0x31e] sm:$0xff]  ;;  %v46181_v51 = vld [vmem:[#allocation3_spill] sm:$0xff] }
 0x2f2   : > { %33832 = vmatprep.mubr.msk.f32.mxu1 %vm398_vm0, %v3357_v38  ;;  %35834 = vmatprep.mubr.msk.f32.mxu0 %vm398_vm0, %v41214_v6  ;;  %v3362_v6 = vld [vmem:[%s39948_s10 + $0x326] sm:$0xff] }
 0x2f3   : > { %v4413_v38 = vld [vmem:[%s39948_s10 + $0x16a] sm:$0xff] }
 0x2f5   : > { %33833 = vmatmul.mubr.msk.f32.gmra.mrb[56].mxu1 %vm398_vm0, %v3358_v62  ;;  %35835 = vmatmul.mubr.msk.f32.gmra.mrb[4].mxu0 %vm398_vm0, %v41224_v9  ;;  %v3363_v9 = vld [vmem:[%s39948_s10 + $0x32e] sm:$0xff]  ;;  %v46184_v62 = vld [vmem:[#allocation6_spill] sm:$0xff] }
 0x2f6   : > { %33835 = vmatprep.mubr.msk.f32.mxu1 %vm398_vm0, %v3359_v0  ;;  %35837 = vmatprep.mubr.msk.f32.mxu0 %vm398_vm0, %v41234_v13  ;;  %v3364_v13 = vld [vmem:[%s39948_s10 + $0x336] sm:$0xff] }
 0x2f7   : > { %v4415_v0 = vld [vmem:[%s39948_s10 + $0x17a] sm:$0xff] }
 0x2f9   : > { %33836 = vmatmul.mubr.msk.f32.gmra.mrb[58].mxu1 %vm398_vm0, %v3360_v2  ;;  %35838 = vmatmul.mubr.msk.f32.gmra.mrb[6].mxu0 %vm398_vm0, %v41246_v4  ;;  %v3366_v4 = vld [vmem:[%s39948_s10 + $0x346] sm:$0xff] }
 0x2fa   : > { %33838 = vmatprep.mubr.msk.f32.mxu1 %vm398_vm0, %v3361_v5  ;;  %35840 = vmatprep.mubr.msk.f32.mxu0 %vm398_vm0, %v41250_v17  ;;  %v3367_v17 = vld [vmem:[%s39948_s10 + $0x34e] sm:$0xff]  ;;  %v4416_v5 = vld [vmem:[%s39948_s10 + $0x182] sm:$0xff] }
 0x2fb   : > { %v46185_v2 = vld [vmem:[#allocation7_spill] sm:$0xff] }
 0x2fd   : > { %33839 = vmatmul.mubr.msk.f32.gmra.mrb[60].mxu1 %vm398_vm0, %v3362_v6  ;;  %35841 = vmatmul.mubr.msk.f32.gmra.mrb[8].mxu0 %vm398_vm0, %v41261_v19  ;;  %v3368_v19 = vld [vmem:[%s39948_s10 + $0x356] sm:$0xff]  ;;  %v4417_v6 = vld [vmem:[%s39948_s10 + $0x18a] sm:$0xff] }
 0x2fe   : > { %33841 = vmatprep.mubr.msk.f32.mxu1 %vm398_vm0, %v3363_v9  ;;  %35843 = vmatprep.mubr.msk.f32.mxu0 %vm398_vm0, %v41265_v22  ;;  %v3369_v22 = vld [vmem:[%s39948_s10 + $0x35e] sm:$0xff]  ;;  %v46186_v9 = vld [vmem:[#allocation8_spill] sm:$0xff] }
 0x301   : > { %33842 = vmatmul.mubr.msk.f32.gmra.mrb[62].mxu1 %vm398_vm0, %v3364_v13  ;;  %35844 = vmatmul.mubr.msk.f32.gmra.mrb[10].mxu0 %vm398_vm0, %v41275_v25  ;;  %v3370_v25 = vld [vmem:[%s39948_s10 + $0x366] sm:$0xff]  ;;  %v46187_v13 = vld [vmem:[#allocation9_spill] sm:$0xff] }
 0x302   : > { %33844 = vmatprep.mubr.msk.f32.mxu1 %vm398_vm0, %v3365_v14  ;;  %35846 = vmatprep.mubr.msk.f32.mxu0 %vm398_vm0, %v41279_v27  ;;  %v3371_v27 = vld [vmem:[%s39948_s10 + $0x36e] sm:$0xff]  ;;  %v4419_v14 = vld [vmem:[%s39948_s10 + $0x19a] sm:$0xff] }
 0x305   : > { %33845 = vmatmul.mubr.msk.f32.gmra.mrb[64].mxu1 %vm398_vm0, %v3366_v4  ;;  %35847 = vmatmul.mubr.msk.f32.gmra.mrb[12].mxu0 %vm398_vm0, %v41289_v29  ;;  %v3372_v29 = vld [vmem:[%s39948_s10 + $0x376] sm:$0xff]  ;;  %v46188_v4 = vld [vmem:[#allocation10_spill] sm:$0xff] }
 0x306   : > { %33847 = vmatprep.mubr.msk.f32.mxu1 %vm398_vm0, %v3367_v17  ;;  %35849 = vmatprep.mubr.msk.f32.mxu0 %vm398_vm0, %v41293_v31  ;;  %v3373_v31 = vld [vmem:[%s39948_s10 + $0x37e] sm:$0xff]  ;;  %v46189_v17 = vld [vmem:[#allocation11_spill] sm:$0xff] }
 0x309   : > { %33848 = vmatmul.mubr.msk.f32.gmra.mrb[66].mxu1 %vm398_vm0, %v3368_v19  ;;  %35850 = vmatmul.mubr.msk.f32.gmra.mrb[14].mxu0 %vm398_vm0, %v41303_v34  ;;  %v3374_v34 = vld [vmem:[%s39948_s10 + $0x386] sm:$0xff] }
 0x30a   : > { %33850 = vmatprep.mubr.msk.f32.mxu1 %vm398_vm0, %v3369_v22  ;;  %35852 = vmatprep.mubr.msk.f32.mxu0 %vm398_vm0, %v41307_v35  ;;  %v3375_v35 = vld [vmem:[%s39948_s10 + $0x38e] sm:$0xff]  ;;  %v4420_v19 = vld [vmem:[%s39948_s10 + $0x1a2] sm:$0xff] }
 0x30b   : > { %v4421_v22 = vld [vmem:[%s39948_s10 + $0x1aa] sm:$0xff] }
 0x30d   : > { %33851 = vmatmul.mubr.msk.f32.gmra.mrb[68].mxu1 %vm398_vm0, %v3370_v25  ;;  %35853 = vmatmul.mubr.msk.f32.gmra.mrb[16].mxu0 %vm398_vm0, %v41317_v37  ;;  %v3376_v37 = vld [vmem:[%s39948_s10 + $0x396] sm:$0xff] }
 0x30e   : > { %33853 = vmatprep.mubr.msk.f32.mxu1 %vm398_vm0, %v3371_v27  ;;  %35855 = vmatprep.mubr.msk.f32.mxu0 %vm398_vm0, %v41321_v39  ;;  %v3377_v39 = vld [vmem:[%s39948_s10 + $0x39e] sm:$0xff]  ;;  %v46190_v25 = vld [vmem:[#allocation12_spill] sm:$0xff] }
 0x30f   : > { %v4422_v27 = vld [vmem:[%s39948_s10 + $0x1b2] sm:$0xff] }
 0x311   : > { %33854 = vmatmul.mubr.msk.f32.gmra.mrb[70].mxu1 %vm398_vm0, %v3372_v29  ;;  %35856 = vmatmul.mubr.msk.f32.gmra.mrb[18].mxu0 %vm398_vm0, %v41330_v42  ;;  %v3378_v42 = vld [vmem:[%s39948_s10 + $0x3a6] sm:$0xff]  ;;  %v4423_v29 = vld [vmem:[%s39948_s10 + $0x1ba] sm:$0xff] }
 0x312   : > { %33856 = vmatprep.mubr.msk.f32.mxu1 %vm398_vm0, %v3373_v31  ;;  %35858 = vmatprep.mubr.msk.f32.mxu0 %vm398_vm0, %v41336_v44  ;;  %v3379_v44 = vld [vmem:[%s39948_s10 + $0x3ae] sm:$0xff] }
 0x313   : > { %v4425_v31 = vld [vmem:[%s39948_s10 + $0x1ca] sm:$0xff] }
 0x315   : > { %33857 = vmatmul.mubr.msk.f32.gmra.mrb[72].mxu1 %vm398_vm0, %v3374_v34  ;;  %35859 = vmatmul.mubr.msk.f32.gmra.mrb[20].mxu0 %vm398_vm0, %v41346_v45  ;;  %v3380_v45 = vld [vmem:[%s39948_s10 + $0x3b6] sm:$0xff]  ;;  %v17773_v34 = vld [vmem:[%s39948_s10 + $0x70c] sm:$0xff] }
 0x316   : > { %33859 = vmatprep.mubr.msk.f32.mxu1 %vm398_vm0, %v3375_v35  ;;  %35861 = vmatprep.mubr.msk.f32.mxu0 %vm398_vm0, %v41350_v47  ;;  %v3381_v47 = vld [vmem:[%s39948_s10 + $0x3be] sm:$0xff]  ;;  %v17774_v35 = vld [vmem:[%s39948_s10 + $0x714] sm:$0xff] }
 0x319   : > { %33860 = vmatmul.mubr.msk.f32.gmra.mrb[74].mxu1 %vm398_vm0, %v3376_v37  ;;  %35862 = vmatmul.mubr.msk.f32.gmra.mrb[22].mxu0 %vm398_vm0, %v41360_v49  ;;  %v3382_v49 = vld [vmem:[%s39948_s10 + $0x3c6] sm:$0xff]  ;;  %v17775_v37 = vld [vmem:[%s39948_s10 + $0x71c] sm:$0xff] }
 0x31a   : > { %33862 = vmatprep.mubr.msk.f32.mxu1 %vm398_vm0, %v3377_v39  ;;  %35864 = vmatprep.mubr.msk.f32.mxu0 %vm398_vm0, %v41364_v52  ;;  %v3383_v52 = vld [vmem:[%s39948_s10 + $0x3ce] sm:$0xff]  ;;  %v17776_v39 = vld [vmem:[%s39948_s10 + $0x724] sm:$0xff] }
 0x31d   : > { %33863 = vmatmul.mubr.msk.f32.gmra.mrb[76].mxu1 %vm398_vm0, %v3378_v42  ;;  %35865 = vmatmul.mubr.msk.f32.gmra.mrb[24].mxu0 %vm398_vm0, %v41374_v53  ;;  %v3384_v53 = vld [vmem:[%s39948_s10 + $0x3d6] sm:$0xff]  ;;  %v4429_v42 = vld [vmem:[%s39948_s10 + $0x1ea] sm:$0xff] }
 0x31e   : > { %33865 = vmatprep.mubr.msk.f32.mxu1 %vm398_vm0, %v3379_v44  ;;  %35867 = vmatprep.mubr.msk.f32.mxu0 %vm398_vm0, %v41378_v55  ;;  %v3385_v55 = vld [vmem:[%s39948_s10 + $0x3de] sm:$0xff]  ;;  %v17777_v44 = vld [vmem:[%s39948_s10 + $0x72c] sm:$0xff] }
 0x321   : > { %33866 = vmatmul.mubr.msk.f32.gmra.mrb[78].mxu1 %vm398_vm0, %v3380_v45  ;;  %35868 = vmatmul.mubr.msk.f32.gmra.mrb[26].mxu0 %vm398_vm0, %v41388_v57  ;;  %v3386_v57 = vld [vmem:[%s39948_s10 + $0x3e6] sm:$0xff]  ;;  %v4430_v45 = vld [vmem:[%s39948_s10 + $0x1f2] sm:$0xff] }
 0x322   : > { %33868 = vmatprep.mubr.msk.f32.mxu1 %vm398_vm0, %v3381_v47  ;;  %35870 = vmatprep.mubr.msk.f32.mxu0 %vm398_vm0, %v41392_v59  ;;  %v3387_v59 = vld [vmem:[%s39948_s10 + $0x3ee] sm:$0xff] }
 0x323   : > { %v17778_v47 = vld [vmem:[%s39948_s10 + $0x734] sm:$0xff] }
 0x325   : > { %33869 = vmatmul.mubr.msk.f32.gmra.mrb[80].mxu1 %vm398_vm0, %v3382_v49  ;;  %35871 = vmatmul.mubr.msk.f32.gmra.mrb[28].mxu0 %vm398_vm0, %v41402_v61  ;;  %v3388_v61 = vld [vmem:[%s39948_s10 + $0x3f6] sm:$0xff] }
 0x326   : > { %33871 = vmatprep.mubr.msk.f32.mxu1 %vm398_vm0, %v3383_v52  ;;  %35873 = vmatprep.mubr.msk.f32.mxu0 %vm398_vm0, %v41406_v63  ;;  %v3389_v63 = vld [vmem:[%s39948_s10 + $0x3fe] sm:$0xff] }
 0x327   : > { %v4431_v49 = vld [vmem:[%s39948_s10 + $0x1fa] sm:$0xff] }
 0x328   : > { %v17779_v52 = vld [vmem:[%s39948_s10 + $0x73c] sm:$0xff] }
 0x329   : > { %33872 = vmatmul.mubr.msk.f32.gmra.mrb[82].mxu1 %vm398_vm0, %v3384_v53  ;;  %35874 = vmatmul.mubr.msk.f32.gmra.mrb[30].mxu0 %vm398_vm0, %v41416_v3  ;;  %v3390_v3 = vld [vmem:[%s39948_s10 + $0x406] sm:$0xff] }
 0x32a   : > { %33874 = vmatprep.mubr.msk.f32.mxu1 %vm398_vm0, %v3385_v55  ;;  %35876 = vmatprep.mubr.msk.f32.mxu0 %vm398_vm0, %v41420_v8  ;;  %v3391_v8 = vld [vmem:[%s39948_s10 + $0x40e] sm:$0xff]  ;;  %v4432_v53 = vld [vmem:[%s39948_s10 + $0x202] sm:$0xff] }
 0x32b   : > { %v17780_v55 = vld [vmem:[%s39948_s10 + $0x744] sm:$0xff] }
 0x32d   : > { %33875 = vmatmul.mubr.msk.f32.gmra.mrb[84].mxu1 %vm398_vm0, %v3386_v57  ;;  %35877 = vmatmul.mubr.msk.f32.gmra.mrb[32].mxu0 %vm398_vm0, %v41430_v11  ;;  %v3392_v11 = vld [vmem:[%s39948_s10 + $0x416] sm:$0xff]  ;;  %v4433_v57 = vld [vmem:[%s39948_s10 + $0x20a] sm:$0xff] }
 0x32e   : > { %33877 = vmatprep.mubr.msk.f32.mxu1 %vm398_vm0, %v3387_v59  ;;  %35879 = vmatprep.mubr.msk.f32.mxu0 %vm398_vm0, %v41434_v15  ;;  %v3393_v15 = vld [vmem:[%s39948_s10 + $0x41e] sm:$0xff]  ;;  %v17781_v59 = vld [vmem:[%s39948_s10 + $0x74c] sm:$0xff] }
 0x331   : > { %33878 = vmatmul.mubr.msk.f32.gmra.mrb[86].mxu1 %vm398_vm0, %v3388_v61  ;;  %35880 = vmatmul.mubr.msk.f32.gmra.mrb[34].mxu0 %vm398_vm0, %v41444_v18  ;;  %v3394_v18 = vld [vmem:[%s39948_s10 + $0x426] sm:$0xff]  ;;  %v4434_v61 = vld [vmem:[%s39948_s10 + $0x212] sm:$0xff] }
 0x332   : > { %33880 = vmatprep.mubr.msk.f32.mxu1 %vm398_vm0, %v3389_v63  ;;  %35882 = vmatprep.mubr.msk.f32.mxu0 %vm398_vm0, %v41448_v24  ;;  %v29869_v24 = vld [vmem:[%s46145_s2 + $0x120] sm:$0xff]  ;;  %v17782_v63 = vld [vmem:[%s39948_s10 + $0x754] sm:$0xff] }
 0x335   : > { %33881 = vmatmul.mubr.msk.f32.gmra.mrb[88].mxu1 %vm398_vm0, %v3390_v3  ;;  %35883 = vmatmul.mubr.msk.f32.gmra.mrb[36].mxu0 %vm398_vm0, %v41458_v28  ;;  %v29870_v28 = vld [vmem:[%s46145_s2 + $0x128] sm:$0xff]  ;;  %v4435_v3 = vld [vmem:[%s39948_s10 + $0x21a] sm:$0xff] }
 0x336   : > { %33883 = vmatprep.mubr.msk.f32.mxu1 %vm398_vm0, %v3391_v8  ;;  %35885 = vmatprep.mubr.msk.f32.mxu0 %vm398_vm0, %v41462_v32  ;;  %v3395_v32 = vld [vmem:[%s39948_s10 + $0x42e] sm:$0xff]  ;;  %v41855_v21 = vpack.c.bf16 %v29870_v28, %v29869_v24  ;;  %v17783_v8 = vld [vmem:[%s39948_s10 + $0x75c] sm:$0xff] }
 0x337   : > { %v17785_v24 = vld [vmem:[%s39948_s10 + $0x76c] sm:$0xff] }
 0x338   : > { %37337 = vmatprep.subr.bf16.mxu0 %v41855_v21  ;;  %v4438_v28 = vld [vmem:[%s39948_s10 + $0x232] sm:$0xff] }
 0x339   : > { %33884 = vmatmul.mubr.msk.f32.gmra.mrb[90].mxu1 %vm398_vm0, %v3392_v11  ;;  %35886 = vmatmul.mubr.msk.f32.gmra.mrb[38].mxu0 %vm398_vm0, %v41472_v36  ;;  %v3396_v36 = vld [vmem:[%s39948_s10 + $0x436] sm:$0xff]  ;;  %v4436_v11 = vld [vmem:[%s39948_s10 + $0x222] sm:$0xff] }
 0x33a   : > { %33886 = vmatprep.mubr.msk.f32.mxu1 %vm398_vm0, %v3393_v15  ;;  %35888 = vmatprep.mubr.msk.f32.mxu0 %vm398_vm0, %v41476_v40  ;;  %v3397_v40 = vld [vmem:[%s39948_s10 + $0x43e] sm:$0xff] }
 0x33b   : > { %v17784_v15 = vld [vmem:[%s39948_s10 + $0x764] sm:$0xff] }
 0x33d   : > { %33887 = vmatmul.mubr.msk.f32.gmra.mrb[92].mxu1 %vm398_vm0, %v3394_v18  ;;  %35889 = vmatmul.mubr.msk.f32.gmra.mrb[40].mxu0 %vm398_vm0, %v41486_v33  ;;  %v3398_v33 = vld [vmem:[%s39948_s10 + $0x446] sm:$0xff] }
 0x33e   : > { %33889 = vmatprep.mubr.msk.f32.mxu1 %vm398_vm0, %v3395_v32  ;;  %35891 = vmatprep.mubr.msk.f32.mxu0 %vm398_vm0, %v41490_v48  ;;  %v3400_v48 = vld [vmem:[%s39948_s10 + $0x456] sm:$0xff]  ;;  %v4437_v18 = vld [vmem:[%s39948_s10 + $0x22a] sm:$0xff] }
 0x33f   : > { %v17786_v32 = vld [vmem:[%s39948_s10 + $0x774] sm:$0xff] }
 0x341   : > { %33890 = vmatmul.mubr.msk.f32.gmra.mrb[94].mxu1 %vm398_vm0, %v3396_v36  ;;  %35892 = vmatmul.mubr.msk.f32.gmra.mrb[42].mxu0 %vm398_vm0, %v41500_v41  ;;  %v3401_v41 = vld [vmem:[%s39948_s10 + $0x45e] sm:$0xff] }
 0x342   : > { %33892 = vmatprep.mubr.msk.f32.mxu1 %vm398_vm0, %v3397_v40  ;;  %35894 = vmatprep.mubr.msk.f32.mxu0 %vm398_vm0, %v41504_v56  ;;  %v3402_v56 = vld [vmem:[%s39948_s10 + $0x466] sm:$0xff]  ;;  %v4439_v36 = vld [vmem:[%s39948_s10 + $0x23a] sm:$0xff] }
 0x343   : > { %v17787_v40 = vld [vmem:[%s39948_s10 + $0x77c] sm:$0xff] }
 0x345   : > { %33893 = vmatmul.mubr.msk.f32.gmra.mrb[96].mxu1 %vm398_vm0, %v3398_v33  ;;  %35895 = vmatmul.mubr.msk.f32.gmra.mrb[44].mxu0 %vm398_vm0, %v41514_v60  ;;  %v3403_v60 = vld [vmem:[%s39948_s10 + $0x46e] sm:$0xff]  ;;  %v4440_v33 = vld [vmem:[%s39948_s10 + $0x242] sm:$0xff] }
 0x346   : > { %33895 = vmatprep.mubr.msk.f32.mxu1 %vm398_vm0, %v3399_v7  ;;  %35897 = vmatprep.mubr.msk.f32.mxu0 %vm398_vm0, %v41518_v1  ;;  %v3404_v1 = vld [vmem:[%s39948_s10 + $0x476] sm:$0xff]  ;;  %v17788_v7 = vld [vmem:[%s39948_s10 + $0x784] sm:$0xff] }
 0x349   : > { %33896 = vmatmul.mubr.msk.f32.gmra.mrb[98].mxu1 %vm398_vm0, %v3400_v48  ;;  %35898 = vmatmul.mubr.msk.f32.gmra.mrb[46].mxu0 %vm398_vm0, %v41528_v10  ;;  %v4409_v10 = vld [vmem:[%s39948_s10 + $0x14a] sm:$0xff] }
 0x34a   : > { %33898 = vmatprep.mubr.msk.f32.mxu1 %vm398_vm0, %v3401_v41  ;;  %35900 = vmatprep.mubr.msk.f32.mxu0 %vm398_vm0, %v41532_v16  ;;  %v4410_v16 = vld [vmem:[%s39948_s10 + $0x152] sm:$0xff]  ;;  %v4441_v48 = vld [vmem:[%s39948_s10 + $0x24a] sm:$0xff] }
 0x34b   : > { %v17789_v41 = vld [vmem:[%s39948_s10 + $0x78c] sm:$0xff] }
 0x34d   : > { %33899 = vmatmul.mubr.msk.f32.gmra.mrb[100].mxu1 %vm398_vm0, %v3402_v56  ;;  %35901 = vmatmul.mubr.msk.f32.gmra.mrb[48].mxu0 %vm398_vm0, %v41542_v26  ;;  %v4411_v26 = vld [vmem:[%s39948_s10 + $0x15a] sm:$0xff]  ;;  %v4442_v56 = vld [vmem:[%s39948_s10 + $0x252] sm:$0xff] }
 0x34e   : > { %33901 = vmatprep.mubr.msk.f32.mxu1 %vm398_vm0, %v3403_v60  ;;  %35903 = vmatprep.mubr.msk.f32.mxu0 %vm398_vm0, %v41546_v23  ;;  %v4412_v23 = vld [vmem:[%s39948_s10 + $0x162] sm:$0xff]  ;;  %v17790_v60 = vld [vmem:[%s39948_s10 + $0x794] sm:$0xff] }
 0x351   : > { %33902 = vmatmul.mubr.msk.f32.gmra.mrb[102].mxu1 %vm398_vm0, %v3404_v1  ;;  %35904 = vmatmul.mubr.msk.f32.gmra.mrb[50].mxu0 %vm398_vm0, %v41556_v43  ;;  %v46182_v43 = vld [vmem:[#allocation4_spill] sm:$0xff]  ;;  %v4443_v1 = vld [vmem:[%s39948_s10 + $0x25a] sm:$0xff] }
 0x352   : > { %33908 = vmatprep.mubr.msk.f32.mxu1 %vm398_vm0, %v4409_v10  ;;  %35906 = vmatprep.mubr.msk.f32.mxu0 %vm398_vm0, %v41560_v50  ;;  %v46183_v50 = vld [vmem:[#allocation5_spill] sm:$0xff] }
 0x353   : > { %v17791_v10 = vld [vmem:[%s39948_s10 + $0x79c] sm:$0xff] }
 0x355   : > { %33909 = vmatmul.mubr.msk.f32.vlgmr.msra.gmra.mrb[0].mxu1 %vm398_vm0, %v4410_v16  ;;  %35907 = vmatmul.mubr.msk.f32.gmra.mrb[52].mxu0 %vm398_vm0, %v46181_v51  ;;  %v4444_v16 = vld [vmem:[%s39948_s10 + $0x262] sm:$0xff]  ;;  %v4445_v51 = vld [vmem:[%s39948_s10 + $0x26a] sm:$0xff] }
 0x356   : > { %37287 = vmatpush3.bf16.msra.mxu1 %v41610_v20  ;;  %33911 = vmatprep.mubr.msk.f32.mxu1 %vm398_vm0, %v4411_v26  ;;  %v4414_v20 = vld [vmem:[%s39948_s10 + $0x172] sm:$0xff]  ;;  %v17792_v26 = vld [vmem:[%s39948_s10 + $0x7a4] sm:$0xff] }
 0x357   : > { %35909 = vmatprep.mubr.msk.f32.mxu0 %vm398_vm0, %v46182_v43  ;;  %v4446_v43 = vld [vmem:[%s39948_s10 + $0x272] sm:$0xff] }
 0x359   : > { %33912 = vmatmul.mubr.msk.f32.gmra.mrb[2].mxu1 %vm398_vm0, %v4412_v23  ;;  %35910 = vmatmul.mubr.msk.f32.gmra.mrb[54].mxu0 %vm398_vm0, %v46183_v50  ;;  %v17793_v23 = vld [vmem:[%s39948_s10 + $0x7ac] sm:$0xff]  ;;  %v4447_v50 = vld [vmem:[%s39948_s10 + $0x27a] sm:$0xff] }
 0x35a   : > { %33914 = vmatprep.mubr.msk.f32.mxu1 %vm398_vm0, %v4413_v38  ;;  %35912 = vmatprep.mubr.msk.f32.mxu0 %vm398_vm0, %v46184_v62  ;;  %v17794_v38 = vld [vmem:[%s39948_s10 + $0x7b4] sm:$0xff]  ;;  %v17795_v62 = vld [vmem:[%s39948_s10 + $0x7bc] sm:$0xff] }
 0x35d   : > { %33915 = vmatmul.mubr.msk.f32.gmra.mrb[4].mxu1 %vm398_vm0, %v4414_v20  ;;  %35913 = vmatmul.mubr.msk.f32.gmra.mrb[56].mxu0 %vm398_vm0, %v41598_v54  ;;  %v4418_v54 = vld [vmem:[%s39948_s10 + $0x192] sm:$0xff]  ;;  %v4448_v20 = vld [vmem:[%s39948_s10 + $0x282] sm:$0xff] }
 0x35e   : > { %33917 = vmatprep.mubr.msk.f32.mxu1 %vm398_vm0, %v4415_v0  ;;  %35915 = vmatprep.mubr.msk.f32.mxu0 %vm398_vm0, %v46185_v2  ;;  %v17796_v0 = vld [vmem:[%s39948_s10 + $0x7c4] sm:$0xff] }
 0x35f   : > { %v4449_v2 = vld [vmem:[%s39948_s10 + $0x28a] sm:$0xff] }
 0x361   : > { %33918 = vmatmul.mubr.msk.f32.gmra.mrb[6].mxu1 %vm398_vm0, %v4416_v5  ;;  %35916 = vmatmul.mubr.msk.f32.gmra.mrb[58].mxu0 %vm398_vm0, %v46186_v9  ;;  %v17797_v5 = vld [vmem:[%s39948_s10 + $0x7cc] sm:$0xff]  ;;  %v17798_v9 = vld [vmem:[%s39948_s10 + $0x7d4] sm:$0xff] }
 0x362   : > { %33920 = vmatprep.mubr.msk.f32.mxu1 %vm398_vm0, %v4417_v6  ;;  %35918 = vmatprep.mubr.msk.f32.mxu0 %vm398_vm0, %v46187_v13  ;;  %v4450_v6 = vld [vmem:[%s39948_s10 + $0x292] sm:$0xff]  ;;  %v28597_v13 = vld [vmem:[%s46145_s2 + $0x60] sm:$0xff] }
 0x365   : > { %33921 = vmatmul.mubr.msk.f32.gmra.mrb[8].mxu1 %vm398_vm0, %v4418_v54  ;;  %35919 = vmatmul.mubr.msk.f32.gmra.mrb[60].mxu0 %vm398_vm0, %v46188_v4  ;;  %v28598_v54 = vld [vmem:[%s46145_s2 + $0x68] sm:$0xff]  ;;  %v17799_v4 = vld [vmem:[%s39948_s10 + $0x7dc] sm:$0xff] }
 0x366   : > { %33923 = vmatprep.mubr.msk.f32.mxu1 %vm398_vm0, %v4419_v14  ;;  %35921 = vmatprep.mubr.msk.f32.mxu0 %vm398_vm0, %v46189_v17  ;;  %v4451_v14 = vld [vmem:[%s39948_s10 + $0x29a] sm:$0xff]  ;;  %v42075_v17 = vpack.c.bf16 %v28598_v54, %v28597_v13  ;;  %v18833_v13 = vld [vmem:[%s39948_s10 + $0x592] sm:$0xff] }
 0x367   : > { %v4482_v54 = vld [vmem:[%s39948_s10 + $0x392] sm:$0xff] }
 0x368   : > { %37289 = vmatprep.subr.bf16.mxu1 %v42075_v17 }
 0x369   : > { %33924 = vmatmul.mubr.msk.f32.gmra.mrb[10].mxu1 %vm398_vm0, %v4420_v19  ;;  %35922 = vmatmul.mubr.msk.f32.gmra.mrb[62].mxu0 %vm398_vm0, %v41649_v30  ;;  %v4424_v30 = vld [vmem:[%s39948_s10 + $0x1c2] sm:$0xff] }
 0x36a   : > { %33926 = vmatprep.mubr.msk.f32.mxu1 %vm398_vm0, %v4421_v22  ;;  %35924 = vmatprep.mubr.msk.f32.mxu0 %vm398_vm0, %v46190_v25  ;;  %v4452_v19 = vld [vmem:[%s39948_s10 + $0x2a2] sm:$0xff]  ;;  %v4453_v25 = vld [vmem:[%s39948_s10 + $0x2aa] sm:$0xff] }
 0x36b   : > { %v17800_v22 = vld [vmem:[%s39948_s10 + $0x7e4] sm:$0xff] }
 0x36d   : > { %33927 = vmatmul.mubr.msk.f32.gmra.mrb[12].mxu1 %vm398_vm0, %v4422_v27  ;;  %35925 = vmatmul.mubr.msk.f32.gmra.mrb[64].mxu0 %vm398_vm0, %v41663_v12  ;;  %v4426_v12 = vld [vmem:[%s39948_s10 + $0x1d2] sm:$0xff] }
 0x36e   : > { %33929 = vmatprep.mubr.msk.f32.mxu1 %vm398_vm0, %v4423_v29  ;;  %35927 = vmatprep.mubr.msk.f32.mxu0 %vm398_vm0, %v41667_v46  ;;  %v4427_v46 = vld [vmem:[%s39948_s10 + $0x1da] sm:$0xff]  ;;  %v17801_v27 = vld [vmem:[%s39948_s10 + $0x7ec] sm:$0xff] }
 0x36f   : > { %v4454_v29 = vld [vmem:[%s39948_s10 + $0x2b2] sm:$0xff] }
 0x371   : > { %33930 = vmatmul.mubr.msk.f32.gmra.mrb[14].mxu1 %vm398_vm0, %v4424_v30  ;;  %35928 = vmatmul.mubr.msk.f32.gmra.mrb[66].mxu0 %vm398_vm0, %v41677_v58  ;;  %v4428_v58 = vld [vmem:[%s39948_s10 + $0x1e2] sm:$0xff]  ;;  %v17802_v30 = vld [vmem:[%s39948_s10 + $0x7f4] sm:$0xff] }
 0x372   : > { %33932 = vmatprep.mubr.msk.f32.mxu1 %vm398_vm0, %v4425_v31  ;;  %35930 = vmatprep.mubr.msk.f32.mxu0 %vm398_vm0, %v17773_v34  ;;  %v4455_v31 = vld [vmem:[%s39948_s10 + $0x2ba] sm:$0xff] }
 0x373   : > { %v17803_v34 = vld [vmem:[%s39948_s10 + $0x7fc] sm:$0xff] }
 0x375   : > { %33933 = vmatmul.mubr.msk.f32.gmra.mrb[16].mxu1 %vm398_vm0, %v4426_v12  ;;  %35931 = vmatmul.mubr.msk.f32.gmra.mrb[68].mxu0 %vm398_vm0, %v17774_v35  ;;  %v4456_v12 = vld [vmem:[%s39948_s10 + $0x2c2] sm:$0xff] }
 0x376   : > { %33935 = vmatprep.mubr.msk.f32.mxu1 %vm398_vm0, %v4427_v46  ;;  %35933 = vmatprep.mubr.msk.f32.mxu0 %vm398_vm0, %v17775_v37  ;;  %v17804_v35 = vld [vmem:[%s39948_s10 + $0x804] sm:$0xff]  ;;  %v17805_v37 = vld [vmem:[%s39948_s10 + $0x80c] sm:$0xff] }
 0x377   : > { %v4457_v46 = vld [vmem:[%s39948_s10 + $0x2ca] sm:$0xff] }
 0x379   : > { %33936 = vmatmul.mubr.msk.f32.gmra.mrb[18].mxu1 %vm398_vm0, %v4428_v58  ;;  %35934 = vmatmul.mubr.msk.f32.gmra.mrb[70].mxu0 %vm398_vm0, %v17776_v39  ;;  %v4458_v58 = vld [vmem:[%s39948_s10 + $0x2d2] sm:$0xff] }
 0x37a   : > { %33938 = vmatprep.mubr.msk.f32.mxu1 %vm398_vm0, %v4429_v42  ;;  %35936 = vmatprep.mubr.msk.f32.mxu0 %vm398_vm0, %v17777_v44  ;;  %v17806_v39 = vld [vmem:[%s39948_s10 + $0x814] sm:$0xff]  ;;  %v17807_v44 = vld [vmem:[%s39948_s10 + $0x81c] sm:$0xff] }
 0x37b   : > { %v4459_v42 = vld [vmem:[%s39948_s10 + $0x2da] sm:$0xff] }
 0x37d   : > { %33939 = vmatmul.mubr.msk.f32.gmra.mrb[20].mxu1 %vm398_vm0, %v4430_v45  ;;  %35937 = vmatmul.mubr.msk.f32.gmra.mrb[72].mxu0 %vm398_vm0, %v17778_v47  ;;  %v4460_v45 = vld [vmem:[%s39948_s10 + $0x2e2] sm:$0xff] }
 0x37e   : > { %33941 = vmatprep.mubr.msk.f32.mxu1 %vm398_vm0, %v4431_v49  ;;  %35939 = vmatprep.mubr.msk.f32.mxu0 %vm398_vm0, %v17779_v52  ;;  %v17808_v47 = vld [vmem:[%s39948_s10 + $0x824] sm:$0xff]  ;;  %v18813_v52 = vld [vmem:[%s39948_s10 + $0x4f2] sm:$0xff] }
 0x37f   : > { %v4461_v49 = vld [vmem:[%s39948_s10 + $0x2ea] sm:$0xff] }
 0x381   : > { %33942 = vmatmul.mubr.msk.f32.gmra.mrb[22].mxu1 %vm398_vm0, %v4432_v53  ;;  %35940 = vmatmul.mubr.msk.f32.gmra.mrb[74].mxu0 %vm398_vm0, %v17780_v55  ;;  %v4462_v53 = vld [vmem:[%s39948_s10 + $0x2f2] sm:$0xff]  ;;  %v18814_v55 = vld [vmem:[%s39948_s10 + $0x4fa] sm:$0xff] }
 0x382   : > { %33944 = vmatprep.mubr.msk.f32.mxu1 %vm398_vm0, %v4433_v57  ;;  %35942 = vmatprep.mubr.msk.f32.mxu0 %vm398_vm0, %v17781_v59  ;;  %v4463_v57 = vld [vmem:[%s39948_s10 + $0x2fa] sm:$0xff]  ;;  %v18815_v59 = vld [vmem:[%s39948_s10 + $0x502] sm:$0xff] }
 0x385   : > { %33945 = vmatmul.mubr.msk.f32.gmra.mrb[24].mxu1 %vm398_vm0, %v4434_v61  ;;  %35943 = vmatmul.mubr.msk.f32.gmra.mrb[76].mxu0 %vm398_vm0, %v17782_v63  ;;  %v4464_v61 = vld [vmem:[%s39948_s10 + $0x302] sm:$0xff]  ;;  %v18816_v63 = vld [vmem:[%s39948_s10 + $0x50a] sm:$0xff] }
 0x386   : > { %33947 = vmatprep.mubr.msk.f32.mxu1 %vm398_vm0, %v4435_v3  ;;  %35945 = vmatprep.mubr.msk.f32.mxu0 %vm398_vm0, %v17783_v8  ;;  %v4465_v3 = vld [vmem:[%s39948_s10 + $0x30a] sm:$0xff]  ;;  %v18817_v8 = vld [vmem:[%s39948_s10 + $0x512] sm:$0xff] }
 0x389   : > { %33948 = vmatmul.mubr.msk.f32.gmra.mrb[26].mxu1 %vm398_vm0, %v4436_v11  ;;  %35946 = vmatmul.mubr.msk.f32.gmra.mrb[78].mxu0 %vm398_vm0, %v17784_v15  ;;  %v18818_v11 = vld [vmem:[%s39948_s10 + $0x51a] sm:$0xff] }
 0x38a   : > { %33950 = vmatprep.mubr.msk.f32.mxu1 %vm398_vm0, %v4437_v18  ;;  %35948 = vmatprep.mubr.msk.f32.mxu0 %vm398_vm0, %v17785_v24  ;;  %v4467_v15 = vld [vmem:[%s39948_s10 + $0x31a] sm:$0xff]  ;;  %v18819_v18 = vld [vmem:[%s39948_s10 + $0x522] sm:$0xff] }
 0x38b   : > { %v4468_v24 = vld [vmem:[%s39948_s10 + $0x322] sm:$0xff] }
 0x38d   : > { %33951 = vmatmul.mubr.msk.f32.gmra.mrb[28].mxu1 %vm398_vm0, %v4438_v28  ;;  %35949 = vmatmul.mubr.msk.f32.gmra.mrb[80].mxu0 %vm398_vm0, %v17786_v32  ;;  %v18820_v28 = vld [vmem:[%s39948_s10 + $0x52a] sm:$0xff] }
 0x38e   : > { %33953 = vmatprep.mubr.msk.f32.mxu1 %vm398_vm0, %v4439_v36  ;;  %35951 = vmatprep.mubr.msk.f32.mxu0 %vm398_vm0, %v17787_v40  ;;  %v4469_v32 = vld [vmem:[%s39948_s10 + $0x32a] sm:$0xff]  ;;  %v18821_v36 = vld [vmem:[%s39948_s10 + $0x532] sm:$0xff] }
 0x38f   : > { %v4470_v40 = vld [vmem:[%s39948_s10 + $0x332] sm:$0xff] }
 0x391   : > { %33954 = vmatmul.mubr.msk.f32.gmra.mrb[30].mxu1 %vm398_vm0, %v4440_v33  ;;  %35952 = vmatmul.mubr.msk.f32.gmra.mrb[82].mxu0 %vm398_vm0, %v17788_v7  ;;  %v18822_v33 = vld [vmem:[%s39948_s10 + $0x53a] sm:$0xff] }
 0x392   : > { %33956 = vmatprep.mubr.msk.f32.mxu1 %vm398_vm0, %v4441_v48  ;;  %35954 = vmatprep.mubr.msk.f32.mxu0 %vm398_vm0, %v17789_v41  ;;  %v4471_v7 = vld [vmem:[%s39948_s10 + $0x33a] sm:$0xff]  ;;  %v18823_v48 = vld [vmem:[%s39948_s10 + $0x542] sm:$0xff] }
 0x393   : > { %v4472_v41 = vld [vmem:[%s39948_s10 + $0x342] sm:$0xff] }
 0x395   : > { %33957 = vmatmul.mubr.msk.f32.gmra.mrb[32].mxu1 %vm398_vm0, %v4442_v56  ;;  %35955 = vmatmul.mubr.msk.f32.gmra.mrb[84].mxu0 %vm398_vm0, %v17790_v60  ;;  %v18824_v56 = vld [vmem:[%s39948_s10 + $0x54a] sm:$0xff] }
 0x396   : > { %33959 = vmatprep.mubr.msk.f32.mxu1 %vm398_vm0, %v4443_v1  ;;  %35957 = vmatprep.mubr.msk.f32.mxu0 %vm398_vm0, %v17791_v10  ;;  %v4473_v60 = vld [vmem:[%s39948_s10 + $0x34a] sm:$0xff]  ;;  %v18825_v1 = vld [vmem:[%s39948_s10 + $0x552] sm:$0xff] }
 0x397   : > { %v4474_v10 = vld [vmem:[%s39948_s10 + $0x352] sm:$0xff] }
 0x399   : > { %33960 = vmatmul.mubr.msk.f32.gmra.mrb[34].mxu1 %vm398_vm0, %v4444_v16  ;;  %35958 = vmatmul.mubr.msk.f32.gmra.mrb[86].mxu0 %vm398_vm0, %v17792_v26  ;;  %v18826_v16 = vld [vmem:[%s39948_s10 + $0x55a] sm:$0xff] }
 0x39a   : > { %33962 = vmatprep.mubr.msk.f32.mxu1 %vm398_vm0, %v4445_v51  ;;  %35960 = vmatprep.mubr.msk.f32.mxu0 %vm398_vm0, %v17793_v23  ;;  %v4475_v26 = vld [vmem:[%s39948_s10 + $0x35a] sm:$0xff]  ;;  %v18827_v51 = vld [vmem:[%s39948_s10 + $0x562] sm:$0xff] }
 0x39b   : > { %v4476_v23 = vld [vmem:[%s39948_s10 + $0x362] sm:$0xff] }
 0x39d   : > { %33963 = vmatmul.mubr.msk.f32.gmra.mrb[36].mxu1 %vm398_vm0, %v4446_v43  ;;  %35961 = vmatmul.mubr.msk.f32.gmra.mrb[88].mxu0 %vm398_vm0, %v17794_v38  ;;  %v18828_v43 = vld [vmem:[%s39948_s10 + $0x56a] sm:$0xff] }
 0x39e   : > { %33965 = vmatprep.mubr.msk.f32.mxu1 %vm398_vm0, %v4447_v50  ;;  %35963 = vmatprep.mubr.msk.f32.mxu0 %vm398_vm0, %v17795_v62  ;;  %v4477_v38 = vld [vmem:[%s39948_s10 + $0x36a] sm:$0xff]  ;;  %v18829_v50 = vld [vmem:[%s39948_s10 + $0x572] sm:$0xff] }
 0x39f   : > { %v4478_v62 = vld [vmem:[%s39948_s10 + $0x372] sm:$0xff] }
 0x3a1   : > { %33966 = vmatmul.mubr.msk.f32.gmra.mrb[38].mxu1 %vm398_vm0, %v4448_v20  ;;  %35964 = vmatmul.mubr.msk.f32.gmra.mrb[90].mxu0 %vm398_vm0, %v17796_v0  ;;  %v18830_v20 = vld [vmem:[%s39948_s10 + $0x57a] sm:$0xff] }
 0x3a2   : > { %33968 = vmatprep.mubr.msk.f32.mxu1 %vm398_vm0, %v4449_v2  ;;  %35966 = vmatprep.mubr.msk.f32.mxu0 %vm398_vm0, %v17797_v5  ;;  %v4479_v0 = vld [vmem:[%s39948_s10 + $0x37a] sm:$0xff]  ;;  %v18831_v2 = vld [vmem:[%s39948_s10 + $0x582] sm:$0xff] }
 0x3a3   : > { %v4480_v5 = vld [vmem:[%s39948_s10 + $0x382] sm:$0xff] }
 0x3a5   : > { %33969 = vmatmul.mubr.msk.f32.gmra.mrb[40].mxu1 %vm398_vm0, %v4450_v6  ;;  %35967 = vmatmul.mubr.msk.f32.gmra.mrb[92].mxu0 %vm398_vm0, %v17798_v9  ;;  %v18832_v6 = vld [vmem:[%s39948_s10 + $0x58a] sm:$0xff] }
 0x3a6   : > { %33971 = vmatprep.mubr.msk.f32.mxu1 %vm398_vm0, %v4451_v14  ;;  %35969 = vmatprep.mubr.msk.f32.mxu0 %vm398_vm0, %v17799_v4  ;;  %v4481_v9 = vld [vmem:[%s39948_s10 + $0x38a] sm:$0xff]  ;;  %v18834_v14 = vld [vmem:[%s39948_s10 + $0x59a] sm:$0xff] }
 0x3a7   : > { %v4483_v4 = vld [vmem:[%s39948_s10 + $0x39a] sm:$0xff] }
 0x3a9   : > { %33972 = vmatmul.mubr.msk.f32.gmra.mrb[42].mxu1 %vm398_vm0, %v4452_v19  ;;  %35970 = vmatmul.mubr.msk.f32.gmra.mrb[94].mxu0 %vm398_vm0, %v17800_v22  ;;  %v18835_v19 = vld [vmem:[%s39948_s10 + $0x5a2] sm:$0xff] }
 0x3aa   : > { %33974 = vmatprep.mubr.msk.f32.mxu1 %vm398_vm0, %v4453_v25  ;;  %35972 = vmatprep.mubr.msk.f32.mxu0 %vm398_vm0, %v17801_v27  ;;  %v4484_v22 = vld [vmem:[%s39948_s10 + $0x3a2] sm:$0xff]  ;;  %v18836_v25 = vld [vmem:[%s39948_s10 + $0x5aa] sm:$0xff] }
 0x3ab   : > { %v4485_v27 = vld [vmem:[%s39948_s10 + $0x3aa] sm:$0xff] }
 0x3ad   : > { %33975 = vmatmul.mubr.msk.f32.gmra.mrb[44].mxu1 %vm398_vm0, %v4454_v29  ;;  %35973 = vmatmul.mubr.msk.f32.gmra.mrb[96].mxu0 %vm398_vm0, %v17802_v30  ;;  %v18837_v29 = vld [vmem:[%s39948_s10 + $0x5b2] sm:$0xff] }
 0x3ae   : > { %33977 = vmatprep.mubr.msk.f32.mxu1 %vm398_vm0, %v4455_v31  ;;  %35975 = vmatprep.mubr.msk.f32.mxu0 %vm398_vm0, %v17803_v34  ;;  %v4486_v30 = vld [vmem:[%s39948_s10 + $0x3b2] sm:$0xff]  ;;  %v18838_v31 = vld [vmem:[%s39948_s10 + $0x5ba] sm:$0xff] }
 0x3af   : > { %v4487_v34 = vld [vmem:[%s39948_s10 + $0x3ba] sm:$0xff] }
 0x3b1   : > { %33978 = vmatmul.mubr.msk.f32.gmra.mrb[46].mxu1 %vm398_vm0, %v4456_v12  ;;  %35976 = vmatmul.mubr.msk.f32.gmra.mrb[98].mxu0 %vm398_vm0, %v17804_v35  ;;  %v18839_v12 = vld [vmem:[%s39948_s10 + $0x5c2] sm:$0xff] }
 0x3b2   : > { %33980 = vmatprep.mubr.msk.f32.mxu1 %vm398_vm0, %v4457_v46  ;;  %35978 = vmatprep.mubr.msk.f32.mxu0 %vm398_vm0, %v17805_v37  ;;  %v4488_v35 = vld [vmem:[%s39948_s10 + $0x3c2] sm:$0xff]  ;;  %v18840_v46 = vld [vmem:[%s39948_s10 + $0x5ca] sm:$0xff] }
 0x3b3   : > { %v4489_v37 = vld [vmem:[%s39948_s10 + $0x3ca] sm:$0xff] }
 0x3b5   : > { %33981 = vmatmul.mubr.msk.f32.gmra.mrb[48].mxu1 %vm398_vm0, %v4458_v58  ;;  %35979 = vmatmul.mubr.msk.f32.gmra.mrb[100].mxu0 %vm398_vm0, %v17806_v39  ;;  %v18841_v58 = vld [vmem:[%s39948_s10 + $0x5d2] sm:$0xff] }
 0x3b6   : > { %33983 = vmatprep.mubr.msk.f32.mxu1 %vm398_vm0, %v4459_v42  ;;  %35981 = vmatprep.mubr.msk.f32.mxu0 %vm398_vm0, %v17807_v44  ;;  %v4490_v39 = vld [vmem:[%s39948_s10 + $0x3d2] sm:$0xff]  ;;  %v18842_v42 = vld [vmem:[%s39948_s10 + $0x5da] sm:$0xff] }
 0x3b7   : > { %v4491_v44 = vld [vmem:[%s39948_s10 + $0x3da] sm:$0xff] }
 0x3b9   : > { %33984 = vmatmul.mubr.msk.f32.gmra.mrb[50].mxu1 %vm398_vm0, %v4460_v45  ;;  %35982 = vmatmul.mubr.msk.f32.gmra.mrb[102].mxu0 %vm398_vm0, %v17808_v47  ;;  %v18843_v45 = vld [vmem:[%s39948_s10 + $0x5e2] sm:$0xff] }
 0x3ba   : > { %33986 = vmatprep.mubr.msk.f32.mxu1 %vm398_vm0, %v4461_v49  ;;  %35988 = vmatprep.mubr.msk.f32.mxu0 %vm398_vm0, %v18813_v52  ;;  %v4492_v47 = vld [vmem:[%s39948_s10 + $0x3e2] sm:$0xff]  ;;  %v18844_v49 = vld [vmem:[%s39948_s10 + $0x5ea] sm:$0xff] }
 0x3bb   : > { %v4493_v52 = vld [vmem:[%s39948_s10 + $0x3ea] sm:$0xff] }
 0x3bd   : > { %33987 = vmatmul.mubr.msk.f32.gmra.mrb[52].mxu1 %vm398_vm0, %v4462_v53  ;;  %35989 = vmatmul.mubr.msk.f32.vlgmr.msra.gmra.mrb[0].mxu0 %vm398_vm0, %v18814_v55  ;;  %v18845_v53 = vld [vmem:[%s39948_s10 + $0x5f2] sm:$0xff] }
 0x3be   : > { %37339 = vmatpush3.bf16.msra.mxu0 %v41855_v21  ;;  %33989 = vmatprep.mubr.msk.f32.mxu1 %vm398_vm0, %v4463_v57  ;;  %v4466_v21 = vld [vmem:[%s39948_s10 + $0x312] sm:$0xff]  ;;  %v18846_v57 = vld [vmem:[%s39948_s10 + $0x5fa] sm:$0xff] }
 0x3bf   : > { %35991 = vmatprep.mubr.msk.f32.mxu0 %vm398_vm0, %v18815_v59  ;;  %v4494_v55 = vld [vmem:[%s39948_s10 + $0x3f2] sm:$0xff]  ;;  %v4495_v59 = vld [vmem:[%s39948_s10 + $0x3fa] sm:$0xff] }
 0x3c1   : > { %33990 = vmatmul.mubr.msk.f32.gmra.mrb[54].mxu1 %vm398_vm0, %v4464_v61  ;;  %35992 = vmatmul.mubr.msk.f32.gmra.mrb[2].mxu0 %vm398_vm0, %v18816_v63  ;;  %v18847_v61 = vld [vmem:[%s39948_s10 + $0x602] sm:$0xff] }
 0x3c2   : > { %33992 = vmatprep.mubr.msk.f32.mxu1 %vm398_vm0, %v4465_v3  ;;  %35994 = vmatprep.mubr.msk.f32.mxu0 %vm398_vm0, %v18817_v8  ;;  %v4496_v63 = vld [vmem:[%s39948_s10 + $0x402] sm:$0xff]  ;;  %v18848_v3 = vld [vmem:[%s39948_s10 + $0x60a] sm:$0xff] }
 0x3c3   : > { %v4497_v8 = vld [vmem:[%s39948_s10 + $0x40a] sm:$0xff] }
 0x3c5   : > { %33993 = vmatmul.mubr.msk.f32.gmra.mrb[56].mxu1 %vm398_vm0, %v4466_v21  ;;  %35995 = vmatmul.mubr.msk.f32.gmra.mrb[4].mxu0 %vm398_vm0, %v18818_v11  ;;  %v18849_v21 = vld [vmem:[%s39948_s10 + $0x612] sm:$0xff] }
 0x3c6   : > { %33995 = vmatprep.mubr.msk.f32.mxu1 %vm398_vm0, %v4467_v15  ;;  %35997 = vmatprep.mubr.msk.f32.mxu0 %vm398_vm0, %v18819_v18  ;;  %v4498_v11 = vld [vmem:[%s39948_s10 + $0x412] sm:$0xff]  ;;  %v18850_v15 = vld [vmem:[%s39948_s10 + $0x61a] sm:$0xff] }
 0x3c7   : > { %v4499_v18 = vld [vmem:[%s39948_s10 + $0x41a] sm:$0xff] }
 0x3c9   : > { %33996 = vmatmul.mubr.msk.f32.gmra.mrb[58].mxu1 %vm398_vm0, %v4468_v24  ;;  %35998 = vmatmul.mubr.msk.f32.gmra.mrb[6].mxu0 %vm398_vm0, %v18820_v28  ;;  %v18851_v24 = vld [vmem:[%s39948_s10 + $0x622] sm:$0xff] }
 0x3ca   : > { %33998 = vmatprep.mubr.msk.f32.mxu1 %vm398_vm0, %v4469_v32  ;;  %36000 = vmatprep.mubr.msk.f32.mxu0 %vm398_vm0, %v18821_v36  ;;  %v4500_v28 = vld [vmem:[%s39948_s10 + $0x422] sm:$0xff]  ;;  %v18852_v32 = vld [vmem:[%s39948_s10 + $0x62a] sm:$0xff] }
 0x3cb   : > { %v4501_v36 = vld [vmem:[%s39948_s10 + $0x42a] sm:$0xff] }
 0x3cd   : > { %33999 = vmatmul.mubr.msk.f32.gmra.mrb[60].mxu1 %vm398_vm0, %v4470_v40  ;;  %36001 = vmatmul.mubr.msk.f32.gmra.mrb[8].mxu0 %vm398_vm0, %v18822_v33  ;;  %v18853_v40 = vld [vmem:[%s39948_s10 + $0x632] sm:$0xff] }
 0x3ce   : > { %34001 = vmatprep.mubr.msk.f32.mxu1 %vm398_vm0, %v4471_v7  ;;  %36003 = vmatprep.mubr.msk.f32.mxu0 %vm398_vm0, %v18823_v48  ;;  %v4502_v33 = vld [vmem:[%s39948_s10 + $0x432] sm:$0xff]  ;;  %v18854_v7 = vld [vmem:[%s39948_s10 + $0x63a] sm:$0xff] }
 0x3cf   : > { %v29975_v48 = vld [vmem:[%s46145_s2 + $0x130] sm:$0xff] }
 0x3d1   : > { %34002 = vmatmul.mubr.msk.f32.gmra.mrb[62].mxu1 %vm398_vm0, %v4472_v41  ;;  %36004 = vmatmul.mubr.msk.f32.gmra.mrb[10].mxu0 %vm398_vm0, %v18824_v56  ;;  %v29976_v41 = vld [vmem:[%s46145_s2 + $0x138] sm:$0xff] }
 0x3d2   : > { %34004 = vmatprep.mubr.msk.f32.mxu1 %vm398_vm0, %v4473_v60  ;;  %36006 = vmatprep.mubr.msk.f32.mxu0 %vm398_vm0, %v18825_v1  ;;  %v4503_v56 = vld [vmem:[%s39948_s10 + $0x43a] sm:$0xff]  ;;  %v18855_v60 = vld [vmem:[%s39948_s10 + $0x642] sm:$0xff]  ;;  %v42293_v1 = vpack.c.bf16 %v29976_v41, %v29975_v48  ;;  %v18885_v48 = vld [vmem:[%s39948_s10 + $0x732] sm:$0xff] }
 0x3d3   : > { %v5538_v41 = vld [vmem:[%s39948_s10 + $0x1fe] sm:$0xff] }
 0x3d4   : > { %37341 = vmatprep.subr.bf16.mxu0 %v42293_v1 }
 0x3d5   : > { %34005 = vmatmul.mubr.msk.f32.gmra.mrb[64].mxu1 %vm398_vm0, %v4474_v10  ;;  %36007 = vmatmul.mubr.msk.f32.gmra.mrb[12].mxu0 %vm398_vm0, %v18826_v16  ;;  %v4504_v10 = vld [vmem:[%s39948_s10 + $0x442] sm:$0xff]  ;;  %v18856_v16 = vld [vmem:[%s39948_s10 + $0x64a] sm:$0xff] }
 0x3d6   : > { %34007 = vmatprep.mubr.msk.f32.mxu1 %vm398_vm0, %v4475_v26  ;;  %36009 = vmatprep.mubr.msk.f32.mxu0 %vm398_vm0, %v18827_v51  ;;  %v4505_v26 = vld [vmem:[%s39948_s10 + $0x44a] sm:$0xff]  ;;  %v18857_v51 = vld [vmem:[%s39948_s10 + $0x652] sm:$0xff] }
 0x3d9   : > { %34008 = vmatmul.mubr.msk.f32.gmra.mrb[66].mxu1 %vm398_vm0, %v4476_v23  ;;  %36010 = vmatmul.mubr.msk.f32.gmra.mrb[14].mxu0 %vm398_vm0, %v18828_v43  ;;  %v4506_v23 = vld [vmem:[%s39948_s10 + $0x452] sm:$0xff]  ;;  %v18858_v43 = vld [vmem:[%s39948_s10 + $0x65a] sm:$0xff] }
 0x3da   : > { %34010 = vmatprep.mubr.msk.f32.mxu1 %vm398_vm0, %v4477_v38  ;;  %36012 = vmatprep.mubr.msk.f32.mxu0 %vm398_vm0, %v18829_v50  ;;  %v4507_v38 = vld [vmem:[%s39948_s10 + $0x45a] sm:$0xff]  ;;  %v18859_v50 = vld [vmem:[%s39948_s10 + $0x662] sm:$0xff] }
 0x3dd   : > { %34011 = vmatmul.mubr.msk.f32.gmra.mrb[68].mxu1 %vm398_vm0, %v4478_v62  ;;  %36013 = vmatmul.mubr.msk.f32.gmra.mrb[16].mxu0 %vm398_vm0, %v18830_v20  ;;  %v4508_v62 = vld [vmem:[%s39948_s10 + $0x462] sm:$0xff]  ;;  %v18860_v20 = vld [vmem:[%s39948_s10 + $0x66a] sm:$0xff] }
 0x3de   : > { %34013 = vmatprep.mubr.msk.f32.mxu1 %vm398_vm0, %v4479_v0  ;;  %36015 = vmatprep.mubr.msk.f32.mxu0 %vm398_vm0, %v18831_v2  ;;  %v4509_v0 = vld [vmem:[%s39948_s10 + $0x46a] sm:$0xff]  ;;  %v18861_v2 = vld [vmem:[%s39948_s10 + $0x672] sm:$0xff] }
 0x3e1   : > { %34014 = vmatmul.mubr.msk.f32.gmra.mrb[70].mxu1 %vm398_vm0, %v4480_v5  ;;  %36016 = vmatmul.mubr.msk.f32.gmra.mrb[18].mxu0 %vm398_vm0, %v18832_v6  ;;  %v4510_v5 = vld [vmem:[%s39948_s10 + $0x472] sm:$0xff]  ;;  %v18862_v6 = vld [vmem:[%s39948_s10 + $0x67a] sm:$0xff] }
 0x3e2   : > { %34016 = vmatprep.mubr.msk.f32.mxu1 %vm398_vm0, %v4481_v9  ;;  %36018 = vmatprep.mubr.msk.f32.mxu0 %vm398_vm0, %v18833_v13  ;;  %v4511_v9 = vld [vmem:[%s39948_s10 + $0x47a] sm:$0xff]  ;;  %v18863_v13 = vld [vmem:[%s39948_s10 + $0x682] sm:$0xff] }
 0x3e5   : > { %34017 = vmatmul.mubr.msk.f32.gmra.mrb[72].mxu1 %vm398_vm0, %v4482_v54  ;;  %36019 = vmatmul.mubr.msk.f32.gmra.mrb[20].mxu0 %vm398_vm0, %v18834_v14  ;;  %v4512_v54 = vld [vmem:[%s39948_s10 + $0x482] sm:$0xff]  ;;  %v18864_v14 = vld [vmem:[%s39948_s10 + $0x68a] sm:$0xff] }
 0x3e6   : > { %34019 = vmatprep.mubr.msk.f32.mxu1 %vm398_vm0, %v4483_v4  ;;  %36021 = vmatprep.mubr.msk.f32.mxu0 %vm398_vm0, %v18835_v19  ;;  %v5517_v4 = vld [vmem:[%s39948_s10 + $0x156] sm:$0xff] }
 0x3e7   : > { %v18865_v19 = vld [vmem:[%s39948_s10 + $0x692] sm:$0xff] }
 0x3e9   : > { %34020 = vmatmul.mubr.msk.f32.gmra.mrb[74].mxu1 %vm398_vm0, %v4484_v22  ;;  %36022 = vmatmul.mubr.msk.f32.gmra.mrb[22].mxu0 %vm398_vm0, %v18836_v25  ;;  %v5518_v22 = vld [vmem:[%s39948_s10 + $0x15e] sm:$0xff] }
 0x3ea   : > { %34022 = vmatprep.mubr.msk.f32.mxu1 %vm398_vm0, %v4485_v27  ;;  %36024 = vmatprep.mubr.msk.f32.mxu0 %vm398_vm0, %v18837_v29  ;;  %v18866_v25 = vld [vmem:[%s39948_s10 + $0x69a] sm:$0xff]  ;;  %v5519_v27 = vld [vmem:[%s39948_s10 + $0x166] sm:$0xff] }
 0x3eb   : > { %v18867_v29 = vld [vmem:[%s39948_s10 + $0x6a2] sm:$0xff] }
 0x3ed   : > { %34023 = vmatmul.mubr.msk.f32.gmra.mrb[76].mxu1 %vm398_vm0, %v4486_v30  ;;  %36025 = vmatmul.mubr.msk.f32.gmra.mrb[24].mxu0 %vm398_vm0, %v18838_v31  ;;  %v5520_v30 = vld [vmem:[%s39948_s10 + $0x16e] sm:$0xff] }
 0x3ee   : > { %34025 = vmatprep.mubr.msk.f32.mxu1 %vm398_vm0, %v4487_v34  ;;  %36027 = vmatprep.mubr.msk.f32.mxu0 %vm398_vm0, %v18839_v12  ;;  %v18868_v31 = vld [vmem:[%s39948_s10 + $0x6aa] sm:$0xff]  ;;  %v5521_v34 = vld [vmem:[%s39948_s10 + $0x176] sm:$0xff] }
 0x3ef   : > { %v18869_v12 = vld [vmem:[%s39948_s10 + $0x6b2] sm:$0xff] }
 0x3f1   : > { %34026 = vmatmul.mubr.msk.f32.gmra.mrb[78].mxu1 %vm398_vm0, %v4488_v35  ;;  %36028 = vmatmul.mubr.msk.f32.gmra.mrb[26].mxu0 %vm398_vm0, %v18840_v46  ;;  %v18870_v35 = vld [vmem:[%s39948_s10 + $0x6ba] sm:$0xff]  ;;  %v5523_v46 = vld [vmem:[%s39948_s10 + $0x186] sm:$0xff] }
 0x3f2   : > { %34028 = vmatprep.mubr.msk.f32.mxu1 %vm398_vm0, %v4489_v37  ;;  %36030 = vmatprep.mubr.msk.f32.mxu0 %vm398_vm0, %v18841_v58  ;;  %v18871_v37 = vld [vmem:[%s39948_s10 + $0x6c2] sm:$0xff]  ;;  %v5524_v58 = vld [vmem:[%s39948_s10 + $0x18e] sm:$0xff] }
 0x3f5   : > { %34029 = vmatmul.mubr.msk.f32.gmra.mrb[80].mxu1 %vm398_vm0, %v4490_v39  ;;  %36031 = vmatmul.mubr.msk.f32.gmra.mrb[28].mxu0 %vm398_vm0, %v18842_v42  ;;  %v18872_v39 = vld [vmem:[%s39948_s10 + $0x6ca] sm:$0xff]  ;;  %v5525_v42 = vld [vmem:[%s39948_s10 + $0x196] sm:$0xff] }
 0x3f6   : > { %34031 = vmatprep.mubr.msk.f32.mxu1 %vm398_vm0, %v4491_v44  ;;  %36033 = vmatprep.mubr.msk.f32.mxu0 %vm398_vm0, %v18843_v45  ;;  %v18873_v44 = vld [vmem:[%s39948_s10 + $0x6d2] sm:$0xff]  ;;  %v5526_v45 = vld [vmem:[%s39948_s10 + $0x19e] sm:$0xff] }
 0x3f9   : > { %34032 = vmatmul.mubr.msk.f32.gmra.mrb[82].mxu1 %vm398_vm0, %v4492_v47  ;;  %36034 = vmatmul.mubr.msk.f32.gmra.mrb[30].mxu0 %vm398_vm0, %v18844_v49  ;;  %v18874_v47 = vld [vmem:[%s39948_s10 + $0x6da] sm:$0xff]  ;;  %v5527_v49 = vld [vmem:[%s39948_s10 + $0x1a6] sm:$0xff] }
 0x3fa   : > { %34034 = vmatprep.mubr.msk.f32.mxu1 %vm398_vm0, %v4493_v52  ;;  %36036 = vmatprep.mubr.msk.f32.mxu0 %vm398_vm0, %v18845_v53  ;;  %v18875_v52 = vld [vmem:[%s39948_s10 + $0x6e2] sm:$0xff]  ;;  %v5528_v53 = vld [vmem:[%s39948_s10 + $0x1ae] sm:$0xff] }
 0x3fd   : > { %34035 = vmatmul.mubr.msk.f32.gmra.mrb[84].mxu1 %vm398_vm0, %v4494_v55  ;;  %36037 = vmatmul.mubr.msk.f32.gmra.mrb[32].mxu0 %vm398_vm0, %v18846_v57  ;;  %v18876_v55 = vld [vmem:[%s39948_s10 + $0x6ea] sm:$0xff]  ;;  %v5529_v57 = vld [vmem:[%s39948_s10 + $0x1b6] sm:$0xff] }
 0x3fe   : > { %34037 = vmatprep.mubr.msk.f32.mxu1 %vm398_vm0, %v4495_v59  ;;  %36039 = vmatprep.mubr.msk.f32.mxu0 %vm398_vm0, %v18847_v61  ;;  %v18877_v59 = vld [vmem:[%s39948_s10 + $0x6f2] sm:$0xff]  ;;  %v5530_v61 = vld [vmem:[%s39948_s10 + $0x1be] sm:$0xff] }
 0x401   : > { %34038 = vmatmul.mubr.msk.f32.gmra.mrb[86].mxu1 %vm398_vm0, %v4496_v63  ;;  %36040 = vmatmul.mubr.msk.f32.gmra.mrb[34].mxu0 %vm398_vm0, %v18848_v3  ;;  %v18878_v63 = vld [vmem:[%s39948_s10 + $0x6fa] sm:$0xff]  ;;  %v5531_v3 = vld [vmem:[%s39948_s10 + $0x1c6] sm:$0xff] }
 0x402   : > { %34040 = vmatprep.mubr.msk.f32.mxu1 %vm398_vm0, %v4497_v8  ;;  %36042 = vmatprep.mubr.msk.f32.mxu0 %vm398_vm0, %v18849_v21  ;;  %v18879_v8 = vld [vmem:[%s39948_s10 + $0x702] sm:$0xff]  ;;  %v5532_v21 = vld [vmem:[%s39948_s10 + $0x1ce] sm:$0xff] }
 0x405   : > { %34041 = vmatmul.mubr.msk.f32.gmra.mrb[88].mxu1 %vm398_vm0, %v4498_v11  ;;  %36043 = vmatmul.mubr.msk.f32.gmra.mrb[36].mxu0 %vm398_vm0, %v18850_v15  ;;  %v18880_v11 = vld [vmem:[%s39948_s10 + $0x70a] sm:$0xff]  ;;  %v5533_v15 = vld [vmem:[%s39948_s10 + $0x1d6] sm:$0xff] }
 0x406   : > { %34043 = vmatprep.mubr.msk.f32.mxu1 %vm398_vm0, %v4499_v18  ;;  %36045 = vmatprep.mubr.msk.f32.mxu0 %vm398_vm0, %v18851_v24  ;;  %v18881_v18 = vld [vmem:[%s39948_s10 + $0x712] sm:$0xff]  ;;  %v5534_v24 = vld [vmem:[%s39948_s10 + $0x1de] sm:$0xff] }
 0x409   : > { %34044 = vmatmul.mubr.msk.f32.gmra.mrb[90].mxu1 %vm398_vm0, %v4500_v28  ;;  %36046 = vmatmul.mubr.msk.f32.gmra.mrb[38].mxu0 %vm398_vm0, %v18852_v32  ;;  %v18882_v28 = vld [vmem:[%s39948_s10 + $0x71a] sm:$0xff]  ;;  %v5535_v32 = vld [vmem:[%s39948_s10 + $0x1e6] sm:$0xff] }
 0x40a   : > { %34046 = vmatprep.mubr.msk.f32.mxu1 %vm398_vm0, %v4501_v36  ;;  %36048 = vmatprep.mubr.msk.f32.mxu0 %vm398_vm0, %v18853_v40  ;;  %v18883_v36 = vld [vmem:[%s39948_s10 + $0x722] sm:$0xff]  ;;  %v5536_v40 = vld [vmem:[%s39948_s10 + $0x1ee] sm:$0xff] }
 0x40d   : > { %34047 = vmatmul.mubr.msk.f32.gmra.mrb[92].mxu1 %vm398_vm0, %v4502_v33  ;;  %36049 = vmatmul.mubr.msk.f32.gmra.mrb[40].mxu0 %vm398_vm0, %v18854_v7  ;;  %v18884_v33 = vld [vmem:[%s39948_s10 + $0x72a] sm:$0xff]  ;;  %v5537_v7 = vld [vmem:[%s39948_s10 + $0x1f6] sm:$0xff] }
 0x40e   : > { %34049 = vmatprep.mubr.msk.f32.mxu1 %vm398_vm0, %v4503_v56  ;;  %36051 = vmatprep.mubr.msk.f32.mxu0 %vm398_vm0, %v18855_v60  ;;  %v18886_v56 = vld [vmem:[%s39948_s10 + $0x73a] sm:$0xff]  ;;  %v5539_v60 = vld [vmem:[%s39948_s10 + $0x206] sm:$0xff] }
 0x411   : > { %34050 = vmatmul.mubr.msk.f32.gmra.mrb[94].mxu1 %vm398_vm0, %v4504_v10  ;;  %36052 = vmatmul.mubr.msk.f32.gmra.mrb[42].mxu0 %vm398_vm0, %v18856_v16  ;;  %v18887_v10 = vld [vmem:[%s39948_s10 + $0x742] sm:$0xff]  ;;  %v5540_v16 = vld [vmem:[%s39948_s10 + $0x20e] sm:$0xff] }
 0x412   : > { %34052 = vmatprep.mubr.msk.f32.mxu1 %vm398_vm0, %v4505_v26  ;;  %36054 = vmatprep.mubr.msk.f32.mxu0 %vm398_vm0, %v18857_v51  ;;  %v18888_v26 = vld [vmem:[%s39948_s10 + $0x74a] sm:$0xff]  ;;  %v5541_v51 = vld [vmem:[%s39948_s10 + $0x216] sm:$0xff] }
 0x415   : > { %34053 = vmatmul.mubr.msk.f32.gmra.mrb[96].mxu1 %vm398_vm0, %v4506_v23  ;;  %36055 = vmatmul.mubr.msk.f32.gmra.mrb[44].mxu0 %vm398_vm0, %v18858_v43  ;;  %v18889_v23 = vld [vmem:[%s39948_s10 + $0x752] sm:$0xff]  ;;  %v5542_v43 = vld [vmem:[%s39948_s10 + $0x21e] sm:$0xff] }
 0x416   : > { %34055 = vmatprep.mubr.msk.f32.mxu1 %vm398_vm0, %v4507_v38  ;;  %36057 = vmatprep.mubr.msk.f32.mxu0 %vm398_vm0, %v18859_v50  ;;  %v18890_v38 = vld [vmem:[%s39948_s10 + $0x75a] sm:$0xff]  ;;  %v5543_v50 = vld [vmem:[%s39948_s10 + $0x226] sm:$0xff] }
 0x419   : > { %34056 = vmatmul.mubr.msk.f32.gmra.mrb[98].mxu1 %vm398_vm0, %v4508_v62  ;;  %36058 = vmatmul.mubr.msk.f32.gmra.mrb[46].mxu0 %vm398_vm0, %v18860_v20  ;;  %v18891_v62 = vld [vmem:[%s39948_s10 + $0x762] sm:$0xff]  ;;  %v5544_v20 = vld [vmem:[%s39948_s10 + $0x22e] sm:$0xff] }
 0x41a   : > { %34058 = vmatprep.mubr.msk.f32.mxu1 %vm398_vm0, %v4509_v0  ;;  %36060 = vmatprep.mubr.msk.f32.mxu0 %vm398_vm0, %v18861_v2  ;;  %v18892_v0 = vld [vmem:[%s39948_s10 + $0x76a] sm:$0xff]  ;;  %v5545_v2 = vld [vmem:[%s39948_s10 + $0x236] sm:$0xff] }
 0x41d   : > { %34059 = vmatmul.mubr.msk.f32.gmra.mrb[100].mxu1 %vm398_vm0, %v4510_v5  ;;  %36061 = vmatmul.mubr.msk.f32.gmra.mrb[48].mxu0 %vm398_vm0, %v18862_v6  ;;  %v18893_v5 = vld [vmem:[%s39948_s10 + $0x772] sm:$0xff]  ;;  %v5546_v6 = vld [vmem:[%s39948_s10 + $0x23e] sm:$0xff] }
 0x41e   : > { %34061 = vmatprep.mubr.msk.f32.mxu1 %vm398_vm0, %v4511_v9  ;;  %36063 = vmatprep.mubr.msk.f32.mxu0 %vm398_vm0, %v18863_v13  ;;  %v18894_v9 = vld [vmem:[%s39948_s10 + $0x77a] sm:$0xff]  ;;  %v5547_v13 = vld [vmem:[%s39948_s10 + $0x246] sm:$0xff] }
 0x421   : > { %34062 = vmatmul.mubr.msk.f32.gmra.mrb[102].mxu1 %vm398_vm0, %v4512_v54  ;;  %36064 = vmatmul.mubr.msk.f32.gmra.mrb[50].mxu0 %vm398_vm0, %v18864_v14  ;;  %v18895_v54 = vld [vmem:[%s39948_s10 + $0x782] sm:$0xff]  ;;  %v5548_v14 = vld [vmem:[%s39948_s10 + $0x24e] sm:$0xff] }
 0x422   : > { %34068 = vmatprep.mubr.msk.f32.mxu1 %vm398_vm0, %v5517_v4  ;;  %36066 = vmatprep.mubr.msk.f32.mxu0 %vm398_vm0, %v18865_v19  ;;  %v18896_v4 = vld [vmem:[%s39948_s10 + $0x78a] sm:$0xff]  ;;  %v5549_v19 = vld [vmem:[%s39948_s10 + $0x256] sm:$0xff] }
 0x425   : > { %34069 = vmatmul.mubr.msk.f32.vlgmr.msra.gmra.mrb[0].mxu1 %vm398_vm0, %v5518_v22  ;;  %36067 = vmatmul.mubr.msk.f32.gmra.mrb[52].mxu0 %vm398_vm0, %v18866_v25  ;;  %v18897_v22 = vld [vmem:[%s39948_s10 + $0x792] sm:$0xff]  ;;  %v5550_v25 = vld [vmem:[%s39948_s10 + $0x25e] sm:$0xff] }
 0x426   : > { %37291 = vmatpush3.bf16.msra.mxu1 %v42075_v17  ;;  %34071 = vmatprep.mubr.msk.f32.mxu1 %vm398_vm0, %v5519_v27  ;;  %v5522_v17 = vld [vmem:[%s39948_s10 + $0x17e] sm:$0xff] }
 0x427   : > { %36069 = vmatprep.mubr.msk.f32.mxu0 %vm398_vm0, %v18867_v29  ;;  %v18898_v27 = vld [vmem:[%s39948_s10 + $0x79a] sm:$0xff]  ;;  %v5551_v29 = vld [vmem:[%s39948_s10 + $0x266] sm:$0xff] }
 0x429   : > { %34072 = vmatmul.mubr.msk.f32.gmra.mrb[2].mxu1 %vm398_vm0, %v5520_v30  ;;  %36070 = vmatmul.mubr.msk.f32.gmra.mrb[54].mxu0 %vm398_vm0, %v18868_v31  ;;  %v18899_v30 = vld [vmem:[%s39948_s10 + $0x7a2] sm:$0xff]  ;;  %v5552_v31 = vld [vmem:[%s39948_s10 + $0x26e] sm:$0xff] }
 0x42a   : > { %34074 = vmatprep.mubr.msk.f32.mxu1 %vm398_vm0, %v5521_v34  ;;  %36072 = vmatprep.mubr.msk.f32.mxu0 %vm398_vm0, %v18869_v12  ;;  %v18900_v34 = vld [vmem:[%s39948_s10 + $0x7aa] sm:$0xff]  ;;  %v5553_v12 = vld [vmem:[%s39948_s10 + $0x276] sm:$0xff] }
 0x42d   : > { %34075 = vmatmul.mubr.msk.f32.gmra.mrb[4].mxu1 %vm398_vm0, %v5522_v17  ;;  %36073 = vmatmul.mubr.msk.f32.gmra.mrb[56].mxu0 %vm398_vm0, %v18870_v35  ;;  %v18901_v17 = vld [vmem:[%s39948_s10 + $0x7b2] sm:$0xff]  ;;  %v5554_v35 = vld [vmem:[%s39948_s10 + $0x27e] sm:$0xff] }
 0x42e   : > { %34077 = vmatprep.mubr.msk.f32.mxu1 %vm398_vm0, %v5523_v46  ;;  %36075 = vmatprep.mubr.msk.f32.mxu0 %vm398_vm0, %v18871_v37  ;;  %v18902_v46 = vld [vmem:[%s39948_s10 + $0x7ba] sm:$0xff]  ;;  %v5555_v37 = vld [vmem:[%s39948_s10 + $0x286] sm:$0xff] }
 0x431   : > { %34078 = vmatmul.mubr.msk.f32.gmra.mrb[6].mxu1 %vm398_vm0, %v5524_v58  ;;  %36076 = vmatmul.mubr.msk.f32.gmra.mrb[58].mxu0 %vm398_vm0, %v18872_v39  ;;  %v18903_v58 = vld [vmem:[%s39948_s10 + $0x7c2] sm:$0xff]  ;;  %v5556_v39 = vld [vmem:[%s39948_s10 + $0x28e] sm:$0xff] }
 0x432   : > { %34080 = vmatprep.mubr.msk.f32.mxu1 %vm398_vm0, %v5525_v42  ;;  %36078 = vmatprep.mubr.msk.f32.mxu0 %vm398_vm0, %v18873_v44  ;;  %v18904_v42 = vld [vmem:[%s39948_s10 + $0x7ca] sm:$0xff]  ;;  %v5557_v44 = vld [vmem:[%s39948_s10 + $0x296] sm:$0xff] }
 0x435   : > { %34081 = vmatmul.mubr.msk.f32.gmra.mrb[8].mxu1 %vm398_vm0, %v5526_v45  ;;  %36079 = vmatmul.mubr.msk.f32.gmra.mrb[60].mxu0 %vm398_vm0, %v18874_v47  ;;  %v18905_v45 = vld [vmem:[%s39948_s10 + $0x7d2] sm:$0xff]  ;;  %v5558_v47 = vld [vmem:[%s39948_s10 + $0x29e] sm:$0xff] }
 0x436   : > { %34083 = vmatprep.mubr.msk.f32.mxu1 %vm398_vm0, %v5527_v49  ;;  %36081 = vmatprep.mubr.msk.f32.mxu0 %vm398_vm0, %v18875_v52  ;;  %v18906_v49 = vld [vmem:[%s39948_s10 + $0x7da] sm:$0xff]  ;;  %v28703_v52 = vld [vmem:[%s46145_s2 + $0x70] sm:$0xff] }
 0x439   : > { %34084 = vmatmul.mubr.msk.f32.gmra.mrb[10].mxu1 %vm398_vm0, %v5528_v53  ;;  %36082 = vmatmul.mubr.msk.f32.gmra.mrb[62].mxu0 %vm398_vm0, %v18876_v55  ;;  %v28704_v53 = vld [vmem:[%s46145_s2 + $0x78] sm:$0xff]  ;;  %v5559_v55 = vld [vmem:[%s39948_s10 + $0x2a6] sm:$0xff] }
 0x43a   : > { %34086 = vmatprep.mubr.msk.f32.mxu1 %vm398_vm0, %v5529_v57  ;;  %36084 = vmatprep.mubr.msk.f32.mxu0 %vm398_vm0, %v18877_v59  ;;  %v18907_v57 = vld [vmem:[%s39948_s10 + $0x7e2] sm:$0xff]  ;;  %v42511_v59 = vpack.c.bf16 %v28704_v53, %v28703_v52  ;;  %v19941_v52 = vld [vmem:[%s39948_s10 + $0x598] sm:$0xff] }
 0x43b   : > { %v5590_v53 = vld [vmem:[%s39948_s10 + $0x39e] sm:$0xff] }
 0x43c   : > { %37293 = vmatprep.subr.bf16.mxu1 %v42511_v59 }
 0x43d   : > { %34087 = vmatmul.mubr.msk.f32.gmra.mrb[12].mxu1 %vm398_vm0, %v5530_v61  ;;  %36085 = vmatmul.mubr.msk.f32.gmra.mrb[64].mxu0 %vm398_vm0, %v18878_v63  ;;  %v5560_v61 = vld [vmem:[%s39948_s10 + $0x2ae] sm:$0xff] }
 0x43e   : > { %34089 = vmatprep.mubr.msk.f32.mxu1 %vm398_vm0, %v5531_v3  ;;  %36087 = vmatprep.mubr.msk.f32.mxu0 %vm398_vm0, %v18879_v8  ;;  %v18908_v63 = vld [vmem:[%s39948_s10 + $0x7ea] sm:$0xff]  ;;  %v5561_v3 = vld [vmem:[%s39948_s10 + $0x2b6] sm:$0xff] }
 0x43f   : > { %v18909_v8 = vld [vmem:[%s39948_s10 + $0x7f2] sm:$0xff] }
 0x441   : > { %34090 = vmatmul.mubr.msk.f32.gmra.mrb[14].mxu1 %vm398_vm0, %v5532_v21  ;;  %36088 = vmatmul.mubr.msk.f32.gmra.mrb[66].mxu0 %vm398_vm0, %v18880_v11  ;;  %v5562_v21 = vld [vmem:[%s39948_s10 + $0x2be] sm:$0xff] }
 0x442   : > { %34092 = vmatprep.mubr.msk.f32.mxu1 %vm398_vm0, %v5533_v15  ;;  %36090 = vmatprep.mubr.msk.f32.mxu0 %vm398_vm0, %v18881_v18  ;;  %v18910_v11 = vld [vmem:[%s39948_s10 + $0x7fa] sm:$0xff]  ;;  %v5563_v15 = vld [vmem:[%s39948_s10 + $0x2c6] sm:$0xff] }
 0x443   : > { %v18911_v18 = vld [vmem:[%s39948_s10 + $0x802] sm:$0xff] }
 0x445   : > { %34093 = vmatmul.mubr.msk.f32.gmra.mrb[16].mxu1 %vm398_vm0, %v5534_v24  ;;  %36091 = vmatmul.mubr.msk.f32.gmra.mrb[68].mxu0 %vm398_vm0, %v18882_v28  ;;  %v5564_v24 = vld [vmem:[%s39948_s10 + $0x2ce] sm:$0xff] }
 0x446   : > { %34095 = vmatprep.mubr.msk.f32.mxu1 %vm398_vm0, %v5535_v32  ;;  %36093 = vmatprep.mubr.msk.f32.mxu0 %vm398_vm0, %v18883_v36  ;;  %v18912_v28 = vld [vmem:[%s39948_s10 + $0x80a] sm:$0xff]  ;;  %v5565_v32 = vld [vmem:[%s39948_s10 + $0x2d6] sm:$0xff] }
 0x447   : > { %v18913_v36 = vld [vmem:[%s39948_s10 + $0x812] sm:$0xff] }
 0x449   : > { %34096 = vmatmul.mubr.msk.f32.gmra.mrb[18].mxu1 %vm398_vm0, %v5536_v40  ;;  %36094 = vmatmul.mubr.msk.f32.gmra.mrb[70].mxu0 %vm398_vm0, %v18884_v33  ;;  %v5566_v40 = vld [vmem:[%s39948_s10 + $0x2de] sm:$0xff] }
 0x44a   : > { %34098 = vmatprep.mubr.msk.f32.mxu1 %vm398_vm0, %v5537_v7  ;;  %36096 = vmatprep.mubr.msk.f32.mxu0 %vm398_vm0, %v18885_v48  ;;  %v18914_v33 = vld [vmem:[%s39948_s10 + $0x81a] sm:$0xff]  ;;  %v5567_v7 = vld [vmem:[%s39948_s10 + $0x2e6] sm:$0xff] }
 0x44b   : > { %v18915_v48 = vld [vmem:[%s39948_s10 + $0x822] sm:$0xff] }
 0x44d   : > { %34099 = vmatmul.mubr.msk.f32.gmra.mrb[20].mxu1 %vm398_vm0, %v5538_v41  ;;  %36097 = vmatmul.mubr.msk.f32.gmra.mrb[72].mxu0 %vm398_vm0, %v18886_v56  ;;  %v5568_v41 = vld [vmem:[%s39948_s10 + $0x2ee] sm:$0xff] }
 0x44e   : > { %34101 = vmatprep.mubr.msk.f32.mxu1 %vm398_vm0, %v5539_v60  ;;  %36099 = vmatprep.mubr.msk.f32.mxu0 %vm398_vm0, %v18887_v10  ;;  %v18916_v56 = vld [vmem:[%s39948_s10 + $0x82a] sm:$0xff]  ;;  %v5569_v60 = vld [vmem:[%s39948_s10 + $0x2f6] sm:$0xff] }
 0x44f   : > { %v19921_v10 = vld [vmem:[%s39948_s10 + $0x4f8] sm:$0xff] }
 0x451   : > { %34102 = vmatmul.mubr.msk.f32.gmra.mrb[22].mxu1 %vm398_vm0, %v5540_v16  ;;  %36100 = vmatmul.mubr.msk.f32.gmra.mrb[74].mxu0 %vm398_vm0, %v18888_v26  ;;  %v5570_v16 = vld [vmem:[%s39948_s10 + $0x2fe] sm:$0xff] }
 0x452   : > { %34104 = vmatprep.mubr.msk.f32.mxu1 %vm398_vm0, %v5541_v51  ;;  %36102 = vmatprep.mubr.msk.f32.mxu0 %vm398_vm0, %v18889_v23  ;;  %v19922_v26 = vld [vmem:[%s39948_s10 + $0x500] sm:$0xff]  ;;  %v19923_v23 = vld [vmem:[%s39948_s10 + $0x508] sm:$0xff] }
 0x453   : > { %v5571_v51 = vld [vmem:[%s39948_s10 + $0x306] sm:$0xff] }
 0x455   : > { %34105 = vmatmul.mubr.msk.f32.gmra.mrb[24].mxu1 %vm398_vm0, %v5542_v43  ;;  %36103 = vmatmul.mubr.msk.f32.gmra.mrb[76].mxu0 %vm398_vm0, %v18890_v38  ;;  %v5572_v43 = vld [vmem:[%s39948_s10 + $0x30e] sm:$0xff] }
 0x456   : > { %34107 = vmatprep.mubr.msk.f32.mxu1 %vm398_vm0, %v5543_v50  ;;  %36105 = vmatprep.mubr.msk.f32.mxu0 %vm398_vm0, %v18891_v62  ;;  %v19924_v38 = vld [vmem:[%s39948_s10 + $0x510] sm:$0xff]  ;;  %v19925_v62 = vld [vmem:[%s39948_s10 + $0x518] sm:$0xff] }
 0x457   : > { %v5573_v50 = vld [vmem:[%s39948_s10 + $0x316] sm:$0xff] }
 0x459   : > { %34108 = vmatmul.mubr.msk.f32.gmra.mrb[26].mxu1 %vm398_vm0, %v5544_v20  ;;  %36106 = vmatmul.mubr.msk.f32.gmra.mrb[78].mxu0 %vm398_vm0, %v18892_v0  ;;  %v19926_v20 = vld [vmem:[%s39948_s10 + $0x520] sm:$0xff] }
 0x45a   : > { %34110 = vmatprep.mubr.msk.f32.mxu1 %vm398_vm0, %v5545_v2  ;;  %36108 = vmatprep.mubr.msk.f32.mxu0 %vm398_vm0, %v18893_v5  ;;  %v5575_v0 = vld [vmem:[%s39948_s10 + $0x326] sm:$0xff]  ;;  %v5576_v5 = vld [vmem:[%s39948_s10 + $0x32e] sm:$0xff] }
 0x45b   : > { %v19927_v2 = vld [vmem:[%s39948_s10 + $0x528] sm:$0xff] }
 0x45d   : > { %34111 = vmatmul.mubr.msk.f32.gmra.mrb[28].mxu1 %vm398_vm0, %v5546_v6  ;;  %36109 = vmatmul.mubr.msk.f32.gmra.mrb[80].mxu0 %vm398_vm0, %v18894_v9  ;;  %v19928_v6 = vld [vmem:[%s39948_s10 + $0x530] sm:$0xff] }
 0x45e   : > { %34113 = vmatprep.mubr.msk.f32.mxu1 %vm398_vm0, %v5547_v13  ;;  %36111 = vmatprep.mubr.msk.f32.mxu0 %vm398_vm0, %v18895_v54  ;;  %v5577_v9 = vld [vmem:[%s39948_s10 + $0x336] sm:$0xff]  ;;  %v5578_v54 = vld [vmem:[%s39948_s10 + $0x33e] sm:$0xff] }
 0x45f   : > { %v19929_v13 = vld [vmem:[%s39948_s10 + $0x538] sm:$0xff] }
 0x461   : > { %34114 = vmatmul.mubr.msk.f32.gmra.mrb[30].mxu1 %vm398_vm0, %v5548_v14  ;;  %36112 = vmatmul.mubr.msk.f32.gmra.mrb[82].mxu0 %vm398_vm0, %v18896_v4  ;;  %v19930_v14 = vld [vmem:[%s39948_s10 + $0x540] sm:$0xff] }
 0x462   : > { %34116 = vmatprep.mubr.msk.f32.mxu1 %vm398_vm0, %v5549_v19  ;;  %36114 = vmatprep.mubr.msk.f32.mxu0 %vm398_vm0, %v18897_v22  ;;  %v5579_v4 = vld [vmem:[%s39948_s10 + $0x346] sm:$0xff]  ;;  %v5580_v22 = vld [vmem:[%s39948_s10 + $0x34e] sm:$0xff] }
 0x463   : > { %v19931_v19 = vld [vmem:[%s39948_s10 + $0x548] sm:$0xff] }
 0x465   : > { %34117 = vmatmul.mubr.msk.f32.gmra.mrb[32].mxu1 %vm398_vm0, %v5550_v25  ;;  %36115 = vmatmul.mubr.msk.f32.gmra.mrb[84].mxu0 %vm398_vm0, %v18898_v27  ;;  %v19932_v25 = vld [vmem:[%s39948_s10 + $0x550] sm:$0xff] }
 0x466   : > { %34119 = vmatprep.mubr.msk.f32.mxu1 %vm398_vm0, %v5551_v29  ;;  %36117 = vmatprep.mubr.msk.f32.mxu0 %vm398_vm0, %v18899_v30  ;;  %v5581_v27 = vld [vmem:[%s39948_s10 + $0x356] sm:$0xff]  ;;  %v5582_v30 = vld [vmem:[%s39948_s10 + $0x35e] sm:$0xff] }
 0x467   : > { %v19933_v29 = vld [vmem:[%s39948_s10 + $0x558] sm:$0xff] }
 0x469   : > { %34120 = vmatmul.mubr.msk.f32.gmra.mrb[34].mxu1 %vm398_vm0, %v5552_v31  ;;  %36118 = vmatmul.mubr.msk.f32.gmra.mrb[86].mxu0 %vm398_vm0, %v18900_v34  ;;  %v19934_v31 = vld [vmem:[%s39948_s10 + $0x560] sm:$0xff] }
 0x46a   : > { %34122 = vmatprep.mubr.msk.f32.mxu1 %vm398_vm0, %v5553_v12  ;;  %36120 = vmatprep.mubr.msk.f32.mxu0 %vm398_vm0, %v18901_v17  ;;  %v5583_v34 = vld [vmem:[%s39948_s10 + $0x366] sm:$0xff]  ;;  %v5584_v17 = vld [vmem:[%s39948_s10 + $0x36e] sm:$0xff] }
 0x46b   : > { %v19935_v12 = vld [vmem:[%s39948_s10 + $0x568] sm:$0xff] }
 0x46d   : > { %34123 = vmatmul.mubr.msk.f32.gmra.mrb[36].mxu1 %vm398_vm0, %v5554_v35  ;;  %36121 = vmatmul.mubr.msk.f32.gmra.mrb[88].mxu0 %vm398_vm0, %v18902_v46  ;;  %v19936_v35 = vld [vmem:[%s39948_s10 + $0x570] sm:$0xff] }
 0x46e   : > { %34125 = vmatprep.mubr.msk.f32.mxu1 %vm398_vm0, %v5555_v37  ;;  %36123 = vmatprep.mubr.msk.f32.mxu0 %vm398_vm0, %v18903_v58  ;;  %v5585_v46 = vld [vmem:[%s39948_s10 + $0x376] sm:$0xff]  ;;  %v5586_v58 = vld [vmem:[%s39948_s10 + $0x37e] sm:$0xff] }
 0x46f   : > { %v19937_v37 = vld [vmem:[%s39948_s10 + $0x578] sm:$0xff] }
 0x471   : > { %34126 = vmatmul.mubr.msk.f32.gmra.mrb[38].mxu1 %vm398_vm0, %v5556_v39  ;;  %36124 = vmatmul.mubr.msk.f32.gmra.mrb[90].mxu0 %vm398_vm0, %v18904_v42  ;;  %v19938_v39 = vld [vmem:[%s39948_s10 + $0x580] sm:$0xff] }
 0x472   : > { %34128 = vmatprep.mubr.msk.f32.mxu1 %vm398_vm0, %v5557_v44  ;;  %36126 = vmatprep.mubr.msk.f32.mxu0 %vm398_vm0, %v18905_v45  ;;  %v5587_v42 = vld [vmem:[%s39948_s10 + $0x386] sm:$0xff]  ;;  %v5588_v45 = vld [vmem:[%s39948_s10 + $0x38e] sm:$0xff] }
 0x473   : > { %v19939_v44 = vld [vmem:[%s39948_s10 + $0x588] sm:$0xff] }
 0x475   : > { %34129 = vmatmul.mubr.msk.f32.gmra.mrb[40].mxu1 %vm398_vm0, %v5558_v47  ;;  %36127 = vmatmul.mubr.msk.f32.gmra.mrb[92].mxu0 %vm398_vm0, %v18906_v49  ;;  %v19940_v47 = vld [vmem:[%s39948_s10 + $0x590] sm:$0xff] }
 0x476   : > { %34131 = vmatprep.mubr.msk.f32.mxu1 %vm398_vm0, %v5559_v55  ;;  %36129 = vmatprep.mubr.msk.f32.mxu0 %vm398_vm0, %v18907_v57  ;;  %v5589_v49 = vld [vmem:[%s39948_s10 + $0x396] sm:$0xff]  ;;  %v19942_v55 = vld [vmem:[%s39948_s10 + $0x5a0] sm:$0xff] }
 0x477   : > { %v5591_v57 = vld [vmem:[%s39948_s10 + $0x3a6] sm:$0xff] }
 0x479   : > { %34132 = vmatmul.mubr.msk.f32.gmra.mrb[42].mxu1 %vm398_vm0, %v5560_v61  ;;  %36130 = vmatmul.mubr.msk.f32.gmra.mrb[94].mxu0 %vm398_vm0, %v18908_v63  ;;  %v19943_v61 = vld [vmem:[%s39948_s10 + $0x5a8] sm:$0xff] }
 0x47a   : > { %34134 = vmatprep.mubr.msk.f32.mxu1 %vm398_vm0, %v5561_v3  ;;  %36132 = vmatprep.mubr.msk.f32.mxu0 %vm398_vm0, %v18909_v8  ;;  %v5592_v63 = vld [vmem:[%s39948_s10 + $0x3ae] sm:$0xff]  ;;  %v5593_v8 = vld [vmem:[%s39948_s10 + $0x3b6] sm:$0xff] }
 0x47b   : > { %v19944_v3 = vld [vmem:[%s39948_s10 + $0x5b0] sm:$0xff] }
 0x47d   : > { %34135 = vmatmul.mubr.msk.f32.gmra.mrb[44].mxu1 %vm398_vm0, %v5562_v21  ;;  %36133 = vmatmul.mubr.msk.f32.gmra.mrb[96].mxu0 %vm398_vm0, %v18910_v11  ;;  %v19945_v21 = vld [vmem:[%s39948_s10 + $0x5b8] sm:$0xff] }
 0x47e   : > { %34137 = vmatprep.mubr.msk.f32.mxu1 %vm398_vm0, %v5563_v15  ;;  %36135 = vmatprep.mubr.msk.f32.mxu0 %vm398_vm0, %v18911_v18  ;;  %v5594_v11 = vld [vmem:[%s39948_s10 + $0x3be] sm:$0xff]  ;;  %v5595_v18 = vld [vmem:[%s39948_s10 + $0x3c6] sm:$0xff] }
 0x47f   : > { %v19946_v15 = vld [vmem:[%s39948_s10 + $0x5c0] sm:$0xff] }
 0x481   : > { %34138 = vmatmul.mubr.msk.f32.gmra.mrb[46].mxu1 %vm398_vm0, %v5564_v24  ;;  %36136 = vmatmul.mubr.msk.f32.gmra.mrb[98].mxu0 %vm398_vm0, %v18912_v28  ;;  %v19947_v24 = vld [vmem:[%s39948_s10 + $0x5c8] sm:$0xff] }
 0x482   : > { %34140 = vmatprep.mubr.msk.f32.mxu1 %vm398_vm0, %v5565_v32  ;;  %36138 = vmatprep.mubr.msk.f32.mxu0 %vm398_vm0, %v18913_v36  ;;  %v5596_v28 = vld [vmem:[%s39948_s10 + $0x3ce] sm:$0xff]  ;;  %v5597_v36 = vld [vmem:[%s39948_s10 + $0x3d6] sm:$0xff] }
 0x483   : > { %v19948_v32 = vld [vmem:[%s39948_s10 + $0x5d0] sm:$0xff] }
 0x485   : > { %34141 = vmatmul.mubr.msk.f32.gmra.mrb[48].mxu1 %vm398_vm0, %v5566_v40  ;;  %36139 = vmatmul.mubr.msk.f32.gmra.mrb[100].mxu0 %vm398_vm0, %v18914_v33  ;;  %v19949_v40 = vld [vmem:[%s39948_s10 + $0x5d8] sm:$0xff] }
 0x486   : > { %34143 = vmatprep.mubr.msk.f32.mxu1 %vm398_vm0, %v5567_v7  ;;  %36141 = vmatprep.mubr.msk.f32.mxu0 %vm398_vm0, %v18915_v48  ;;  %v5598_v33 = vld [vmem:[%s39948_s10 + $0x3de] sm:$0xff]  ;;  %v5599_v48 = vld [vmem:[%s39948_s10 + $0x3e6] sm:$0xff] }
 0x487   : > { %v19950_v7 = vld [vmem:[%s39948_s10 + $0x5e0] sm:$0xff] }
 0x489   : > { %34144 = vmatmul.mubr.msk.f32.gmra.mrb[50].mxu1 %vm398_vm0, %v5568_v41  ;;  %36142 = vmatmul.mubr.msk.f32.gmra.mrb[102].mxu0 %vm398_vm0, %v18916_v56  ;;  %v19951_v41 = vld [vmem:[%s39948_s10 + $0x5e8] sm:$0xff] }
 0x48a   : > { %34146 = vmatprep.mubr.msk.f32.mxu1 %vm398_vm0, %v5569_v60  ;;  %36148 = vmatprep.mubr.msk.f32.mxu0 %vm398_vm0, %v19921_v10  ;;  %v5600_v56 = vld [vmem:[%s39948_s10 + $0x3ee] sm:$0xff]  ;;  %v5601_v10 = vld [vmem:[%s39948_s10 + $0x3f6] sm:$0xff] }
 0x48b   : > { %v19952_v60 = vld [vmem:[%s39948_s10 + $0x5f0] sm:$0xff] }
 0x48d   : > { %34147 = vmatmul.mubr.msk.f32.gmra.mrb[52].mxu1 %vm398_vm0, %v5570_v16  ;;  %36149 = vmatmul.mubr.msk.f32.vlgmr.msra.gmra.mrb[0].mxu0 %vm398_vm0, %v19922_v26  ;;  %v19953_v16 = vld [vmem:[%s39948_s10 + $0x5f8] sm:$0xff] }
 0x48e   : > { %37343 = vmatpush3.bf16.msra.mxu0 %v42293_v1  ;;  %34149 = vmatprep.mubr.msk.f32.mxu1 %vm398_vm0, %v5571_v51  ;;  %v5574_v1 = vld [vmem:[%s39948_s10 + $0x31e] sm:$0xff] }
 0x48f   : > { %36151 = vmatprep.mubr.msk.f32.mxu0 %vm398_vm0, %v19923_v23  ;;  %v5602_v26 = vld [vmem:[%s39948_s10 + $0x3fe] sm:$0xff]  ;;  %v5603_v23 = vld [vmem:[%s39948_s10 + $0x406] sm:$0xff] }
 0x490   : > { %v19954_v51 = vld [vmem:[%s39948_s10 + $0x600] sm:$0xff] }
 0x491   : > { %34150 = vmatmul.mubr.msk.f32.gmra.mrb[54].mxu1 %vm398_vm0, %v5572_v43  ;;  %36152 = vmatmul.mubr.msk.f32.gmra.mrb[2].mxu0 %vm398_vm0, %v19924_v38  ;;  %v19955_v43 = vld [vmem:[%s39948_s10 + $0x608] sm:$0xff] }
 0x492   : > { %34152 = vmatprep.mubr.msk.f32.mxu1 %vm398_vm0, %v5573_v50  ;;  %36154 = vmatprep.mubr.msk.f32.mxu0 %vm398_vm0, %v19925_v62  ;;  %v5604_v38 = vld [vmem:[%s39948_s10 + $0x40e] sm:$0xff]  ;;  %v5605_v62 = vld [vmem:[%s39948_s10 + $0x416] sm:$0xff] }
 0x493   : > { %v19956_v50 = vld [vmem:[%s39948_s10 + $0x610] sm:$0xff] }
 0x495   : > { %34153 = vmatmul.mubr.msk.f32.gmra.mrb[56].mxu1 %vm398_vm0, %v5574_v1  ;;  %36155 = vmatmul.mubr.msk.f32.gmra.mrb[4].mxu0 %vm398_vm0, %v19926_v20  ;;  %v19957_v1 = vld [vmem:[%s39948_s10 + $0x618] sm:$0xff] }
 0x496   : > { %34155 = vmatprep.mubr.msk.f32.mxu1 %vm398_vm0, %v5575_v0  ;;  %36157 = vmatprep.mubr.msk.f32.mxu0 %vm398_vm0, %v19927_v2  ;;  %v5606_v20 = vld [vmem:[%s39948_s10 + $0x41e] sm:$0xff]  ;;  %v5607_v2 = vld [vmem:[%s39948_s10 + $0x426] sm:$0xff] }
 0x497   : > { %v19958_v0 = vld [vmem:[%s39948_s10 + $0x620] sm:$0xff] }
 0x499   : > { %34156 = vmatmul.mubr.msk.f32.gmra.mrb[58].mxu1 %vm398_vm0, %v5576_v5  ;;  %36158 = vmatmul.mubr.msk.f32.gmra.mrb[6].mxu0 %vm398_vm0, %v19928_v6  ;;  %v19959_v5 = vld [vmem:[%s39948_s10 + $0x628] sm:$0xff] }
 0x49a   : > { %34158 = vmatprep.mubr.msk.f32.mxu1 %vm398_vm0, %v5577_v9  ;;  %36160 = vmatprep.mubr.msk.f32.mxu0 %vm398_vm0, %v19929_v13  ;;  %v5608_v6 = vld [vmem:[%s39948_s10 + $0x42e] sm:$0xff]  ;;  %v5609_v13 = vld [vmem:[%s39948_s10 + $0x436] sm:$0xff] }
 0x49b   : > { %v19960_v9 = vld [vmem:[%s39948_s10 + $0x630] sm:$0xff] }
 0x49d   : > { %34159 = vmatmul.mubr.msk.f32.gmra.mrb[60].mxu1 %vm398_vm0, %v5578_v54  ;;  %36161 = vmatmul.mubr.msk.f32.gmra.mrb[8].mxu0 %vm398_vm0, %v19930_v14  ;;  %v19961_v54 = vld [vmem:[%s39948_s10 + $0x638] sm:$0xff] }
 0x49e   : > { %34161 = vmatprep.mubr.msk.f32.mxu1 %vm398_vm0, %v5579_v4  ;;  %36163 = vmatprep.mubr.msk.f32.mxu0 %vm398_vm0, %v19931_v19  ;;  %v5610_v14 = vld [vmem:[%s39948_s10 + $0x43e] sm:$0xff] }
 0x49f   : > { %v19962_v4 = vld [vmem:[%s39948_s10 + $0x640] sm:$0xff] }
 0x4a0   : > { %v30081_v19 = vld [vmem:[%s46145_s2 + $0x140] sm:$0xff] }
 0x4a1   : > { %34162 = vmatmul.mubr.msk.f32.gmra.mrb[62].mxu1 %vm398_vm0, %v5580_v22  ;;  %36164 = vmatmul.mubr.msk.f32.gmra.mrb[10].mxu0 %vm398_vm0, %v19932_v25  ;;  %v30082_v22 = vld [vmem:[%s46145_s2 + $0x148] sm:$0xff] }
 0x4a2   : > { %34164 = vmatprep.mubr.msk.f32.mxu1 %vm398_vm0, %v5581_v27  ;;  %36166 = vmatprep.mubr.msk.f32.mxu0 %vm398_vm0, %v19933_v29  ;;  %v5611_v25 = vld [vmem:[%s39948_s10 + $0x446] sm:$0xff]  ;;  %v42729_v29 = vpack.c.bf16 %v30082_v22, %v30081_v19  ;;  %v19993_v19 = vld [vmem:[%s39948_s10 + $0x738] sm:$0xff] }
 0x4a3   : > { %v19963_v27 = vld [vmem:[%s39948_s10 + $0x648] sm:$0xff] }
 0x4a4   : > { %37345 = vmatprep.subr.bf16.mxu0 %v42729_v29  ;;  %v6646_v22 = vld [vmem:[%s39948_s10 + $0x324] sm:$0xff] }
 0x4a5   : > { %34165 = vmatmul.mubr.msk.f32.gmra.mrb[64].mxu1 %vm398_vm0, %v5582_v30  ;;  %36167 = vmatmul.mubr.msk.f32.gmra.mrb[12].mxu0 %vm398_vm0, %v19934_v31  ;;  %v5612_v30 = vld [vmem:[%s39948_s10 + $0x44e] sm:$0xff] }
 0x4a6   : > { %34167 = vmatprep.mubr.msk.f32.mxu1 %vm398_vm0, %v5583_v34  ;;  %36169 = vmatprep.mubr.msk.f32.mxu0 %vm398_vm0, %v19935_v12  ;;  %v19964_v31 = vld [vmem:[%s39948_s10 + $0x650] sm:$0xff]  ;;  %v19965_v12 = vld [vmem:[%s39948_s10 + $0x658] sm:$0xff] }
 0x4a7   : > { %v5613_v34 = vld [vmem:[%s39948_s10 + $0x456] sm:$0xff] }
 0x4a9   : > { %34168 = vmatmul.mubr.msk.f32.gmra.mrb[66].mxu1 %vm398_vm0, %v5584_v17  ;;  %36170 = vmatmul.mubr.msk.f32.gmra.mrb[14].mxu0 %vm398_vm0, %v19936_v35  ;;  %v5614_v17 = vld [vmem:[%s39948_s10 + $0x45e] sm:$0xff] }
 0x4aa   : > { %34170 = vmatprep.mubr.msk.f32.mxu1 %vm398_vm0, %v5585_v46  ;;  %36172 = vmatprep.mubr.msk.f32.mxu0 %vm398_vm0, %v19937_v37  ;;  %v19966_v35 = vld [vmem:[%s39948_s10 + $0x660] sm:$0xff]  ;;  %v19967_v37 = vld [vmem:[%s39948_s10 + $0x668] sm:$0xff] }
 0x4ab   : > { %v5615_v46 = vld [vmem:[%s39948_s10 + $0x466] sm:$0xff] }
 0x4ad   : > { %34171 = vmatmul.mubr.msk.f32.gmra.mrb[68].mxu1 %vm398_vm0, %v5586_v58  ;;  %36173 = vmatmul.mubr.msk.f32.gmra.mrb[16].mxu0 %vm398_vm0, %v19938_v39  ;;  %v5616_v58 = vld [vmem:[%s39948_s10 + $0x46e] sm:$0xff] }
 0x4ae   : > { %34173 = vmatprep.mubr.msk.f32.mxu1 %vm398_vm0, %v5587_v42  ;;  %36175 = vmatprep.mubr.msk.f32.mxu0 %vm398_vm0, %v19939_v44  ;;  %v19968_v39 = vld [vmem:[%s39948_s10 + $0x670] sm:$0xff]  ;;  %v19969_v44 = vld [vmem:[%s39948_s10 + $0x678] sm:$0xff] }
 0x4af   : > { %v5617_v42 = vld [vmem:[%s39948_s10 + $0x476] sm:$0xff] }
 0x4b1   : > { %34174 = vmatmul.mubr.msk.f32.gmra.mrb[70].mxu1 %vm398_vm0, %v5588_v45  ;;  %36176 = vmatmul.mubr.msk.f32.gmra.mrb[18].mxu0 %vm398_vm0, %v19940_v47  ;;  %v5618_v45 = vld [vmem:[%s39948_s10 + $0x47e] sm:$0xff] }
 0x4b2   : > { %34176 = vmatprep.mubr.msk.f32.mxu1 %vm398_vm0, %v5589_v49  ;;  %36178 = vmatprep.mubr.msk.f32.mxu0 %vm398_vm0, %v19941_v52  ;;  %v19970_v47 = vld [vmem:[%s39948_s10 + $0x680] sm:$0xff]  ;;  %v19971_v52 = vld [vmem:[%s39948_s10 + $0x688] sm:$0xff] }
 0x4b3   : > { %v5619_v49 = vld [vmem:[%s39948_s10 + $0x486] sm:$0xff] }
 0x4b5   : > { %34177 = vmatmul.mubr.msk.f32.gmra.mrb[72].mxu1 %vm398_vm0, %v5590_v53  ;;  %36179 = vmatmul.mubr.msk.f32.gmra.mrb[20].mxu0 %vm398_vm0, %v19942_v55  ;;  %v5620_v53 = vld [vmem:[%s39948_s10 + $0x48e] sm:$0xff] }
 0x4b6   : > { %34179 = vmatprep.mubr.msk.f32.mxu1 %vm398_vm0, %v5591_v57  ;;  %36181 = vmatprep.mubr.msk.f32.mxu0 %vm398_vm0, %v19943_v61  ;;  %v19972_v55 = vld [vmem:[%s39948_s10 + $0x690] sm:$0xff]  ;;  %v6625_v57 = vld [vmem:[%s39948_s10 + $0x27c] sm:$0xff] }
 0x4b7   : > { %v19973_v61 = vld [vmem:[%s39948_s10 + $0x698] sm:$0xff] }
 0x4b9   : > { %34180 = vmatmul.mubr.msk.f32.gmra.mrb[74].mxu1 %vm398_vm0, %v5592_v63  ;;  %36182 = vmatmul.mubr.msk.f32.gmra.mrb[22].mxu0 %vm398_vm0, %v19944_v3  ;;  %v6626_v63 = vld [vmem:[%s39948_s10 + $0x284] sm:$0xff] }
 0x4ba   : > { %34182 = vmatprep.mubr.msk.f32.mxu1 %vm398_vm0, %v5593_v8  ;;  %36184 = vmatprep.mubr.msk.f32.mxu0 %vm398_vm0, %v19945_v21  ;;  %v19974_v3 = vld [vmem:[%s39948_s10 + $0x6a0] sm:$0xff]  ;;  %v6627_v8 = vld [vmem:[%s39948_s10 + $0x28c] sm:$0xff] }
 0x4bb   : > { %v19975_v21 = vld [vmem:[%s39948_s10 + $0x6a8] sm:$0xff] }
 0x4bd   : > { %34183 = vmatmul.mubr.msk.f32.gmra.mrb[76].mxu1 %vm398_vm0, %v5594_v11  ;;  %36185 = vmatmul.mubr.msk.f32.gmra.mrb[24].mxu0 %vm398_vm0, %v19946_v15  ;;  %v6628_v11 = vld [vmem:[%s39948_s10 + $0x294] sm:$0xff] }
 0x4be   : > { %34185 = vmatprep.mubr.msk.f32.mxu1 %vm398_vm0, %v5595_v18  ;;  %36187 = vmatprep.mubr.msk.f32.mxu0 %vm398_vm0, %v19947_v24  ;;  %v19976_v15 = vld [vmem:[%s39948_s10 + $0x6b0] sm:$0xff]  ;;  %v6629_v18 = vld [vmem:[%s39948_s10 + $0x29c] sm:$0xff] }
 0x4bf   : > { %v19977_v24 = vld [vmem:[%s39948_s10 + $0x6b8] sm:$0xff] }
 0x4c1   : > { %34186 = vmatmul.mubr.msk.f32.gmra.mrb[78].mxu1 %vm398_vm0, %v5596_v28  ;;  %36188 = vmatmul.mubr.msk.f32.gmra.mrb[26].mxu0 %vm398_vm0, %v19948_v32  ;;  %v19978_v28 = vld [vmem:[%s39948_s10 + $0x6c0] sm:$0xff]  ;;  %v6631_v32 = vld [vmem:[%s39948_s10 + $0x2ac] sm:$0xff] }
 0x4c2   : > { %34188 = vmatprep.mubr.msk.f32.mxu1 %vm398_vm0, %v5597_v36  ;;  %36190 = vmatprep.mubr.msk.f32.mxu0 %vm398_vm0, %v19949_v40  ;;  %v19979_v36 = vld [vmem:[%s39948_s10 + $0x6c8] sm:$0xff]  ;;  %v6632_v40 = vld [vmem:[%s39948_s10 + $0x2b4] sm:$0xff] }
 0x4c5   : > { %34189 = vmatmul.mubr.msk.f32.gmra.mrb[80].mxu1 %vm398_vm0, %v5598_v33  ;;  %36191 = vmatmul.mubr.msk.f32.gmra.mrb[28].mxu0 %vm398_vm0, %v19950_v7  ;;  %v19980_v33 = vld [vmem:[%s39948_s10 + $0x6d0] sm:$0xff]  ;;  %v6633_v7 = vld [vmem:[%s39948_s10 + $0x2bc] sm:$0xff] }
 0x4c6   : > { %34191 = vmatprep.mubr.msk.f32.mxu1 %vm398_vm0, %v5599_v48  ;;  %36193 = vmatprep.mubr.msk.f32.mxu0 %vm398_vm0, %v19951_v41  ;;  %v19981_v48 = vld [vmem:[%s39948_s10 + $0x6d8] sm:$0xff]  ;;  %v6634_v41 = vld [vmem:[%s39948_s10 + $0x2c4] sm:$0xff] }
 0x4c9   : > { %34192 = vmatmul.mubr.msk.f32.gmra.mrb[82].mxu1 %vm398_vm0, %v5600_v56  ;;  %36194 = vmatmul.mubr.msk.f32.gmra.mrb[30].mxu0 %vm398_vm0, %v19952_v60  ;;  %v19982_v56 = vld [vmem:[%s39948_s10 + $0x6e0] sm:$0xff]  ;;  %v6635_v60 = vld [vmem:[%s39948_s10 + $0x2cc] sm:$0xff] }
 0x4ca   : > { %34194 = vmatprep.mubr.msk.f32.mxu1 %vm398_vm0, %v5601_v10  ;;  %36196 = vmatprep.mubr.msk.f32.mxu0 %vm398_vm0, %v19953_v16  ;;  %v19983_v10 = vld [vmem:[%s39948_s10 + $0x6e8] sm:$0xff]  ;;  %v6636_v16 = vld [vmem:[%s39948_s10 + $0x2d4] sm:$0xff] }
 0x4cd   : > { %34195 = vmatmul.mubr.msk.f32.gmra.mrb[84].mxu1 %vm398_vm0, %v5602_v26  ;;  %36197 = vmatmul.mubr.msk.f32.gmra.mrb[32].mxu0 %vm398_vm0, %v19954_v51  ;;  %v19984_v26 = vld [vmem:[%s39948_s10 + $0x6f0] sm:$0xff]  ;;  %v6637_v51 = vld [vmem:[%s39948_s10 + $0x2dc] sm:$0xff] }
 0x4ce   : > { %34197 = vmatprep.mubr.msk.f32.mxu1 %vm398_vm0, %v5603_v23  ;;  %36199 = vmatprep.mubr.msk.f32.mxu0 %vm398_vm0, %v19955_v43  ;;  %v19985_v23 = vld [vmem:[%s39948_s10 + $0x6f8] sm:$0xff]  ;;  %v6638_v43 = vld [vmem:[%s39948_s10 + $0x2e4] sm:$0xff] }
 0x4d1   : > { %34198 = vmatmul.mubr.msk.f32.gmra.mrb[86].mxu1 %vm398_vm0, %v5604_v38  ;;  %36200 = vmatmul.mubr.msk.f32.gmra.mrb[34].mxu0 %vm398_vm0, %v19956_v50  ;;  %v19986_v38 = vld [vmem:[%s39948_s10 + $0x700] sm:$0xff]  ;;  %v6639_v50 = vld [vmem:[%s39948_s10 + $0x2ec] sm:$0xff] }
 0x4d2   : > { %34200 = vmatprep.mubr.msk.f32.mxu1 %vm398_vm0, %v5605_v62  ;;  %36202 = vmatprep.mubr.msk.f32.mxu0 %vm398_vm0, %v19957_v1  ;;  %v19987_v62 = vld [vmem:[%s39948_s10 + $0x708] sm:$0xff]  ;;  %v6640_v1 = vld [vmem:[%s39948_s10 + $0x2f4] sm:$0xff] }
 0x4d5   : > { %34201 = vmatmul.mubr.msk.f32.gmra.mrb[88].mxu1 %vm398_vm0, %v5606_v20  ;;  %36203 = vmatmul.mubr.msk.f32.gmra.mrb[36].mxu0 %vm398_vm0, %v19958_v0  ;;  %v19988_v20 = vld [vmem:[%s39948_s10 + $0x710] sm:$0xff]  ;;  %v6641_v0 = vld [vmem:[%s39948_s10 + $0x2fc] sm:$0xff] }
 0x4d6   : > { %34203 = vmatprep.mubr.msk.f32.mxu1 %vm398_vm0, %v5607_v2  ;;  %36205 = vmatprep.mubr.msk.f32.mxu0 %vm398_vm0, %v19959_v5  ;;  %v19989_v2 = vld [vmem:[%s39948_s10 + $0x718] sm:$0xff]  ;;  %v6642_v5 = vld [vmem:[%s39948_s10 + $0x304] sm:$0xff] }
 0x4d9   : > { %34204 = vmatmul.mubr.msk.f32.gmra.mrb[90].mxu1 %vm398_vm0, %v5608_v6  ;;  %36206 = vmatmul.mubr.msk.f32.gmra.mrb[38].mxu0 %vm398_vm0, %v19960_v9  ;;  %v19990_v6 = vld [vmem:[%s39948_s10 + $0x720] sm:$0xff]  ;;  %v6643_v9 = vld [vmem:[%s39948_s10 + $0x30c] sm:$0xff] }
 0x4da   : > { %34206 = vmatprep.mubr.msk.f32.mxu1 %vm398_vm0, %v5609_v13  ;;  %36208 = vmatprep.mubr.msk.f32.mxu0 %vm398_vm0, %v19961_v54  ;;  %v19991_v13 = vld [vmem:[%s39948_s10 + $0x728] sm:$0xff]  ;;  %v6644_v54 = vld [vmem:[%s39948_s10 + $0x314] sm:$0xff] }
 0x4dd   : > { %34207 = vmatmul.mubr.msk.f32.gmra.mrb[92].mxu1 %vm398_vm0, %v5610_v14  ;;  %36209 = vmatmul.mubr.msk.f32.gmra.mrb[40].mxu0 %vm398_vm0, %v19962_v4  ;;  %v19992_v14 = vld [vmem:[%s39948_s10 + $0x730] sm:$0xff]  ;;  %v6645_v4 = vld [vmem:[%s39948_s10 + $0x31c] sm:$0xff] }
 0x4de   : > { %34209 = vmatprep.mubr.msk.f32.mxu1 %vm398_vm0, %v5611_v25  ;;  %36211 = vmatprep.mubr.msk.f32.mxu0 %vm398_vm0, %v19963_v27  ;;  %v19994_v25 = vld [vmem:[%s39948_s10 + $0x740] sm:$0xff]  ;;  %v6647_v27 = vld [vmem:[%s39948_s10 + $0x32c] sm:$0xff] }
 0x4e1   : > { %34210 = vmatmul.mubr.msk.f32.gmra.mrb[94].mxu1 %vm398_vm0, %v5612_v30  ;;  %36212 = vmatmul.mubr.msk.f32.gmra.mrb[42].mxu0 %vm398_vm0, %v19964_v31  ;;  %v19995_v30 = vld [vmem:[%s39948_s10 + $0x748] sm:$0xff]  ;;  %v6648_v31 = vld [vmem:[%s39948_s10 + $0x334] sm:$0xff] }
 0x4e2   : > { %34212 = vmatprep.mubr.msk.f32.mxu1 %vm398_vm0, %v5613_v34  ;;  %36214 = vmatprep.mubr.msk.f32.mxu0 %vm398_vm0, %v19965_v12  ;;  %v19996_v34 = vld [vmem:[%s39948_s10 + $0x750] sm:$0xff]  ;;  %v6649_v12 = vld [vmem:[%s39948_s10 + $0x33c] sm:$0xff] }
 0x4e5   : > { %34213 = vmatmul.mubr.msk.f32.gmra.mrb[96].mxu1 %vm398_vm0, %v5614_v17  ;;  %36215 = vmatmul.mubr.msk.f32.gmra.mrb[44].mxu0 %vm398_vm0, %v19966_v35  ;;  %v19997_v17 = vld [vmem:[%s39948_s10 + $0x758] sm:$0xff]  ;;  %v6650_v35 = vld [vmem:[%s39948_s10 + $0x344] sm:$0xff] }
 0x4e6   : > { %34215 = vmatprep.mubr.msk.f32.mxu1 %vm398_vm0, %v5615_v46  ;;  %36217 = vmatprep.mubr.msk.f32.mxu0 %vm398_vm0, %v19967_v37  ;;  %v19998_v46 = vld [vmem:[%s39948_s10 + $0x760] sm:$0xff]  ;;  %v6651_v37 = vld [vmem:[%s39948_s10 + $0x34c] sm:$0xff] }
 0x4e9   : > { %34216 = vmatmul.mubr.msk.f32.gmra.mrb[98].mxu1 %vm398_vm0, %v5616_v58  ;;  %36218 = vmatmul.mubr.msk.f32.gmra.mrb[46].mxu0 %vm398_vm0, %v19968_v39  ;;  %v19999_v58 = vld [vmem:[%s39948_s10 + $0x768] sm:$0xff]  ;;  %v6652_v39 = vld [vmem:[%s39948_s10 + $0x354] sm:$0xff] }
 0x4ea   : > { %34218 = vmatprep.mubr.msk.f32.mxu1 %vm398_vm0, %v5617_v42  ;;  %36220 = vmatprep.mubr.msk.f32.mxu0 %vm398_vm0, %v19969_v44  ;;  %v20000_v42 = vld [vmem:[%s39948_s10 + $0x770] sm:$0xff]  ;;  %v6653_v44 = vld [vmem:[%s39948_s10 + $0x35c] sm:$0xff] }
 0x4ed   : > { %34219 = vmatmul.mubr.msk.f32.gmra.mrb[100].mxu1 %vm398_vm0, %v5618_v45  ;;  %36221 = vmatmul.mubr.msk.f32.gmra.mrb[48].mxu0 %vm398_vm0, %v19970_v47  ;;  %v20001_v45 = vld [vmem:[%s39948_s10 + $0x778] sm:$0xff]  ;;  %v6654_v47 = vld [vmem:[%s39948_s10 + $0x364] sm:$0xff] }
 0x4ee   : > { %34221 = vmatprep.mubr.msk.f32.mxu1 %vm398_vm0, %v5619_v49  ;;  %36223 = vmatprep.mubr.msk.f32.mxu0 %vm398_vm0, %v19971_v52  ;;  %v20002_v49 = vld [vmem:[%s39948_s10 + $0x780] sm:$0xff]  ;;  %v6655_v52 = vld [vmem:[%s39948_s10 + $0x36c] sm:$0xff] }
 0x4f1   : > { %34222 = vmatmul.mubr.msk.f32.gmra.mrb[102].mxu1 %vm398_vm0, %v5620_v53  ;;  %36224 = vmatmul.mubr.msk.f32.gmra.mrb[50].mxu0 %vm398_vm0, %v19972_v55  ;;  %v20003_v53 = vld [vmem:[%s39948_s10 + $0x788] sm:$0xff]  ;;  %v6656_v55 = vld [vmem:[%s39948_s10 + $0x374] sm:$0xff] }
 0x4f2   : > { %34228 = vmatprep.mubr.msk.f32.mxu1 %vm398_vm0, %v6625_v57  ;;  %36226 = vmatprep.mubr.msk.f32.mxu0 %vm398_vm0, %v19973_v61  ;;  %v20004_v57 = vld [vmem:[%s39948_s10 + $0x790] sm:$0xff]  ;;  %v6657_v61 = vld [vmem:[%s39948_s10 + $0x37c] sm:$0xff] }
 0x4f5   : > { %34229 = vmatmul.mubr.msk.f32.vlgmr.msra.gmra.mrb[0].mxu1 %vm398_vm0, %v6626_v63  ;;  %36227 = vmatmul.mubr.msk.f32.gmra.mrb[52].mxu0 %vm398_vm0, %v19974_v3  ;;  %v20005_v63 = vld [vmem:[%s39948_s10 + $0x798] sm:$0xff]  ;;  %v6658_v3 = vld [vmem:[%s39948_s10 + $0x384] sm:$0xff] }
 0x4f6   : > { %37295 = vmatpush3.bf16.msra.mxu1 %v42511_v59  ;;  %34231 = vmatprep.mubr.msk.f32.mxu1 %vm398_vm0, %v6627_v8  ;;  %v6630_v59 = vld [vmem:[%s39948_s10 + $0x2a4] sm:$0xff] }
 0x4f7   : > { %36229 = vmatprep.mubr.msk.f32.mxu0 %vm398_vm0, %v19975_v21  ;;  %v20006_v8 = vld [vmem:[%s39948_s10 + $0x7a0] sm:$0xff]  ;;  %v6659_v21 = vld [vmem:[%s39948_s10 + $0x38c] sm:$0xff] }
 0x4f9   : > { %34232 = vmatmul.mubr.msk.f32.gmra.mrb[2].mxu1 %vm398_vm0, %v6628_v11  ;;  %36230 = vmatmul.mubr.msk.f32.gmra.mrb[54].mxu0 %vm398_vm0, %v19976_v15  ;;  %v20007_v11 = vld [vmem:[%s39948_s10 + $0x7a8] sm:$0xff]  ;;  %v6660_v15 = vld [vmem:[%s39948_s10 + $0x394] sm:$0xff] }
 0x4fa   : > { %34234 = vmatprep.mubr.msk.f32.mxu1 %vm398_vm0, %v6629_v18  ;;  %36232 = vmatprep.mubr.msk.f32.mxu0 %vm398_vm0, %v19977_v24  ;;  %v20008_v18 = vld [vmem:[%s39948_s10 + $0x7b0] sm:$0xff]  ;;  %v6661_v24 = vld [vmem:[%s39948_s10 + $0x39c] sm:$0xff] }
 0x4fd   : > { %34235 = vmatmul.mubr.msk.f32.gmra.mrb[4].mxu1 %vm398_vm0, %v6630_v59  ;;  %36233 = vmatmul.mubr.msk.f32.gmra.mrb[56].mxu0 %vm398_vm0, %v19978_v28  ;;  %v20009_v59 = vld [vmem:[%s39948_s10 + $0x7b8] sm:$0xff]  ;;  %v6662_v28 = vld [vmem:[%s39948_s10 + $0x3a4] sm:$0xff] }
 0x4fe   : > { %34237 = vmatprep.mubr.msk.f32.mxu1 %vm398_vm0, %v6631_v32  ;;  %36235 = vmatprep.mubr.msk.f32.mxu0 %vm398_vm0, %v19979_v36  ;;  %v20010_v32 = vld [vmem:[%s39948_s10 + $0x7c0] sm:$0xff]  ;;  %v6663_v36 = vld [vmem:[%s39948_s10 + $0x3ac] sm:$0xff] }
 0x501   : > { %34238 = vmatmul.mubr.msk.f32.gmra.mrb[6].mxu1 %vm398_vm0, %v6632_v40  ;;  %36236 = vmatmul.mubr.msk.f32.gmra.mrb[58].mxu0 %vm398_vm0, %v19980_v33  ;;  %v20011_v40 = vld [vmem:[%s39948_s10 + $0x7c8] sm:$0xff]  ;;  %v6664_v33 = vld [vmem:[%s39948_s10 + $0x3b4] sm:$0xff] }
 0x502   : > { %34240 = vmatprep.mubr.msk.f32.mxu1 %vm398_vm0, %v6633_v7  ;;  %36238 = vmatprep.mubr.msk.f32.mxu0 %vm398_vm0, %v19981_v48  ;;  %v20012_v7 = vld [vmem:[%s39948_s10 + $0x7d0] sm:$0xff]  ;;  %v6665_v48 = vld [vmem:[%s39948_s10 + $0x3bc] sm:$0xff] }
 0x505   : > { %34241 = vmatmul.mubr.msk.f32.gmra.mrb[8].mxu1 %vm398_vm0, %v6634_v41  ;;  %36239 = vmatmul.mubr.msk.f32.gmra.mrb[60].mxu0 %vm398_vm0, %v19982_v56  ;;  %v20013_v41 = vld [vmem:[%s39948_s10 + $0x7d8] sm:$0xff]  ;;  %v6666_v56 = vld [vmem:[%s39948_s10 + $0x3c4] sm:$0xff] }
 0x506   : > { %34243 = vmatprep.mubr.msk.f32.mxu1 %vm398_vm0, %v6635_v60  ;;  %36241 = vmatprep.mubr.msk.f32.mxu0 %vm398_vm0, %v19983_v10  ;;  %v20014_v60 = vld [vmem:[%s39948_s10 + $0x7e0] sm:$0xff] }
 0x507   : > { %v28809_v10 = vld [vmem:[%s46145_s2 + $0x80] sm:$0xff] }
 0x509   : > { %34244 = vmatmul.mubr.msk.f32.gmra.mrb[10].mxu1 %vm398_vm0, %v6636_v16  ;;  %36242 = vmatmul.mubr.msk.f32.gmra.mrb[62].mxu0 %vm398_vm0, %v19984_v26  ;;  %v28810_v16 = vld [vmem:[%s46145_s2 + $0x88] sm:$0xff] }
 0x50a   : > { %34246 = vmatprep.mubr.msk.f32.mxu1 %vm398_vm0, %v6637_v51  ;;  %36244 = vmatprep.mubr.msk.f32.mxu0 %vm398_vm0, %v19985_v23  ;;  %v6667_v26 = vld [vmem:[%s39948_s10 + $0x3cc] sm:$0xff]  ;;  %v42947_v23 = vpack.c.bf16 %v28810_v16, %v28809_v10  ;;  %v21049_v10 = vld [vmem:[%s39948_s10 + $0x6be] sm:$0xff] }
 0x50b   : > { %v20015_v51 = vld [vmem:[%s39948_s10 + $0x7e8] sm:$0xff] }
 0x50c   : > { %37297 = vmatprep.subr.bf16.mxu1 %v42947_v23  ;;  %v6698_v16 = vld [vmem:[%s39948_s10 + $0x4c4] sm:$0xff] }
 0x50d   : > { %34247 = vmatmul.mubr.msk.f32.gmra.mrb[12].mxu1 %vm398_vm0, %v6638_v43  ;;  %36245 = vmatmul.mubr.msk.f32.gmra.mrb[64].mxu0 %vm398_vm0, %v19986_v38  ;;  %v6668_v43 = vld [vmem:[%s39948_s10 + $0x3d4] sm:$0xff] }
 0x50e   : > { %34249 = vmatprep.mubr.msk.f32.mxu1 %vm398_vm0, %v6639_v50  ;;  %36247 = vmatprep.mubr.msk.f32.mxu0 %vm398_vm0, %v19987_v62  ;;  %v20016_v38 = vld [vmem:[%s39948_s10 + $0x7f0] sm:$0xff]  ;;  %v6669_v50 = vld [vmem:[%s39948_s10 + $0x3dc] sm:$0xff] }
 0x50f   : > { %v20017_v62 = vld [vmem:[%s39948_s10 + $0x7f8] sm:$0xff] }
 0x511   : > { %34250 = vmatmul.mubr.msk.f32.gmra.mrb[14].mxu1 %vm398_vm0, %v6640_v1  ;;  %36248 = vmatmul.mubr.msk.f32.gmra.mrb[66].mxu0 %vm398_vm0, %v19988_v20  ;;  %v6670_v1 = vld [vmem:[%s39948_s10 + $0x3e4] sm:$0xff] }
 0x512   : > { %34252 = vmatprep.mubr.msk.f32.mxu1 %vm398_vm0, %v6641_v0  ;;  %36250 = vmatprep.mubr.msk.f32.mxu0 %vm398_vm0, %v19989_v2  ;;  %v20018_v20 = vld [vmem:[%s39948_s10 + $0x800] sm:$0xff]  ;;  %v6671_v0 = vld [vmem:[%s39948_s10 + $0x3ec] sm:$0xff] }
 0x513   : > { %v20019_v2 = vld [vmem:[%s39948_s10 + $0x808] sm:$0xff] }
 0x515   : > { %34253 = vmatmul.mubr.msk.f32.gmra.mrb[16].mxu1 %vm398_vm0, %v6642_v5  ;;  %36251 = vmatmul.mubr.msk.f32.gmra.mrb[68].mxu0 %vm398_vm0, %v19990_v6  ;;  %v6672_v5 = vld [vmem:[%s39948_s10 + $0x3f4] sm:$0xff] }
 0x516   : > { %34255 = vmatprep.mubr.msk.f32.mxu1 %vm398_vm0, %v6643_v9  ;;  %36253 = vmatprep.mubr.msk.f32.mxu0 %vm398_vm0, %v19991_v13  ;;  %v20020_v6 = vld [vmem:[%s39948_s10 + $0x810] sm:$0xff]  ;;  %v6673_v9 = vld [vmem:[%s39948_s10 + $0x3fc] sm:$0xff] }
 0x517   : > { %v20021_v13 = vld [vmem:[%s39948_s10 + $0x818] sm:$0xff] }
 0x519   : > { %34256 = vmatmul.mubr.msk.f32.gmra.mrb[18].mxu1 %vm398_vm0, %v6644_v54  ;;  %36254 = vmatmul.mubr.msk.f32.gmra.mrb[70].mxu0 %vm398_vm0, %v19992_v14  ;;  %v6674_v54 = vld [vmem:[%s39948_s10 + $0x404] sm:$0xff] }
 0x51a   : > { %34258 = vmatprep.mubr.msk.f32.mxu1 %vm398_vm0, %v6645_v4  ;;  %36256 = vmatprep.mubr.msk.f32.mxu0 %vm398_vm0, %v19993_v19  ;;  %v20022_v14 = vld [vmem:[%s39948_s10 + $0x820] sm:$0xff]  ;;  %v6675_v4 = vld [vmem:[%s39948_s10 + $0x40c] sm:$0xff] }
 0x51b   : > { %v20023_v19 = vld [vmem:[%s39948_s10 + $0x828] sm:$0xff] }
 0x51d   : > { %34259 = vmatmul.mubr.msk.f32.gmra.mrb[20].mxu1 %vm398_vm0, %v6646_v22  ;;  %36257 = vmatmul.mubr.msk.f32.gmra.mrb[72].mxu0 %vm398_vm0, %v19994_v25  ;;  %v6676_v22 = vld [vmem:[%s39948_s10 + $0x414] sm:$0xff] }
 0x51e   : > { %34261 = vmatprep.mubr.msk.f32.mxu1 %vm398_vm0, %v6647_v27  ;;  %36259 = vmatprep.mubr.msk.f32.mxu0 %vm398_vm0, %v19995_v30  ;;  %v20024_v25 = vld [vmem:[%s39948_s10 + $0x830] sm:$0xff]  ;;  %v6677_v27 = vld [vmem:[%s39948_s10 + $0x41c] sm:$0xff] }
 0x51f   : > { %v21029_v30 = vld [vmem:[%s39948_s10 + $0x61e] sm:$0xff] }
 0x521   : > { %34262 = vmatmul.mubr.msk.f32.gmra.mrb[22].mxu1 %vm398_vm0, %v6648_v31  ;;  %36260 = vmatmul.mubr.msk.f32.gmra.mrb[74].mxu0 %vm398_vm0, %v19996_v34  ;;  %v6678_v31 = vld [vmem:[%s39948_s10 + $0x424] sm:$0xff] }
 0x522   : > { %34264 = vmatprep.mubr.msk.f32.mxu1 %vm398_vm0, %v6649_v12  ;;  %36262 = vmatprep.mubr.msk.f32.mxu0 %vm398_vm0, %v19997_v17  ;;  %v21030_v34 = vld [vmem:[%s39948_s10 + $0x626] sm:$0xff]  ;;  %v21031_v17 = vld [vmem:[%s39948_s10 + $0x62e] sm:$0xff] }
 0x523   : > { %v6679_v12 = vld [vmem:[%s39948_s10 + $0x42c] sm:$0xff] }
 0x525   : > { %34265 = vmatmul.mubr.msk.f32.gmra.mrb[24].mxu1 %vm398_vm0, %v6650_v35  ;;  %36263 = vmatmul.mubr.msk.f32.gmra.mrb[76].mxu0 %vm398_vm0, %v19998_v46  ;;  %v6680_v35 = vld [vmem:[%s39948_s10 + $0x434] sm:$0xff] }
 0x526   : > { %34267 = vmatprep.mubr.msk.f32.mxu1 %vm398_vm0, %v6651_v37  ;;  %36265 = vmatprep.mubr.msk.f32.mxu0 %vm398_vm0, %v19999_v58  ;;  %v21032_v46 = vld [vmem:[%s39948_s10 + $0x636] sm:$0xff]  ;;  %v21033_v58 = vld [vmem:[%s39948_s10 + $0x63e] sm:$0xff] }
 0x527   : > { %v6681_v37 = vld [vmem:[%s39948_s10 + $0x43c] sm:$0xff] }
 0x529   : > { %34268 = vmatmul.mubr.msk.f32.gmra.mrb[26].mxu1 %vm398_vm0, %v6652_v39  ;;  %36266 = vmatmul.mubr.msk.f32.gmra.mrb[78].mxu0 %vm398_vm0, %v20000_v42  ;;  %v21034_v39 = vld [vmem:[%s39948_s10 + $0x646] sm:$0xff] }
 0x52a   : > { %34270 = vmatprep.mubr.msk.f32.mxu1 %vm398_vm0, %v6653_v44  ;;  %36268 = vmatprep.mubr.msk.f32.mxu0 %vm398_vm0, %v20001_v45  ;;  %v6683_v42 = vld [vmem:[%s39948_s10 + $0x44c] sm:$0xff]  ;;  %v6684_v45 = vld [vmem:[%s39948_s10 + $0x454] sm:$0xff] }
 0x52b   : > { %v21035_v44 = vld [vmem:[%s39948_s10 + $0x64e] sm:$0xff] }
 0x52d   : > { %34271 = vmatmul.mubr.msk.f32.gmra.mrb[28].mxu1 %vm398_vm0, %v6654_v47  ;;  %36269 = vmatmul.mubr.msk.f32.gmra.mrb[80].mxu0 %vm398_vm0, %v20002_v49  ;;  %v21036_v47 = vld [vmem:[%s39948_s10 + $0x656] sm:$0xff] }
 0x52e   : > { %34273 = vmatprep.mubr.msk.f32.mxu1 %vm398_vm0, %v6655_v52  ;;  %36271 = vmatprep.mubr.msk.f32.mxu0 %vm398_vm0, %v20003_v53  ;;  %v6685_v49 = vld [vmem:[%s39948_s10 + $0x45c] sm:$0xff]  ;;  %v6686_v53 = vld [vmem:[%s39948_s10 + $0x464] sm:$0xff] }
 0x52f   : > { %v21037_v52 = vld [vmem:[%s39948_s10 + $0x65e] sm:$0xff] }
 0x531   : > { %34274 = vmatmul.mubr.msk.f32.gmra.mrb[30].mxu1 %vm398_vm0, %v6656_v55  ;;  %36272 = vmatmul.mubr.msk.f32.gmra.mrb[82].mxu0 %vm398_vm0, %v20004_v57  ;;  %v21038_v55 = vld [vmem:[%s39948_s10 + $0x666] sm:$0xff] }
 0x532   : > { %34276 = vmatprep.mubr.msk.f32.mxu1 %vm398_vm0, %v6657_v61  ;;  %36274 = vmatprep.mubr.msk.f32.mxu0 %vm398_vm0, %v20005_v63  ;;  %v6687_v57 = vld [vmem:[%s39948_s10 + $0x46c] sm:$0xff]  ;;  %v6688_v63 = vld [vmem:[%s39948_s10 + $0x474] sm:$0xff] }
 0x533   : > { %v21039_v61 = vld [vmem:[%s39948_s10 + $0x66e] sm:$0xff] }
 0x535   : > { %34277 = vmatmul.mubr.msk.f32.gmra.mrb[32].mxu1 %vm398_vm0, %v6658_v3  ;;  %36275 = vmatmul.mubr.msk.f32.gmra.mrb[84].mxu0 %vm398_vm0, %v20006_v8  ;;  %v21040_v3 = vld [vmem:[%s39948_s10 + $0x676] sm:$0xff] }
 0x536   : > { %34279 = vmatprep.mubr.msk.f32.mxu1 %vm398_vm0, %v6659_v21  ;;  %36277 = vmatprep.mubr.msk.f32.mxu0 %vm398_vm0, %v20007_v11  ;;  %v6689_v8 = vld [vmem:[%s39948_s10 + $0x47c] sm:$0xff]  ;;  %v6690_v11 = vld [vmem:[%s39948_s10 + $0x484] sm:$0xff] }
 0x537   : > { %v21041_v21 = vld [vmem:[%s39948_s10 + $0x67e] sm:$0xff] }
 0x539   : > { %34280 = vmatmul.mubr.msk.f32.gmra.mrb[34].mxu1 %vm398_vm0, %v6660_v15  ;;  %36278 = vmatmul.mubr.msk.f32.gmra.mrb[86].mxu0 %vm398_vm0, %v20008_v18  ;;  %v21042_v15 = vld [vmem:[%s39948_s10 + $0x686] sm:$0xff] }
 0x53a   : > { %34282 = vmatprep.mubr.msk.f32.mxu1 %vm398_vm0, %v6661_v24  ;;  %36280 = vmatprep.mubr.msk.f32.mxu0 %vm398_vm0, %v20009_v59  ;;  %v6691_v18 = vld [vmem:[%s39948_s10 + $0x48c] sm:$0xff]  ;;  %v6692_v59 = vld [vmem:[%s39948_s10 + $0x494] sm:$0xff] }
 0x53b   : > { %v21043_v24 = vld [vmem:[%s39948_s10 + $0x68e] sm:$0xff] }
 0x53d   : > { %34283 = vmatmul.mubr.msk.f32.gmra.mrb[36].mxu1 %vm398_vm0, %v6662_v28  ;;  %36281 = vmatmul.mubr.msk.f32.gmra.mrb[88].mxu0 %vm398_vm0, %v20010_v32  ;;  %v21044_v28 = vld [vmem:[%s39948_s10 + $0x696] sm:$0xff] }
 0x53e   : > { %34285 = vmatprep.mubr.msk.f32.mxu1 %vm398_vm0, %v6663_v36  ;;  %36283 = vmatprep.mubr.msk.f32.mxu0 %vm398_vm0, %v20011_v40  ;;  %v6693_v32 = vld [vmem:[%s39948_s10 + $0x49c] sm:$0xff]  ;;  %v6694_v40 = vld [vmem:[%s39948_s10 + $0x4a4] sm:$0xff] }
 0x53f   : > { %v21045_v36 = vld [vmem:[%s39948_s10 + $0x69e] sm:$0xff] }
 0x541   : > { %34286 = vmatmul.mubr.msk.f32.gmra.mrb[38].mxu1 %vm398_vm0, %v6664_v33  ;;  %36284 = vmatmul.mubr.msk.f32.gmra.mrb[90].mxu0 %vm398_vm0, %v20012_v7  ;;  %v21046_v33 = vld [vmem:[%s39948_s10 + $0x6a6] sm:$0xff] }
 0x542   : > { %34288 = vmatprep.mubr.msk.f32.mxu1 %vm398_vm0, %v6665_v48  ;;  %36286 = vmatprep.mubr.msk.f32.mxu0 %vm398_vm0, %v20013_v41  ;;  %v6695_v7 = vld [vmem:[%s39948_s10 + $0x4ac] sm:$0xff]  ;;  %v6696_v41 = vld [vmem:[%s39948_s10 + $0x4b4] sm:$0xff] }
 0x543   : > { %v21047_v48 = vld [vmem:[%s39948_s10 + $0x6ae] sm:$0xff] }
 0x545   : > { %34289 = vmatmul.mubr.msk.f32.gmra.mrb[40].mxu1 %vm398_vm0, %v6666_v56  ;;  %36287 = vmatmul.mubr.msk.f32.gmra.mrb[92].mxu0 %vm398_vm0, %v20014_v60  ;;  %v21048_v56 = vld [vmem:[%s39948_s10 + $0x6b6] sm:$0xff] }
 0x546   : > { %34291 = vmatprep.mubr.msk.f32.mxu1 %vm398_vm0, %v6667_v26  ;;  %36289 = vmatprep.mubr.msk.f32.mxu0 %vm398_vm0, %v20015_v51  ;;  %v6697_v60 = vld [vmem:[%s39948_s10 + $0x4bc] sm:$0xff]  ;;  %v21050_v26 = vld [vmem:[%s39948_s10 + $0x6c6] sm:$0xff] }
 0x547   : > { %v6699_v51 = vld [vmem:[%s39948_s10 + $0x4cc] sm:$0xff] }
 0x549   : > { %34292 = vmatmul.mubr.msk.f32.gmra.mrb[42].mxu1 %vm398_vm0, %v6668_v43  ;;  %36290 = vmatmul.mubr.msk.f32.gmra.mrb[94].mxu0 %vm398_vm0, %v20016_v38  ;;  %v21051_v43 = vld [vmem:[%s39948_s10 + $0x6ce] sm:$0xff] }
 0x54a   : > { %34294 = vmatprep.mubr.msk.f32.mxu1 %vm398_vm0, %v6669_v50  ;;  %36292 = vmatprep.mubr.msk.f32.mxu0 %vm398_vm0, %v20017_v62  ;;  %v6700_v38 = vld [vmem:[%s39948_s10 + $0x4d4] sm:$0xff]  ;;  %v6701_v62 = vld [vmem:[%s39948_s10 + $0x4dc] sm:$0xff] }
 0x54b   : > { %v21052_v50 = vld [vmem:[%s39948_s10 + $0x6d6] sm:$0xff] }
 0x54d   : > { %34295 = vmatmul.mubr.msk.f32.gmra.mrb[44].mxu1 %vm398_vm0, %v6670_v1  ;;  %36293 = vmatmul.mubr.msk.f32.gmra.mrb[96].mxu0 %vm398_vm0, %v20018_v20  ;;  %v21053_v1 = vld [vmem:[%s39948_s10 + $0x6de] sm:$0xff] }
 0x54e   : > { %34297 = vmatprep.mubr.msk.f32.mxu1 %vm398_vm0, %v6671_v0  ;;  %36295 = vmatprep.mubr.msk.f32.mxu0 %vm398_vm0, %v20019_v2  ;;  %v6702_v20 = vld [vmem:[%s39948_s10 + $0x4e4] sm:$0xff]  ;;  %v6703_v2 = vld [vmem:[%s39948_s10 + $0x4ec] sm:$0xff] }
 0x54f   : > { %v21054_v0 = vld [vmem:[%s39948_s10 + $0x6e6] sm:$0xff] }
 0x551   : > { %34298 = vmatmul.mubr.msk.f32.gmra.mrb[46].mxu1 %vm398_vm0, %v6672_v5  ;;  %36296 = vmatmul.mubr.msk.f32.gmra.mrb[98].mxu0 %vm398_vm0, %v20020_v6  ;;  %v21055_v5 = vld [vmem:[%s39948_s10 + $0x6ee] sm:$0xff] }
 0x552   : > { %34300 = vmatprep.mubr.msk.f32.mxu1 %vm398_vm0, %v6673_v9  ;;  %36298 = vmatprep.mubr.msk.f32.mxu0 %vm398_vm0, %v20021_v13  ;;  %v6704_v6 = vld [vmem:[%s39948_s10 + $0x4f4] sm:$0xff]  ;;  %v6705_v13 = vld [vmem:[%s39948_s10 + $0x4fc] sm:$0xff] }
 0x553   : > { %v21056_v9 = vld [vmem:[%s39948_s10 + $0x6f6] sm:$0xff] }
 0x555   : > { %34301 = vmatmul.mubr.msk.f32.gmra.mrb[48].mxu1 %vm398_vm0, %v6674_v54  ;;  %36299 = vmatmul.mubr.msk.f32.gmra.mrb[100].mxu0 %vm398_vm0, %v20022_v14  ;;  %v21057_v54 = vld [vmem:[%s39948_s10 + $0x6fe] sm:$0xff] }
 0x556   : > { %34303 = vmatprep.mubr.msk.f32.mxu1 %vm398_vm0, %v6675_v4  ;;  %36301 = vmatprep.mubr.msk.f32.mxu0 %vm398_vm0, %v20023_v19  ;;  %v6706_v14 = vld [vmem:[%s39948_s10 + $0x504] sm:$0xff]  ;;  %v6707_v19 = vld [vmem:[%s39948_s10 + $0x50c] sm:$0xff] }
 0x557   : > { %v21058_v4 = vld [vmem:[%s39948_s10 + $0x706] sm:$0xff] }
 0x559   : > { %34304 = vmatmul.mubr.msk.f32.gmra.mrb[50].mxu1 %vm398_vm0, %v6676_v22  ;;  %36302 = vmatmul.mubr.msk.f32.gmra.mrb[102].mxu0 %vm398_vm0, %v20024_v25  ;;  %v21059_v22 = vld [vmem:[%s39948_s10 + $0x70e] sm:$0xff] }
 0x55a   : > { %34306 = vmatprep.mubr.msk.f32.mxu1 %vm398_vm0, %v6677_v27  ;;  %36308 = vmatprep.mubr.msk.f32.mxu0 %vm398_vm0, %v21029_v30  ;;  %v6708_v25 = vld [vmem:[%s39948_s10 + $0x514] sm:$0xff]  ;;  %v6709_v30 = vld [vmem:[%s39948_s10 + $0x51c] sm:$0xff] }
 0x55b   : > { %v21060_v27 = vld [vmem:[%s39948_s10 + $0x716] sm:$0xff] }
 0x55d   : > { %34307 = vmatmul.mubr.msk.f32.gmra.mrb[52].mxu1 %vm398_vm0, %v6678_v31  ;;  %36309 = vmatmul.mubr.msk.f32.vlgmr.msra.gmra.mrb[0].mxu0 %vm398_vm0, %v21030_v34  ;;  %v21061_v31 = vld [vmem:[%s39948_s10 + $0x71e] sm:$0xff] }
 0x55e   : > { %37347 = vmatpush3.bf16.msra.mxu0 %v42729_v29  ;;  %34309 = vmatprep.mubr.msk.f32.mxu1 %vm398_vm0, %v6679_v12  ;;  %v6682_v29 = vld [vmem:[%s39948_s10 + $0x444] sm:$0xff] }
 0x55f   : > { %36311 = vmatprep.mubr.msk.f32.mxu0 %vm398_vm0, %v21031_v17  ;;  %v6710_v34 = vld [vmem:[%s39948_s10 + $0x524] sm:$0xff]  ;;  %v6711_v17 = vld [vmem:[%s39948_s10 + $0x52c] sm:$0xff] }
 0x560   : > { %v21062_v12 = vld [vmem:[%s39948_s10 + $0x726] sm:$0xff] }
 0x561   : > { %34310 = vmatmul.mubr.msk.f32.gmra.mrb[54].mxu1 %vm398_vm0, %v6680_v35  ;;  %36312 = vmatmul.mubr.msk.f32.gmra.mrb[2].mxu0 %vm398_vm0, %v21032_v46  ;;  %v21063_v35 = vld [vmem:[%s39948_s10 + $0x72e] sm:$0xff] }
 0x562   : > { %34312 = vmatprep.mubr.msk.f32.mxu1 %vm398_vm0, %v6681_v37  ;;  %36314 = vmatprep.mubr.msk.f32.mxu0 %vm398_vm0, %v21033_v58  ;;  %v6712_v46 = vld [vmem:[%s39948_s10 + $0x534] sm:$0xff]  ;;  %v6713_v58 = vld [vmem:[%s39948_s10 + $0x53c] sm:$0xff] }
 0x563   : > { %v21064_v37 = vld [vmem:[%s39948_s10 + $0x736] sm:$0xff] }
 0x565   : > { %34313 = vmatmul.mubr.msk.f32.gmra.mrb[56].mxu1 %vm398_vm0, %v6682_v29  ;;  %36315 = vmatmul.mubr.msk.f32.gmra.mrb[4].mxu0 %vm398_vm0, %v21034_v39  ;;  %v21065_v29 = vld [vmem:[%s39948_s10 + $0x73e] sm:$0xff] }
 0x566   : > { %34315 = vmatprep.mubr.msk.f32.mxu1 %vm398_vm0, %v6683_v42  ;;  %36317 = vmatprep.mubr.msk.f32.mxu0 %vm398_vm0, %v21035_v44  ;;  %v6714_v39 = vld [vmem:[%s39948_s10 + $0x544] sm:$0xff]  ;;  %v6715_v44 = vld [vmem:[%s39948_s10 + $0x54c] sm:$0xff] }
 0x567   : > { %v21066_v42 = vld [vmem:[%s39948_s10 + $0x746] sm:$0xff] }
 0x569   : > { %34316 = vmatmul.mubr.msk.f32.gmra.mrb[58].mxu1 %vm398_vm0, %v6684_v45  ;;  %36318 = vmatmul.mubr.msk.f32.gmra.mrb[6].mxu0 %vm398_vm0, %v21036_v47  ;;  %v21067_v45 = vld [vmem:[%s39948_s10 + $0x74e] sm:$0xff] }
 0x56a   : > { %34318 = vmatprep.mubr.msk.f32.mxu1 %vm398_vm0, %v6685_v49  ;;  %36320 = vmatprep.mubr.msk.f32.mxu0 %vm398_vm0, %v21037_v52  ;;  %v6716_v47 = vld [vmem:[%s39948_s10 + $0x554] sm:$0xff]  ;;  %v6717_v52 = vld [vmem:[%s39948_s10 + $0x55c] sm:$0xff] }
 0x56b   : > { %v21068_v49 = vld [vmem:[%s39948_s10 + $0x756] sm:$0xff] }
 0x56d   : > { %34319 = vmatmul.mubr.msk.f32.gmra.mrb[60].mxu1 %vm398_vm0, %v6686_v53  ;;  %36321 = vmatmul.mubr.msk.f32.gmra.mrb[8].mxu0 %vm398_vm0, %v21038_v55  ;;  %v21069_v53 = vld [vmem:[%s39948_s10 + $0x75e] sm:$0xff] }
 0x56e   : > { %34321 = vmatprep.mubr.msk.f32.mxu1 %vm398_vm0, %v6687_v57  ;;  %36323 = vmatprep.mubr.msk.f32.mxu0 %vm398_vm0, %v21039_v61  ;;  %v6718_v55 = vld [vmem:[%s39948_s10 + $0x564] sm:$0xff]  ;;  %v30187_v61 = vld [vmem:[%s46145_s2 + $0x150] sm:$0xff] }
 0x56f   : > { %v21070_v57 = vld [vmem:[%s39948_s10 + $0x766] sm:$0xff] }
 0x571   : > { %34322 = vmatmul.mubr.msk.f32.gmra.mrb[62].mxu1 %vm398_vm0, %v6688_v63  ;;  %36324 = vmatmul.mubr.msk.f32.gmra.mrb[10].mxu0 %vm398_vm0, %v21040_v3  ;;  %v30188_v63 = vld [vmem:[%s46145_s2 + $0x158] sm:$0xff]  ;;  %v6719_v3 = vld [vmem:[%s39948_s10 + $0x56c] sm:$0xff] }
 0x572   : > { %34324 = vmatprep.mubr.msk.f32.mxu1 %vm398_vm0, %v6689_v8  ;;  %36326 = vmatprep.mubr.msk.f32.mxu0 %vm398_vm0, %v21041_v21  ;;  %v21071_v8 = vld [vmem:[%s39948_s10 + $0x76e] sm:$0xff]  ;;  %v43165_v21 = vpack.c.bf16 %v30188_v63, %v30187_v61  ;;  %v21101_v61 = vld [vmem:[%s39948_s10 + $0x85e] sm:$0xff] }
 0x573   : > { %v7754_v63 = vld [vmem:[%s39948_s10 + $0x32a] sm:$0xff] }
 0x574   : > { %37349 = vmatprep.subr.bf16.mxu0 %v43165_v21 }
 0x575   : > { %34325 = vmatmul.mubr.msk.f32.gmra.mrb[64].mxu1 %vm398_vm0, %v6690_v11  ;;  %36327 = vmatmul.mubr.msk.f32.gmra.mrb[12].mxu0 %vm398_vm0, %v21042_v15  ;;  %v6720_v11 = vld [vmem:[%s39948_s10 + $0x574] sm:$0xff] }
 0x576   : > { %34327 = vmatprep.mubr.msk.f32.mxu1 %vm398_vm0, %v6691_v18  ;;  %36329 = vmatprep.mubr.msk.f32.mxu0 %vm398_vm0, %v21043_v24  ;;  %v21072_v15 = vld [vmem:[%s39948_s10 + $0x776] sm:$0xff]  ;;  %v21073_v24 = vld [vmem:[%s39948_s10 + $0x77e] sm:$0xff] }
 0x577   : > { %v6721_v18 = vld [vmem:[%s39948_s10 + $0x57c] sm:$0xff] }
 0x579   : > { %34328 = vmatmul.mubr.msk.f32.gmra.mrb[66].mxu1 %vm398_vm0, %v6692_v59  ;;  %36330 = vmatmul.mubr.msk.f32.gmra.mrb[14].mxu0 %vm398_vm0, %v21044_v28  ;;  %v6722_v59 = vld [vmem:[%s39948_s10 + $0x584] sm:$0xff] }
 0x57a   : > { %34330 = vmatprep.mubr.msk.f32.mxu1 %vm398_vm0, %v6693_v32  ;;  %36332 = vmatprep.mubr.msk.f32.mxu0 %vm398_vm0, %v21045_v36  ;;  %v21074_v28 = vld [vmem:[%s39948_s10 + $0x786] sm:$0xff]  ;;  %v21075_v36 = vld [vmem:[%s39948_s10 + $0x78e] sm:$0xff] }
 0x57b   : > { %v6723_v32 = vld [vmem:[%s39948_s10 + $0x58c] sm:$0xff] }
 0x57d   : > { %34331 = vmatmul.mubr.msk.f32.gmra.mrb[68].mxu1 %vm398_vm0, %v6694_v40  ;;  %36333 = vmatmul.mubr.msk.f32.gmra.mrb[16].mxu0 %vm398_vm0, %v21046_v33  ;;  %v6724_v40 = vld [vmem:[%s39948_s10 + $0x594] sm:$0xff] }
 0x57e   : > { %34333 = vmatprep.mubr.msk.f32.mxu1 %vm398_vm0, %v6695_v7  ;;  %36335 = vmatprep.mubr.msk.f32.mxu0 %vm398_vm0, %v21047_v48  ;;  %v21076_v33 = vld [vmem:[%s39948_s10 + $0x796] sm:$0xff]  ;;  %v21077_v48 = vld [vmem:[%s39948_s10 + $0x79e] sm:$0xff] }
 0x57f   : > { %v6725_v7 = vld [vmem:[%s39948_s10 + $0x59c] sm:$0xff] }
 0x581   : > { %34334 = vmatmul.mubr.msk.f32.gmra.mrb[70].mxu1 %vm398_vm0, %v6696_v41  ;;  %36336 = vmatmul.mubr.msk.f32.gmra.mrb[18].mxu0 %vm398_vm0, %v21048_v56  ;;  %v6726_v41 = vld [vmem:[%s39948_s10 + $0x5a4] sm:$0xff] }
 0x582   : > { %34336 = vmatprep.mubr.msk.f32.mxu1 %vm398_vm0, %v6697_v60  ;;  %36338 = vmatprep.mubr.msk.f32.mxu0 %vm398_vm0, %v21049_v10  ;;  %v21078_v56 = vld [vmem:[%s39948_s10 + $0x7a6] sm:$0xff]  ;;  %v21079_v10 = vld [vmem:[%s39948_s10 + $0x7ae] sm:$0xff] }
 0x583   : > { %v6727_v60 = vld [vmem:[%s39948_s10 + $0x5ac] sm:$0xff] }
 0x585   : > { %34337 = vmatmul.mubr.msk.f32.gmra.mrb[72].mxu1 %vm398_vm0, %v6698_v16  ;;  %36339 = vmatmul.mubr.msk.f32.gmra.mrb[20].mxu0 %vm398_vm0, %v21050_v26  ;;  %v6728_v16 = vld [vmem:[%s39948_s10 + $0x5b4] sm:$0xff] }
 0x586   : > { %34339 = vmatprep.mubr.msk.f32.mxu1 %vm398_vm0, %v6699_v51  ;;  %36341 = vmatprep.mubr.msk.f32.mxu0 %vm398_vm0, %v21051_v43  ;;  %v21080_v26 = vld [vmem:[%s39948_s10 + $0x7b6] sm:$0xff]  ;;  %v7733_v51 = vld [vmem:[%s39948_s10 + $0x282] sm:$0xff] }
 0x587   : > { %v21081_v43 = vld [vmem:[%s39948_s10 + $0x7be] sm:$0xff] }
 0x589   : > { %34340 = vmatmul.mubr.msk.f32.gmra.mrb[74].mxu1 %vm398_vm0, %v6700_v38  ;;  %36342 = vmatmul.mubr.msk.f32.gmra.mrb[22].mxu0 %vm398_vm0, %v21052_v50  ;;  %v7734_v38 = vld [vmem:[%s39948_s10 + $0x28a] sm:$0xff] }
 0x58a   : > { %34342 = vmatprep.mubr.msk.f32.mxu1 %vm398_vm0, %v6701_v62  ;;  %36344 = vmatprep.mubr.msk.f32.mxu0 %vm398_vm0, %v21053_v1  ;;  %v21082_v50 = vld [vmem:[%s39948_s10 + $0x7c6] sm:$0xff]  ;;  %v7735_v62 = vld [vmem:[%s39948_s10 + $0x292] sm:$0xff] }
 0x58b   : > { %v21083_v1 = vld [vmem:[%s39948_s10 + $0x7ce] sm:$0xff] }
 0x58d   : > { %34343 = vmatmul.mubr.msk.f32.gmra.mrb[76].mxu1 %vm398_vm0, %v6702_v20  ;;  %36345 = vmatmul.mubr.msk.f32.gmra.mrb[24].mxu0 %vm398_vm0, %v21054_v0  ;;  %v7736_v20 = vld [vmem:[%s39948_s10 + $0x29a] sm:$0xff] }
 0x58e   : > { %34345 = vmatprep.mubr.msk.f32.mxu1 %vm398_vm0, %v6703_v2  ;;  %36347 = vmatprep.mubr.msk.f32.mxu0 %vm398_vm0, %v21055_v5  ;;  %v21084_v0 = vld [vmem:[%s39948_s10 + $0x7d6] sm:$0xff]  ;;  %v7737_v2 = vld [vmem:[%s39948_s10 + $0x2a2] sm:$0xff] }
 0x58f   : > { %v21085_v5 = vld [vmem:[%s39948_s10 + $0x7de] sm:$0xff] }
 0x591   : > { %34346 = vmatmul.mubr.msk.f32.gmra.mrb[78].mxu1 %vm398_vm0, %v6704_v6  ;;  %36348 = vmatmul.mubr.msk.f32.gmra.mrb[26].mxu0 %vm398_vm0, %v21056_v9  ;;  %v21086_v6 = vld [vmem:[%s39948_s10 + $0x7e6] sm:$0xff]  ;;  %v7739_v9 = vld [vmem:[%s39948_s10 + $0x2b2] sm:$0xff] }
 0x592   : > { %34348 = vmatprep.mubr.msk.f32.mxu1 %vm398_vm0, %v6705_v13  ;;  %36350 = vmatprep.mubr.msk.f32.mxu0 %vm398_vm0, %v21057_v54  ;;  %v21087_v13 = vld [vmem:[%s39948_s10 + $0x7ee] sm:$0xff]  ;;  %v7740_v54 = vld [vmem:[%s39948_s10 + $0x2ba] sm:$0xff] }
 0x595   : > { %34349 = vmatmul.mubr.msk.f32.gmra.mrb[80].mxu1 %vm398_vm0, %v6706_v14  ;;  %36351 = vmatmul.mubr.msk.f32.gmra.mrb[28].mxu0 %vm398_vm0, %v21058_v4  ;;  %v21088_v14 = vld [vmem:[%s39948_s10 + $0x7f6] sm:$0xff]  ;;  %v7741_v4 = vld [vmem:[%s39948_s10 + $0x2c2] sm:$0xff] }
 0x596   : > { %34351 = vmatprep.mubr.msk.f32.mxu1 %vm398_vm0, %v6707_v19  ;;  %36353 = vmatprep.mubr.msk.f32.mxu0 %vm398_vm0, %v21059_v22  ;;  %v21089_v19 = vld [vmem:[%s39948_s10 + $0x7fe] sm:$0xff]  ;;  %v7742_v22 = vld [vmem:[%s39948_s10 + $0x2ca] sm:$0xff] }
 0x599   : > { %34352 = vmatmul.mubr.msk.f32.gmra.mrb[82].mxu1 %vm398_vm0, %v6708_v25  ;;  %36354 = vmatmul.mubr.msk.f32.gmra.mrb[30].mxu0 %vm398_vm0, %v21060_v27  ;;  %v21090_v25 = vld [vmem:[%s39948_s10 + $0x806] sm:$0xff]  ;;  %v7743_v27 = vld [vmem:[%s39948_s10 + $0x2d2] sm:$0xff] }
 0x59a   : > { %34354 = vmatprep.mubr.msk.f32.mxu1 %vm398_vm0, %v6709_v30  ;;  %36356 = vmatprep.mubr.msk.f32.mxu0 %vm398_vm0, %v21061_v31  ;;  %v21091_v30 = vld [vmem:[%s39948_s10 + $0x80e] sm:$0xff]  ;;  %v7744_v31 = vld [vmem:[%s39948_s10 + $0x2da] sm:$0xff] }
 0x59d   : > { %34355 = vmatmul.mubr.msk.f32.gmra.mrb[84].mxu1 %vm398_vm0, %v6710_v34  ;;  %36357 = vmatmul.mubr.msk.f32.gmra.mrb[32].mxu0 %vm398_vm0, %v21062_v12  ;;  %v21092_v34 = vld [vmem:[%s39948_s10 + $0x816] sm:$0xff]  ;;  %v7745_v12 = vld [vmem:[%s39948_s10 + $0x2e2] sm:$0xff] }
 0x59e   : > { %34357 = vmatprep.mubr.msk.f32.mxu1 %vm398_vm0, %v6711_v17  ;;  %36359 = vmatprep.mubr.msk.f32.mxu0 %vm398_vm0, %v21063_v35  ;;  %v21093_v17 = vld [vmem:[%s39948_s10 + $0x81e] sm:$0xff]  ;;  %v7746_v35 = vld [vmem:[%s39948_s10 + $0x2ea] sm:$0xff] }
 0x5a1   : > { %34358 = vmatmul.mubr.msk.f32.gmra.mrb[86].mxu1 %vm398_vm0, %v6712_v46  ;;  %36360 = vmatmul.mubr.msk.f32.gmra.mrb[34].mxu0 %vm398_vm0, %v21064_v37  ;;  %v21094_v46 = vld [vmem:[%s39948_s10 + $0x826] sm:$0xff]  ;;  %v7747_v37 = vld [vmem:[%s39948_s10 + $0x2f2] sm:$0xff] }
 0x5a2   : > { %34360 = vmatprep.mubr.msk.f32.mxu1 %vm398_vm0, %v6713_v58  ;;  %36362 = vmatprep.mubr.msk.f32.mxu0 %vm398_vm0, %v21065_v29  ;;  %v21095_v58 = vld [vmem:[%s39948_s10 + $0x82e] sm:$0xff]  ;;  %v7748_v29 = vld [vmem:[%s39948_s10 + $0x2fa] sm:$0xff] }
 0x5a5   : > { %34361 = vmatmul.mubr.msk.f32.gmra.mrb[88].mxu1 %vm398_vm0, %v6714_v39  ;;  %36363 = vmatmul.mubr.msk.f32.gmra.mrb[36].mxu0 %vm398_vm0, %v21066_v42  ;;  %v21096_v39 = vld [vmem:[%s39948_s10 + $0x836] sm:$0xff]  ;;  %v7749_v42 = vld [vmem:[%s39948_s10 + $0x302] sm:$0xff] }
 0x5a6   : > { %34363 = vmatprep.mubr.msk.f32.mxu1 %vm398_vm0, %v6715_v44  ;;  %36365 = vmatprep.mubr.msk.f32.mxu0 %vm398_vm0, %v21067_v45  ;;  %v21097_v44 = vld [vmem:[%s39948_s10 + $0x83e] sm:$0xff]  ;;  %v7750_v45 = vld [vmem:[%s39948_s10 + $0x30a] sm:$0xff] }
 0x5a9   : > { %34364 = vmatmul.mubr.msk.f32.gmra.mrb[90].mxu1 %vm398_vm0, %v6716_v47  ;;  %36366 = vmatmul.mubr.msk.f32.gmra.mrb[38].mxu0 %vm398_vm0, %v21068_v49  ;;  %v21098_v47 = vld [vmem:[%s39948_s10 + $0x846] sm:$0xff]  ;;  %v7751_v49 = vld [vmem:[%s39948_s10 + $0x312] sm:$0xff] }
 0x5aa   : > { %34366 = vmatprep.mubr.msk.f32.mxu1 %vm398_vm0, %v6717_v52  ;;  %36368 = vmatprep.mubr.msk.f32.mxu0 %vm398_vm0, %v21069_v53  ;;  %v21099_v52 = vld [vmem:[%s39948_s10 + $0x84e] sm:$0xff]  ;;  %v7752_v53 = vld [vmem:[%s39948_s10 + $0x31a] sm:$0xff] }
 0x5ad   : > { %34367 = vmatmul.mubr.msk.f32.gmra.mrb[92].mxu1 %vm398_vm0, %v6718_v55  ;;  %36369 = vmatmul.mubr.msk.f32.gmra.mrb[40].mxu0 %vm398_vm0, %v21070_v57  ;;  %v21100_v55 = vld [vmem:[%s39948_s10 + $0x856] sm:$0xff]  ;;  %v7753_v57 = vld [vmem:[%s39948_s10 + $0x322] sm:$0xff] }
 0x5ae   : > { %34369 = vmatprep.mubr.msk.f32.mxu1 %vm398_vm0, %v6719_v3  ;;  %36371 = vmatprep.mubr.msk.f32.mxu0 %vm398_vm0, %v21071_v8  ;;  %v21102_v3 = vld [vmem:[%s39948_s10 + $0x866] sm:$0xff]  ;;  %v7755_v8 = vld [vmem:[%s39948_s10 + $0x332] sm:$0xff] }
 0x5b1   : > { %34370 = vmatmul.mubr.msk.f32.gmra.mrb[94].mxu1 %vm398_vm0, %v6720_v11  ;;  %36372 = vmatmul.mubr.msk.f32.gmra.mrb[42].mxu0 %vm398_vm0, %v21072_v15  ;;  %v21103_v11 = vld [vmem:[%s39948_s10 + $0x86e] sm:$0xff]  ;;  %v7756_v15 = vld [vmem:[%s39948_s10 + $0x33a] sm:$0xff] }
 0x5b2   : > { %34372 = vmatprep.mubr.msk.f32.mxu1 %vm398_vm0, %v6721_v18  ;;  %36374 = vmatprep.mubr.msk.f32.mxu0 %vm398_vm0, %v21073_v24  ;;  %v21104_v18 = vld [vmem:[%s39948_s10 + $0x876] sm:$0xff]  ;;  %v7757_v24 = vld [vmem:[%s39948_s10 + $0x342] sm:$0xff] }
 0x5b5   : > { %34373 = vmatmul.mubr.msk.f32.gmra.mrb[96].mxu1 %vm398_vm0, %v6722_v59  ;;  %36375 = vmatmul.mubr.msk.f32.gmra.mrb[44].mxu0 %vm398_vm0, %v21074_v28  ;;  %v21105_v59 = vld [vmem:[%s39948_s10 + $0x87e] sm:$0xff]  ;;  %v7758_v28 = vld [vmem:[%s39948_s10 + $0x34a] sm:$0xff] }
 0x5b6   : > { %34375 = vmatprep.mubr.msk.f32.mxu1 %vm398_vm0, %v6723_v32  ;;  %36377 = vmatprep.mubr.msk.f32.mxu0 %vm398_vm0, %v21075_v36  ;;  %v21106_v32 = vld [vmem:[%s39948_s10 + $0x886] sm:$0xff]  ;;  %v7759_v36 = vld [vmem:[%s39948_s10 + $0x352] sm:$0xff] }
 0x5b9   : > { %34376 = vmatmul.mubr.msk.f32.gmra.mrb[98].mxu1 %vm398_vm0, %v6724_v40  ;;  %36378 = vmatmul.mubr.msk.f32.gmra.mrb[46].mxu0 %vm398_vm0, %v21076_v33  ;;  %v21107_v40 = vld [vmem:[%s39948_s10 + $0x88e] sm:$0xff]  ;;  %v7760_v33 = vld [vmem:[%s39948_s10 + $0x35a] sm:$0xff] }
 0x5ba   : > { %34378 = vmatprep.mubr.msk.f32.mxu1 %vm398_vm0, %v6725_v7  ;;  %36380 = vmatprep.mubr.msk.f32.mxu0 %vm398_vm0, %v21077_v48  ;;  %v21108_v7 = vld [vmem:[%s39948_s10 + $0x896] sm:$0xff]  ;;  %v7761_v48 = vld [vmem:[%s39948_s10 + $0x362] sm:$0xff] }
 0x5bd   : > { %34379 = vmatmul.mubr.msk.f32.gmra.mrb[100].mxu1 %vm398_vm0, %v6726_v41  ;;  %36381 = vmatmul.mubr.msk.f32.gmra.mrb[48].mxu0 %vm398_vm0, %v21078_v56  ;;  %v21109_v41 = vld [vmem:[%s39948_s10 + $0x89e] sm:$0xff]  ;;  %v7762_v56 = vld [vmem:[%s39948_s10 + $0x36a] sm:$0xff] }
 0x5be   : > { %34381 = vmatprep.mubr.msk.f32.mxu1 %vm398_vm0, %v6727_v60  ;;  %36383 = vmatprep.mubr.msk.f32.mxu0 %vm398_vm0, %v21079_v10  ;;  %v21110_v60 = vld [vmem:[%s39948_s10 + $0x8a6] sm:$0xff]  ;;  %v7763_v10 = vld [vmem:[%s39948_s10 + $0x372] sm:$0xff] }
 0x5c1   : > { %34382 = vmatmul.mubr.msk.f32.gmra.mrb[102].mxu1 %vm398_vm0, %v6728_v16  ;;  %36384 = vmatmul.mubr.msk.f32.gmra.mrb[50].mxu0 %vm398_vm0, %v21080_v26  ;;  %v21111_v16 = vld [vmem:[%s39948_s10 + $0x8ae] sm:$0xff]  ;;  %v7764_v26 = vld [vmem:[%s39948_s10 + $0x37a] sm:$0xff] }
 0x5c2   : > { %34388 = vmatprep.mubr.msk.f32.mxu1 %vm398_vm0, %v7733_v51  ;;  %36386 = vmatprep.mubr.msk.f32.mxu0 %vm398_vm0, %v21081_v43  ;;  %v21112_v51 = vld [vmem:[%s39948_s10 + $0x8b6] sm:$0xff]  ;;  %v7765_v43 = vld [vmem:[%s39948_s10 + $0x382] sm:$0xff] }
 0x5c5   : > { %34389 = vmatmul.mubr.msk.f32.vlgmr.msra.gmra.mrb[0].mxu1 %vm398_vm0, %v7734_v38  ;;  %36387 = vmatmul.mubr.msk.f32.gmra.mrb[52].mxu0 %vm398_vm0, %v21082_v50  ;;  %v21113_v38 = vld [vmem:[%s39948_s10 + $0x8be] sm:$0xff]  ;;  %v7766_v50 = vld [vmem:[%s39948_s10 + $0x38a] sm:$0xff] }
 0x5c6   : > { %37299 = vmatpush3.bf16.msra.mxu1 %v42947_v23  ;;  %34391 = vmatprep.mubr.msk.f32.mxu1 %vm398_vm0, %v7735_v62  ;;  %v7738_v23 = vld [vmem:[%s39948_s10 + $0x2aa] sm:$0xff] }
 0x5c7   : > { %36389 = vmatprep.mubr.msk.f32.mxu0 %vm398_vm0, %v21083_v1  ;;  %v21114_v62 = vld [vmem:[%s39948_s10 + $0x8c6] sm:$0xff]  ;;  %v7767_v1 = vld [vmem:[%s39948_s10 + $0x392] sm:$0xff] }
 0x5c9   : > { %34392 = vmatmul.mubr.msk.f32.gmra.mrb[2].mxu1 %vm398_vm0, %v7736_v20  ;;  %36390 = vmatmul.mubr.msk.f32.gmra.mrb[54].mxu0 %vm398_vm0, %v21084_v0  ;;  %v21115_v20 = vld [vmem:[%s39948_s10 + $0x8ce] sm:$0xff]  ;;  %v7768_v0 = vld [vmem:[%s39948_s10 + $0x39a] sm:$0xff] }
 0x5ca   : > { %34394 = vmatprep.mubr.msk.f32.mxu1 %vm398_vm0, %v7737_v2  ;;  %36392 = vmatprep.mubr.msk.f32.mxu0 %vm398_vm0, %v21085_v5  ;;  %v21116_v2 = vld [vmem:[%s39948_s10 + $0x8d6] sm:$0xff]  ;;  %v7769_v5 = vld [vmem:[%s39948_s10 + $0x3a2] sm:$0xff] }
 0x5cd   : > { %34395 = vmatmul.mubr.msk.f32.gmra.mrb[4].mxu1 %vm398_vm0, %v7738_v23  ;;  %36393 = vmatmul.mubr.msk.f32.gmra.mrb[56].mxu0 %vm398_vm0, %v21086_v6  ;;  %v21117_v23 = vld [vmem:[%s39948_s10 + $0x8de] sm:$0xff]  ;;  %v7770_v6 = vld [vmem:[%s39948_s10 + $0x3aa] sm:$0xff] }
 0x5ce   : > { %34397 = vmatprep.mubr.msk.f32.mxu1 %vm398_vm0, %v7739_v9  ;;  %36395 = vmatprep.mubr.msk.f32.mxu0 %vm398_vm0, %v21087_v13  ;;  %v21118_v9 = vld [vmem:[%s39948_s10 + $0x8e6] sm:$0xff]  ;;  %v7771_v13 = vld [vmem:[%s39948_s10 + $0x3b2] sm:$0xff] }
 0x5d1   : > { %34398 = vmatmul.mubr.msk.f32.gmra.mrb[6].mxu1 %vm398_vm0, %v7740_v54  ;;  %36396 = vmatmul.mubr.msk.f32.gmra.mrb[58].mxu0 %vm398_vm0, %v21088_v14  ;;  %v21119_v54 = vld [vmem:[%s39948_s10 + $0x8ee] sm:$0xff]  ;;  %v7772_v14 = vld [vmem:[%s39948_s10 + $0x3ba] sm:$0xff] }
 0x5d2   : > { %34400 = vmatprep.mubr.msk.f32.mxu1 %vm398_vm0, %v7741_v4  ;;  %36398 = vmatprep.mubr.msk.f32.mxu0 %vm398_vm0, %v21089_v19  ;;  %v21120_v4 = vld [vmem:[%s39948_s10 + $0x8f6] sm:$0xff]  ;;  %v7773_v19 = vld [vmem:[%s39948_s10 + $0x3c2] sm:$0xff] }
 0x5d5   : > { %34401 = vmatmul.mubr.msk.f32.gmra.mrb[8].mxu1 %vm398_vm0, %v7742_v22  ;;  %36399 = vmatmul.mubr.msk.f32.gmra.mrb[60].mxu0 %vm398_vm0, %v21090_v25  ;;  %v21121_v22 = vld [vmem:[%s39948_s10 + $0x8fe] sm:$0xff]  ;;  %v7774_v25 = vld [vmem:[%s39948_s10 + $0x3ca] sm:$0xff] }
 0x5d6   : > { %34403 = vmatprep.mubr.msk.f32.mxu1 %vm398_vm0, %v7743_v27  ;;  %36401 = vmatprep.mubr.msk.f32.mxu0 %vm398_vm0, %v21091_v30  ;;  %v21122_v27 = vld [vmem:[%s39948_s10 + $0x906] sm:$0xff]  ;;  %v28915_v30 = vld [vmem:[%s46145_s2 + $0x90] sm:$0xff] }
 0x5d9   : > { %34404 = vmatmul.mubr.msk.f32.gmra.mrb[10].mxu1 %vm398_vm0, %v7744_v31  ;;  %36402 = vmatmul.mubr.msk.f32.gmra.mrb[62].mxu0 %vm398_vm0, %v21092_v34  ;;  %v28916_v31 = vld [vmem:[%s46145_s2 + $0x98] sm:$0xff] }
 0x5da   : > { %34406 = vmatprep.mubr.msk.f32.mxu1 %vm398_vm0, %v7745_v12  ;;  %36404 = vmatprep.mubr.msk.f32.mxu0 %vm398_vm0, %v21093_v17  ;;  %v7775_v34 = vld [vmem:[%s39948_s10 + $0x3d2] sm:$0xff]  ;;  %v43383_v17 = vpack.c.bf16 %v28916_v31, %v28915_v30  ;;  %v22157_v30 = vld [vmem:[%s39948_s10 + $0x6ca] sm:$0xff] }
 0x5db   : > { %v21123_v12 = vld [vmem:[%s39948_s10 + $0x90e] sm:$0xff] }
 0x5dc   : > { %37301 = vmatprep.subr.bf16.mxu1 %v43383_v17  ;;  %v7806_v31 = vld [vmem:[%s39948_s10 + $0x4ca] sm:$0xff] }
 0x5dd   : > { %34407 = vmatmul.mubr.msk.f32.gmra.mrb[12].mxu1 %vm398_vm0, %v7746_v35  ;;  %36405 = vmatmul.mubr.msk.f32.gmra.mrb[64].mxu0 %vm398_vm0, %v21094_v46  ;;  %v7776_v35 = vld [vmem:[%s39948_s10 + $0x3da] sm:$0xff] }
 0x5de   : > { %34409 = vmatprep.mubr.msk.f32.mxu1 %vm398_vm0, %v7747_v37  ;;  %36407 = vmatprep.mubr.msk.f32.mxu0 %vm398_vm0, %v21095_v58  ;;  %v21124_v46 = vld [vmem:[%s39948_s10 + $0x916] sm:$0xff]  ;;  %v7777_v37 = vld [vmem:[%s39948_s10 + $0x3e2] sm:$0xff] }
 0x5df   : > { %v21125_v58 = vld [vmem:[%s39948_s10 + $0x91e] sm:$0xff] }
 0x5e1   : > { %34410 = vmatmul.mubr.msk.f32.gmra.mrb[14].mxu1 %vm398_vm0, %v7748_v29  ;;  %36408 = vmatmul.mubr.msk.f32.gmra.mrb[66].mxu0 %vm398_vm0, %v21096_v39  ;;  %v7778_v29 = vld [vmem:[%s39948_s10 + $0x3ea] sm:$0xff] }
 0x5e2   : > { %34412 = vmatprep.mubr.msk.f32.mxu1 %vm398_vm0, %v7749_v42  ;;  %36410 = vmatprep.mubr.msk.f32.mxu0 %vm398_vm0, %v21097_v44  ;;  %v21126_v39 = vld [vmem:[%s39948_s10 + $0x926] sm:$0xff]  ;;  %v7779_v42 = vld [vmem:[%s39948_s10 + $0x3f2] sm:$0xff] }
 0x5e3   : > { %v21127_v44 = vld [vmem:[%s39948_s10 + $0x92e] sm:$0xff] }
 0x5e5   : > { %34413 = vmatmul.mubr.msk.f32.gmra.mrb[16].mxu1 %vm398_vm0, %v7750_v45  ;;  %36411 = vmatmul.mubr.msk.f32.gmra.mrb[68].mxu0 %vm398_vm0, %v21098_v47  ;;  %v7780_v45 = vld [vmem:[%s39948_s10 + $0x3fa] sm:$0xff] }
 0x5e6   : > { %34415 = vmatprep.mubr.msk.f32.mxu1 %vm398_vm0, %v7751_v49  ;;  %36413 = vmatprep.mubr.msk.f32.mxu0 %vm398_vm0, %v21099_v52  ;;  %v21128_v47 = vld [vmem:[%s39948_s10 + $0x936] sm:$0xff]  ;;  %v7781_v49 = vld [vmem:[%s39948_s10 + $0x402] sm:$0xff] }
 0x5e7   : > { %v21129_v52 = vld [vmem:[%s39948_s10 + $0x93e] sm:$0xff] }
 0x5e9   : > { %34416 = vmatmul.mubr.msk.f32.gmra.mrb[18].mxu1 %vm398_vm0, %v7752_v53  ;;  %36414 = vmatmul.mubr.msk.f32.gmra.mrb[70].mxu0 %vm398_vm0, %v21100_v55  ;;  %v7782_v53 = vld [vmem:[%s39948_s10 + $0x40a] sm:$0xff] }
 0x5ea   : > { %34418 = vmatprep.mubr.msk.f32.mxu1 %vm398_vm0, %v7753_v57  ;;  %36416 = vmatprep.mubr.msk.f32.mxu0 %vm398_vm0, %v21101_v61  ;;  %v21130_v55 = vld [vmem:[%s39948_s10 + $0x946] sm:$0xff]  ;;  %v7783_v57 = vld [vmem:[%s39948_s10 + $0x412] sm:$0xff] }
 0x5eb   : > { %v21131_v61 = vld [vmem:[%s39948_s10 + $0x94e] sm:$0xff] }
 0x5ed   : > { %34419 = vmatmul.mubr.msk.f32.gmra.mrb[20].mxu1 %vm398_vm0, %v7754_v63  ;;  %36417 = vmatmul.mubr.msk.f32.gmra.mrb[72].mxu0 %vm398_vm0, %v21102_v3  ;;  %v7784_v63 = vld [vmem:[%s39948_s10 + $0x41a] sm:$0xff] }
 0x5ee   : > { %34421 = vmatprep.mubr.msk.f32.mxu1 %vm398_vm0, %v7755_v8  ;;  %36419 = vmatprep.mubr.msk.f32.mxu0 %vm398_vm0, %v21103_v11  ;;  %v21132_v3 = vld [vmem:[%s39948_s10 + $0x956] sm:$0xff]  ;;  %v7785_v8 = vld [vmem:[%s39948_s10 + $0x422] sm:$0xff]  ;;  %v22137_v11 = vld [vmem:[%s39948_s10 + $0x62a] sm:$0xff] }
 0x5f1   : > { %34422 = vmatmul.mubr.msk.f32.gmra.mrb[22].mxu1 %vm398_vm0, %v7756_v15  ;;  %36420 = vmatmul.mubr.msk.f32.gmra.mrb[74].mxu0 %vm398_vm0, %v21104_v18  ;;  %v7786_v15 = vld [vmem:[%s39948_s10 + $0x42a] sm:$0xff]  ;;  %v22138_v18 = vld [vmem:[%s39948_s10 + $0x632] sm:$0xff] }
 0x5f2   : > { %34424 = vmatprep.mubr.msk.f32.mxu1 %vm398_vm0, %v7757_v24  ;;  %36422 = vmatprep.mubr.msk.f32.mxu0 %vm398_vm0, %v21105_v59  ;;  %v7787_v24 = vld [vmem:[%s39948_s10 + $0x432] sm:$0xff]  ;;  %v22139_v59 = vld [vmem:[%s39948_s10 + $0x63a] sm:$0xff] }
 0x5f5   : > { %34425 = vmatmul.mubr.msk.f32.gmra.mrb[24].mxu1 %vm398_vm0, %v7758_v28  ;;  %36423 = vmatmul.mubr.msk.f32.gmra.mrb[76].mxu0 %vm398_vm0, %v21106_v32  ;;  %v7788_v28 = vld [vmem:[%s39948_s10 + $0x43a] sm:$0xff]  ;;  %v22140_v32 = vld [vmem:[%s39948_s10 + $0x642] sm:$0xff] }
 0x5f6   : > { %34427 = vmatprep.mubr.msk.f32.mxu1 %vm398_vm0, %v7759_v36  ;;  %36425 = vmatprep.mubr.msk.f32.mxu0 %vm398_vm0, %v21107_v40  ;;  %v7789_v36 = vld [vmem:[%s39948_s10 + $0x442] sm:$0xff]  ;;  %v22141_v40 = vld [vmem:[%s39948_s10 + $0x64a] sm:$0xff] }
 0x5f9   : > { %34428 = vmatmul.mubr.msk.f32.gmra.mrb[26].mxu1 %vm398_vm0, %v7760_v33  ;;  %36426 = vmatmul.mubr.msk.f32.gmra.mrb[78].mxu0 %vm398_vm0, %v21108_v7  ;;  %v22142_v33 = vld [vmem:[%s39948_s10 + $0x652] sm:$0xff] }
 0x5fa   : > { %34430 = vmatprep.mubr.msk.f32.mxu1 %vm398_vm0, %v7761_v48  ;;  %36428 = vmatprep.mubr.msk.f32.mxu0 %vm398_vm0, %v21109_v41  ;;  %v7791_v7 = vld [vmem:[%s39948_s10 + $0x452] sm:$0xff]  ;;  %v22143_v48 = vld [vmem:[%s39948_s10 + $0x65a] sm:$0xff] }
 0x5fb   : > { %v7792_v41 = vld [vmem:[%s39948_s10 + $0x45a] sm:$0xff] }
 0x5fd   : > { %34431 = vmatmul.mubr.msk.f32.gmra.mrb[28].mxu1 %vm398_vm0, %v7762_v56  ;;  %36429 = vmatmul.mubr.msk.f32.gmra.mrb[80].mxu0 %vm398_vm0, %v21110_v60  ;;  %v22144_v56 = vld [vmem:[%s39948_s10 + $0x662] sm:$0xff] }
 0x5fe   : > { %34433 = vmatprep.mubr.msk.f32.mxu1 %vm398_vm0, %v7763_v10  ;;  %36431 = vmatprep.mubr.msk.f32.mxu0 %vm398_vm0, %v21111_v16  ;;  %v7793_v60 = vld [vmem:[%s39948_s10 + $0x462] sm:$0xff]  ;;  %v22145_v10 = vld [vmem:[%s39948_s10 + $0x66a] sm:$0xff] }
 0x5ff   : > { %v7794_v16 = vld [vmem:[%s39948_s10 + $0x46a] sm:$0xff] }
 0x601   : > { %34434 = vmatmul.mubr.msk.f32.gmra.mrb[30].mxu1 %vm398_vm0, %v7764_v26  ;;  %36432 = vmatmul.mubr.msk.f32.gmra.mrb[82].mxu0 %vm398_vm0, %v21112_v51  ;;  %v22146_v26 = vld [vmem:[%s39948_s10 + $0x672] sm:$0xff] }
 0x602   : > { %34436 = vmatprep.mubr.msk.f32.mxu1 %vm398_vm0, %v7765_v43  ;;  %36434 = vmatprep.mubr.msk.f32.mxu0 %vm398_vm0, %v21113_v38  ;;  %v7795_v51 = vld [vmem:[%s39948_s10 + $0x472] sm:$0xff]  ;;  %v22147_v43 = vld [vmem:[%s39948_s10 + $0x67a] sm:$0xff] }
 0x603   : > { %v7796_v38 = vld [vmem:[%s39948_s10 + $0x47a] sm:$0xff] }
 0x605   : > { %34437 = vmatmul.mubr.msk.f32.gmra.mrb[32].mxu1 %vm398_vm0, %v7766_v50  ;;  %36435 = vmatmul.mubr.msk.f32.gmra.mrb[84].mxu0 %vm398_vm0, %v21114_v62  ;;  %v22148_v50 = vld [vmem:[%s39948_s10 + $0x682] sm:$0xff] }
 0x606   : > { %34439 = vmatprep.mubr.msk.f32.mxu1 %vm398_vm0, %v7767_v1  ;;  %36437 = vmatprep.mubr.msk.f32.mxu0 %vm398_vm0, %v21115_v20  ;;  %v7797_v62 = vld [vmem:[%s39948_s10 + $0x482] sm:$0xff]  ;;  %v22149_v1 = vld [vmem:[%s39948_s10 + $0x68a] sm:$0xff] }
 0x607   : > { %v7798_v20 = vld [vmem:[%s39948_s10 + $0x48a] sm:$0xff] }
 0x609   : > { %34440 = vmatmul.mubr.msk.f32.gmra.mrb[34].mxu1 %vm398_vm0, %v7768_v0  ;;  %36438 = vmatmul.mubr.msk.f32.gmra.mrb[86].mxu0 %vm398_vm0, %v21116_v2  ;;  %v22150_v0 = vld [vmem:[%s39948_s10 + $0x692] sm:$0xff] }
 0x60a   : > { %34442 = vmatprep.mubr.msk.f32.mxu1 %vm398_vm0, %v7769_v5  ;;  %36440 = vmatprep.mubr.msk.f32.mxu0 %vm398_vm0, %v21117_v23  ;;  %v7799_v2 = vld [vmem:[%s39948_s10 + $0x492] sm:$0xff]  ;;  %v22151_v5 = vld [vmem:[%s39948_s10 + $0x69a] sm:$0xff] }
 0x60b   : > { %v7800_v23 = vld [vmem:[%s39948_s10 + $0x49a] sm:$0xff] }
 0x60d   : > { %34443 = vmatmul.mubr.msk.f32.gmra.mrb[36].mxu1 %vm398_vm0, %v7770_v6  ;;  %36441 = vmatmul.mubr.msk.f32.gmra.mrb[88].mxu0 %vm398_vm0, %v21118_v9  ;;  %v22152_v6 = vld [vmem:[%s39948_s10 + $0x6a2] sm:$0xff] }
 0x60e   : > { %34445 = vmatprep.mubr.msk.f32.mxu1 %vm398_vm0, %v7771_v13  ;;  %36443 = vmatprep.mubr.msk.f32.mxu0 %vm398_vm0, %v21119_v54  ;;  %v7801_v9 = vld [vmem:[%s39948_s10 + $0x4a2] sm:$0xff]  ;;  %v22153_v13 = vld [vmem:[%s39948_s10 + $0x6aa] sm:$0xff] }
 0x60f   : > { %v7802_v54 = vld [vmem:[%s39948_s10 + $0x4aa] sm:$0xff] }
 0x611   : > { %34446 = vmatmul.mubr.msk.f32.gmra.mrb[38].mxu1 %vm398_vm0, %v7772_v14  ;;  %36444 = vmatmul.mubr.msk.f32.gmra.mrb[90].mxu0 %vm398_vm0, %v21120_v4  ;;  %v22154_v14 = vld [vmem:[%s39948_s10 + $0x6b2] sm:$0xff] }
 0x612   : > { %34448 = vmatprep.mubr.msk.f32.mxu1 %vm398_vm0, %v7773_v19  ;;  %36446 = vmatprep.mubr.msk.f32.mxu0 %vm398_vm0, %v21121_v22  ;;  %v7803_v4 = vld [vmem:[%s39948_s10 + $0x4b2] sm:$0xff]  ;;  %v22155_v19 = vld [vmem:[%s39948_s10 + $0x6ba] sm:$0xff] }
 0x613   : > { %v7804_v22 = vld [vmem:[%s39948_s10 + $0x4ba] sm:$0xff] }
 0x615   : > { %34449 = vmatmul.mubr.msk.f32.gmra.mrb[40].mxu1 %vm398_vm0, %v7774_v25  ;;  %36447 = vmatmul.mubr.msk.f32.gmra.mrb[92].mxu0 %vm398_vm0, %v21122_v27  ;;  %v22156_v25 = vld [vmem:[%s39948_s10 + $0x6c2] sm:$0xff] }
 0x616   : > { %34451 = vmatprep.mubr.msk.f32.mxu1 %vm398_vm0, %v7775_v34  ;;  %36449 = vmatprep.mubr.msk.f32.mxu0 %vm398_vm0, %v21123_v12  ;;  %v7805_v27 = vld [vmem:[%s39948_s10 + $0x4c2] sm:$0xff]  ;;  %v22158_v34 = vld [vmem:[%s39948_s10 + $0x6d2] sm:$0xff] }
 0x617   : > { %v7807_v12 = vld [vmem:[%s39948_s10 + $0x4d2] sm:$0xff] }
 0x619   : > { %34452 = vmatmul.mubr.msk.f32.gmra.mrb[42].mxu1 %vm398_vm0, %v7776_v35  ;;  %36450 = vmatmul.mubr.msk.f32.gmra.mrb[94].mxu0 %vm398_vm0, %v21124_v46  ;;  %v22159_v35 = vld [vmem:[%s39948_s10 + $0x6da] sm:$0xff] }
 0x61a   : > { %34454 = vmatprep.mubr.msk.f32.mxu1 %vm398_vm0, %v7777_v37  ;;  %36452 = vmatprep.mubr.msk.f32.mxu0 %vm398_vm0, %v21125_v58  ;;  %v7808_v46 = vld [vmem:[%s39948_s10 + $0x4da] sm:$0xff]  ;;  %v22160_v37 = vld [vmem:[%s39948_s10 + $0x6e2] sm:$0xff] }
 0x61b   : > { %v7809_v58 = vld [vmem:[%s39948_s10 + $0x4e2] sm:$0xff] }
 0x61d   : > { %34455 = vmatmul.mubr.msk.f32.gmra.mrb[44].mxu1 %vm398_vm0, %v7778_v29  ;;  %36453 = vmatmul.mubr.msk.f32.gmra.mrb[96].mxu0 %vm398_vm0, %v21126_v39  ;;  %v22161_v29 = vld [vmem:[%s39948_s10 + $0x6ea] sm:$0xff] }
 0x61e   : > { %34457 = vmatprep.mubr.msk.f32.mxu1 %vm398_vm0, %v7779_v42  ;;  %36455 = vmatprep.mubr.msk.f32.mxu0 %vm398_vm0, %v21127_v44  ;;  %v7810_v39 = vld [vmem:[%s39948_s10 + $0x4ea] sm:$0xff]  ;;  %v22162_v42 = vld [vmem:[%s39948_s10 + $0x6f2] sm:$0xff] }
 0x61f   : > { %v7811_v44 = vld [vmem:[%s39948_s10 + $0x4f2] sm:$0xff] }
 0x621   : > { %34458 = vmatmul.mubr.msk.f32.gmra.mrb[46].mxu1 %vm398_vm0, %v7780_v45  ;;  %36456 = vmatmul.mubr.msk.f32.gmra.mrb[98].mxu0 %vm398_vm0, %v21128_v47  ;;  %v22163_v45 = vld [vmem:[%s39948_s10 + $0x6fa] sm:$0xff] }
 0x622   : > { %34460 = vmatprep.mubr.msk.f32.mxu1 %vm398_vm0, %v7781_v49  ;;  %36458 = vmatprep.mubr.msk.f32.mxu0 %vm398_vm0, %v21129_v52  ;;  %v7812_v47 = vld [vmem:[%s39948_s10 + $0x4fa] sm:$0xff]  ;;  %v22164_v49 = vld [vmem:[%s39948_s10 + $0x702] sm:$0xff] }
 0x623   : > { %v7813_v52 = vld [vmem:[%s39948_s10 + $0x502] sm:$0xff] }
 0x625   : > { %34461 = vmatmul.mubr.msk.f32.gmra.mrb[48].mxu1 %vm398_vm0, %v7782_v53  ;;  %36459 = vmatmul.mubr.msk.f32.gmra.mrb[100].mxu0 %vm398_vm0, %v21130_v55  ;;  %v22165_v53 = vld [vmem:[%s39948_s10 + $0x70a] sm:$0xff] }
 0x626   : > { %34463 = vmatprep.mubr.msk.f32.mxu1 %vm398_vm0, %v7783_v57  ;;  %36461 = vmatprep.mubr.msk.f32.mxu0 %vm398_vm0, %v21131_v61  ;;  %v7814_v55 = vld [vmem:[%s39948_s10 + $0x50a] sm:$0xff]  ;;  %v22166_v57 = vld [vmem:[%s39948_s10 + $0x712] sm:$0xff] }
 0x627   : > { %v7815_v61 = vld [vmem:[%s39948_s10 + $0x512] sm:$0xff] }
 0x629   : > { %34464 = vmatmul.mubr.msk.f32.gmra.mrb[50].mxu1 %vm398_vm0, %v7784_v63  ;;  %36462 = vmatmul.mubr.msk.f32.gmra.mrb[102].mxu0 %vm398_vm0, %v21132_v3  ;;  %v22167_v63 = vld [vmem:[%s39948_s10 + $0x71a] sm:$0xff] }
 0x62a   : > { %34466 = vmatprep.mubr.msk.f32.mxu1 %vm398_vm0, %v7785_v8  ;;  %36468 = vmatprep.mubr.msk.f32.mxu0 %vm398_vm0, %v22137_v11  ;;  %v7816_v3 = vld [vmem:[%s39948_s10 + $0x51a] sm:$0xff]  ;;  %v22168_v8 = vld [vmem:[%s39948_s10 + $0x722] sm:$0xff] }
 0x62b   : > { %v7817_v11 = vld [vmem:[%s39948_s10 + $0x522] sm:$0xff] }
 0x62d   : > { %34467 = vmatmul.mubr.msk.f32.gmra.mrb[52].mxu1 %vm398_vm0, %v7786_v15  ;;  %36469 = vmatmul.mubr.msk.f32.vlgmr.msra.gmra.mrb[0].mxu0 %vm398_vm0, %v22138_v18  ;;  %v22169_v15 = vld [vmem:[%s39948_s10 + $0x72a] sm:$0xff] }
 0x62e   : > { %37351 = vmatpush3.bf16.msra.mxu0 %v43165_v21  ;;  %34469 = vmatprep.mubr.msk.f32.mxu1 %vm398_vm0, %v7787_v24  ;;  %v7790_v21 = vld [vmem:[%s39948_s10 + $0x44a] sm:$0xff]  ;;  %v22170_v24 = vld [vmem:[%s39948_s10 + $0x732] sm:$0xff] }
 0x62f   : > { %36471 = vmatprep.mubr.msk.f32.mxu0 %vm398_vm0, %v22139_v59  ;;  %v7818_v18 = vld [vmem:[%s39948_s10 + $0x52a] sm:$0xff]  ;;  %v7819_v59 = vld [vmem:[%s39948_s10 + $0x532] sm:$0xff] }
 0x631   : > { %34470 = vmatmul.mubr.msk.f32.gmra.mrb[54].mxu1 %vm398_vm0, %v7788_v28  ;;  %36472 = vmatmul.mubr.msk.f32.gmra.mrb[2].mxu0 %vm398_vm0, %v22140_v32  ;;  %v22171_v28 = vld [vmem:[%s39948_s10 + $0x73a] sm:$0xff] }
 0x632   : > { %34472 = vmatprep.mubr.msk.f32.mxu1 %vm398_vm0, %v7789_v36  ;;  %36474 = vmatprep.mubr.msk.f32.mxu0 %vm398_vm0, %v22141_v40  ;;  %v7820_v32 = vld [vmem:[%s39948_s10 + $0x53a] sm:$0xff]  ;;  %v22172_v36 = vld [vmem:[%s39948_s10 + $0x742] sm:$0xff] }
 0x633   : > { %v7821_v40 = vld [vmem:[%s39948_s10 + $0x542] sm:$0xff] }
 0x635   : > { %34473 = vmatmul.mubr.msk.f32.gmra.mrb[56].mxu1 %vm398_vm0, %v7790_v21  ;;  %36475 = vmatmul.mubr.msk.f32.gmra.mrb[4].mxu0 %vm398_vm0, %v22142_v33  ;;  %v22173_v21 = vld [vmem:[%s39948_s10 + $0x74a] sm:$0xff] }
 0x636   : > { %34475 = vmatprep.mubr.msk.f32.mxu1 %vm398_vm0, %v7791_v7  ;;  %36477 = vmatprep.mubr.msk.f32.mxu0 %vm398_vm0, %v22143_v48  ;;  %v7822_v33 = vld [vmem:[%s39948_s10 + $0x54a] sm:$0xff]  ;;  %v22174_v7 = vld [vmem:[%s39948_s10 + $0x752] sm:$0xff] }
 0x637   : > { %v7823_v48 = vld [vmem:[%s39948_s10 + $0x552] sm:$0xff] }
 0x639   : > { %34476 = vmatmul.mubr.msk.f32.gmra.mrb[58].mxu1 %vm398_vm0, %v7792_v41  ;;  %36478 = vmatmul.mubr.msk.f32.gmra.mrb[6].mxu0 %vm398_vm0, %v22144_v56  ;;  %v22175_v41 = vld [vmem:[%s39948_s10 + $0x75a] sm:$0xff] }
 0x63a   : > { %34478 = vmatprep.mubr.msk.f32.mxu1 %vm398_vm0, %v7793_v60  ;;  %36480 = vmatprep.mubr.msk.f32.mxu0 %vm398_vm0, %v22145_v10  ;;  %v7824_v56 = vld [vmem:[%s39948_s10 + $0x55a] sm:$0xff]  ;;  %v22176_v60 = vld [vmem:[%s39948_s10 + $0x762] sm:$0xff] }
 0x63b   : > { %v7825_v10 = vld [vmem:[%s39948_s10 + $0x562] sm:$0xff] }
 0x63d   : > { %34479 = vmatmul.mubr.msk.f32.gmra.mrb[60].mxu1 %vm398_vm0, %v7794_v16  ;;  %36481 = vmatmul.mubr.msk.f32.gmra.mrb[8].mxu0 %vm398_vm0, %v22146_v26  ;;  %v22177_v16 = vld [vmem:[%s39948_s10 + $0x76a] sm:$0xff] }
 0x63e   : > { %34481 = vmatprep.mubr.msk.f32.mxu1 %vm398_vm0, %v7795_v51  ;;  %36483 = vmatprep.mubr.msk.f32.mxu0 %vm398_vm0, %v22147_v43  ;;  %v7826_v26 = vld [vmem:[%s39948_s10 + $0x56a] sm:$0xff]  ;;  %v22178_v51 = vld [vmem:[%s39948_s10 + $0x772] sm:$0xff]  ;;  %v30293_v43 = vld [vmem:[%s46145_s2 + $0x160] sm:$0xff] }
 0x641   : > { %34482 = vmatmul.mubr.msk.f32.gmra.mrb[62].mxu1 %vm398_vm0, %v7796_v38  ;;  %36484 = vmatmul.mubr.msk.f32.gmra.mrb[10].mxu0 %vm398_vm0, %v22148_v50  ;;  %v30294_v38 = vld [vmem:[%s46145_s2 + $0x168] sm:$0xff]  ;;  %v7827_v50 = vld [vmem:[%s39948_s10 + $0x572] sm:$0xff] }
 0x642   : > { %34484 = vmatprep.mubr.msk.f32.mxu1 %vm398_vm0, %v7797_v62  ;;  %36486 = vmatprep.mubr.msk.f32.mxu0 %vm398_vm0, %v22149_v1  ;;  %v22179_v62 = vld [vmem:[%s39948_s10 + $0x77a] sm:$0xff]  ;;  %v43601_v1 = vpack.c.bf16 %v30294_v38, %v30293_v43  ;;  %v22209_v43 = vld [vmem:[%s39948_s10 + $0x86a] sm:$0xff] }
 0x643   : > { %v8862_v38 = vld [vmem:[%s39948_s10 + $0x330] sm:$0xff] }
 0x644   : > { %37353 = vmatprep.subr.bf16.mxu0 %v43601_v1 }
 0x645   : > { %34485 = vmatmul.mubr.msk.f32.gmra.mrb[64].mxu1 %vm398_vm0, %v7798_v20  ;;  %36487 = vmatmul.mubr.msk.f32.gmra.mrb[12].mxu0 %vm398_vm0, %v22150_v0  ;;  %v7828_v20 = vld [vmem:[%s39948_s10 + $0x57a] sm:$0xff]  ;;  %v22180_v0 = vld [vmem:[%s39948_s10 + $0x782] sm:$0xff] }
 0x646   : > { %34487 = vmatprep.mubr.msk.f32.mxu1 %vm398_vm0, %v7799_v2  ;;  %36489 = vmatprep.mubr.msk.f32.mxu0 %vm398_vm0, %v22151_v5  ;;  %v7829_v2 = vld [vmem:[%s39948_s10 + $0x582] sm:$0xff]  ;;  %v22181_v5 = vld [vmem:[%s39948_s10 + $0x78a] sm:$0xff] }
 0x649   : > { %34488 = vmatmul.mubr.msk.f32.gmra.mrb[66].mxu1 %vm398_vm0, %v7800_v23  ;;  %36490 = vmatmul.mubr.msk.f32.gmra.mrb[14].mxu0 %vm398_vm0, %v22152_v6  ;;  %v7830_v23 = vld [vmem:[%s39948_s10 + $0x58a] sm:$0xff]  ;;  %v22182_v6 = vld [vmem:[%s39948_s10 + $0x792] sm:$0xff] }
 0x64a   : > { %34490 = vmatprep.mubr.msk.f32.mxu1 %vm398_vm0, %v7801_v9  ;;  %36492 = vmatprep.mubr.msk.f32.mxu0 %vm398_vm0, %v22153_v13  ;;  %v7831_v9 = vld [vmem:[%s39948_s10 + $0x592] sm:$0xff]  ;;  %v22183_v13 = vld [vmem:[%s39948_s10 + $0x79a] sm:$0xff] }
 0x64d   : > { %34491 = vmatmul.mubr.msk.f32.gmra.mrb[68].mxu1 %vm398_vm0, %v7802_v54  ;;  %36493 = vmatmul.mubr.msk.f32.gmra.mrb[16].mxu0 %vm398_vm0, %v22154_v14  ;;  %v7832_v54 = vld [vmem:[%s39948_s10 + $0x59a] sm:$0xff]  ;;  %v22184_v14 = vld [vmem:[%s39948_s10 + $0x7a2] sm:$0xff] }
 0x64e   : > { %34493 = vmatprep.mubr.msk.f32.mxu1 %vm398_vm0, %v7803_v4  ;;  %36495 = vmatprep.mubr.msk.f32.mxu0 %vm398_vm0, %v22155_v19  ;;  %v7833_v4 = vld [vmem:[%s39948_s10 + $0x5a2] sm:$0xff]  ;;  %v22185_v19 = vld [vmem:[%s39948_s10 + $0x7aa] sm:$0xff] }
 0x651   : > { %34494 = vmatmul.mubr.msk.f32.gmra.mrb[70].mxu1 %vm398_vm0, %v7804_v22  ;;  %36496 = vmatmul.mubr.msk.f32.gmra.mrb[18].mxu0 %vm398_vm0, %v22156_v25  ;;  %v7834_v22 = vld [vmem:[%s39948_s10 + $0x5aa] sm:$0xff]  ;;  %v22186_v25 = vld [vmem:[%s39948_s10 + $0x7b2] sm:$0xff] }
 0x652   : > { %34496 = vmatprep.mubr.msk.f32.mxu1 %vm398_vm0, %v7805_v27  ;;  %36498 = vmatprep.mubr.msk.f32.mxu0 %vm398_vm0, %v22157_v30  ;;  %v7835_v27 = vld [vmem:[%s39948_s10 + $0x5b2] sm:$0xff]  ;;  %v22187_v30 = vld [vmem:[%s39948_s10 + $0x7ba] sm:$0xff] }
 0x655   : > { %34497 = vmatmul.mubr.msk.f32.gmra.mrb[72].mxu1 %vm398_vm0, %v7806_v31  ;;  %36499 = vmatmul.mubr.msk.f32.gmra.mrb[20].mxu0 %vm398_vm0, %v22158_v34  ;;  %v7836_v31 = vld [vmem:[%s39948_s10 + $0x5ba] sm:$0xff]  ;;  %v22188_v34 = vld [vmem:[%s39948_s10 + $0x7c2] sm:$0xff] }
 0x656   : > { %34499 = vmatprep.mubr.msk.f32.mxu1 %vm398_vm0, %v7807_v12  ;;  %36501 = vmatprep.mubr.msk.f32.mxu0 %vm398_vm0, %v22159_v35  ;;  %v8841_v12 = vld [vmem:[%s39948_s10 + $0x288] sm:$0xff] }
 0x657   : > { %v22189_v35 = vld [vmem:[%s39948_s10 + $0x7ca] sm:$0xff] }
 0x659   : > { %34500 = vmatmul.mubr.msk.f32.gmra.mrb[74].mxu1 %vm398_vm0, %v7808_v46  ;;  %36502 = vmatmul.mubr.msk.f32.gmra.mrb[22].mxu0 %vm398_vm0, %v22160_v37  ;;  %v8842_v46 = vld [vmem:[%s39948_s10 + $0x290] sm:$0xff] }
 0x65a   : > { %34502 = vmatprep.mubr.msk.f32.mxu1 %vm398_vm0, %v7809_v58  ;;  %36504 = vmatprep.mubr.msk.f32.mxu0 %vm398_vm0, %v22161_v29  ;;  %v22190_v37 = vld [vmem:[%s39948_s10 + $0x7d2] sm:$0xff]  ;;  %v22191_v29 = vld [vmem:[%s39948_s10 + $0x7da] sm:$0xff] }
 0x65b   : > { %v8843_v58 = vld [vmem:[%s39948_s10 + $0x298] sm:$0xff] }
 0x65d   : > { %34503 = vmatmul.mubr.msk.f32.gmra.mrb[76].mxu1 %vm398_vm0, %v7810_v39  ;;  %36505 = vmatmul.mubr.msk.f32.gmra.mrb[24].mxu0 %vm398_vm0, %v22162_v42  ;;  %v8844_v39 = vld [vmem:[%s39948_s10 + $0x2a0] sm:$0xff] }
 0x65e   : > { %34505 = vmatprep.mubr.msk.f32.mxu1 %vm398_vm0, %v7811_v44  ;;  %36507 = vmatprep.mubr.msk.f32.mxu0 %vm398_vm0, %v22163_v45  ;;  %v22192_v42 = vld [vmem:[%s39948_s10 + $0x7e2] sm:$0xff]  ;;  %v22193_v45 = vld [vmem:[%s39948_s10 + $0x7ea] sm:$0xff] }
 0x65f   : > { %v8845_v44 = vld [vmem:[%s39948_s10 + $0x2a8] sm:$0xff] }
 0x661   : > { %34506 = vmatmul.mubr.msk.f32.gmra.mrb[78].mxu1 %vm398_vm0, %v7812_v47  ;;  %36508 = vmatmul.mubr.msk.f32.gmra.mrb[26].mxu0 %vm398_vm0, %v22164_v49  ;;  %v22194_v47 = vld [vmem:[%s39948_s10 + $0x7f2] sm:$0xff] }
 0x662   : > { %34508 = vmatprep.mubr.msk.f32.mxu1 %vm398_vm0, %v7813_v52  ;;  %36510 = vmatprep.mubr.msk.f32.mxu0 %vm398_vm0, %v22165_v53  ;;  %v8847_v49 = vld [vmem:[%s39948_s10 + $0x2b8] sm:$0xff]  ;;  %v8848_v53 = vld [vmem:[%s39948_s10 + $0x2c0] sm:$0xff] }
 0x663   : > { %v22195_v52 = vld [vmem:[%s39948_s10 + $0x7fa] sm:$0xff] }
 0x665   : > { %34509 = vmatmul.mubr.msk.f32.gmra.mrb[80].mxu1 %vm398_vm0, %v7814_v55  ;;  %36511 = vmatmul.mubr.msk.f32.gmra.mrb[28].mxu0 %vm398_vm0, %v22166_v57  ;;  %v22196_v55 = vld [vmem:[%s39948_s10 + $0x802] sm:$0xff] }
 0x666   : > { %34511 = vmatprep.mubr.msk.f32.mxu1 %vm398_vm0, %v7815_v61  ;;  %36513 = vmatprep.mubr.msk.f32.mxu0 %vm398_vm0, %v22167_v63  ;;  %v8849_v57 = vld [vmem:[%s39948_s10 + $0x2c8] sm:$0xff]  ;;  %v8850_v63 = vld [vmem:[%s39948_s10 + $0x2d0] sm:$0xff] }
 0x667   : > { %v22197_v61 = vld [vmem:[%s39948_s10 + $0x80a] sm:$0xff] }
 0x669   : > { %34512 = vmatmul.mubr.msk.f32.gmra.mrb[82].mxu1 %vm398_vm0, %v7816_v3  ;;  %36514 = vmatmul.mubr.msk.f32.gmra.mrb[30].mxu0 %vm398_vm0, %v22168_v8  ;;  %v22198_v3 = vld [vmem:[%s39948_s10 + $0x812] sm:$0xff] }
 0x66a   : > { %34514 = vmatprep.mubr.msk.f32.mxu1 %vm398_vm0, %v7817_v11  ;;  %36516 = vmatprep.mubr.msk.f32.mxu0 %vm398_vm0, %v22169_v15  ;;  %v8851_v8 = vld [vmem:[%s39948_s10 + $0x2d8] sm:$0xff]  ;;  %v8852_v15 = vld [vmem:[%s39948_s10 + $0x2e0] sm:$0xff] }
 0x66b   : > { %v22199_v11 = vld [vmem:[%s39948_s10 + $0x81a] sm:$0xff] }
 0x66d   : > { %34515 = vmatmul.mubr.msk.f32.gmra.mrb[84].mxu1 %vm398_vm0, %v7818_v18  ;;  %36517 = vmatmul.mubr.msk.f32.gmra.mrb[32].mxu0 %vm398_vm0, %v22170_v24  ;;  %v22200_v18 = vld [vmem:[%s39948_s10 + $0x822] sm:$0xff] }
 0x66e   : > { %34517 = vmatprep.mubr.msk.f32.mxu1 %vm398_vm0, %v7819_v59  ;;  %36519 = vmatprep.mubr.msk.f32.mxu0 %vm398_vm0, %v22171_v28  ;;  %v8853_v24 = vld [vmem:[%s39948_s10 + $0x2e8] sm:$0xff]  ;;  %v8854_v28 = vld [vmem:[%s39948_s10 + $0x2f0] sm:$0xff] }
 0x66f   : > { %v22201_v59 = vld [vmem:[%s39948_s10 + $0x82a] sm:$0xff] }
 0x671   : > { %34518 = vmatmul.mubr.msk.f32.gmra.mrb[86].mxu1 %vm398_vm0, %v7820_v32  ;;  %36520 = vmatmul.mubr.msk.f32.gmra.mrb[34].mxu0 %vm398_vm0, %v22172_v36  ;;  %v22202_v32 = vld [vmem:[%s39948_s10 + $0x832] sm:$0xff] }
 0x672   : > { %34520 = vmatprep.mubr.msk.f32.mxu1 %vm398_vm0, %v7821_v40  ;;  %36522 = vmatprep.mubr.msk.f32.mxu0 %vm398_vm0, %v22173_v21  ;;  %v8855_v36 = vld [vmem:[%s39948_s10 + $0x2f8] sm:$0xff]  ;;  %v8856_v21 = vld [vmem:[%s39948_s10 + $0x300] sm:$0xff] }
 0x673   : > { %v22203_v40 = vld [vmem:[%s39948_s10 + $0x83a] sm:$0xff] }
 0x675   : > { %34521 = vmatmul.mubr.msk.f32.gmra.mrb[88].mxu1 %vm398_vm0, %v7822_v33  ;;  %36523 = vmatmul.mubr.msk.f32.gmra.mrb[36].mxu0 %vm398_vm0, %v22174_v7  ;;  %v22204_v33 = vld [vmem:[%s39948_s10 + $0x842] sm:$0xff] }
 0x676   : > { %34523 = vmatprep.mubr.msk.f32.mxu1 %vm398_vm0, %v7823_v48  ;;  %36525 = vmatprep.mubr.msk.f32.mxu0 %vm398_vm0, %v22175_v41  ;;  %v8857_v7 = vld [vmem:[%s39948_s10 + $0x308] sm:$0xff]  ;;  %v8858_v41 = vld [vmem:[%s39948_s10 + $0x310] sm:$0xff] }
 0x677   : > { %v22205_v48 = vld [vmem:[%s39948_s10 + $0x84a] sm:$0xff] }
 0x679   : > { %34524 = vmatmul.mubr.msk.f32.gmra.mrb[90].mxu1 %vm398_vm0, %v7824_v56  ;;  %36526 = vmatmul.mubr.msk.f32.gmra.mrb[38].mxu0 %vm398_vm0, %v22176_v60  ;;  %v22206_v56 = vld [vmem:[%s39948_s10 + $0x852] sm:$0xff] }
 0x67a   : > { %34526 = vmatprep.mubr.msk.f32.mxu1 %vm398_vm0, %v7825_v10  ;;  %36528 = vmatprep.mubr.msk.f32.mxu0 %vm398_vm0, %v22177_v16  ;;  %v8859_v60 = vld [vmem:[%s39948_s10 + $0x318] sm:$0xff]  ;;  %v8860_v16 = vld [vmem:[%s39948_s10 + $0x320] sm:$0xff] }
 0x67b   : > { %v22207_v10 = vld [vmem:[%s39948_s10 + $0x85a] sm:$0xff] }
 0x67d   : > { %34527 = vmatmul.mubr.msk.f32.gmra.mrb[92].mxu1 %vm398_vm0, %v7826_v26  ;;  %36529 = vmatmul.mubr.msk.f32.gmra.mrb[40].mxu0 %vm398_vm0, %v22178_v51  ;;  %v22208_v26 = vld [vmem:[%s39948_s10 + $0x862] sm:$0xff] }
 0x67e   : > { %34529 = vmatprep.mubr.msk.f32.mxu1 %vm398_vm0, %v7827_v50  ;;  %36531 = vmatprep.mubr.msk.f32.mxu0 %vm398_vm0, %v22179_v62  ;;  %v8861_v51 = vld [vmem:[%s39948_s10 + $0x328] sm:$0xff]  ;;  %v22210_v50 = vld [vmem:[%s39948_s10 + $0x872] sm:$0xff] }
 0x67f   : > { %v8863_v62 = vld [vmem:[%s39948_s10 + $0x338] sm:$0xff] }
 0x681   : > { %34530 = vmatmul.mubr.msk.f32.gmra.mrb[94].mxu1 %vm398_vm0, %v7828_v20  ;;  %36532 = vmatmul.mubr.msk.f32.gmra.mrb[42].mxu0 %vm398_vm0, %v22180_v0  ;;  %v22211_v20 = vld [vmem:[%s39948_s10 + $0x87a] sm:$0xff] }
 0x682   : > { %34532 = vmatprep.mubr.msk.f32.mxu1 %vm398_vm0, %v7829_v2  ;;  %36534 = vmatprep.mubr.msk.f32.mxu0 %vm398_vm0, %v22181_v5  ;;  %v8864_v0 = vld [vmem:[%s39948_s10 + $0x340] sm:$0xff]  ;;  %v8865_v5 = vld [vmem:[%s39948_s10 + $0x348] sm:$0xff] }
 0x683   : > { %v22212_v2 = vld [vmem:[%s39948_s10 + $0x882] sm:$0xff] }
 0x685   : > { %34533 = vmatmul.mubr.msk.f32.gmra.mrb[96].mxu1 %vm398_vm0, %v7830_v23  ;;  %36535 = vmatmul.mubr.msk.f32.gmra.mrb[44].mxu0 %vm398_vm0, %v22182_v6  ;;  %v22213_v23 = vld [vmem:[%s39948_s10 + $0x88a] sm:$0xff] }
 0x686   : > { %34535 = vmatprep.mubr.msk.f32.mxu1 %vm398_vm0, %v7831_v9  ;;  %36537 = vmatprep.mubr.msk.f32.mxu0 %vm398_vm0, %v22183_v13  ;;  %v8866_v6 = vld [vmem:[%s39948_s10 + $0x350] sm:$0xff]  ;;  %v8867_v13 = vld [vmem:[%s39948_s10 + $0x358] sm:$0xff] }
 0x687   : > { %v22214_v9 = vld [vmem:[%s39948_s10 + $0x892] sm:$0xff] }
 0x689   : > { %34536 = vmatmul.mubr.msk.f32.gmra.mrb[98].mxu1 %vm398_vm0, %v7832_v54  ;;  %36538 = vmatmul.mubr.msk.f32.gmra.mrb[46].mxu0 %vm398_vm0, %v22184_v14  ;;  %v22215_v54 = vld [vmem:[%s39948_s10 + $0x89a] sm:$0xff] }
 0x68a   : > { %34538 = vmatprep.mubr.msk.f32.mxu1 %vm398_vm0, %v7833_v4  ;;  %36540 = vmatprep.mubr.msk.f32.mxu0 %vm398_vm0, %v22185_v19  ;;  %v8868_v14 = vld [vmem:[%s39948_s10 + $0x360] sm:$0xff]  ;;  %v8869_v19 = vld [vmem:[%s39948_s10 + $0x368] sm:$0xff] }
 0x68b   : > { %v22216_v4 = vld [vmem:[%s39948_s10 + $0x8a2] sm:$0xff] }
 0x68d   : > { %34539 = vmatmul.mubr.msk.f32.gmra.mrb[100].mxu1 %vm398_vm0, %v7834_v22  ;;  %36541 = vmatmul.mubr.msk.f32.gmra.mrb[48].mxu0 %vm398_vm0, %v22186_v25  ;;  %v22217_v22 = vld [vmem:[%s39948_s10 + $0x8aa] sm:$0xff] }
 0x68e   : > { %34541 = vmatprep.mubr.msk.f32.mxu1 %vm398_vm0, %v7835_v27  ;;  %36543 = vmatprep.mubr.msk.f32.mxu0 %vm398_vm0, %v22187_v30  ;;  %v8870_v25 = vld [vmem:[%s39948_s10 + $0x370] sm:$0xff]  ;;  %v8871_v30 = vld [vmem:[%s39948_s10 + $0x378] sm:$0xff] }
 0x68f   : > { %v22218_v27 = vld [vmem:[%s39948_s10 + $0x8b2] sm:$0xff] }
 0x691   : > { %34542 = vmatmul.mubr.msk.f32.gmra.mrb[102].mxu1 %vm398_vm0, %v7836_v31  ;;  %36544 = vmatmul.mubr.msk.f32.gmra.mrb[50].mxu0 %vm398_vm0, %v22188_v34  ;;  %v22219_v31 = vld [vmem:[%s39948_s10 + $0x8ba] sm:$0xff] }
 0x692   : > { %34548 = vmatprep.mubr.msk.f32.mxu1 %vm398_vm0, %v8841_v12  ;;  %36546 = vmatprep.mubr.msk.f32.mxu0 %vm398_vm0, %v22189_v35  ;;  %v8872_v34 = vld [vmem:[%s39948_s10 + $0x380] sm:$0xff]  ;;  %v8873_v35 = vld [vmem:[%s39948_s10 + $0x388] sm:$0xff] }
 0x693   : > { %v22220_v12 = vld [vmem:[%s39948_s10 + $0x8c2] sm:$0xff] }
 0x695   : > { %34549 = vmatmul.mubr.msk.f32.vlgmr.msra.gmra.mrb[0].mxu1 %vm398_vm0, %v8842_v46  ;;  %36547 = vmatmul.mubr.msk.f32.gmra.mrb[52].mxu0 %vm398_vm0, %v22190_v37  ;;  %v22221_v46 = vld [vmem:[%s39948_s10 + $0x8ca] sm:$0xff] }
 0x696   : > { %37303 = vmatpush3.bf16.msra.mxu1 %v43383_v17  ;;  %34551 = vmatprep.mubr.msk.f32.mxu1 %vm398_vm0, %v8843_v58  ;;  %v8846_v17 = vld [vmem:[%s39948_s10 + $0x2b0] sm:$0xff] }
 0x697   : > { %36549 = vmatprep.mubr.msk.f32.mxu0 %vm398_vm0, %v22191_v29  ;;  %v8874_v37 = vld [vmem:[%s39948_s10 + $0x390] sm:$0xff]  ;;  %v8875_v29 = vld [vmem:[%s39948_s10 + $0x398] sm:$0xff] }
 0x698   : > { %v22222_v58 = vld [vmem:[%s39948_s10 + $0x8d2] sm:$0xff] }
 0x699   : > { %34552 = vmatmul.mubr.msk.f32.gmra.mrb[2].mxu1 %vm398_vm0, %v8844_v39  ;;  %36550 = vmatmul.mubr.msk.f32.gmra.mrb[54].mxu0 %vm398_vm0, %v22192_v42  ;;  %v22223_v39 = vld [vmem:[%s39948_s10 + $0x8da] sm:$0xff] }
 0x69a   : > { %34554 = vmatprep.mubr.msk.f32.mxu1 %vm398_vm0, %v8845_v44  ;;  %36552 = vmatprep.mubr.msk.f32.mxu0 %vm398_vm0, %v22193_v45  ;;  %v8876_v42 = vld [vmem:[%s39948_s10 + $0x3a0] sm:$0xff]  ;;  %v43788_v45 = vld [vmem:[%s39948_s10 + $0x3a8] sm:$0xff] }
 0x69b   : > { %v22224_v44 = vld [vmem:[%s39948_s10 + $0x8e2] sm:$0xff] }
 0x69d   : > { %34555 = vmatmul.mubr.msk.f32.gmra.mrb[4].mxu1 %vm398_vm0, %v8846_v17  ;;  %36553 = vmatmul.mubr.msk.f32.gmra.mrb[56].mxu0 %vm398_vm0, %v22194_v47  ;;  %v22225_v17 = vld [vmem:[%s39948_s10 + $0x8ea] sm:$0xff] }
 0x69e   : > { %34557 = vmatprep.mubr.msk.f32.mxu1 %vm398_vm0, %v8847_v49  ;;  %36555 = vmatprep.mubr.msk.f32.mxu0 %vm398_vm0, %v22195_v52  ;;  %v43797_v47 = vld [vmem:[%s39948_s10 + $0x3b0] sm:$0xff]  ;;  %v43801_v52 = vld [vmem:[%s39948_s10 + $0x3b8] sm:$0xff] }
 0x69f   : > { %v22226_v49 = vld [vmem:[%s39948_s10 + $0x8f2] sm:$0xff] }
 0x6a1   : > { %34558 = vmatmul.mubr.msk.f32.gmra.mrb[6].mxu1 %vm398_vm0, %v8848_v53  ;;  %36556 = vmatmul.mubr.msk.f32.gmra.mrb[58].mxu0 %vm398_vm0, %v22196_v55  ;;  %v22227_v53 = vld [vmem:[%s39948_s10 + $0x8fa] sm:$0xff] }
 0x6a2   : > { %34560 = vmatprep.mubr.msk.f32.mxu1 %vm398_vm0, %v8849_v57  ;;  %36558 = vmatprep.mubr.msk.f32.mxu0 %vm398_vm0, %v22197_v61  ;;  %v43811_v55 = vld [vmem:[%s39948_s10 + $0x3c0] sm:$0xff]  ;;  %v43815_v61 = vld [vmem:[%s39948_s10 + $0x3c8] sm:$0xff] }
 0x6a3   : > { %v22228_v57 = vld [vmem:[%s39948_s10 + $0x902] sm:$0xff] }
 0x6a5   : > { %34561 = vmatmul.mubr.msk.f32.gmra.mrb[8].mxu1 %vm398_vm0, %v8850_v63  ;;  %36559 = vmatmul.mubr.msk.f32.gmra.mrb[60].mxu0 %vm398_vm0, %v22198_v3  ;;  %v22229_v63 = vld [vmem:[%s39948_s10 + $0x90a] sm:$0xff] }
 0x6a6   : > { %34563 = vmatprep.mubr.msk.f32.mxu1 %vm398_vm0, %v8851_v8  ;;  %36561 = vmatprep.mubr.msk.f32.mxu0 %vm398_vm0, %v22199_v11  ;;  %v43822_v3 = vld [vmem:[%s39948_s10 + $0x3d0] sm:$0xff]  ;;  %v29021_v11 = vld [vmem:[%s46145_s2 + $0xa0] sm:$0xff] }
 0x6a7   : > { %v22230_v8 = vld [vmem:[%s39948_s10 + $0x912] sm:$0xff] }
 0x6a9   : > { %34564 = vmatmul.mubr.msk.f32.gmra.mrb[10].mxu1 %vm398_vm0, %v8852_v15  ;;  %36562 = vmatmul.mubr.msk.f32.gmra.mrb[62].mxu0 %vm398_vm0, %v22200_v18  ;;  %v29022_v15 = vld [vmem:[%s46145_s2 + $0xa8] sm:$0xff]  ;;  %v43835_v18 = vld [vmem:[%s39948_s10 + $0x3d8] sm:$0xff] }
 0x6aa   : > { %34566 = vmatprep.mubr.msk.f32.mxu1 %vm398_vm0, %v8853_v24  ;;  %36564 = vmatprep.mubr.msk.f32.mxu0 %vm398_vm0, %v22201_v59  ;;  %v22231_v24 = vld [vmem:[%s39948_s10 + $0x91a] sm:$0xff]  ;;  %v43838_v59 = vpack.c.bf16 %v29022_v15, %v29021_v11 }
 0x6ab   : > { %v23262_v11 = vld [vmem:[%s39948_s10 + $0x6be] sm:$0xff] }
 0x6ac   : > { %37305 = vmatprep.subr.bf16.mxu1 %v43838_v59  ;;  %v44035_v15 = vld [vmem:[%s39948_s10 + $0x4b8] sm:$0xff] }
 0x6ad   : > { %34567 = vmatmul.mubr.msk.f32.gmra.mrb[12].mxu1 %vm398_vm0, %v8854_v28  ;;  %36565 = vmatmul.mubr.msk.f32.gmra.mrb[64].mxu0 %vm398_vm0, %v22202_v32  ;;  %v43847_v28 = vld [vmem:[%s39948_s10 + $0x3e0] sm:$0xff] }
 0x6ae   : > { %34569 = vmatprep.mubr.msk.f32.mxu1 %vm398_vm0, %v8855_v36  ;;  %36567 = vmatprep.mubr.msk.f32.mxu0 %vm398_vm0, %v22203_v40  ;;  %v22232_v32 = vld [vmem:[%s39948_s10 + $0x922] sm:$0xff]  ;;  %v22233_v40 = vld [vmem:[%s39948_s10 + $0x92a] sm:$0xff] }
 0x6af   : > { %v43851_v36 = vld [vmem:[%s39948_s10 + $0x3e8] sm:$0xff] }
 0x6b1   : > { %34570 = vmatmul.mubr.msk.f32.gmra.mrb[14].mxu1 %vm398_vm0, %v8856_v21  ;;  %36568 = vmatmul.mubr.msk.f32.gmra.mrb[66].mxu0 %vm398_vm0, %v22204_v33  ;;  %v43862_v21 = vld [vmem:[%s39948_s10 + $0x3f0] sm:$0xff] }
 0x6b2   : > { %34572 = vmatprep.mubr.msk.f32.mxu1 %vm398_vm0, %v8857_v7  ;;  %36570 = vmatprep.mubr.msk.f32.mxu0 %vm398_vm0, %v22205_v48  ;;  %v22234_v33 = vld [vmem:[%s39948_s10 + $0x932] sm:$0xff]  ;;  %v22235_v48 = vld [vmem:[%s39948_s10 + $0x93a] sm:$0xff] }
 0x6b3   : > { %v43866_v7 = vld [vmem:[%s39948_s10 + $0x3f8] sm:$0xff] }
 0x6b5   : > { %34573 = vmatmul.mubr.msk.f32.gmra.mrb[16].mxu1 %vm398_vm0, %v8858_v41  ;;  %36571 = vmatmul.mubr.msk.f32.gmra.mrb[68].mxu0 %vm398_vm0, %v22206_v56  ;;  %v43876_v41 = vld [vmem:[%s39948_s10 + $0x400] sm:$0xff] }
 0x6b6   : > { %34575 = vmatprep.mubr.msk.f32.mxu1 %vm398_vm0, %v8859_v60  ;;  %36573 = vmatprep.mubr.msk.f32.mxu0 %vm398_vm0, %v22207_v10  ;;  %v22236_v56 = vld [vmem:[%s39948_s10 + $0x942] sm:$0xff]  ;;  %v22237_v10 = vld [vmem:[%s39948_s10 + $0x94a] sm:$0xff] }
 0x6b7   : > { %v43880_v60 = vld [vmem:[%s39948_s10 + $0x408] sm:$0xff] }
 0x6b9   : > { %34576 = vmatmul.mubr.msk.f32.gmra.mrb[18].mxu1 %vm398_vm0, %v8860_v16  ;;  %36574 = vmatmul.mubr.msk.f32.gmra.mrb[70].mxu0 %vm398_vm0, %v22208_v26  ;;  %v43890_v16 = vld [vmem:[%s39948_s10 + $0x410] sm:$0xff] }
 0x6ba   : > { %34578 = vmatprep.mubr.msk.f32.mxu1 %vm398_vm0, %v8861_v51  ;;  %36576 = vmatprep.mubr.msk.f32.mxu0 %vm398_vm0, %v22209_v43  ;;  %v22238_v26 = vld [vmem:[%s39948_s10 + $0x952] sm:$0xff]  ;;  %v22239_v43 = vld [vmem:[%s39948_s10 + $0x95a] sm:$0xff] }
 0x6bb   : > { %v43894_v51 = vld [vmem:[%s39948_s10 + $0x418] sm:$0xff] }
 0x6bd   : > { %34579 = vmatmul.mubr.msk.f32.gmra.mrb[20].mxu1 %vm398_vm0, %v8862_v38  ;;  %36577 = vmatmul.mubr.msk.f32.gmra.mrb[72].mxu0 %vm398_vm0, %v22210_v50  ;;  %v43904_v38 = vld [vmem:[%s39948_s10 + $0x420] sm:$0xff] }
 0x6be   : > { %34581 = vmatprep.mubr.msk.f32.mxu1 %vm398_vm0, %v8863_v62  ;;  %36579 = vmatprep.mubr.msk.f32.mxu0 %vm398_vm0, %v22211_v20  ;;  %v22240_v50 = vld [vmem:[%s39948_s10 + $0x962] sm:$0xff]  ;;  %v23245_v20 = vld [vmem:[%s39948_s10 + $0x636] sm:$0xff] }
 0x6bf   : > { %v43908_v62 = vld [vmem:[%s39948_s10 + $0x428] sm:$0xff] }
 0x6c1   : > { %34582 = vmatmul.mubr.msk.f32.gmra.mrb[22].mxu1 %vm398_vm0, %v8864_v0  ;;  %36580 = vmatmul.mubr.msk.f32.gmra.mrb[74].mxu0 %vm398_vm0, %v22212_v2  ;;  %v43918_v0 = vld [vmem:[%s39948_s10 + $0x430] sm:$0xff]  ;;  %v23246_v2 = vld [vmem:[%s39948_s10 + $0x63e] sm:$0xff] }
 0x6c2   : > { %34584 = vmatprep.mubr.msk.f32.mxu1 %vm398_vm0, %v8865_v5  ;;  %36582 = vmatprep.mubr.msk.f32.mxu0 %vm398_vm0, %v22213_v23  ;;  %v43922_v5 = vld [vmem:[%s39948_s10 + $0x438] sm:$0xff]  ;;  %v23247_v23 = vld [vmem:[%s39948_s10 + $0x646] sm:$0xff] }
 0x6c5   : > { %34585 = vmatmul.mubr.msk.f32.gmra.mrb[24].mxu1 %vm398_vm0, %v8866_v6  ;;  %36583 = vmatmul.mubr.msk.f32.gmra.mrb[76].mxu0 %vm398_vm0, %v22214_v9  ;;  %v43932_v6 = vld [vmem:[%s39948_s10 + $0x440] sm:$0xff]  ;;  %v23248_v9 = vld [vmem:[%s39948_s10 + $0x64e] sm:$0xff] }
 0x6c6   : > { %34587 = vmatprep.mubr.msk.f32.mxu1 %vm398_vm0, %v8867_v13  ;;  %36585 = vmatprep.mubr.msk.f32.mxu0 %vm398_vm0, %v22215_v54  ;;  %v43937_v13 = vld [vmem:[%s39948_s10 + $0x448] sm:$0xff]  ;;  %v23249_v54 = vld [vmem:[%s39948_s10 + $0x656] sm:$0xff] }
 0x6c9   : > { %34588 = vmatmul.mubr.msk.f32.gmra.mrb[26].mxu1 %vm398_vm0, %v8868_v14  ;;  %36586 = vmatmul.mubr.msk.f32.gmra.mrb[78].mxu0 %vm398_vm0, %v22216_v4  ;;  %v23250_v14 = vld [vmem:[%s39948_s10 + $0x65e] sm:$0xff] }
 0x6ca   : > { %34590 = vmatprep.mubr.msk.f32.mxu1 %vm398_vm0, %v8869_v19  ;;  %36588 = vmatprep.mubr.msk.f32.mxu0 %vm398_vm0, %v22217_v22  ;;  %v43951_v4 = vld [vmem:[%s39948_s10 + $0x458] sm:$0xff]  ;;  %v23251_v19 = vld [vmem:[%s39948_s10 + $0x666] sm:$0xff] }
 0x6cb   : > { %v43961_v22 = vld [vmem:[%s39948_s10 + $0x460] sm:$0xff] }
 0x6cd   : > { %34591 = vmatmul.mubr.msk.f32.gmra.mrb[28].mxu1 %vm398_vm0, %v8870_v25  ;;  %36589 = vmatmul.mubr.msk.f32.gmra.mrb[80].mxu0 %vm398_vm0, %v22218_v27  ;;  %v23252_v25 = vld [vmem:[%s39948_s10 + $0x66e] sm:$0xff] }
 0x6ce   : > { %34593 = vmatprep.mubr.msk.f32.mxu1 %vm398_vm0, %v8871_v30  ;;  %36591 = vmatprep.mubr.msk.f32.mxu0 %vm398_vm0, %v22219_v31  ;;  %v43965_v27 = vld [vmem:[%s39948_s10 + $0x468] sm:$0xff]  ;;  %v23253_v30 = vld [vmem:[%s39948_s10 + $0x676] sm:$0xff] }
 0x6cf   : > { %v43975_v31 = vld [vmem:[%s39948_s10 + $0x470] sm:$0xff] }
 0x6d1   : > { %34594 = vmatmul.mubr.msk.f32.gmra.mrb[30].mxu1 %vm398_vm0, %v8872_v34  ;;  %36592 = vmatmul.mubr.msk.f32.gmra.mrb[82].mxu0 %vm398_vm0, %v22220_v12  ;;  %v23254_v34 = vld [vmem:[%s39948_s10 + $0x67e] sm:$0xff] }
 0x6d2   : > { %34596 = vmatprep.mubr.msk.f32.mxu1 %vm398_vm0, %v8873_v35  ;;  %36594 = vmatprep.mubr.msk.f32.mxu0 %vm398_vm0, %v22221_v46  ;;  %v43979_v12 = vld [vmem:[%s39948_s10 + $0x478] sm:$0xff]  ;;  %v23255_v35 = vld [vmem:[%s39948_s10 + $0x686] sm:$0xff] }
 0x6d3   : > { %v43989_v46 = vld [vmem:[%s39948_s10 + $0x480] sm:$0xff] }
 0x6d5   : > { %34597 = vmatmul.mubr.msk.f32.gmra.mrb[32].mxu1 %vm398_vm0, %v8874_v37  ;;  %36595 = vmatmul.mubr.msk.f32.gmra.mrb[84].mxu0 %vm398_vm0, %v22222_v58  ;;  %v23256_v37 = vld [vmem:[%s39948_s10 + $0x68e] sm:$0xff] }
 0x6d6   : > { %34599 = vmatprep.mubr.msk.f32.mxu1 %vm398_vm0, %v8875_v29  ;;  %36597 = vmatprep.mubr.msk.f32.mxu0 %vm398_vm0, %v22223_v39  ;;  %v43993_v58 = vld [vmem:[%s39948_s10 + $0x488] sm:$0xff]  ;;  %v23257_v29 = vld [vmem:[%s39948_s10 + $0x696] sm:$0xff] }
 0x6d7   : > { %v44003_v39 = vld [vmem:[%s39948_s10 + $0x490] sm:$0xff] }
 0x6d9   : > { %34600 = vmatmul.mubr.msk.f32.gmra.mrb[34].mxu1 %vm398_vm0, %v8876_v42  ;;  %36598 = vmatmul.mubr.msk.f32.gmra.mrb[86].mxu0 %vm398_vm0, %v22224_v44  ;;  %v23258_v42 = vld [vmem:[%s39948_s10 + $0x69e] sm:$0xff] }
 0x6da   : > { %34602 = vmatprep.mubr.msk.f32.mxu1 %vm398_vm0, %v43788_v45  ;;  %36600 = vmatprep.mubr.msk.f32.mxu0 %vm398_vm0, %v22225_v17  ;;  %v44007_v44 = vld [vmem:[%s39948_s10 + $0x498] sm:$0xff]  ;;  %v23259_v17 = vld [vmem:[%s39948_s10 + $0x6a6] sm:$0xff] }
 0x6dd   : > { %34603 = vmatmul.mubr.msk.f32.gmra.mrb[36].mxu1 %vm398_vm0, %v43797_v47  ;;  %36601 = vmatmul.mubr.msk.f32.gmra.mrb[88].mxu0 %vm398_vm0, %v22226_v49  ;;  %v44017_v49 = vld [vmem:[%s39948_s10 + $0x4a0] sm:$0xff] }
 0x6de   : > { %34605 = vmatprep.mubr.msk.f32.mxu1 %vm398_vm0, %v43801_v52  ;;  %36603 = vmatprep.mubr.msk.f32.mxu0 %vm398_vm0, %v22227_v53  ;;  %v23260_v53 = vld [vmem:[%s39948_s10 + $0x6ae] sm:$0xff] }
 0x6e1   : > { %34606 = vmatmul.mubr.msk.f32.gmra.mrb[38].mxu1 %vm398_vm0, %v43811_v55  ;;  %36604 = vmatmul.mubr.msk.f32.gmra.mrb[90].mxu0 %vm398_vm0, %v22228_v57  ;;  %v44021_v57 = vld [vmem:[%s39948_s10 + $0x4a8] sm:$0xff] }
 0x6e2   : > { %34608 = vmatprep.mubr.msk.f32.mxu1 %vm398_vm0, %v43815_v61  ;;  %36606 = vmatprep.mubr.msk.f32.mxu0 %vm398_vm0, %v22229_v63  ;;  %v23261_v63 = vld [vmem:[%s39948_s10 + $0x6b6] sm:$0xff] }
 0x6e5   : > { %34609 = vmatmul.mubr.msk.f32.gmra.mrb[40].mxu1 %vm398_vm0, %v43822_v3  ;;  %36607 = vmatmul.mubr.msk.f32.gmra.mrb[92].mxu0 %vm398_vm0, %v22230_v8  ;;  %v44031_v8 = vld [vmem:[%s39948_s10 + $0x4b0] sm:$0xff] }
 0x6e6   : > { %34611 = vmatprep.mubr.msk.f32.mxu1 %vm398_vm0, %v43835_v18  ;;  %36609 = vmatprep.mubr.msk.f32.mxu0 %vm398_vm0, %v22231_v24  ;;  %v23263_v24 = vld [vmem:[%s39948_s10 + $0x6c6] sm:$0xff] }
 0x6e9   : > { %34612 = vmatmul.mubr.msk.f32.gmra.mrb[42].mxu1 %vm398_vm0, %v43847_v28  ;;  %36610 = vmatmul.mubr.msk.f32.gmra.mrb[94].mxu0 %vm398_vm0, %v22232_v32  ;;  %v44045_v32 = vld [vmem:[%s39948_s10 + $0x4c0] sm:$0xff] }
 0x6ea   : > { %34614 = vmatprep.mubr.msk.f32.mxu1 %vm398_vm0, %v43851_v36  ;;  %36612 = vmatprep.mubr.msk.f32.mxu0 %vm398_vm0, %v22233_v40  ;;  %v23264_v40 = vld [vmem:[%s39948_s10 + $0x6ce] sm:$0xff] }
 0x6ed   : > { %34615 = vmatmul.mubr.msk.f32.gmra.mrb[44].mxu1 %vm398_vm0, %v43862_v21  ;;  %36613 = vmatmul.mubr.msk.f32.gmra.mrb[96].mxu0 %vm398_vm0, %v22234_v33  ;;  %v44049_v33 = vld [vmem:[%s39948_s10 + $0x4c8] sm:$0xff] }
 0x6ee   : > { %34617 = vmatprep.mubr.msk.f32.mxu1 %vm398_vm0, %v43866_v7  ;;  %36615 = vmatprep.mubr.msk.f32.mxu0 %vm398_vm0, %v22235_v48  ;;  %v23265_v48 = vld [vmem:[%s39948_s10 + $0x6d6] sm:$0xff] }
 0x6f1   : > { %34618 = vmatmul.mubr.msk.f32.gmra.mrb[46].mxu1 %vm398_vm0, %v43876_v41  ;;  %36616 = vmatmul.mubr.msk.f32.gmra.mrb[98].mxu0 %vm398_vm0, %v22236_v56  ;;  %v44059_v56 = vld [vmem:[%s39948_s10 + $0x4d0] sm:$0xff] }
 0x6f2   : > { %34620 = vmatprep.mubr.msk.f32.mxu1 %vm398_vm0, %v43880_v60  ;;  %36618 = vmatprep.mubr.msk.f32.mxu0 %vm398_vm0, %v22237_v10  ;;  %v23266_v10 = vld [vmem:[%s39948_s10 + $0x6de] sm:$0xff] }
 0x6f5   : > { %34621 = vmatmul.mubr.msk.f32.gmra.mrb[48].mxu1 %vm398_vm0, %v43890_v16  ;;  %36619 = vmatmul.mubr.msk.f32.gmra.mrb[100].mxu0 %vm398_vm0, %v22238_v26  ;;  %v44063_v26 = vld [vmem:[%s39948_s10 + $0x4d8] sm:$0xff] }
 0x6f6   : > { %34623 = vmatprep.mubr.msk.f32.mxu1 %vm398_vm0, %v43894_v51  ;;  %36621 = vmatprep.mubr.msk.f32.mxu0 %vm398_vm0, %v22239_v43  ;;  %v23267_v43 = vld [vmem:[%s39948_s10 + $0x6e6] sm:$0xff] }
 0x6f9   : > { %34624 = vmatmul.mubr.msk.f32.gmra.mrb[50].mxu1 %vm398_vm0, %v43904_v38  ;;  %36622 = vmatmul.mubr.msk.f32.gmra.mrb[102].mxu0 %vm398_vm0, %v22240_v50  ;;  %v44073_v50 = vld [vmem:[%s39948_s10 + $0x4e0] sm:$0xff] }
 0x6fa   : > { %34626 = vmatprep.mubr.msk.f32.mxu1 %vm398_vm0, %v43908_v62  ;;  %36628 = vmatprep.mubr.msk.f32.mxu0 %vm398_vm0, %v23245_v20  ;;  %v23268_v20 = vld [vmem:[%s39948_s10 + $0x6ee] sm:$0xff] }
 0x6fd   : > { %34627 = vmatmul.mubr.msk.f32.gmra.mrb[52].mxu1 %vm398_vm0, %v43918_v0  ;;  %36629 = vmatmul.mubr.msk.f32.vlgmr.msra.gmra.mrb[0].mxu0 %vm398_vm0, %v23246_v2  ;;  %v44077_v2 = vld [vmem:[%s39948_s10 + $0x4e8] sm:$0xff] }
 0x6fe   : > { %37355 = vmatpush3.bf16.msra.mxu0 %v43601_v1  ;;  %34629 = vmatprep.mubr.msk.f32.mxu1 %vm398_vm0, %v43922_v5  ;;  %v43947_v1 = vld [vmem:[%s39948_s10 + $0x450] sm:$0xff] }
 0x6ff   : > { %36631 = vmatprep.mubr.msk.f32.mxu0 %vm398_vm0, %v23247_v23  ;;  %v23269_v23 = vld [vmem:[%s39948_s10 + $0x6f6] sm:$0xff] }
 0x701   : > { %34630 = vmatmul.mubr.msk.f32.gmra.mrb[54].mxu1 %vm398_vm0, %v43932_v6  ;;  %36632 = vmatmul.mubr.msk.f32.gmra.mrb[2].mxu0 %vm398_vm0, %v23248_v9  ;;  %v44087_v9 = vld [vmem:[%s39948_s10 + $0x4f0] sm:$0xff] }
 0x702   : > { %34632 = vmatprep.mubr.msk.f32.mxu1 %vm398_vm0, %v43937_v13  ;;  %36634 = vmatprep.mubr.msk.f32.mxu0 %vm398_vm0, %v23249_v54  ;;  %v23270_v54 = vld [vmem:[%s39948_s10 + $0x6fe] sm:$0xff] }
 0x705   : > { %34633 = vmatmul.mubr.msk.f32.gmra.mrb[56].mxu1 %vm398_vm0, %v43947_v1  ;;  %36635 = vmatmul.mubr.msk.f32.gmra.mrb[4].mxu0 %vm398_vm0, %v23250_v14  ;;  %v44091_v14 = vld [vmem:[%s39948_s10 + $0x4f8] sm:$0xff] }
 0x706   : > { %34635 = vmatprep.mubr.msk.f32.mxu1 %vm398_vm0, %v43951_v4  ;;  %36637 = vmatprep.mubr.msk.f32.mxu0 %vm398_vm0, %v23251_v19  ;;  %v23271_v19 = vld [vmem:[%s39948_s10 + $0x706] sm:$0xff] }
 0x709   : > { %34636 = vmatmul.mubr.msk.f32.gmra.mrb[58].mxu1 %vm398_vm0, %v43961_v22  ;;  %36638 = vmatmul.mubr.msk.f32.gmra.mrb[6].mxu0 %vm398_vm0, %v23252_v25  ;;  %v44101_v25 = vld [vmem:[%s39948_s10 + $0x500] sm:$0xff] }
 0x70a   : > { %34638 = vmatprep.mubr.msk.f32.mxu1 %vm398_vm0, %v43965_v27  ;;  %36640 = vmatprep.mubr.msk.f32.mxu0 %vm398_vm0, %v23253_v30  ;;  %v23272_v30 = vld [vmem:[%s39948_s10 + $0x70e] sm:$0xff] }
 0x70d   : > { %34639 = vmatmul.mubr.msk.f32.gmra.mrb[60].mxu1 %vm398_vm0, %v43975_v31  ;;  %36641 = vmatmul.mubr.msk.f32.gmra.mrb[8].mxu0 %vm398_vm0, %v23254_v34  ;;  %v44105_v34 = vld [vmem:[%s39948_s10 + $0x508] sm:$0xff] }
 0x70e   : > { %34641 = vmatprep.mubr.msk.f32.mxu1 %vm398_vm0, %v43979_v12  ;;  %36643 = vmatprep.mubr.msk.f32.mxu0 %vm398_vm0, %v23255_v35  ;;  %v23273_v35 = vld [vmem:[%s39948_s10 + $0x716] sm:$0xff] }
 0x711   : > { %34642 = vmatmul.mubr.msk.f32.gmra.mrb[62].mxu1 %vm398_vm0, %v43989_v46  ;;  %36644 = vmatmul.mubr.msk.f32.gmra.mrb[10].mxu0 %vm398_vm0, %v23256_v37  ;;  %v44115_v37 = vld [vmem:[%s39948_s10 + $0x510] sm:$0xff] }
 0x712   : > { %34644 = vmatprep.mubr.msk.f32.mxu1 %vm398_vm0, %v43993_v58  ;;  %36646 = vmatprep.mubr.msk.f32.mxu0 %vm398_vm0, %v23257_v29  ;;  %v23274_v29 = vld [vmem:[%s39948_s10 + $0x71e] sm:$0xff] }
 0x715   : > { %34645 = vmatmul.mubr.msk.f32.gmra.mrb[64].mxu1 %vm398_vm0, %v44003_v39  ;;  %36647 = vmatmul.mubr.msk.f32.gmra.mrb[12].mxu0 %vm398_vm0, %v23258_v42  ;;  %v44119_v42 = vld [vmem:[%s39948_s10 + $0x518] sm:$0xff] }
 0x716   : > { %34647 = vmatprep.mubr.msk.f32.mxu1 %vm398_vm0, %v44007_v44  ;;  %36649 = vmatprep.mubr.msk.f32.mxu0 %vm398_vm0, %v23259_v17  ;;  %v23275_v17 = vld [vmem:[%s39948_s10 + $0x726] sm:$0xff] }
 0x719   : > { %34648 = vmatmul.mubr.msk.f32.gmra.mrb[66].mxu1 %vm398_vm0, %v44017_v49  ;;  %36650 = vmatmul.mubr.msk.f32.gmra.mrb[14].mxu0 %vm398_vm0, %v23260_v53  ;;  %v44129_v53 = vld [vmem:[%s39948_s10 + $0x520] sm:$0xff] }
 0x71a   : > { %34650 = vmatprep.mubr.msk.f32.mxu1 %vm398_vm0, %v44021_v57  ;;  %36652 = vmatprep.mubr.msk.f32.mxu0 %vm398_vm0, %v23261_v63  ;;  %v23276_v63 = vld [vmem:[%s39948_s10 + $0x72e] sm:$0xff] }
 0x71d   : > { %34651 = vmatmul.mubr.msk.f32.gmra.mrb[68].mxu1 %vm398_vm0, %v44031_v8  ;;  %36653 = vmatmul.mubr.msk.f32.gmra.mrb[16].mxu0 %vm398_vm0, %v23262_v11  ;;  %v44133_v11 = vld [vmem:[%s39948_s10 + $0x528] sm:$0xff] }
 0x71e   : > { %34653 = vmatprep.mubr.msk.f32.mxu1 %vm398_vm0, %v44035_v15  ;;  %36655 = vmatprep.mubr.msk.f32.mxu0 %vm398_vm0, %v23263_v24  ;;  %v23277_v24 = vld [vmem:[%s39948_s10 + $0x736] sm:$0xff] }
 0x721   : > { %34654 = vmatmul.mubr.msk.f32.gmra.mrb[70].mxu1 %vm398_vm0, %v44045_v32  ;;  %36656 = vmatmul.mubr.msk.f32.gmra.mrb[18].mxu0 %vm398_vm0, %v23264_v40  ;;  %v44143_v40 = vld [vmem:[%s39948_s10 + $0x530] sm:$0xff] }
 0x722   : > { %34656 = vmatprep.mubr.msk.f32.mxu1 %vm398_vm0, %v44049_v33  ;;  %36658 = vmatprep.mubr.msk.f32.mxu0 %vm398_vm0, %v23265_v48  ;;  %v23278_v48 = vld [vmem:[%s39948_s10 + $0x73e] sm:$0xff] }
 0x725   : > { %34657 = vmatmul.mubr.msk.f32.gmra.mrb[72].mxu1 %vm398_vm0, %v44059_v56  ;;  %36659 = vmatmul.mubr.msk.f32.gmra.mrb[20].mxu0 %vm398_vm0, %v23266_v10  ;;  %v44147_v10 = vld [vmem:[%s39948_s10 + $0x538] sm:$0xff] }
 0x726   : > { %34659 = vmatprep.mubr.msk.f32.mxu1 %vm398_vm0, %v44063_v26  ;;  %36661 = vmatprep.mubr.msk.f32.mxu0 %vm398_vm0, %v23267_v43  ;;  %v23279_v43 = vld [vmem:[%s39948_s10 + $0x746] sm:$0xff] }
 0x729   : > { %34660 = vmatmul.mubr.msk.f32.gmra.mrb[74].mxu1 %vm398_vm0, %v44073_v50  ;;  %36662 = vmatmul.mubr.msk.f32.gmra.mrb[22].mxu0 %vm398_vm0, %v23268_v20  ;;  %v44157_v20 = vld [vmem:[%s39948_s10 + $0x540] sm:$0xff] }
 0x72a   : > { %34662 = vmatprep.mubr.msk.f32.mxu1 %vm398_vm0, %v44077_v2  ;;  %36664 = vmatprep.mubr.msk.f32.mxu0 %vm398_vm0, %v23269_v23  ;;  %v23280_v23 = vld [vmem:[%s39948_s10 + $0x74e] sm:$0xff] }
 0x72d   : > { %34663 = vmatmul.mubr.msk.f32.gmra.mrb[76].mxu1 %vm398_vm0, %v44087_v9  ;;  %36665 = vmatmul.mubr.msk.f32.gmra.mrb[24].mxu0 %vm398_vm0, %v23270_v54  ;;  %v44161_v54 = vld [vmem:[%s39948_s10 + $0x548] sm:$0xff] }
 0x72e   : > { %34665 = vmatprep.mubr.msk.f32.mxu1 %vm398_vm0, %v44091_v14  ;;  %36667 = vmatprep.mubr.msk.f32.mxu0 %vm398_vm0, %v23271_v19  ;;  %v23281_v19 = vld [vmem:[%s39948_s10 + $0x756] sm:$0xff] }
 0x731   : > { %34666 = vmatmul.mubr.msk.f32.gmra.mrb[78].mxu1 %vm398_vm0, %v44101_v25  ;;  %36668 = vmatmul.mubr.msk.f32.gmra.mrb[26].mxu0 %vm398_vm0, %v23272_v30  ;;  %v44171_v30 = vld [vmem:[%s39948_s10 + $0x550] sm:$0xff] }
 0x732   : > { %34668 = vmatprep.mubr.msk.f32.mxu1 %vm398_vm0, %v44105_v34  ;;  %36670 = vmatprep.mubr.msk.f32.mxu0 %vm398_vm0, %v23273_v35  ;;  %46191 = vst [vmem:[#allocation3_spill] sm:$0xff] %v44171_v30  ;;  %v23282_v35 = vld [vmem:[%s39948_s10 + $0x75e] sm:$0xff] }
 0x735   : > { %34669 = vmatmul.mubr.msk.f32.gmra.mrb[80].mxu1 %vm398_vm0, %v44115_v37  ;;  %36671 = vmatmul.mubr.msk.f32.gmra.mrb[28].mxu0 %vm398_vm0, %v23274_v29  ;;  %v44175_v29 = vld [vmem:[%s39948_s10 + $0x558] sm:$0xff] }
 0x736   : > { %34671 = vmatprep.mubr.msk.f32.mxu1 %vm398_vm0, %v44119_v42  ;;  %36673 = vmatprep.mubr.msk.f32.mxu0 %vm398_vm0, %v23275_v17  ;;  %46192 = vst [vmem:[#allocation4_spill] sm:$0xff] %v44175_v29  ;;  %v23283_v17 = vld [vmem:[%s39948_s10 + $0x766] sm:$0xff] }
 0x739   : > { %34672 = vmatmul.mubr.msk.f32.gmra.mrb[82].mxu1 %vm398_vm0, %v44129_v53  ;;  %36674 = vmatmul.mubr.msk.f32.gmra.mrb[30].mxu0 %vm398_vm0, %v23276_v63  ;;  %v44185_v63 = vld [vmem:[%s39948_s10 + $0x560] sm:$0xff] }
 0x73a   : > { %34674 = vmatprep.mubr.msk.f32.mxu1 %vm398_vm0, %v44133_v11  ;;  %36676 = vmatprep.mubr.msk.f32.mxu0 %vm398_vm0, %v23277_v24  ;;  %46193 = vst [vmem:[#allocation5_spill] sm:$0xff] %v44185_v63  ;;  %v23284_v24 = vld [vmem:[%s39948_s10 + $0x76e] sm:$0xff] }
 0x73d   : > { %34675 = vmatmul.mubr.msk.f32.gmra.mrb[84].mxu1 %vm398_vm0, %v44143_v40  ;;  %36677 = vmatmul.mubr.msk.f32.gmra.mrb[32].mxu0 %vm398_vm0, %v23278_v48  ;;  %v44189_v48 = vld [vmem:[%s39948_s10 + $0x568] sm:$0xff] }
 0x73e   : > { %34677 = vmatprep.mubr.msk.f32.mxu1 %vm398_vm0, %v44147_v10  ;;  %36679 = vmatprep.mubr.msk.f32.mxu0 %vm398_vm0, %v23279_v43  ;;  %46194 = vst [vmem:[#allocation6_spill] sm:$0xff] %v44189_v48  ;;  %v23285_v43 = vld [vmem:[%s39948_s10 + $0x776] sm:$0xff] }
 0x741   : > { %34678 = vmatmul.mubr.msk.f32.gmra.mrb[86].mxu1 %vm398_vm0, %v44157_v20  ;;  %36680 = vmatmul.mubr.msk.f32.gmra.mrb[34].mxu0 %vm398_vm0, %v23280_v23  ;;  %v44196_v23 = vld [vmem:[%s39948_s10 + $0x570] sm:$0xff] }
 0x742   : > { %34680 = vmatprep.mubr.msk.f32.mxu1 %vm398_vm0, %v44161_v54  ;;  %36682 = vmatprep.mubr.msk.f32.mxu0 %vm398_vm0, %v23281_v19  ;;  %v23286_v19 = vld [vmem:[%s39948_s10 + $0x77e] sm:$0xff] }
 0x745   : > { %34681 = vmatmul.mubr.msk.f32.gmra.mrb[88].mxu1 %vm398_vm0, %v44171_v30  ;;  %36683 = vmatmul.mubr.msk.f32.gmra.mrb[36].mxu0 %vm398_vm0, %v23282_v35  ;;  %v30399_v35 = vld [vmem:[%s46145_s2 + $0x170] sm:$0xff]  ;;  %v44225_v30 = vld [vmem:[%s39948_s10 + $0x588] sm:$0xff] }
 0x746   : > { %34683 = vmatprep.mubr.msk.f32.mxu1 %vm398_vm0, %v44175_v29  ;;  %36685 = vmatprep.mubr.msk.f32.mxu0 %vm398_vm0, %v23283_v17  ;;  %v30400_v17 = vld [vmem:[%s46145_s2 + $0x178] sm:$0xff]  ;;  %46197 = vst [vmem:[#allocation9_spill] sm:$0xff] %v44225_v30 }
 0x747   : > { %v44212_v29 = vpack.c.bf16 %v30400_v17, %v30399_v35  ;;  %v23289_v35 = vld [vmem:[%s39948_s10 + $0x796] sm:$0xff]  ;;  %v23290_v17 = vld [vmem:[%s39948_s10 + $0x79e] sm:$0xff] }
 0x749   : > { %34684 = vmatmul.mubr.msk.f32.gmra.mrb[90].mxu1 %vm398_vm0, %v44185_v63  ;;  %36686 = vmatmul.mubr.msk.f32.gmra.mrb[38].mxu0 %vm398_vm0, %v23284_v24  ;;  %v44209_v63 = vld [vmem:[%s39948_s10 + $0x578] sm:$0xff]  ;;  %v23287_v24 = vld [vmem:[%s39948_s10 + $0x786] sm:$0xff] }
 0x74a   : > { %34686 = vmatprep.mubr.msk.f32.mxu1 %vm398_vm0, %v44189_v48  ;;  %36688 = vmatprep.mubr.msk.f32.mxu0 %vm398_vm0, %v23285_v43  ;;  %46195 = vst [vmem:[#allocation7_spill] sm:$0xff] %v44209_v63  ;;  %v44221_v43 = vld [vmem:[%s39948_s10 + $0x580] sm:$0xff]  ;;  %v23288_v48 = vld [vmem:[%s39948_s10 + $0x78e] sm:$0xff] }
 0x74b   : > { %46196 = vst [vmem:[#allocation8_spill] sm:$0xff] %v44221_v43  ;;  %37357 = vmatprep.subr.bf16.mxu0 %v44212_v29 }
 0x74d   : > { %34687 = vmatmul.mubr.msk.f32.gmra.mrb[92].mxu1 %vm398_vm0, %v44196_v23  ;;  %36689 = vmatmul.mubr.msk.f32.gmra.mrb[40].mxu0 %vm398_vm0, %v23286_v19  ;;  %v44236_v19 = vld [vmem:[%s39948_s10 + $0x590] sm:$0xff] }
 0x74e   : > { %34689 = vmatprep.mubr.msk.f32.mxu1 %vm398_vm0, %v44209_v63  ;;  %36691 = vmatprep.mubr.msk.f32.mxu0 %vm398_vm0, %v23287_v24  ;;  %46198 = vst [vmem:[#allocation10_spill] sm:$0xff] %v44236_v19  ;;  %v44240_v24 = vld [vmem:[%s39948_s10 + $0x598] sm:$0xff]  ;;  %v23291_v63 = vld [vmem:[%s39948_s10 + $0x7a6] sm:$0xff] }
 0x74f   : > { %46199 = vst [vmem:[#allocation11_spill] sm:$0xff] %v44240_v24 }
 0x751   : > { %34690 = vmatmul.mubr.msk.f32.gmra.mrb[94].mxu1 %vm398_vm0, %v44221_v43  ;;  %36692 = vmatmul.mubr.msk.f32.gmra.mrb[42].mxu0 %vm398_vm0, %v23288_v48  ;;  %v44250_v48 = vld [vmem:[%s39948_s10 + $0x5a0] sm:$0xff]  ;;  %v23293_v43 = vld [vmem:[%s39948_s10 + $0x7b6] sm:$0xff] }
 0x752   : > { %34692 = vmatprep.mubr.msk.f32.mxu1 %vm398_vm0, %v44225_v30  ;;  %36694 = vmatprep.mubr.msk.f32.mxu0 %vm398_vm0, %v23289_v35  ;;  %v23292_v35 = vld [vmem:[%s39948_s10 + $0x7ae] sm:$0xff] }
 0x753   : > { %v44254_v30 = vld [vmem:[%s39948_s10 + $0x5a8] sm:$0xff] }
 0x754   : > { %46200 = vst [vmem:[#allocation12_spill] sm:$0xff] %v44254_v30 }
 0x755   : > { %34693 = vmatmul.mubr.msk.f32.gmra.mrb[96].mxu1 %vm398_vm0, %v44236_v19  ;;  %36695 = vmatmul.mubr.msk.f32.gmra.mrb[44].mxu0 %vm398_vm0, %v23290_v17  ;;  %v23294_v17 = vld [vmem:[%s39948_s10 + $0x7be] sm:$0xff]  ;;  %v23295_v19 = vld [vmem:[%s39948_s10 + $0x7c6] sm:$0xff] }
 0x756   : > { %34695 = vmatprep.mubr.msk.f32.mxu1 %vm398_vm0, %v44240_v24  ;;  %36697 = vmatprep.mubr.msk.f32.mxu0 %vm398_vm0, %v23291_v63  ;;  %v44264_v63 = vld [vmem:[%s39948_s10 + $0x5b0] sm:$0xff]  ;;  %v44268_v24 = vld [vmem:[%s39948_s10 + $0x5b8] sm:$0xff] }
 0x757   : > { %46201 = vst [vmem:[#allocation13_spill] sm:$0xff] %v44268_v24 }
 0x759   : > { %34696 = vmatmul.mubr.msk.f32.gmra.mrb[98].mxu1 %vm398_vm0, %v44250_v48  ;;  %36698 = vmatmul.mubr.msk.f32.gmra.mrb[46].mxu0 %vm398_vm0, %v23292_v35  ;;  %v23296_v35 = vld [vmem:[%s39948_s10 + $0x7ce] sm:$0xff] }
 0x75a   : > { %34698 = vmatprep.mubr.msk.f32.mxu1 %vm398_vm0, %v44254_v30  ;;  %36700 = vmatprep.mubr.msk.f32.mxu0 %vm398_vm0, %v23293_v43  ;;  %v44278_v43 = vld [vmem:[%s39948_s10 + $0x5c0] sm:$0xff]  ;;  %v23297_v30 = vld [vmem:[%s39948_s10 + $0x7d6] sm:$0xff] }
 0x75d   : > { %34699 = vmatmul.mubr.msk.f32.gmra.mrb[100].mxu1 %vm398_vm0, %v44264_v63  ;;  %36701 = vmatmul.mubr.msk.f32.gmra.mrb[48].mxu0 %vm398_vm0, %v23294_v17  ;;  %v23298_v17 = vld [vmem:[%s39948_s10 + $0x7de] sm:$0xff] }
 0x75e   : > { %34701 = vmatprep.mubr.msk.f32.mxu1 %vm398_vm0, %v44268_v24  ;;  %36703 = vmatprep.mubr.msk.f32.mxu0 %vm398_vm0, %v23295_v19  ;;  %v23299_v24 = vld [vmem:[%s39948_s10 + $0x7e6] sm:$0xff]  ;;  %v23300_v19 = vld [vmem:[%s39948_s10 + $0x7ee] sm:$0xff] }
 0x761   : > { %34702 = vmatmul.mubr.msk.f32.gmra.mrb[102].mxu1 %vm398_vm0, %v44278_v43  ;;  %36704 = vmatmul.mubr.msk.f32.gmra.mrb[50].mxu0 %vm398_vm0, %v23296_v35  ;;  %v23345_v35 = vld [vmem:[%s39948_s10 + $0x956] sm:$0xff] }
 0x762   : > { %34708 = vmatprep.mubr.msk.f32.mxu1 %vm398_vm0, %v43788_v45  ;;  %36706 = vmatprep.mubr.msk.f32.mxu0 %vm398_vm0, %v23297_v30  ;;  %v23301_v45 = vld [vmem:[%s39948_s10 + $0x7f6] sm:$0xff]  ;;  %v23339_v30 = vld [vmem:[%s39948_s10 + $0x926] sm:$0xff] }
 0x765   : > { %34709 = vmatmul.mubr.msk.f32.vlgmr.msra.gmra.mrb[0].mxu1 %vm398_vm0, %v43797_v47  ;;  %36707 = vmatmul.mubr.msk.f32.gmra.mrb[52].mxu0 %vm398_vm0, %v23298_v17  ;;  %v23302_v47 = vld [vmem:[%s39948_s10 + $0x7fe] sm:$0xff]  ;;  %v24356_v17 = vld [vmem:[%s39948_s10 + $0x768] sm:$0xff] }
 0x766   : > { %37307 = vmatpush3.bf16.msra.mxu1 %v43838_v59  ;;  %34711 = vmatprep.mubr.msk.f32.mxu1 %vm398_vm0, %v43801_v52  ;;  %v23303_v59 = vld [vmem:[%s39948_s10 + $0x806] sm:$0xff]  ;;  %v23304_v52 = vld [vmem:[%s39948_s10 + $0x80e] sm:$0xff] }
 0x767   : > { %36709 = vmatprep.mubr.msk.f32.mxu0 %vm398_vm0, %v23299_v24  ;;  %v23341_v24 = vld [vmem:[%s39948_s10 + $0x936] sm:$0xff] }
 0x769   : > { %34712 = vmatmul.mubr.msk.f32.gmra.mrb[2].mxu1 %vm398_vm0, %v43811_v55  ;;  %36710 = vmatmul.mubr.msk.f32.gmra.mrb[54].mxu0 %vm398_vm0, %v23300_v19  ;;  %v23305_v55 = vld [vmem:[%s39948_s10 + $0x816] sm:$0xff] }
 0x76a   : > { %34714 = vmatprep.mubr.msk.f32.mxu1 %vm398_vm0, %v43815_v61  ;;  %36712 = vmatprep.mubr.msk.f32.mxu0 %vm398_vm0, %v23301_v45  ;;  %v23306_v61 = vld [vmem:[%s39948_s10 + $0x81e] sm:$0xff] }
 0x76b   : > { %v46204_v19 = vld [vmem:[#allocation5_spill] sm:$0xff]  ;;  %v46205_v45 = vld [vmem:[#allocation6_spill] sm:$0xff] }
 0x76d   : > { %34715 = vmatmul.mubr.msk.f32.gmra.mrb[4].mxu1 %vm398_vm0, %v43822_v3  ;;  %36713 = vmatmul.mubr.msk.f32.gmra.mrb[56].mxu0 %vm398_vm0, %v23302_v47  ;;  %v23307_v3 = vld [vmem:[%s39948_s10 + $0x826] sm:$0xff] }
 0x76e   : > { %34717 = vmatprep.mubr.msk.f32.mxu1 %vm398_vm0, %v43835_v18  ;;  %36715 = vmatprep.mubr.msk.f32.mxu0 %vm398_vm0, %v23303_v59  ;;  %v23308_v18 = vld [vmem:[%s39948_s10 + $0x82e] sm:$0xff]  ;;  %v24359_v47 = vld [vmem:[%s39948_s10 + $0x780] sm:$0xff] }
 0x76f   : > { %v46206_v59 = vld [vmem:[#allocation7_spill] sm:$0xff] }
 0x771   : > { %34718 = vmatmul.mubr.msk.f32.gmra.mrb[6].mxu1 %vm398_vm0, %v43847_v28  ;;  %36716 = vmatmul.mubr.msk.f32.gmra.mrb[58].mxu0 %vm398_vm0, %v23304_v52  ;;  %v23309_v28 = vld [vmem:[%s39948_s10 + $0x836] sm:$0xff]  ;;  %v24360_v52 = vld [vmem:[%s39948_s10 + $0x788] sm:$0xff] }
 0x772   : > { %34720 = vmatprep.mubr.msk.f32.mxu1 %vm398_vm0, %v43851_v36  ;;  %36718 = vmatprep.mubr.msk.f32.mxu0 %vm398_vm0, %v23305_v55  ;;  %v23310_v36 = vld [vmem:[%s39948_s10 + $0x83e] sm:$0xff]  ;;  %v24361_v55 = vld [vmem:[%s39948_s10 + $0x790] sm:$0xff] }
 0x775   : > { %34721 = vmatmul.mubr.msk.f32.gmra.mrb[8].mxu1 %vm398_vm0, %v43862_v21  ;;  %36719 = vmatmul.mubr.msk.f32.gmra.mrb[60].mxu0 %vm398_vm0, %v23306_v61  ;;  %v23311_v21 = vld [vmem:[%s39948_s10 + $0x846] sm:$0xff]  ;;  %v46207_v61 = vld [vmem:[#allocation8_spill] sm:$0xff] }
 0x776   : > { %34723 = vmatprep.mubr.msk.f32.mxu1 %vm398_vm0, %v43866_v7  ;;  %36721 = vmatprep.mubr.msk.f32.mxu0 %vm398_vm0, %v23307_v3  ;;  %v23312_v7 = vld [vmem:[%s39948_s10 + $0x84e] sm:$0xff]  ;;  %v46208_v3 = vld [vmem:[#allocation9_spill] sm:$0xff] }
 0x779   : > { %34724 = vmatmul.mubr.msk.f32.gmra.mrb[10].mxu1 %vm398_vm0, %v43876_v41  ;;  %36722 = vmatmul.mubr.msk.f32.gmra.mrb[62].mxu0 %vm398_vm0, %v23308_v18  ;;  %v23313_v41 = vld [vmem:[%s39948_s10 + $0x856] sm:$0xff]  ;;  %v24363_v18 = vld [vmem:[%s39948_s10 + $0x7a0] sm:$0xff] }
 0x77a   : > { %34726 = vmatprep.mubr.msk.f32.mxu1 %vm398_vm0, %v43880_v60  ;;  %36724 = vmatprep.mubr.msk.f32.mxu0 %vm398_vm0, %v23309_v28  ;;  %v23314_v60 = vld [vmem:[%s39948_s10 + $0x85e] sm:$0xff] }
 0x77b   : > { %v46209_v28 = vld [vmem:[#allocation10_spill] sm:$0xff] }
 0x77d   : > { %34727 = vmatmul.mubr.msk.f32.gmra.mrb[12].mxu1 %vm398_vm0, %v43890_v16  ;;  %36725 = vmatmul.mubr.msk.f32.gmra.mrb[64].mxu0 %vm398_vm0, %v23310_v36  ;;  %v23315_v16 = vld [vmem:[%s39948_s10 + $0x866] sm:$0xff] }
 0x77e   : > { %34729 = vmatprep.mubr.msk.f32.mxu1 %vm398_vm0, %v43894_v51  ;;  %36727 = vmatprep.mubr.msk.f32.mxu0 %vm398_vm0, %v23311_v21  ;;  %v23316_v51 = vld [vmem:[%s39948_s10 + $0x86e] sm:$0xff] }
 0x77f   : > { %v46210_v36 = vld [vmem:[#allocation11_spill] sm:$0xff] }
 0x780   : > { %v24364_v21 = vld [vmem:[%s39948_s10 + $0x7a8] sm:$0xff] }
 0x781   : > { %34730 = vmatmul.mubr.msk.f32.gmra.mrb[14].mxu1 %vm398_vm0, %v43904_v38  ;;  %36728 = vmatmul.mubr.msk.f32.gmra.mrb[66].mxu0 %vm398_vm0, %v23312_v7  ;;  %v23317_v38 = vld [vmem:[%s39948_s10 + $0x876] sm:$0xff] }
 0x782   : > { %34732 = vmatprep.mubr.msk.f32.mxu1 %vm398_vm0, %v43908_v62  ;;  %36730 = vmatprep.mubr.msk.f32.mxu0 %vm398_vm0, %v23313_v41  ;;  %v23318_v62 = vld [vmem:[%s39948_s10 + $0x87e] sm:$0xff]  ;;  %v24365_v7 = vld [vmem:[%s39948_s10 + $0x7b0] sm:$0xff] }
 0x783   : > { %v46211_v41 = vld [vmem:[#allocation12_spill] sm:$0xff] }
 0x785   : > { %34733 = vmatmul.mubr.msk.f32.gmra.mrb[16].mxu1 %vm398_vm0, %v43918_v0  ;;  %36731 = vmatmul.mubr.msk.f32.gmra.mrb[68].mxu0 %vm398_vm0, %v23314_v60  ;;  %v23319_v0 = vld [vmem:[%s39948_s10 + $0x886] sm:$0xff]  ;;  %v24366_v60 = vld [vmem:[%s39948_s10 + $0x7b8] sm:$0xff] }
 0x786   : > { %34735 = vmatprep.mubr.msk.f32.mxu1 %vm398_vm0, %v43922_v5  ;;  %36733 = vmatprep.mubr.msk.f32.mxu0 %vm398_vm0, %v23315_v16  ;;  %v23320_v5 = vld [vmem:[%s39948_s10 + $0x88e] sm:$0xff]  ;;  %v24367_v16 = vld [vmem:[%s39948_s10 + $0x7c0] sm:$0xff] }
 0x789   : > { %34736 = vmatmul.mubr.msk.f32.gmra.mrb[18].mxu1 %vm398_vm0, %v43932_v6  ;;  %36734 = vmatmul.mubr.msk.f32.gmra.mrb[70].mxu0 %vm398_vm0, %v23316_v51  ;;  %v23321_v6 = vld [vmem:[%s39948_s10 + $0x896] sm:$0xff] }
 0x78a   : > { %34738 = vmatprep.mubr.msk.f32.mxu1 %vm398_vm0, %v43937_v13  ;;  %36736 = vmatprep.mubr.msk.f32.mxu0 %vm398_vm0, %v23317_v38  ;;  %v23322_v13 = vld [vmem:[%s39948_s10 + $0x89e] sm:$0xff]  ;;  %v10017_v38 = vld [vmem:[%s39948_s10 + $0x5c8] sm:$0xff] }
 0x78b   : > { %v46212_v51 = vld [vmem:[#allocation13_spill] sm:$0xff] }
 0x78d   : > { %34739 = vmatmul.mubr.msk.f32.gmra.mrb[20].mxu1 %vm398_vm0, %v43947_v1  ;;  %36737 = vmatmul.mubr.msk.f32.gmra.mrb[72].mxu0 %vm398_vm0, %v23318_v62  ;;  %v23323_v1 = vld [vmem:[%s39948_s10 + $0x8a6] sm:$0xff]  ;;  %v24369_v62 = vld [vmem:[%s39948_s10 + $0x7d0] sm:$0xff] }
 0x78e   : > { %34741 = vmatprep.mubr.msk.f32.mxu1 %vm398_vm0, %v43951_v4  ;;  %36739 = vmatprep.mubr.msk.f32.mxu0 %vm398_vm0, %v23319_v0  ;;  %v23324_v4 = vld [vmem:[%s39948_s10 + $0x8ae] sm:$0xff]  ;;  %v24370_v0 = vld [vmem:[%s39948_s10 + $0x7d8] sm:$0xff] }
 0x791   : > { %34742 = vmatmul.mubr.msk.f32.gmra.mrb[22].mxu1 %vm398_vm0, %v43961_v22  ;;  %36740 = vmatmul.mubr.msk.f32.gmra.mrb[74].mxu0 %vm398_vm0, %v23320_v5  ;;  %v23325_v22 = vld [vmem:[%s39948_s10 + $0x8b6] sm:$0xff] }
 0x792   : > { %34744 = vmatprep.mubr.msk.f32.mxu1 %vm398_vm0, %v43965_v27  ;;  %36742 = vmatprep.mubr.msk.f32.mxu0 %vm398_vm0, %v23321_v6  ;;  %v23326_v27 = vld [vmem:[%s39948_s10 + $0x8be] sm:$0xff] }
 0x793   : > { %v10019_v5 = vld [vmem:[%s39948_s10 + $0x5d8] sm:$0xff]  ;;  %v24371_v6 = vld [vmem:[%s39948_s10 + $0x7e0] sm:$0xff] }
 0x795   : > { %34745 = vmatmul.mubr.msk.f32.gmra.mrb[24].mxu1 %vm398_vm0, %v43975_v31  ;;  %36743 = vmatmul.mubr.msk.f32.gmra.mrb[76].mxu0 %vm398_vm0, %v23322_v13  ;;  %v23327_v31 = vld [vmem:[%s39948_s10 + $0x8c6] sm:$0xff] }
 0x796   : > { %34747 = vmatprep.mubr.msk.f32.mxu1 %vm398_vm0, %v43979_v12  ;;  %36745 = vmatprep.mubr.msk.f32.mxu0 %vm398_vm0, %v23323_v1  ;;  %v23328_v12 = vld [vmem:[%s39948_s10 + $0x8ce] sm:$0xff] }
 0x797   : > { %v24372_v13 = vld [vmem:[%s39948_s10 + $0x7e8] sm:$0xff] }
 0x798   : > { %v10021_v1 = vld [vmem:[%s39948_s10 + $0x5e8] sm:$0xff] }
 0x799   : > { %34748 = vmatmul.mubr.msk.f32.gmra.mrb[26].mxu1 %vm398_vm0, %v43989_v46  ;;  %36746 = vmatmul.mubr.msk.f32.gmra.mrb[78].mxu0 %vm398_vm0, %v23324_v4  ;;  %v23329_v46 = vld [vmem:[%s39948_s10 + $0x8d6] sm:$0xff] }
 0x79a   : > { %34750 = vmatprep.mubr.msk.f32.mxu1 %vm398_vm0, %v43993_v58  ;;  %36748 = vmatprep.mubr.msk.f32.mxu0 %vm398_vm0, %v23325_v22  ;;  %v23330_v58 = vld [vmem:[%s39948_s10 + $0x8de] sm:$0xff]  ;;  %v24373_v4 = vld [vmem:[%s39948_s10 + $0x7f0] sm:$0xff] }
 0x79b   : > { %v10022_v22 = vld [vmem:[%s39948_s10 + $0x5f0] sm:$0xff] }
 0x79d   : > { %34751 = vmatmul.mubr.msk.f32.gmra.mrb[28].mxu1 %vm398_vm0, %v44003_v39  ;;  %36749 = vmatmul.mubr.msk.f32.gmra.mrb[80].mxu0 %vm398_vm0, %v23326_v27  ;;  %v23331_v39 = vld [vmem:[%s39948_s10 + $0x8e6] sm:$0xff]  ;;  %v24374_v27 = vld [vmem:[%s39948_s10 + $0x7f8] sm:$0xff] }
 0x79e   : > { %34753 = vmatprep.mubr.msk.f32.mxu1 %vm398_vm0, %v44007_v44  ;;  %36751 = vmatprep.mubr.msk.f32.mxu0 %vm398_vm0, %v23327_v31  ;;  %v23332_v44 = vld [vmem:[%s39948_s10 + $0x8ee] sm:$0xff]  ;;  %v10023_v31 = vld [vmem:[%s39948_s10 + $0x5f8] sm:$0xff] }
 0x7a1   : > { %34754 = vmatmul.mubr.msk.f32.gmra.mrb[30].mxu1 %vm398_vm0, %v44017_v49  ;;  %36752 = vmatmul.mubr.msk.f32.gmra.mrb[82].mxu0 %vm398_vm0, %v23328_v12  ;;  %v23333_v49 = vld [vmem:[%s39948_s10 + $0x8f6] sm:$0xff]  ;;  %v24375_v12 = vld [vmem:[%s39948_s10 + $0x800] sm:$0xff] }
 0x7a2   : > { %34756 = vmatprep.mubr.msk.f32.mxu1 %vm398_vm0, %v44021_v57  ;;  %36754 = vmatprep.mubr.msk.f32.mxu0 %vm398_vm0, %v23329_v46  ;;  %v23334_v57 = vld [vmem:[%s39948_s10 + $0x8fe] sm:$0xff] }
 0x7a3   : > { %v10024_v46 = vld [vmem:[%s39948_s10 + $0x600] sm:$0xff] }
 0x7a5   : > { %34757 = vmatmul.mubr.msk.f32.gmra.mrb[32].mxu1 %vm398_vm0, %v44031_v8  ;;  %36755 = vmatmul.mubr.msk.f32.gmra.mrb[84].mxu0 %vm398_vm0, %v23330_v58  ;;  %v23335_v8 = vld [vmem:[%s39948_s10 + $0x906] sm:$0xff] }
 0x7a6   : > { %34759 = vmatprep.mubr.msk.f32.mxu1 %vm398_vm0, %v44035_v15  ;;  %36757 = vmatprep.mubr.msk.f32.mxu0 %vm398_vm0, %v23331_v39  ;;  %v23336_v15 = vld [vmem:[%s39948_s10 + $0x90e] sm:$0xff] }
 0x7a7   : > { %v24376_v58 = vld [vmem:[%s39948_s10 + $0x808] sm:$0xff] }
 0x7a8   : > { %v10025_v39 = vld [vmem:[%s39948_s10 + $0x608] sm:$0xff] }
 0x7a9   : > { %34760 = vmatmul.mubr.msk.f32.gmra.mrb[34].mxu1 %vm398_vm0, %v44045_v32  ;;  %36758 = vmatmul.mubr.msk.f32.gmra.mrb[86].mxu0 %vm398_vm0, %v23332_v44  ;;  %v23337_v32 = vld [vmem:[%s39948_s10 + $0x916] sm:$0xff] }
 0x7aa   : > { %34762 = vmatprep.mubr.msk.f32.mxu1 %vm398_vm0, %v44049_v33  ;;  %36760 = vmatprep.mubr.msk.f32.mxu0 %vm398_vm0, %v23333_v49  ;;  %v23338_v33 = vld [vmem:[%s39948_s10 + $0x91e] sm:$0xff]  ;;  %v24377_v44 = vld [vmem:[%s39948_s10 + $0x810] sm:$0xff] }
 0x7ab   : > { %v10026_v49 = vld [vmem:[%s39948_s10 + $0x610] sm:$0xff] }
 0x7ad   : > { %34763 = vmatmul.mubr.msk.f32.gmra.mrb[36].mxu1 %vm398_vm0, %v44059_v56  ;;  %36761 = vmatmul.mubr.msk.f32.gmra.mrb[88].mxu0 %vm398_vm0, %v23334_v57  ;;  %v29127_v56 = vld [vmem:[%s46145_s2 + $0xb0] sm:$0xff]  ;;  %v24378_v57 = vld [vmem:[%s39948_s10 + $0x818] sm:$0xff] }
 0x7ae   : > { %34765 = vmatprep.mubr.msk.f32.mxu1 %vm398_vm0, %v44063_v26  ;;  %36763 = vmatprep.mubr.msk.f32.mxu0 %vm398_vm0, %v23335_v8  ;;  %v29128_v26 = vld [vmem:[%s46145_s2 + $0xb8] sm:$0xff] }
 0x7af   : > { %v10027_v8 = vld [vmem:[%s39948_s10 + $0x618] sm:$0xff] }
 0x7b1   : > { %34766 = vmatmul.mubr.msk.f32.gmra.mrb[38].mxu1 %vm398_vm0, %v44073_v50  ;;  %36764 = vmatmul.mubr.msk.f32.gmra.mrb[90].mxu0 %vm398_vm0, %v23336_v15  ;;  %v44457_v50 = vpack.c.bf16 %v29128_v26, %v29127_v56  ;;  %v24379_v15 = vld [vmem:[%s39948_s10 + $0x820] sm:$0xff]  ;;  %v10029_v56 = vld [vmem:[%s39948_s10 + $0x628] sm:$0xff]  ;;  %v24381_v26 = vld [vmem:[%s39948_s10 + $0x830] sm:$0xff] }
 0x7b2   : > { %34768 = vmatprep.mubr.msk.f32.mxu1 %vm398_vm0, %v44077_v2  ;;  %36766 = vmatprep.mubr.msk.f32.mxu0 %vm398_vm0, %v23337_v32  ;;  %v23340_v2 = vld [vmem:[%s39948_s10 + $0x92e] sm:$0xff]  ;;  %v10028_v32 = vld [vmem:[%s39948_s10 + $0x620] sm:$0xff] }
 0x7b3   : > { %37309 = vmatprep.subr.bf16.mxu1 %v44457_v50 }
 0x7b5   : > { %34769 = vmatmul.mubr.msk.f32.gmra.mrb[40].mxu1 %vm398_vm0, %v44087_v9  ;;  %36767 = vmatmul.mubr.msk.f32.gmra.mrb[92].mxu0 %vm398_vm0, %v23338_v33  ;;  %v23342_v9 = vld [vmem:[%s39948_s10 + $0x93e] sm:$0xff]  ;;  %v24380_v33 = vld [vmem:[%s39948_s10 + $0x828] sm:$0xff] }
 0x7b6   : > { %34771 = vmatprep.mubr.msk.f32.mxu1 %vm398_vm0, %v44091_v14  ;;  %36769 = vmatprep.mubr.msk.f32.mxu0 %vm398_vm0, %v23339_v30  ;;  %v23343_v14 = vld [vmem:[%s39948_s10 + $0x946] sm:$0xff]  ;;  %v10030_v30 = vld [vmem:[%s39948_s10 + $0x630] sm:$0xff] }
 0x7b9   : > { %34772 = vmatmul.mubr.msk.f32.gmra.mrb[42].mxu1 %vm398_vm0, %v44101_v25  ;;  %36770 = vmatmul.mubr.msk.f32.gmra.mrb[94].mxu0 %vm398_vm0, %v23340_v2  ;;  %v23344_v25 = vld [vmem:[%s39948_s10 + $0x94e] sm:$0xff]  ;;  %v24382_v2 = vld [vmem:[%s39948_s10 + $0x838] sm:$0xff] }
 0x7ba   : > { %34774 = vmatprep.mubr.msk.f32.mxu1 %vm398_vm0, %v44105_v34  ;;  %36772 = vmatprep.mubr.msk.f32.mxu0 %vm398_vm0, %v23341_v24  ;;  %v23346_v34 = vld [vmem:[%s39948_s10 + $0x95e] sm:$0xff] }
 0x7bb   : > { %v10031_v24 = vld [vmem:[%s39948_s10 + $0x638] sm:$0xff] }
 0x7bd   : > { %34775 = vmatmul.mubr.msk.f32.gmra.mrb[44].mxu1 %vm398_vm0, %v44115_v37  ;;  %36773 = vmatmul.mubr.msk.f32.gmra.mrb[96].mxu0 %vm398_vm0, %v23342_v9  ;;  %v23347_v37 = vld [vmem:[%s39948_s10 + $0x966] sm:$0xff] }
 0x7be   : > { %34777 = vmatprep.mubr.msk.f32.mxu1 %vm398_vm0, %v44119_v42  ;;  %36775 = vmatprep.mubr.msk.f32.mxu0 %vm398_vm0, %v23343_v14  ;;  %v23348_v42 = vld [vmem:[%s39948_s10 + $0x96e] sm:$0xff]  ;;  %v24383_v9 = vld [vmem:[%s39948_s10 + $0x840] sm:$0xff] }
 0x7bf   : > { %v10032_v14 = vld [vmem:[%s39948_s10 + $0x640] sm:$0xff] }
 0x7c1   : > { %34778 = vmatmul.mubr.msk.f32.gmra.mrb[46].mxu1 %vm398_vm0, %v44129_v53  ;;  %36776 = vmatmul.mubr.msk.f32.gmra.mrb[98].mxu0 %vm398_vm0, %v23344_v25  ;;  %v24353_v53 = vld [vmem:[%s39948_s10 + $0x750] sm:$0xff]  ;;  %v24384_v25 = vld [vmem:[%s39948_s10 + $0x848] sm:$0xff] }
 0x7c2   : > { %34780 = vmatprep.mubr.msk.f32.mxu1 %vm398_vm0, %v44133_v11  ;;  %36778 = vmatprep.mubr.msk.f32.mxu0 %vm398_vm0, %v23345_v35  ;;  %v24354_v11 = vld [vmem:[%s39948_s10 + $0x758] sm:$0xff]  ;;  %v10033_v35 = vld [vmem:[%s39948_s10 + $0x648] sm:$0xff] }
 0x7c5   : > { %34781 = vmatmul.mubr.msk.f32.gmra.mrb[48].mxu1 %vm398_vm0, %v44143_v40  ;;  %36779 = vmatmul.mubr.msk.f32.gmra.mrb[100].mxu0 %vm398_vm0, %v23346_v34  ;;  %v24355_v40 = vld [vmem:[%s39948_s10 + $0x760] sm:$0xff]  ;;  %v24385_v34 = vld [vmem:[%s39948_s10 + $0x850] sm:$0xff] }
 0x7c6   : > { %34783 = vmatprep.mubr.msk.f32.mxu1 %vm398_vm0, %v44147_v10  ;;  %36781 = vmatprep.mubr.msk.f32.mxu0 %vm398_vm0, %v23347_v37  ;;  %v46202_v10 = vld [vmem:[#allocation3_spill] sm:$0xff]  ;;  %v10034_v37 = vld [vmem:[%s39948_s10 + $0x650] sm:$0xff] }
 0x7c9   : > { %34784 = vmatmul.mubr.msk.f32.gmra.mrb[50].mxu1 %vm398_vm0, %v44157_v20  ;;  %36782 = vmatmul.mubr.msk.f32.gmra.mrb[102].mxu0 %vm398_vm0, %v23348_v42  ;;  %v46203_v20 = vld [vmem:[#allocation4_spill] sm:$0xff]  ;;  %v24386_v42 = vld [vmem:[%s39948_s10 + $0x858] sm:$0xff] }
 0x7ca   : > { %34786 = vmatprep.mubr.msk.f32.mxu1 %vm398_vm0, %v44161_v54  ;;  %36788 = vmatprep.mubr.msk.f32.mxu0 %vm398_vm0, %v24353_v53  ;;  %v24357_v54 = vld [vmem:[%s39948_s10 + $0x770] sm:$0xff]  ;;  %v10035_v53 = vld [vmem:[%s39948_s10 + $0x658] sm:$0xff] }
 0x7cd   : > { %34787 = vmatmul.mubr.msk.f32.gmra.mrb[52].mxu1 %vm398_vm0, %v46202_v10  ;;  %36789 = vmatmul.mubr.msk.f32.vlgmr.msra.gmra.mrb[0].mxu0 %vm398_vm0, %v24354_v11  ;;  %v24387_v11 = vld [vmem:[%s39948_s10 + $0x860] sm:$0xff]  ;;  %v24388_v10 = vld [vmem:[%s39948_s10 + $0x868] sm:$0xff] }
 0x7ce   : > { %37359 = vmatpush3.bf16.msra.mxu0 %v44212_v29  ;;  %34789 = vmatprep.mubr.msk.f32.mxu1 %vm398_vm0, %v46203_v20  ;;  %v24358_v29 = vld [vmem:[%s39948_s10 + $0x778] sm:$0xff]  ;;  %v10037_v20 = vld [vmem:[%s39948_s10 + $0x668] sm:$0xff] }
 0x7cf   : > { %36791 = vmatprep.mubr.msk.f32.mxu0 %vm398_vm0, %v24355_v40  ;;  %v10036_v40 = vld [vmem:[%s39948_s10 + $0x660] sm:$0xff] }
 0x7d1   : > { %34790 = vmatmul.mubr.msk.f32.gmra.mrb[54].mxu1 %vm398_vm0, %v46204_v19  ;;  %36792 = vmatmul.mubr.msk.f32.gmra.mrb[2].mxu0 %vm398_vm0, %v24356_v17  ;;  %v24389_v17 = vld [vmem:[%s39948_s10 + $0x870] sm:$0xff]  ;;  %v24390_v19 = vld [vmem:[%s39948_s10 + $0x878] sm:$0xff] }
 0x7d2   : > { %34792 = vmatprep.mubr.msk.f32.mxu1 %vm398_vm0, %v46205_v45  ;;  %36794 = vmatprep.mubr.msk.f32.mxu0 %vm398_vm0, %v24357_v54  ;;  %v10038_v54 = vld [vmem:[%s39948_s10 + $0x670] sm:$0xff]  ;;  %v10039_v45 = vld [vmem:[%s39948_s10 + $0x678] sm:$0xff] }
 0x7d5   : > { %34793 = vmatmul.mubr.msk.f32.gmra.mrb[56].mxu1 %vm398_vm0, %v44196_v23  ;;  %36795 = vmatmul.mubr.msk.f32.gmra.mrb[4].mxu0 %vm398_vm0, %v24358_v29  ;;  %v24362_v23 = vld [vmem:[%s39948_s10 + $0x798] sm:$0xff]  ;;  %v24391_v29 = vld [vmem:[%s39948_s10 + $0x880] sm:$0xff] }
 0x7d6   : > { %34795 = vmatprep.mubr.msk.f32.mxu1 %vm398_vm0, %v46206_v59  ;;  %36797 = vmatprep.mubr.msk.f32.mxu0 %vm398_vm0, %v24359_v47  ;;  %v10040_v47 = vld [vmem:[%s39948_s10 + $0x680] sm:$0xff]  ;;  %v24392_v59 = vld [vmem:[%s39948_s10 + $0x888] sm:$0xff] }
 0x7d9   : > { %34796 = vmatmul.mubr.msk.f32.gmra.mrb[58].mxu1 %vm398_vm0, %v46207_v61  ;;  %36798 = vmatmul.mubr.msk.f32.gmra.mrb[6].mxu0 %vm398_vm0, %v24360_v52  ;;  %v10041_v52 = vld [vmem:[%s39948_s10 + $0x688] sm:$0xff]  ;;  %v10042_v61 = vld [vmem:[%s39948_s10 + $0x690] sm:$0xff] }
 0x7da   : > { %34798 = vmatprep.mubr.msk.f32.mxu1 %vm398_vm0, %v46208_v3  ;;  %36800 = vmatprep.mubr.msk.f32.mxu0 %vm398_vm0, %v24361_v55  ;;  %v24393_v55 = vld [vmem:[%s39948_s10 + $0x890] sm:$0xff]  ;;  %v24394_v3 = vld [vmem:[%s39948_s10 + $0x898] sm:$0xff] }
 0x7dd   : > { %34799 = vmatmul.mubr.msk.f32.gmra.mrb[60].mxu1 %vm398_vm0, %v46209_v28  ;;  %36801 = vmatmul.mubr.msk.f32.gmra.mrb[8].mxu0 %vm398_vm0, %v24362_v23  ;;  %v30505_v23 = vld [vmem:[%s46145_s2 + $0x180] sm:$0xff]  ;;  %v10043_v28 = vld [vmem:[%s39948_s10 + $0x698] sm:$0xff] }
 0x7de   : > { %34801 = vmatprep.mubr.msk.f32.mxu1 %vm398_vm0, %v46210_v36  ;;  %36803 = vmatprep.mubr.msk.f32.mxu0 %vm398_vm0, %v24363_v18  ;;  %v30506_v18 = vld [vmem:[%s46145_s2 + $0x188] sm:$0xff]  ;;  %v24395_v36 = vld [vmem:[%s39948_s10 + $0x8a0] sm:$0xff] }
 0x7e1   : > { %34802 = vmatmul.mubr.msk.f32.gmra.mrb[62].mxu1 %vm398_vm0, %v44250_v48  ;;  %36804 = vmatmul.mubr.msk.f32.gmra.mrb[10].mxu0 %vm398_vm0, %v24364_v21  ;;  %v24368_v48 = vld [vmem:[%s39948_s10 + $0x7c8] sm:$0xff]  ;;  %v44677_v21 = vpack.c.bf16 %v30506_v18, %v30505_v23  ;;  %v24425_v18 = vld [vmem:[%s39948_s10 + $0x990] sm:$0xff] }
 0x7e2   : > { %34804 = vmatprep.mubr.msk.f32.mxu1 %vm398_vm0, %v46211_v41  ;;  %36806 = vmatprep.mubr.msk.f32.mxu0 %vm398_vm0, %v24365_v7  ;;  %v10044_v7 = vld [vmem:[%s39948_s10 + $0x6a0] sm:$0xff]  ;;  %v24396_v41 = vld [vmem:[%s39948_s10 + $0x8a8] sm:$0xff] }
 0x7e3   : > { %37361 = vmatprep.subr.bf16.mxu0 %v44677_v21  ;;  %v11077_v23 = vld [vmem:[%s39948_s10 + $0x44e] sm:$0xff] }
 0x7e5   : > { %34805 = vmatmul.mubr.msk.f32.gmra.mrb[64].mxu1 %vm398_vm0, %v44264_v63  ;;  %36807 = vmatmul.mubr.msk.f32.gmra.mrb[12].mxu0 %vm398_vm0, %v24366_v60  ;;  %v10018_v63 = vld [vmem:[%s39948_s10 + $0x5d0] sm:$0xff]  ;;  %v10045_v60 = vld [vmem:[%s39948_s10 + $0x6a8] sm:$0xff] }
 0x7e6   : > { %34807 = vmatprep.mubr.msk.f32.mxu1 %vm398_vm0, %v46212_v51  ;;  %36809 = vmatprep.mubr.msk.f32.mxu0 %vm398_vm0, %v24367_v16  ;;  %v24397_v16 = vld [vmem:[%s39948_s10 + $0x8b0] sm:$0xff] }
 0x7e7   : > { %v10046_v51 = vld [vmem:[%s39948_s10 + $0x6b0] sm:$0xff] }
 0x7e9   : > { %34808 = vmatmul.mubr.msk.f32.gmra.mrb[66].mxu1 %vm398_vm0, %v44278_v43  ;;  %36810 = vmatmul.mubr.msk.f32.gmra.mrb[14].mxu0 %vm398_vm0, %v24368_v48  ;;  %v10020_v43 = vld [vmem:[%s39948_s10 + $0x5e0] sm:$0xff]  ;;  %v24398_v48 = vld [vmem:[%s39948_s10 + $0x8b8] sm:$0xff] }
 0x7ea   : > { %34810 = vmatprep.mubr.msk.f32.mxu1 %vm398_vm0, %v10017_v38  ;;  %36812 = vmatprep.mubr.msk.f32.mxu0 %vm398_vm0, %v24369_v62  ;;  %v10047_v38 = vld [vmem:[%s39948_s10 + $0x6b8] sm:$0xff]  ;;  %v24399_v62 = vld [vmem:[%s39948_s10 + $0x8c0] sm:$0xff] }
 0x7ed   : > { %34811 = vmatmul.mubr.msk.f32.gmra.mrb[68].mxu1 %vm398_vm0, %v10018_v63  ;;  %36813 = vmatmul.mubr.msk.f32.gmra.mrb[16].mxu0 %vm398_vm0, %v24370_v0  ;;  %v10048_v63 = vld [vmem:[%s39948_s10 + $0x6c0] sm:$0xff]  ;;  %v24400_v0 = vld [vmem:[%s39948_s10 + $0x8c8] sm:$0xff] }
 0x7ee   : > { %34813 = vmatprep.mubr.msk.f32.mxu1 %vm398_vm0, %v10019_v5  ;;  %36815 = vmatprep.mubr.msk.f32.mxu0 %vm398_vm0, %v24371_v6  ;;  %v10049_v5 = vld [vmem:[%s39948_s10 + $0x6c8] sm:$0xff]  ;;  %v24401_v6 = vld [vmem:[%s39948_s10 + $0x8d0] sm:$0xff] }
 0x7f1   : > { %34814 = vmatmul.mubr.msk.f32.gmra.mrb[70].mxu1 %vm398_vm0, %v10020_v43  ;;  %36816 = vmatmul.mubr.msk.f32.gmra.mrb[18].mxu0 %vm398_vm0, %v24372_v13  ;;  %v10050_v43 = vld [vmem:[%s39948_s10 + $0x6d0] sm:$0xff]  ;;  %v24402_v13 = vld [vmem:[%s39948_s10 + $0x8d8] sm:$0xff] }
 0x7f2   : > { %34816 = vmatprep.mubr.msk.f32.mxu1 %vm398_vm0, %v10021_v1  ;;  %36818 = vmatprep.mubr.msk.f32.mxu0 %vm398_vm0, %v24373_v4  ;;  %v10051_v1 = vld [vmem:[%s39948_s10 + $0x6d8] sm:$0xff]  ;;  %v24403_v4 = vld [vmem:[%s39948_s10 + $0x8e0] sm:$0xff] }
 0x7f5   : > { %34817 = vmatmul.mubr.msk.f32.gmra.mrb[72].mxu1 %vm398_vm0, %v10022_v22  ;;  %36819 = vmatmul.mubr.msk.f32.gmra.mrb[20].mxu0 %vm398_vm0, %v24374_v27  ;;  %v10052_v22 = vld [vmem:[%s39948_s10 + $0x6e0] sm:$0xff]  ;;  %v24404_v27 = vld [vmem:[%s39948_s10 + $0x8e8] sm:$0xff] }
 0x7f6   : > { %34819 = vmatprep.mubr.msk.f32.mxu1 %vm398_vm0, %v10023_v31  ;;  %36821 = vmatprep.mubr.msk.f32.mxu0 %vm398_vm0, %v24375_v12  ;;  %v11057_v31 = vld [vmem:[%s39948_s10 + $0x3ae] sm:$0xff] }
 0x7f7   : > { %v24405_v12 = vld [vmem:[%s39948_s10 + $0x8f0] sm:$0xff] }
 0x7f9   : > { %34820 = vmatmul.mubr.msk.f32.gmra.mrb[74].mxu1 %vm398_vm0, %v10024_v46  ;;  %36822 = vmatmul.mubr.msk.f32.gmra.mrb[22].mxu0 %vm398_vm0, %v24376_v58  ;;  %v11058_v46 = vld [vmem:[%s39948_s10 + $0x3b6] sm:$0xff] }
 0x7fa   : > { %34822 = vmatprep.mubr.msk.f32.mxu1 %vm398_vm0, %v10025_v39  ;;  %36824 = vmatprep.mubr.msk.f32.mxu0 %vm398_vm0, %v24377_v44  ;;  %v24406_v58 = vld [vmem:[%s39948_s10 + $0x8f8] sm:$0xff]  ;;  %v24407_v44 = vld [vmem:[%s39948_s10 + $0x900] sm:$0xff] }
 0x7fb   : > { %v11059_v39 = vld [vmem:[%s39948_s10 + $0x3be] sm:$0xff] }
 0x7fd   : > { %34823 = vmatmul.mubr.msk.f32.gmra.mrb[76].mxu1 %vm398_vm0, %v10026_v49  ;;  %36825 = vmatmul.mubr.msk.f32.gmra.mrb[24].mxu0 %vm398_vm0, %v24378_v57  ;;  %v11060_v49 = vld [vmem:[%s39948_s10 + $0x3c6] sm:$0xff] }
 0x7fe   : > { %34825 = vmatprep.mubr.msk.f32.mxu1 %vm398_vm0, %v10027_v8  ;;  %36827 = vmatprep.mubr.msk.f32.mxu0 %vm398_vm0, %v24379_v15  ;;  %v24408_v57 = vld [vmem:[%s39948_s10 + $0x908] sm:$0xff]  ;;  %v24409_v15 = vld [vmem:[%s39948_s10 + $0x910] sm:$0xff] }
 0x7ff   : > { %v11061_v8 = vld [vmem:[%s39948_s10 + $0x3ce] sm:$0xff] }
 0x801   : > { %34826 = vmatmul.mubr.msk.f32.gmra.mrb[78].mxu1 %vm398_vm0, %v10028_v32  ;;  %36828 = vmatmul.mubr.msk.f32.gmra.mrb[26].mxu0 %vm398_vm0, %v24380_v33  ;;  %v46213_v32 = vld [vmem:[#allocation2_spill] sm:$0xff]  ;;  %v24410_v33 = vld [vmem:[%s39948_s10 + $0x918] sm:$0xff] }
 0x802   : > { %34828 = vmatprep.mubr.msk.f32.mxu1 %vm398_vm0, %v10029_v56  ;;  %36830 = vmatprep.mubr.msk.f32.mxu0 %vm398_vm0, %v24381_v26  ;;  %v11063_v56 = vld [vmem:[%s39948_s10 + $0x3de] sm:$0xff] }
 0x803   : > { %v24411_v26 = vld [vmem:[%s39948_s10 + $0x920] sm:$0xff] }
 0x805   : > { %34829 = vmatmul.mubr.msk.f32.gmra.mrb[80].mxu1 %vm398_vm0, %v10030_v30  ;;  %36831 = vmatmul.mubr.msk.f32.gmra.mrb[28].mxu0 %vm398_vm0, %v24382_v2  ;;  %v11064_v30 = vld [vmem:[%s39948_s10 + $0x3e6] sm:$0xff] }
 0x806   : > { %34831 = vmatprep.mubr.msk.f32.mxu1 %vm398_vm0, %v10031_v24  ;;  %36833 = vmatprep.mubr.msk.f32.mxu0 %vm398_vm0, %v24383_v9  ;;  %v24412_v2 = vld [vmem:[%s39948_s10 + $0x928] sm:$0xff]  ;;  %v24413_v9 = vld [vmem:[%s39948_s10 + $0x930] sm:$0xff] }
 0x807   : > { %v11065_v24 = vld [vmem:[%s39948_s10 + $0x3ee] sm:$0xff] }
 0x809   : > { %34832 = vmatmul.mubr.msk.f32.gmra.mrb[82].mxu1 %vm398_vm0, %v10032_v14  ;;  %36834 = vmatmul.mubr.msk.f32.gmra.mrb[30].mxu0 %vm398_vm0, %v24384_v25  ;;  %v11066_v14 = vld [vmem:[%s39948_s10 + $0x3f6] sm:$0xff] }
 0x80a   : > { %34834 = vmatprep.mubr.msk.f32.mxu1 %vm398_vm0, %v10033_v35  ;;  %36836 = vmatprep.mubr.msk.f32.mxu0 %vm398_vm0, %v24385_v34  ;;  %v24414_v25 = vld [vmem:[%s39948_s10 + $0x938] sm:$0xff]  ;;  %v24415_v34 = vld [vmem:[%s39948_s10 + $0x940] sm:$0xff] }
 0x80b   : > { %v11067_v35 = vld [vmem:[%s39948_s10 + $0x3fe] sm:$0xff] }
 0x80d   : > { %34835 = vmatmul.mubr.msk.f32.gmra.mrb[84].mxu1 %vm398_vm0, %v10034_v37  ;;  %36837 = vmatmul.mubr.msk.f32.gmra.mrb[32].mxu0 %vm398_vm0, %v24386_v42  ;;  %v11068_v37 = vld [vmem:[%s39948_s10 + $0x406] sm:$0xff] }
 0x80e   : > { %34837 = vmatprep.mubr.msk.f32.mxu1 %vm398_vm0, %v10035_v53  ;;  %36839 = vmatprep.mubr.msk.f32.mxu0 %vm398_vm0, %v24387_v11  ;;  %v24416_v42 = vld [vmem:[%s39948_s10 + $0x948] sm:$0xff]  ;;  %v24417_v11 = vld [vmem:[%s39948_s10 + $0x950] sm:$0xff] }
 0x80f   : > { %v11069_v53 = vld [vmem:[%s39948_s10 + $0x40e] sm:$0xff] }
 0x811   : > { %34838 = vmatmul.mubr.msk.f32.gmra.mrb[86].mxu1 %vm398_vm0, %v10036_v40  ;;  %36840 = vmatmul.mubr.msk.f32.gmra.mrb[34].mxu0 %vm398_vm0, %v24388_v10  ;;  %v11070_v40 = vld [vmem:[%s39948_s10 + $0x416] sm:$0xff] }
 0x812   : > { %34840 = vmatprep.mubr.msk.f32.mxu1 %vm398_vm0, %v10037_v20  ;;  %36842 = vmatprep.mubr.msk.f32.mxu0 %vm398_vm0, %v24389_v17  ;;  %v24418_v10 = vld [vmem:[%s39948_s10 + $0x958] sm:$0xff]  ;;  %v24419_v17 = vld [vmem:[%s39948_s10 + $0x960] sm:$0xff] }
 0x813   : > { %v11071_v20 = vld [vmem:[%s39948_s10 + $0x41e] sm:$0xff] }
 0x815   : > { %34841 = vmatmul.mubr.msk.f32.gmra.mrb[88].mxu1 %vm398_vm0, %v10038_v54  ;;  %36843 = vmatmul.mubr.msk.f32.gmra.mrb[36].mxu0 %vm398_vm0, %v24390_v19  ;;  %v11072_v54 = vld [vmem:[%s39948_s10 + $0x426] sm:$0xff] }
 0x816   : > { %34843 = vmatprep.mubr.msk.f32.mxu1 %vm398_vm0, %v10039_v45  ;;  %36845 = vmatprep.mubr.msk.f32.mxu0 %vm398_vm0, %v24391_v29  ;;  %v24420_v19 = vld [vmem:[%s39948_s10 + $0x968] sm:$0xff]  ;;  %v24421_v29 = vld [vmem:[%s39948_s10 + $0x970] sm:$0xff] }
 0x817   : > { %v11073_v45 = vld [vmem:[%s39948_s10 + $0x42e] sm:$0xff] }
 0x819   : > { %34844 = vmatmul.mubr.msk.f32.gmra.mrb[90].mxu1 %vm398_vm0, %v10040_v47  ;;  %36846 = vmatmul.mubr.msk.f32.gmra.mrb[38].mxu0 %vm398_vm0, %v24392_v59  ;;  %v11074_v47 = vld [vmem:[%s39948_s10 + $0x436] sm:$0xff] }
 0x81a   : > { %34846 = vmatprep.mubr.msk.f32.mxu1 %vm398_vm0, %v10041_v52  ;;  %36848 = vmatprep.mubr.msk.f32.mxu0 %vm398_vm0, %v24393_v55  ;;  %v24422_v59 = vld [vmem:[%s39948_s10 + $0x978] sm:$0xff]  ;;  %v24423_v55 = vld [vmem:[%s39948_s10 + $0x980] sm:$0xff] }
 0x81b   : > { %v11075_v52 = vld [vmem:[%s39948_s10 + $0x43e] sm:$0xff] }
 0x81d   : > { %34847 = vmatmul.mubr.msk.f32.gmra.mrb[92].mxu1 %vm398_vm0, %v10042_v61  ;;  %36849 = vmatmul.mubr.msk.f32.gmra.mrb[40].mxu0 %vm398_vm0, %v24394_v3  ;;  %v11076_v61 = vld [vmem:[%s39948_s10 + $0x446] sm:$0xff] }
 0x81e   : > { %34849 = vmatprep.mubr.msk.f32.mxu1 %vm398_vm0, %v10043_v28  ;;  %36851 = vmatprep.mubr.msk.f32.mxu0 %vm398_vm0, %v24395_v36  ;;  %v24424_v3 = vld [vmem:[%s39948_s10 + $0x988] sm:$0xff]  ;;  %v11078_v28 = vld [vmem:[%s39948_s10 + $0x456] sm:$0xff] }
 0x81f   : > { %v24426_v36 = vld [vmem:[%s39948_s10 + $0x998] sm:$0xff] }
 0x821   : > { %34850 = vmatmul.mubr.msk.f32.gmra.mrb[94].mxu1 %vm398_vm0, %v10044_v7  ;;  %36852 = vmatmul.mubr.msk.f32.gmra.mrb[42].mxu0 %vm398_vm0, %v24396_v41  ;;  %v11079_v7 = vld [vmem:[%s39948_s10 + $0x45e] sm:$0xff] }
 0x822   : > { %34852 = vmatprep.mubr.msk.f32.mxu1 %vm398_vm0, %v10045_v60  ;;  %36854 = vmatprep.mubr.msk.f32.mxu0 %vm398_vm0, %v24397_v16  ;;  %v24427_v41 = vld [vmem:[%s39948_s10 + $0x9a0] sm:$0xff]  ;;  %v24428_v16 = vld [vmem:[%s39948_s10 + $0x9a8] sm:$0xff] }
 0x823   : > { %v11080_v60 = vld [vmem:[%s39948_s10 + $0x466] sm:$0xff] }
 0x825   : > { %34853 = vmatmul.mubr.msk.f32.gmra.mrb[96].mxu1 %vm398_vm0, %v10046_v51  ;;  %36855 = vmatmul.mubr.msk.f32.gmra.mrb[44].mxu0 %vm398_vm0, %v24398_v48  ;;  %v11081_v51 = vld [vmem:[%s39948_s10 + $0x46e] sm:$0xff] }
 0x826   : > { %34855 = vmatprep.mubr.msk.f32.mxu1 %vm398_vm0, %v10047_v38  ;;  %36857 = vmatprep.mubr.msk.f32.mxu0 %vm398_vm0, %v24399_v62  ;;  %v24429_v48 = vld [vmem:[%s39948_s10 + $0x9b0] sm:$0xff]  ;;  %v24430_v62 = vld [vmem:[%s39948_s10 + $0x9b8] sm:$0xff] }
 0x827   : > { %v11082_v38 = vld [vmem:[%s39948_s10 + $0x476] sm:$0xff] }
 0x829   : > { %34856 = vmatmul.mubr.msk.f32.gmra.mrb[98].mxu1 %vm398_vm0, %v10048_v63  ;;  %36858 = vmatmul.mubr.msk.f32.gmra.mrb[46].mxu0 %vm398_vm0, %v24400_v0  ;;  %v11083_v63 = vld [vmem:[%s39948_s10 + $0x47e] sm:$0xff] }
 0x82a   : > { %34858 = vmatprep.mubr.msk.f32.mxu1 %vm398_vm0, %v10049_v5  ;;  %36860 = vmatprep.mubr.msk.f32.mxu0 %vm398_vm0, %v24401_v6  ;;  %v24431_v0 = vld [vmem:[%s39948_s10 + $0x9c0] sm:$0xff]  ;;  %v24432_v6 = vld [vmem:[%s39948_s10 + $0x9c8] sm:$0xff] }
 0x82b   : > { %v11084_v5 = vld [vmem:[%s39948_s10 + $0x486] sm:$0xff] }
 0x82d   : > { %34859 = vmatmul.mubr.msk.f32.gmra.mrb[100].mxu1 %vm398_vm0, %v10050_v43  ;;  %36861 = vmatmul.mubr.msk.f32.gmra.mrb[48].mxu0 %vm398_vm0, %v24402_v13  ;;  %v11085_v43 = vld [vmem:[%s39948_s10 + $0x48e] sm:$0xff] }
 0x82e   : > { %34861 = vmatprep.mubr.msk.f32.mxu1 %vm398_vm0, %v10051_v1  ;;  %36863 = vmatprep.mubr.msk.f32.mxu0 %vm398_vm0, %v24403_v4  ;;  %v24433_v13 = vld [vmem:[%s39948_s10 + $0x9d0] sm:$0xff]  ;;  %v24434_v4 = vld [vmem:[%s39948_s10 + $0x9d8] sm:$0xff] }
 0x82f   : > { %v11086_v1 = vld [vmem:[%s39948_s10 + $0x496] sm:$0xff] }
 0x831   : > { %34862 = vmatmul.mubr.msk.f32.gmra.mrb[102].mxu1 %vm398_vm0, %v10052_v22  ;;  %36864 = vmatmul.mubr.msk.f32.gmra.mrb[50].mxu0 %vm398_vm0, %v24404_v27  ;;  %v11087_v22 = vld [vmem:[%s39948_s10 + $0x49e] sm:$0xff] }
 0x832   : > { %34868 = vmatprep.mubr.msk.f32.mxu1 %vm398_vm0, %v11057_v31  ;;  %36866 = vmatprep.mubr.msk.f32.mxu0 %vm398_vm0, %v24405_v12  ;;  %v24435_v27 = vld [vmem:[%s39948_s10 + $0x9e0] sm:$0xff]  ;;  %v24436_v12 = vld [vmem:[%s39948_s10 + $0x9e8] sm:$0xff] }
 0x833   : > { %v11088_v31 = vld [vmem:[%s39948_s10 + $0x4a6] sm:$0xff] }
 0x835   : > { %34869 = vmatmul.mubr.msk.f32.vlgmr.msra.gmra.mrb[0].mxu1 %vm398_vm0, %v11058_v46  ;;  %36867 = vmatmul.mubr.msk.f32.gmra.mrb[52].mxu0 %vm398_vm0, %v24406_v58  ;;  %v11089_v46 = vld [vmem:[%s39948_s10 + $0x4ae] sm:$0xff] }
 0x836   : > { %37311 = vmatpush3.bf16.msra.mxu1 %v44457_v50  ;;  %34871 = vmatprep.mubr.msk.f32.mxu1 %vm398_vm0, %v11059_v39  ;;  %v11062_v50 = vld [vmem:[%s39948_s10 + $0x3d6] sm:$0xff] }
 0x837   : > { %36869 = vmatprep.mubr.msk.f32.mxu0 %vm398_vm0, %v24407_v44  ;;  %37364 = vmatprep.subr.bf16.mxu1 %v46213_v32  ;;  %v24437_v58 = vld [vmem:[%s39948_s10 + $0x9f0] sm:$0xff]  ;;  %v24438_v44 = vld [vmem:[%s39948_s10 + $0x9f8] sm:$0xff] }
 0x838   : > { %v11090_v39 = vld [vmem:[%s39948_s10 + $0x4b6] sm:$0xff] }
 0x839   : > { %34872 = vmatmul.mubr.msk.f32.gmra.mrb[2].mxu1 %vm398_vm0, %v11060_v49  ;;  %36870 = vmatmul.mubr.msk.f32.gmra.mrb[54].mxu0 %vm398_vm0, %v24408_v57  ;;  %v11091_v49 = vld [vmem:[%s39948_s10 + $0x4be] sm:$0xff] }
 0x83a   : > { %34874 = vmatprep.mubr.msk.f32.mxu1 %vm398_vm0, %v11061_v8  ;;  %36872 = vmatprep.mubr.msk.f32.mxu0 %vm398_vm0, %v24409_v15  ;;  %v24439_v57 = vld [vmem:[%s39948_s10 + $0xa00] sm:$0xff]  ;;  %v24440_v15 = vld [vmem:[%s39948_s10 + $0xa08] sm:$0xff] }
 0x83b   : > { %v11092_v8 = vld [vmem:[%s39948_s10 + $0x4c6] sm:$0xff] }
 0x83d   : > { %34875 = vmatmul.mubr.msk.f32.gmra.mrb[4].mxu1 %vm398_vm0, %v11062_v50  ;;  %36873 = vmatmul.mubr.msk.f32.gmra.mrb[56].mxu0 %vm398_vm0, %v24410_v33  ;;  %v11093_v50 = vld [vmem:[%s39948_s10 + $0x4ce] sm:$0xff] }
 0x83e   : > { %34877 = vmatprep.mubr.msk.f32.mxu1 %vm398_vm0, %v11063_v56  ;;  %36875 = vmatprep.mubr.msk.f32.mxu0 %vm398_vm0, %v24411_v26  ;;  %v24441_v33 = vld [vmem:[%s39948_s10 + $0xa10] sm:$0xff]  ;;  %v24442_v26 = vld [vmem:[%s39948_s10 + $0xa18] sm:$0xff] }
 0x83f   : > { %v11094_v56 = vld [vmem:[%s39948_s10 + $0x4d6] sm:$0xff] }
 0x841   : > { %34878 = vmatmul.mubr.msk.f32.gmra.mrb[6].mxu1 %vm398_vm0, %v11064_v30  ;;  %36876 = vmatmul.mubr.msk.f32.gmra.mrb[58].mxu0 %vm398_vm0, %v24412_v2  ;;  %v11095_v30 = vld [vmem:[%s39948_s10 + $0x4de] sm:$0xff] }
 0x842   : > { %34880 = vmatprep.mubr.msk.f32.mxu1 %vm398_vm0, %v11065_v24  ;;  %36878 = vmatprep.mubr.msk.f32.mxu0 %vm398_vm0, %v24413_v9  ;;  %v24443_v2 = vld [vmem:[%s39948_s10 + $0xa20] sm:$0xff]  ;;  %v24444_v9 = vld [vmem:[%s39948_s10 + $0xa28] sm:$0xff] }
 0x843   : > { %v11096_v24 = vld [vmem:[%s39948_s10 + $0x4e6] sm:$0xff] }
 0x845   : > { %34881 = vmatmul.mubr.msk.f32.gmra.mrb[8].mxu1 %vm398_vm0, %v11066_v14  ;;  %36879 = vmatmul.mubr.msk.f32.gmra.mrb[60].mxu0 %vm398_vm0, %v24414_v25  ;;  %v11097_v14 = vld [vmem:[%s39948_s10 + $0x4ee] sm:$0xff] }
 0x846   : > { %34883 = vmatprep.mubr.msk.f32.mxu1 %vm398_vm0, %v11067_v35  ;;  %36881 = vmatprep.mubr.msk.f32.mxu0 %vm398_vm0, %v24415_v34  ;;  %v24445_v25 = vld [vmem:[%s39948_s10 + $0xa30] sm:$0xff]  ;;  %v24446_v34 = vld [vmem:[%s39948_s10 + $0xa38] sm:$0xff] }
 0x847   : > { %v11098_v35 = vld [vmem:[%s39948_s10 + $0x4f6] sm:$0xff] }
 0x849   : > { %34884 = vmatmul.mubr.msk.f32.gmra.mrb[10].mxu1 %vm398_vm0, %v11068_v37  ;;  %36882 = vmatmul.mubr.msk.f32.gmra.mrb[62].mxu0 %vm398_vm0, %v24416_v42  ;;  %v11099_v37 = vld [vmem:[%s39948_s10 + $0x4fe] sm:$0xff] }
 0x84a   : > { %34886 = vmatprep.mubr.msk.f32.mxu1 %vm398_vm0, %v11069_v53  ;;  %36884 = vmatprep.mubr.msk.f32.mxu0 %vm398_vm0, %v24417_v11  ;;  %v24447_v42 = vld [vmem:[%s39948_s10 + $0xa40] sm:$0xff]  ;;  %v24448_v11 = vld [vmem:[%s39948_s10 + $0xa48] sm:$0xff] }
 0x84b   : > { %v11100_v53 = vld [vmem:[%s39948_s10 + $0x506] sm:$0xff] }
 0x84d   : > { %34887 = vmatmul.mubr.msk.f32.gmra.mrb[12].mxu1 %vm398_vm0, %v11070_v40  ;;  %36885 = vmatmul.mubr.msk.f32.gmra.mrb[64].mxu0 %vm398_vm0, %v24418_v10  ;;  %v11101_v40 = vld [vmem:[%s39948_s10 + $0x50e] sm:$0xff] }
 0x84e   : > { %34889 = vmatprep.mubr.msk.f32.mxu1 %vm398_vm0, %v11071_v20  ;;  %36887 = vmatprep.mubr.msk.f32.mxu0 %vm398_vm0, %v24419_v17  ;;  %v24449_v10 = vld [vmem:[%s39948_s10 + $0xa50] sm:$0xff]  ;;  %v24450_v17 = vld [vmem:[%s39948_s10 + $0xa58] sm:$0xff] }
 0x84f   : > { %v11102_v20 = vld [vmem:[%s39948_s10 + $0x516] sm:$0xff] }
 0x851   : > { %34890 = vmatmul.mubr.msk.f32.gmra.mrb[14].mxu1 %vm398_vm0, %v11072_v54  ;;  %36888 = vmatmul.mubr.msk.f32.gmra.mrb[66].mxu0 %vm398_vm0, %v24420_v19  ;;  %v11103_v54 = vld [vmem:[%s39948_s10 + $0x51e] sm:$0xff] }
 0x852   : > { %34892 = vmatprep.mubr.msk.f32.mxu1 %vm398_vm0, %v11073_v45  ;;  %36890 = vmatprep.mubr.msk.f32.mxu0 %vm398_vm0, %v24421_v29  ;;  %v24451_v19 = vld [vmem:[%s39948_s10 + $0xa60] sm:$0xff]  ;;  %v24452_v29 = vld [vmem:[%s39948_s10 + $0xa68] sm:$0xff] }
 0x853   : > { %v11104_v45 = vld [vmem:[%s39948_s10 + $0x526] sm:$0xff] }
 0x855   : > { %34893 = vmatmul.mubr.msk.f32.gmra.mrb[16].mxu1 %vm398_vm0, %v11074_v47  ;;  %36891 = vmatmul.mubr.msk.f32.gmra.mrb[68].mxu0 %vm398_vm0, %v24422_v59  ;;  %v11105_v47 = vld [vmem:[%s39948_s10 + $0x52e] sm:$0xff] }
 0x856   : > { %34895 = vmatprep.mubr.msk.f32.mxu1 %vm398_vm0, %v11075_v52  ;;  %36893 = vmatprep.mubr.msk.f32.mxu0 %vm398_vm0, %v24423_v55  ;;  %v24453_v59 = vld [vmem:[%s39948_s10 + $0xa70] sm:$0xff]  ;;  %v24454_v55 = vld [vmem:[%s39948_s10 + $0xa78] sm:$0xff] }
 0x857   : > { %v11106_v52 = vld [vmem:[%s39948_s10 + $0x536] sm:$0xff] }
 0x859   : > { %34896 = vmatmul.mubr.msk.f32.gmra.mrb[18].mxu1 %vm398_vm0, %v11076_v61  ;;  %36894 = vmatmul.mubr.msk.f32.gmra.mrb[70].mxu0 %vm398_vm0, %v24424_v3  ;;  %v11107_v61 = vld [vmem:[%s39948_s10 + $0x53e] sm:$0xff] }
 0x85a   : > { %34898 = vmatprep.mubr.msk.f32.mxu1 %vm398_vm0, %v11077_v23  ;;  %36896 = vmatprep.mubr.msk.f32.mxu0 %vm398_vm0, %v24425_v18  ;;  %v24455_v3 = vld [vmem:[%s39948_s10 + $0xa80] sm:$0xff]  ;;  %v24456_v18 = vld [vmem:[%s39948_s10 + $0xa88] sm:$0xff] }
 0x85b   : > { %v11108_v23 = vld [vmem:[%s39948_s10 + $0x546] sm:$0xff] }
 0x85d   : > { %34899 = vmatmul.mubr.msk.f32.gmra.mrb[20].mxu1 %vm398_vm0, %v11078_v28  ;;  %36897 = vmatmul.mubr.msk.f32.gmra.mrb[72].mxu0 %vm398_vm0, %v24426_v36  ;;  %v11109_v28 = vld [vmem:[%s39948_s10 + $0x54e] sm:$0xff]  ;;  %v25461_v36 = vld [vmem:[%s39948_s10 + $0x762] sm:$0xff] }
 0x85e   : > { %34901 = vmatprep.mubr.msk.f32.mxu1 %vm398_vm0, %v11079_v7  ;;  %36899 = vmatprep.mubr.msk.f32.mxu0 %vm398_vm0, %v24427_v41  ;;  %v11110_v7 = vld [vmem:[%s39948_s10 + $0x556] sm:$0xff]  ;;  %v25462_v41 = vld [vmem:[%s39948_s10 + $0x76a] sm:$0xff] }
 0x861   : > { %34902 = vmatmul.mubr.msk.f32.gmra.mrb[22].mxu1 %vm398_vm0, %v11080_v60  ;;  %36900 = vmatmul.mubr.msk.f32.gmra.mrb[74].mxu0 %vm398_vm0, %v24428_v16  ;;  %v11111_v60 = vld [vmem:[%s39948_s10 + $0x55e] sm:$0xff]  ;;  %v25463_v16 = vld [vmem:[%s39948_s10 + $0x772] sm:$0xff] }
 0x862   : > { %34904 = vmatprep.mubr.msk.f32.mxu1 %vm398_vm0, %v11081_v51  ;;  %36902 = vmatprep.mubr.msk.f32.mxu0 %vm398_vm0, %v24429_v48  ;;  %v11112_v51 = vld [vmem:[%s39948_s10 + $0x566] sm:$0xff]  ;;  %v25464_v48 = vld [vmem:[%s39948_s10 + $0x77a] sm:$0xff] }
 0x865   : > { %34905 = vmatmul.mubr.msk.f32.gmra.mrb[24].mxu1 %vm398_vm0, %v11082_v38  ;;  %36903 = vmatmul.mubr.msk.f32.gmra.mrb[76].mxu0 %vm398_vm0, %v24430_v62  ;;  %v11113_v38 = vld [vmem:[%s39948_s10 + $0x56e] sm:$0xff]  ;;  %v25465_v62 = vld [vmem:[%s39948_s10 + $0x782] sm:$0xff] }
 0x866   : > { %34907 = vmatprep.mubr.msk.f32.mxu1 %vm398_vm0, %v11083_v63  ;;  %36905 = vmatprep.mubr.msk.f32.mxu0 %vm398_vm0, %v24431_v0  ;;  %v25466_v63 = vld [vmem:[%s39948_s10 + $0x78a] sm:$0xff]  ;;  %v11115_v0 = vld [vmem:[%s39948_s10 + $0x57e] sm:$0xff] }
 0x869   : > { %34908 = vmatmul.mubr.msk.f32.gmra.mrb[26].mxu1 %vm398_vm0, %v11084_v5  ;;  %36906 = vmatmul.mubr.msk.f32.gmra.mrb[78].mxu0 %vm398_vm0, %v24432_v6  ;;  %v25467_v5 = vld [vmem:[%s39948_s10 + $0x792] sm:$0xff]  ;;  %v11116_v6 = vld [vmem:[%s39948_s10 + $0x586] sm:$0xff] }
 0x86a   : > { %34910 = vmatprep.mubr.msk.f32.mxu1 %vm398_vm0, %v11085_v43  ;;  %36908 = vmatprep.mubr.msk.f32.mxu0 %vm398_vm0, %v24433_v13  ;;  %v25468_v43 = vld [vmem:[%s39948_s10 + $0x79a] sm:$0xff]  ;;  %v11117_v13 = vld [vmem:[%s39948_s10 + $0x58e] sm:$0xff] }
 0x86d   : > { %34911 = vmatmul.mubr.msk.f32.gmra.mrb[28].mxu1 %vm398_vm0, %v11086_v1  ;;  %36909 = vmatmul.mubr.msk.f32.gmra.mrb[80].mxu0 %vm398_vm0, %v24434_v4  ;;  %v25469_v1 = vld [vmem:[%s39948_s10 + $0x7a2] sm:$0xff]  ;;  %v11118_v4 = vld [vmem:[%s39948_s10 + $0x596] sm:$0xff] }
 0x86e   : > { %34913 = vmatprep.mubr.msk.f32.mxu1 %vm398_vm0, %v11087_v22  ;;  %36911 = vmatprep.mubr.msk.f32.mxu0 %vm398_vm0, %v24435_v27  ;;  %v25470_v22 = vld [vmem:[%s39948_s10 + $0x7aa] sm:$0xff]  ;;  %v11119_v27 = vld [vmem:[%s39948_s10 + $0x59e] sm:$0xff] }
 0x871   : > { %34914 = vmatmul.mubr.msk.f32.gmra.mrb[30].mxu1 %vm398_vm0, %v11088_v31  ;;  %36912 = vmatmul.mubr.msk.f32.gmra.mrb[82].mxu0 %vm398_vm0, %v24436_v12  ;;  %v25471_v31 = vld [vmem:[%s39948_s10 + $0x7b2] sm:$0xff]  ;;  %v11120_v12 = vld [vmem:[%s39948_s10 + $0x5a6] sm:$0xff] }
 0x872   : > { %34916 = vmatprep.mubr.msk.f32.mxu1 %vm398_vm0, %v11089_v46  ;;  %36914 = vmatprep.mubr.msk.f32.mxu0 %vm398_vm0, %v24437_v58  ;;  %v25472_v46 = vld [vmem:[%s39948_s10 + $0x7ba] sm:$0xff]  ;;  %v11121_v58 = vld [vmem:[%s39948_s10 + $0x5ae] sm:$0xff] }
 0x875   : > { %34917 = vmatmul.mubr.msk.f32.gmra.mrb[32].mxu1 %vm398_vm0, %v11090_v39  ;;  %36915 = vmatmul.mubr.msk.f32.gmra.mrb[84].mxu0 %vm398_vm0, %v24438_v44  ;;  %v25473_v39 = vld [vmem:[%s39948_s10 + $0x7c2] sm:$0xff]  ;;  %v11122_v44 = vld [vmem:[%s39948_s10 + $0x5b6] sm:$0xff] }
 0x876   : > { %34919 = vmatprep.mubr.msk.f32.mxu1 %vm398_vm0, %v11091_v49  ;;  %36917 = vmatprep.mubr.msk.f32.mxu0 %vm398_vm0, %v24439_v57  ;;  %v25474_v49 = vld [vmem:[%s39948_s10 + $0x7ca] sm:$0xff]  ;;  %v11123_v57 = vld [vmem:[%s39948_s10 + $0x5be] sm:$0xff] }
 0x879   : > { %34920 = vmatmul.mubr.msk.f32.gmra.mrb[34].mxu1 %vm398_vm0, %v11092_v8  ;;  %36918 = vmatmul.mubr.msk.f32.gmra.mrb[86].mxu0 %vm398_vm0, %v24440_v15  ;;  %v25475_v8 = vld [vmem:[%s39948_s10 + $0x7d2] sm:$0xff]  ;;  %v11124_v15 = vld [vmem:[%s39948_s10 + $0x5c6] sm:$0xff] }
 0x87a   : > { %34922 = vmatprep.mubr.msk.f32.mxu1 %vm398_vm0, %v11093_v50  ;;  %36920 = vmatprep.mubr.msk.f32.mxu0 %vm398_vm0, %v24441_v33  ;;  %v25476_v50 = vld [vmem:[%s39948_s10 + $0x7da] sm:$0xff]  ;;  %v11125_v33 = vld [vmem:[%s39948_s10 + $0x5ce] sm:$0xff] }
 0x87d   : > { %34923 = vmatmul.mubr.msk.f32.gmra.mrb[36].mxu1 %vm398_vm0, %v11094_v56  ;;  %36921 = vmatmul.mubr.msk.f32.gmra.mrb[88].mxu0 %vm398_vm0, %v24442_v26  ;;  %v25477_v56 = vld [vmem:[%s39948_s10 + $0x7e2] sm:$0xff]  ;;  %v11126_v26 = vld [vmem:[%s39948_s10 + $0x5d6] sm:$0xff] }
 0x87e   : > { %34925 = vmatprep.mubr.msk.f32.mxu1 %vm398_vm0, %v11095_v30  ;;  %36923 = vmatprep.mubr.msk.f32.mxu0 %vm398_vm0, %v24443_v2  ;;  %v25478_v30 = vld [vmem:[%s39948_s10 + $0x7ea] sm:$0xff]  ;;  %v11127_v2 = vld [vmem:[%s39948_s10 + $0x5de] sm:$0xff] }
 0x881   : > { %34926 = vmatmul.mubr.msk.f32.gmra.mrb[38].mxu1 %vm398_vm0, %v11096_v24  ;;  %36924 = vmatmul.mubr.msk.f32.gmra.mrb[90].mxu0 %vm398_vm0, %v24444_v9  ;;  %v25479_v24 = vld [vmem:[%s39948_s10 + $0x7f2] sm:$0xff]  ;;  %v11128_v9 = vld [vmem:[%s39948_s10 + $0x5e6] sm:$0xff] }
 0x882   : > { %34928 = vmatprep.mubr.msk.f32.mxu1 %vm398_vm0, %v11097_v14  ;;  %36926 = vmatprep.mubr.msk.f32.mxu0 %vm398_vm0, %v24445_v25  ;;  %v25480_v14 = vld [vmem:[%s39948_s10 + $0x7fa] sm:$0xff]  ;;  %v11129_v25 = vld [vmem:[%s39948_s10 + $0x5ee] sm:$0xff] }
 0x885   : > { %34929 = vmatmul.mubr.msk.f32.gmra.mrb[40].mxu1 %vm398_vm0, %v11098_v35  ;;  %36927 = vmatmul.mubr.msk.f32.gmra.mrb[92].mxu0 %vm398_vm0, %v24446_v34  ;;  %v25481_v35 = vld [vmem:[%s39948_s10 + $0x802] sm:$0xff]  ;;  %v11130_v34 = vld [vmem:[%s39948_s10 + $0x5f6] sm:$0xff] }
 0x886   : > { %34931 = vmatprep.mubr.msk.f32.mxu1 %vm398_vm0, %v11099_v37  ;;  %36929 = vmatprep.mubr.msk.f32.mxu0 %vm398_vm0, %v24447_v42  ;;  %v25482_v37 = vld [vmem:[%s39948_s10 + $0x80a] sm:$0xff]  ;;  %v11131_v42 = vld [vmem:[%s39948_s10 + $0x5fe] sm:$0xff] }
 0x889   : > { %34932 = vmatmul.mubr.msk.f32.gmra.mrb[42].mxu1 %vm398_vm0, %v11100_v53  ;;  %36930 = vmatmul.mubr.msk.f32.gmra.mrb[94].mxu0 %vm398_vm0, %v24448_v11  ;;  %v25483_v53 = vld [vmem:[%s39948_s10 + $0x812] sm:$0xff]  ;;  %v11132_v11 = vld [vmem:[%s39948_s10 + $0x606] sm:$0xff] }
 0x88a   : > { %34934 = vmatprep.mubr.msk.f32.mxu1 %vm398_vm0, %v11101_v40  ;;  %36932 = vmatprep.mubr.msk.f32.mxu0 %vm398_vm0, %v24449_v10  ;;  %v25484_v40 = vld [vmem:[%s39948_s10 + $0x81a] sm:$0xff]  ;;  %v11133_v10 = vld [vmem:[%s39948_s10 + $0x60e] sm:$0xff] }
 0x88d   : > { %34935 = vmatmul.mubr.msk.f32.gmra.mrb[44].mxu1 %vm398_vm0, %v11102_v20  ;;  %36933 = vmatmul.mubr.msk.f32.gmra.mrb[96].mxu0 %vm398_vm0, %v24450_v17  ;;  %v25485_v20 = vld [vmem:[%s39948_s10 + $0x822] sm:$0xff]  ;;  %v11134_v17 = vld [vmem:[%s39948_s10 + $0x616] sm:$0xff] }
 0x88e   : > { %34937 = vmatprep.mubr.msk.f32.mxu1 %vm398_vm0, %v11103_v54  ;;  %36935 = vmatprep.mubr.msk.f32.mxu0 %vm398_vm0, %v24451_v19  ;;  %v25486_v54 = vld [vmem:[%s39948_s10 + $0x82a] sm:$0xff]  ;;  %v11135_v19 = vld [vmem:[%s39948_s10 + $0x61e] sm:$0xff] }
 0x891   : > { %34938 = vmatmul.mubr.msk.f32.gmra.mrb[46].mxu1 %vm398_vm0, %v11104_v45  ;;  %36936 = vmatmul.mubr.msk.f32.gmra.mrb[98].mxu0 %vm398_vm0, %v24452_v29  ;;  %v25487_v45 = vld [vmem:[%s39948_s10 + $0x832] sm:$0xff]  ;;  %v11136_v29 = vld [vmem:[%s39948_s10 + $0x626] sm:$0xff] }
 0x892   : > { %34940 = vmatprep.mubr.msk.f32.mxu1 %vm398_vm0, %v11105_v47  ;;  %36938 = vmatprep.mubr.msk.f32.mxu0 %vm398_vm0, %v24453_v59  ;;  %v25488_v47 = vld [vmem:[%s39948_s10 + $0x83a] sm:$0xff]  ;;  %v11137_v59 = vld [vmem:[%s39948_s10 + $0x62e] sm:$0xff] }
 0x895   : > { %34941 = vmatmul.mubr.msk.f32.gmra.mrb[48].mxu1 %vm398_vm0, %v11106_v52  ;;  %36939 = vmatmul.mubr.msk.f32.gmra.mrb[100].mxu0 %vm398_vm0, %v24454_v55  ;;  %v25489_v52 = vld [vmem:[%s39948_s10 + $0x842] sm:$0xff]  ;;  %v11138_v55 = vld [vmem:[%s39948_s10 + $0x636] sm:$0xff] }
 0x896   : > { %34943 = vmatprep.mubr.msk.f32.mxu1 %vm398_vm0, %v11107_v61  ;;  %36941 = vmatprep.mubr.msk.f32.mxu0 %vm398_vm0, %v24455_v3  ;;  %v25490_v61 = vld [vmem:[%s39948_s10 + $0x84a] sm:$0xff]  ;;  %v11139_v3 = vld [vmem:[%s39948_s10 + $0x63e] sm:$0xff] }
 0x899   : > { %34944 = vmatmul.mubr.msk.f32.gmra.mrb[50].mxu1 %vm398_vm0, %v11108_v23  ;;  %36942 = vmatmul.mubr.msk.f32.gmra.mrb[102].mxu0 %vm398_vm0, %v24456_v18  ;;  %v25491_v23 = vld [vmem:[%s39948_s10 + $0x852] sm:$0xff]  ;;  %v11140_v18 = vld [vmem:[%s39948_s10 + $0x646] sm:$0xff] }
 0x89a   : > { %34946 = vmatprep.mubr.msk.f32.mxu1 %vm398_vm0, %v11109_v28  ;;  %36948 = vmatprep.mubr.msk.f32.mxu0 %vm398_vm0, %v25461_v36  ;;  %v25492_v28 = vld [vmem:[%s39948_s10 + $0x85a] sm:$0xff]  ;;  %v11141_v36 = vld [vmem:[%s39948_s10 + $0x64e] sm:$0xff] }
 0x89d   : > { %34947 = vmatmul.mubr.msk.f32.gmra.mrb[52].mxu1 %vm398_vm0, %v11110_v7  ;;  %36949 = vmatmul.mubr.msk.f32.vlgmr.msra.gmra.mrb[0].mxu0 %vm398_vm0, %v25462_v41  ;;  %v25493_v7 = vld [vmem:[%s39948_s10 + $0x862] sm:$0xff]  ;;  %v11142_v41 = vld [vmem:[%s39948_s10 + $0x656] sm:$0xff] }
 0x89e   : > { %37363 = vmatpush3.bf16.msra.mxu0 %v44677_v21  ;;  %34949 = vmatprep.mubr.msk.f32.mxu1 %vm398_vm0, %v11111_v60  ;;  %v11114_v21 = vld [vmem:[%s39948_s10 + $0x576] sm:$0xff]  ;;  %v25494_v60 = vld [vmem:[%s39948_s10 + $0x86a] sm:$0xff] }
 0x89f   : > { %36951 = vmatprep.mubr.msk.f32.mxu0 %vm398_vm0, %v25463_v16  ;;  %v11143_v16 = vld [vmem:[%s39948_s10 + $0x65e] sm:$0xff] }
 0x8a1   : > { %34950 = vmatmul.mubr.msk.f32.gmra.mrb[54].mxu1 %vm398_vm0, %v11112_v51  ;;  %36952 = vmatmul.mubr.msk.f32.gmra.mrb[2].mxu0 %vm398_vm0, %v25464_v48  ;;  %v25495_v51 = vld [vmem:[%s39948_s10 + $0x872] sm:$0xff]  ;;  %v11144_v48 = vld [vmem:[%s39948_s10 + $0x666] sm:$0xff] }
 0x8a2   : > { %34952 = vmatprep.mubr.msk.f32.mxu1 %vm398_vm0, %v11113_v38  ;;  %36954 = vmatprep.mubr.msk.f32.mxu0 %vm398_vm0, %v25465_v62  ;;  %v25496_v38 = vld [vmem:[%s39948_s10 + $0x87a] sm:$0xff]  ;;  %v11145_v62 = vld [vmem:[%s39948_s10 + $0x66e] sm:$0xff] }
 0x8a5   : > { %34953 = vmatmul.mubr.msk.f32.gmra.mrb[56].mxu1 %vm398_vm0, %v11114_v21  ;;  %36955 = vmatmul.mubr.msk.f32.gmra.mrb[4].mxu0 %vm398_vm0, %v25466_v63  ;;  %v25497_v21 = vld [vmem:[%s39948_s10 + $0x882] sm:$0xff]  ;;  %v11146_v63 = vld [vmem:[%s39948_s10 + $0x676] sm:$0xff] }
 0x8a6   : > { %34955 = vmatprep.mubr.msk.f32.mxu1 %vm398_vm0, %v11115_v0  ;;  %36957 = vmatprep.mubr.msk.f32.mxu0 %vm398_vm0, %v25467_v5  ;;  %v25498_v0 = vld [vmem:[%s39948_s10 + $0x88a] sm:$0xff]  ;;  %v11147_v5 = vld [vmem:[%s39948_s10 + $0x67e] sm:$0xff] }
 0x8a9   : > { %34956 = vmatmul.mubr.msk.f32.gmra.mrb[58].mxu1 %vm398_vm0, %v11116_v6  ;;  %36958 = vmatmul.mubr.msk.f32.gmra.mrb[6].mxu0 %vm398_vm0, %v25468_v43  ;;  %v25499_v6 = vld [vmem:[%s39948_s10 + $0x892] sm:$0xff]  ;;  %v11148_v43 = vld [vmem:[%s39948_s10 + $0x686] sm:$0xff] }
 0x8aa   : > { %34958 = vmatprep.mubr.msk.f32.mxu1 %vm398_vm0, %v11117_v13  ;;  %36960 = vmatprep.mubr.msk.f32.mxu0 %vm398_vm0, %v25469_v1  ;;  %v25500_v13 = vld [vmem:[%s39948_s10 + $0x89a] sm:$0xff]  ;;  %v11149_v1 = vld [vmem:[%s39948_s10 + $0x68e] sm:$0xff] }
 0x8ad   : > { %34959 = vmatmul.mubr.msk.f32.gmra.mrb[60].mxu1 %vm398_vm0, %v11118_v4  ;;  %36961 = vmatmul.mubr.msk.f32.gmra.mrb[8].mxu0 %vm398_vm0, %v25470_v22  ;;  %v25501_v4 = vld [vmem:[%s39948_s10 + $0x8a2] sm:$0xff]  ;;  %v11150_v22 = vld [vmem:[%s39948_s10 + $0x696] sm:$0xff] }
 0x8ae   : > { %34961 = vmatprep.mubr.msk.f32.mxu1 %vm398_vm0, %v11119_v27  ;;  %36963 = vmatprep.mubr.msk.f32.mxu0 %vm398_vm0, %v25471_v31  ;;  %v25502_v27 = vld [vmem:[%s39948_s10 + $0x8aa] sm:$0xff]  ;;  %v11151_v31 = vld [vmem:[%s39948_s10 + $0x69e] sm:$0xff] }
 0x8b1   : > { %34962 = vmatmul.mubr.msk.f32.gmra.mrb[62].mxu1 %vm398_vm0, %v11120_v12  ;;  %36964 = vmatmul.mubr.msk.f32.gmra.mrb[10].mxu0 %vm398_vm0, %v25472_v46  ;;  %v25503_v12 = vld [vmem:[%s39948_s10 + $0x8b2] sm:$0xff]  ;;  %v11152_v46 = vld [vmem:[%s39948_s10 + $0x6a6] sm:$0xff] }
 0x8b2   : > { %34964 = vmatprep.mubr.msk.f32.mxu1 %vm398_vm0, %v11121_v58  ;;  %36966 = vmatprep.mubr.msk.f32.mxu0 %vm398_vm0, %v25473_v39  ;;  %v25504_v58 = vld [vmem:[%s39948_s10 + $0x8ba] sm:$0xff]  ;;  %v11153_v39 = vld [vmem:[%s39948_s10 + $0x6ae] sm:$0xff] }
 0x8b5   : > { %34965 = vmatmul.mubr.msk.f32.gmra.mrb[64].mxu1 %vm398_vm0, %v11122_v44  ;;  %36967 = vmatmul.mubr.msk.f32.gmra.mrb[12].mxu0 %vm398_vm0, %v25474_v49  ;;  %v25505_v44 = vld [vmem:[%s39948_s10 + $0x8c2] sm:$0xff]  ;;  %v11154_v49 = vld [vmem:[%s39948_s10 + $0x6b6] sm:$0xff] }
 0x8b6   : > { %34967 = vmatprep.mubr.msk.f32.mxu1 %vm398_vm0, %v11123_v57  ;;  %36969 = vmatprep.mubr.msk.f32.mxu0 %vm398_vm0, %v25475_v8  ;;  %v25506_v57 = vld [vmem:[%s39948_s10 + $0x8ca] sm:$0xff]  ;;  %v11155_v8 = vld [vmem:[%s39948_s10 + $0x6be] sm:$0xff] }
 0x8b9   : > { %34968 = vmatmul.mubr.msk.f32.gmra.mrb[66].mxu1 %vm398_vm0, %v11124_v15  ;;  %36970 = vmatmul.mubr.msk.f32.gmra.mrb[14].mxu0 %vm398_vm0, %v25476_v50  ;;  %v25507_v15 = vld [vmem:[%s39948_s10 + $0x8d2] sm:$0xff]  ;;  %v11156_v50 = vld [vmem:[%s39948_s10 + $0x6c6] sm:$0xff] }
 0x8ba   : > { %34970 = vmatprep.mubr.msk.f32.mxu1 %vm398_vm0, %v11125_v33  ;;  %36972 = vmatprep.mubr.msk.f32.mxu0 %vm398_vm0, %v25477_v56  ;;  %v25508_v33 = vld [vmem:[%s39948_s10 + $0x8da] sm:$0xff]  ;;  %v11157_v56 = vld [vmem:[%s39948_s10 + $0x6ce] sm:$0xff] }
 0x8bd   : > { %34971 = vmatmul.mubr.msk.f32.gmra.mrb[68].mxu1 %vm398_vm0, %v11126_v26  ;;  %36973 = vmatmul.mubr.msk.f32.gmra.mrb[16].mxu0 %vm398_vm0, %v25478_v30  ;;  %v25509_v26 = vld [vmem:[%s39948_s10 + $0x8e2] sm:$0xff]  ;;  %v11158_v30 = vld [vmem:[%s39948_s10 + $0x6d6] sm:$0xff] }
 0x8be   : > { %34973 = vmatprep.mubr.msk.f32.mxu1 %vm398_vm0, %v11127_v2  ;;  %36975 = vmatprep.mubr.msk.f32.mxu0 %vm398_vm0, %v25479_v24  ;;  %v25510_v2 = vld [vmem:[%s39948_s10 + $0x8ea] sm:$0xff]  ;;  %v11159_v24 = vld [vmem:[%s39948_s10 + $0x6de] sm:$0xff] }
 0x8c1   : > { %34974 = vmatmul.mubr.msk.f32.gmra.mrb[70].mxu1 %vm398_vm0, %v11128_v9  ;;  %36976 = vmatmul.mubr.msk.f32.gmra.mrb[18].mxu0 %vm398_vm0, %v25480_v14  ;;  %v25511_v9 = vld [vmem:[%s39948_s10 + $0x8f2] sm:$0xff]  ;;  %v11160_v14 = vld [vmem:[%s39948_s10 + $0x6e6] sm:$0xff] }
 0x8c2   : > { %34976 = vmatprep.mubr.msk.f32.mxu1 %vm398_vm0, %v11129_v25  ;;  %36978 = vmatprep.mubr.msk.f32.mxu0 %vm398_vm0, %v25481_v35  ;;  %v25512_v25 = vld [vmem:[%s39948_s10 + $0x8fa] sm:$0xff] }
 0x8c3   : > { %v12165_v35 = vld [vmem:[%s39948_s10 + $0x3b4] sm:$0xff] }
 0x8c5   : > { %34977 = vmatmul.mubr.msk.f32.gmra.mrb[72].mxu1 %vm398_vm0, %v11130_v34  ;;  %36979 = vmatmul.mubr.msk.f32.gmra.mrb[20].mxu0 %vm398_vm0, %v25482_v37  ;;  %v25513_v34 = vld [vmem:[%s39948_s10 + $0x902] sm:$0xff] }
 0x8c6   : > { %34979 = vmatprep.mubr.msk.f32.mxu1 %vm398_vm0, %v11131_v42  ;;  %36981 = vmatprep.mubr.msk.f32.mxu0 %vm398_vm0, %v25483_v53  ;;  %v12166_v37 = vld [vmem:[%s39948_s10 + $0x3bc] sm:$0xff]  ;;  %v25514_v42 = vld [vmem:[%s39948_s10 + $0x90a] sm:$0xff] }
 0x8c7   : > { %v12167_v53 = vld [vmem:[%s39948_s10 + $0x3c4] sm:$0xff] }
 0x8c9   : > { %34980 = vmatmul.mubr.msk.f32.gmra.mrb[74].mxu1 %vm398_vm0, %v11132_v11  ;;  %36982 = vmatmul.mubr.msk.f32.gmra.mrb[22].mxu0 %vm398_vm0, %v25484_v40  ;;  %v25515_v11 = vld [vmem:[%s39948_s10 + $0x912] sm:$0xff] }
 0x8ca   : > { %34982 = vmatprep.mubr.msk.f32.mxu1 %vm398_vm0, %v11133_v10  ;;  %36984 = vmatprep.mubr.msk.f32.mxu0 %vm398_vm0, %v25485_v20  ;;  %v12168_v40 = vld [vmem:[%s39948_s10 + $0x3cc] sm:$0xff]  ;;  %v25516_v10 = vld [vmem:[%s39948_s10 + $0x91a] sm:$0xff] }
 0x8cb   : > { %v12169_v20 = vld [vmem:[%s39948_s10 + $0x3d4] sm:$0xff] }
 0x8cd   : > { %34983 = vmatmul.mubr.msk.f32.gmra.mrb[76].mxu1 %vm398_vm0, %v11134_v17  ;;  %36985 = vmatmul.mubr.msk.f32.gmra.mrb[24].mxu0 %vm398_vm0, %v25486_v54  ;;  %v25517_v17 = vld [vmem:[%s39948_s10 + $0x922] sm:$0xff]  ;;  %v25518_v54 = vld [vmem:[%s39948_s10 + $0x92a] sm:$0xff] }
 0x8ce   : > { %34985 = vmatprep.mubr.msk.f32.mxu1 %vm398_vm0, %v11135_v19  ;;  %36987 = vmatprep.mubr.msk.f32.mxu0 %vm398_vm0, %v25487_v45  ;;  %v12171_v19 = vld [vmem:[%s39948_s10 + $0x3e4] sm:$0xff]  ;;  %v25519_v45 = vld [vmem:[%s39948_s10 + $0x932] sm:$0xff] }
 0x8d1   : > { %34986 = vmatmul.mubr.msk.f32.gmra.mrb[78].mxu1 %vm398_vm0, %v11136_v29  ;;  %36988 = vmatmul.mubr.msk.f32.gmra.mrb[26].mxu0 %vm398_vm0, %v25488_v47  ;;  %v12172_v29 = vld [vmem:[%s39948_s10 + $0x3ec] sm:$0xff]  ;;  %v25520_v47 = vld [vmem:[%s39948_s10 + $0x93a] sm:$0xff] }
 0x8d2   : > { %34988 = vmatprep.mubr.msk.f32.mxu1 %vm398_vm0, %v11137_v59  ;;  %36990 = vmatprep.mubr.msk.f32.mxu0 %vm398_vm0, %v25489_v52  ;;  %v12173_v59 = vld [vmem:[%s39948_s10 + $0x3f4] sm:$0xff]  ;;  %v25521_v52 = vld [vmem:[%s39948_s10 + $0x942] sm:$0xff] }
 0x8d5   : > { %34989 = vmatmul.mubr.msk.f32.gmra.mrb[80].mxu1 %vm398_vm0, %v11138_v55  ;;  %36991 = vmatmul.mubr.msk.f32.gmra.mrb[28].mxu0 %vm398_vm0, %v25490_v61  ;;  %v12174_v55 = vld [vmem:[%s39948_s10 + $0x3fc] sm:$0xff]  ;;  %v25522_v61 = vld [vmem:[%s39948_s10 + $0x94a] sm:$0xff] }
 0x8d6   : > { %34991 = vmatprep.mubr.msk.f32.mxu1 %vm398_vm0, %v11139_v3  ;;  %36993 = vmatprep.mubr.msk.f32.mxu0 %vm398_vm0, %v25491_v23  ;;  %v12175_v3 = vld [vmem:[%s39948_s10 + $0x404] sm:$0xff]  ;;  %v25523_v23 = vld [vmem:[%s39948_s10 + $0x952] sm:$0xff] }
 0x8d9   : > { %34992 = vmatmul.mubr.msk.f32.gmra.mrb[82].mxu1 %vm398_vm0, %v11140_v18  ;;  %36994 = vmatmul.mubr.msk.f32.gmra.mrb[30].mxu0 %vm398_vm0, %v25492_v28  ;;  %v12176_v18 = vld [vmem:[%s39948_s10 + $0x40c] sm:$0xff]  ;;  %v25524_v28 = vld [vmem:[%s39948_s10 + $0x95a] sm:$0xff] }
 0x8da   : > { %34994 = vmatprep.mubr.msk.f32.mxu1 %vm398_vm0, %v11141_v36  ;;  %36996 = vmatprep.mubr.msk.f32.mxu0 %vm398_vm0, %v25493_v7  ;;  %v12177_v36 = vld [vmem:[%s39948_s10 + $0x414] sm:$0xff]  ;;  %v25525_v7 = vld [vmem:[%s39948_s10 + $0x962] sm:$0xff] }
 0x8dd   : > { %34995 = vmatmul.mubr.msk.f32.gmra.mrb[84].mxu1 %vm398_vm0, %v11142_v41  ;;  %36997 = vmatmul.mubr.msk.f32.gmra.mrb[32].mxu0 %vm398_vm0, %v25494_v60  ;;  %v12178_v41 = vld [vmem:[%s39948_s10 + $0x41c] sm:$0xff]  ;;  %v25526_v60 = vld [vmem:[%s39948_s10 + $0x96a] sm:$0xff] }
 0x8de   : > { %34997 = vmatprep.mubr.msk.f32.mxu1 %vm398_vm0, %v11143_v16  ;;  %36999 = vmatprep.mubr.msk.f32.mxu0 %vm398_vm0, %v25495_v51  ;;  %v12179_v16 = vld [vmem:[%s39948_s10 + $0x424] sm:$0xff]  ;;  %v25527_v51 = vld [vmem:[%s39948_s10 + $0x972] sm:$0xff] }
 0x8e1   : > { %34998 = vmatmul.mubr.msk.f32.gmra.mrb[86].mxu1 %vm398_vm0, %v11144_v48  ;;  %37000 = vmatmul.mubr.msk.f32.gmra.mrb[34].mxu0 %vm398_vm0, %v25496_v38  ;;  %v12180_v48 = vld [vmem:[%s39948_s10 + $0x42c] sm:$0xff]  ;;  %v25528_v38 = vld [vmem:[%s39948_s10 + $0x97a] sm:$0xff] }
 0x8e2   : > { %35000 = vmatprep.mubr.msk.f32.mxu1 %vm398_vm0, %v11145_v62  ;;  %37002 = vmatprep.mubr.msk.f32.mxu0 %vm398_vm0, %v25497_v21  ;;  %v12181_v62 = vld [vmem:[%s39948_s10 + $0x434] sm:$0xff]  ;;  %v25529_v21 = vld [vmem:[%s39948_s10 + $0x982] sm:$0xff] }
 0x8e5   : > { %35001 = vmatmul.mubr.msk.f32.gmra.mrb[88].mxu1 %vm398_vm0, %v11146_v63  ;;  %37003 = vmatmul.mubr.msk.f32.gmra.mrb[36].mxu0 %vm398_vm0, %v25498_v0  ;;  %v12182_v63 = vld [vmem:[%s39948_s10 + $0x43c] sm:$0xff]  ;;  %v25530_v0 = vld [vmem:[%s39948_s10 + $0x98a] sm:$0xff] }
 0x8e6   : > { %35003 = vmatprep.mubr.msk.f32.mxu1 %vm398_vm0, %v11147_v5  ;;  %37005 = vmatprep.mubr.msk.f32.mxu0 %vm398_vm0, %v25499_v6  ;;  %v12183_v5 = vld [vmem:[%s39948_s10 + $0x444] sm:$0xff]  ;;  %v25531_v6 = vld [vmem:[%s39948_s10 + $0x992] sm:$0xff] }
 0x8e9   : > { %35004 = vmatmul.mubr.msk.f32.gmra.mrb[90].mxu1 %vm398_vm0, %v11148_v43  ;;  %37006 = vmatmul.mubr.msk.f32.gmra.mrb[38].mxu0 %vm398_vm0, %v25500_v13  ;;  %v12184_v43 = vld [vmem:[%s39948_s10 + $0x44c] sm:$0xff]  ;;  %v25532_v13 = vld [vmem:[%s39948_s10 + $0x99a] sm:$0xff] }
 0x8ea   : > { %35006 = vmatprep.mubr.msk.f32.mxu1 %vm398_vm0, %v11149_v1  ;;  %37008 = vmatprep.mubr.msk.f32.mxu0 %vm398_vm0, %v25501_v4  ;;  %v12185_v1 = vld [vmem:[%s39948_s10 + $0x454] sm:$0xff]  ;;  %v25533_v4 = vld [vmem:[%s39948_s10 + $0x9a2] sm:$0xff] }
 0x8ed   : > { %35007 = vmatmul.mubr.msk.f32.gmra.mrb[92].mxu1 %vm398_vm0, %v11150_v22  ;;  %37009 = vmatmul.mubr.msk.f32.gmra.mrb[40].mxu0 %vm398_vm0, %v25502_v27  ;;  %v12186_v22 = vld [vmem:[%s39948_s10 + $0x45c] sm:$0xff]  ;;  %v25534_v27 = vld [vmem:[%s39948_s10 + $0x9aa] sm:$0xff] }
 0x8ee   : > { %35009 = vmatprep.mubr.msk.f32.mxu1 %vm398_vm0, %v11151_v31  ;;  %37011 = vmatprep.mubr.msk.f32.mxu0 %vm398_vm0, %v25503_v12  ;;  %v12187_v31 = vld [vmem:[%s39948_s10 + $0x464] sm:$0xff]  ;;  %v25535_v12 = vld [vmem:[%s39948_s10 + $0x9b2] sm:$0xff] }
 0x8f1   : > { %35010 = vmatmul.mubr.msk.f32.gmra.mrb[94].mxu1 %vm398_vm0, %v11152_v46  ;;  %37012 = vmatmul.mubr.msk.f32.gmra.mrb[42].mxu0 %vm398_vm0, %v25504_v58  ;;  %v12188_v46 = vld [vmem:[%s39948_s10 + $0x46c] sm:$0xff]  ;;  %v25536_v58 = vld [vmem:[%s39948_s10 + $0x9ba] sm:$0xff] }
 0x8f2   : > { %35012 = vmatprep.mubr.msk.f32.mxu1 %vm398_vm0, %v11153_v39  ;;  %37014 = vmatprep.mubr.msk.f32.mxu0 %vm398_vm0, %v25505_v44  ;;  %v12189_v39 = vld [vmem:[%s39948_s10 + $0x474] sm:$0xff]  ;;  %v25537_v44 = vld [vmem:[%s39948_s10 + $0x9c2] sm:$0xff] }
 0x8f5   : > { %35013 = vmatmul.mubr.msk.f32.gmra.mrb[96].mxu1 %vm398_vm0, %v11154_v49  ;;  %37015 = vmatmul.mubr.msk.f32.gmra.mrb[44].mxu0 %vm398_vm0, %v25506_v57  ;;  %v12190_v49 = vld [vmem:[%s39948_s10 + $0x47c] sm:$0xff]  ;;  %v25538_v57 = vld [vmem:[%s39948_s10 + $0x9ca] sm:$0xff] }
 0x8f6   : > { %35015 = vmatprep.mubr.msk.f32.mxu1 %vm398_vm0, %v11155_v8  ;;  %37017 = vmatprep.mubr.msk.f32.mxu0 %vm398_vm0, %v25507_v15  ;;  %v12191_v8 = vld [vmem:[%s39948_s10 + $0x484] sm:$0xff]  ;;  %v25539_v15 = vld [vmem:[%s39948_s10 + $0x9d2] sm:$0xff] }
 0x8f9   : > { %35016 = vmatmul.mubr.msk.f32.gmra.mrb[98].mxu1 %vm398_vm0, %v11156_v50  ;;  %37018 = vmatmul.mubr.msk.f32.gmra.mrb[46].mxu0 %vm398_vm0, %v25508_v33  ;;  %v12192_v50 = vld [vmem:[%s39948_s10 + $0x48c] sm:$0xff]  ;;  %v25540_v33 = vld [vmem:[%s39948_s10 + $0x9da] sm:$0xff] }
 0x8fa   : > { %35018 = vmatprep.mubr.msk.f32.mxu1 %vm398_vm0, %v11157_v56  ;;  %37020 = vmatprep.mubr.msk.f32.mxu0 %vm398_vm0, %v25509_v26  ;;  %v12193_v56 = vld [vmem:[%s39948_s10 + $0x494] sm:$0xff]  ;;  %v25541_v26 = vld [vmem:[%s39948_s10 + $0x9e2] sm:$0xff] }
 0x8fd   : > { %35019 = vmatmul.mubr.msk.f32.gmra.mrb[100].mxu1 %vm398_vm0, %v11158_v30  ;;  %37021 = vmatmul.mubr.msk.f32.gmra.mrb[48].mxu0 %vm398_vm0, %v25510_v2  ;;  %v12194_v30 = vld [vmem:[%s39948_s10 + $0x49c] sm:$0xff]  ;;  %v25542_v2 = vld [vmem:[%s39948_s10 + $0x9ea] sm:$0xff] }
 0x8fe   : > { %35021 = vmatprep.mubr.msk.f32.mxu1 %vm398_vm0, %v11159_v24  ;;  %37023 = vmatprep.mubr.msk.f32.mxu0 %vm398_vm0, %v25511_v9  ;;  %v12195_v24 = vld [vmem:[%s39948_s10 + $0x4a4] sm:$0xff]  ;;  %v25543_v9 = vld [vmem:[%s39948_s10 + $0x9f2] sm:$0xff] }
 0x901   : > { %35022 = vmatmul.mubr.msk.f32.gmra.mrb[102].mxu1 %vm398_vm0, %v11160_v14  ;;  %37024 = vmatmul.mubr.msk.f32.gmra.mrb[50].mxu0 %vm398_vm0, %v25512_v25  ;;  %v12196_v14 = vld [vmem:[%s39948_s10 + $0x4ac] sm:$0xff]  ;;  %v25544_v25 = vld [vmem:[%s39948_s10 + $0x9fa] sm:$0xff] }
 0x902   : > { %35028 = vmatprep.mubr.msk.f32.mxu1 %vm398_vm0, %v12165_v35  ;;  %37026 = vmatprep.mubr.msk.f32.mxu0 %vm398_vm0, %v25513_v34  ;;  %v12197_v35 = vld [vmem:[%s39948_s10 + $0x4b4] sm:$0xff]  ;;  %v25545_v34 = vld [vmem:[%s39948_s10 + $0xa02] sm:$0xff] }
 0x905   : > { %35029 = vmatmul.mubr.msk.f32.vlgmr.msra.gmra.mrb[0].mxu1 %vm398_vm0, %v12166_v37  ;;  %37027 = vmatmul.mubr.msk.f32.gmra.mrb[52].mxu0 %vm398_vm0, %v25514_v42  ;;  %v12198_v37 = vld [vmem:[%s39948_s10 + $0x4bc] sm:$0xff]  ;;  %v25546_v42 = vld [vmem:[%s39948_s10 + $0xa0a] sm:$0xff] }
 0x906   : > { %37365 = vmatpush3.bf16.msra.mxu1 %v46213_v32  ;;  %35031 = vmatprep.mubr.msk.f32.mxu1 %vm398_vm0, %v12167_v53  ;;  %v12170_v32 = vld [vmem:[%s39948_s10 + $0x3dc] sm:$0xff]  ;;  %v12199_v53 = vld [vmem:[%s39948_s10 + $0x4c4] sm:$0xff] }
 0x907   : > { %37029 = vmatprep.mubr.msk.f32.mxu0 %vm398_vm0, %v25515_v11  ;;  %v25547_v11 = vld [vmem:[%s39948_s10 + $0xa12] sm:$0xff] }
 0x909   : > { %35032 = vmatmul.mubr.msk.f32.gmra.mrb[2].mxu1 %vm398_vm0, %v12168_v40  ;;  %37030 = vmatmul.mubr.msk.f32.gmra.mrb[54].mxu0 %vm398_vm0, %v25516_v10  ;;  %v12200_v40 = vld [vmem:[%s39948_s10 + $0x4cc] sm:$0xff]  ;;  %v25548_v10 = vld [vmem:[%s39948_s10 + $0xa1a] sm:$0xff] }
 0x90a   : > { %35034 = vmatprep.mubr.msk.f32.mxu1 %vm398_vm0, %v12169_v20  ;;  %37032 = vmatprep.mubr.msk.f32.mxu0 %vm398_vm0, %v25517_v17  ;;  %v12201_v20 = vld [vmem:[%s39948_s10 + $0x4d4] sm:$0xff]  ;;  %v25549_v17 = vld [vmem:[%s39948_s10 + $0xa22] sm:$0xff] }
 0x90d   : > { %35035 = vmatmul.mubr.msk.f32.gmra.mrb[4].mxu1 %vm398_vm0, %v12170_v32  ;;  %37033 = vmatmul.mubr.msk.f32.gmra.mrb[56].mxu0 %vm398_vm0, %v25518_v54  ;;  %v12202_v32 = vld [vmem:[%s39948_s10 + $0x4dc] sm:$0xff]  ;;  %v25550_v54 = vld [vmem:[%s39948_s10 + $0xa2a] sm:$0xff] }
 0x90e   : > { %35037 = vmatprep.mubr.msk.f32.mxu1 %vm398_vm0, %v12171_v19  ;;  %37035 = vmatprep.mubr.msk.f32.mxu0 %vm398_vm0, %v25519_v45  ;;  %v12203_v19 = vld [vmem:[%s39948_s10 + $0x4e4] sm:$0xff]  ;;  %v25551_v45 = vld [vmem:[%s39948_s10 + $0xa32] sm:$0xff] }
 0x911   : > { %35038 = vmatmul.mubr.msk.f32.gmra.mrb[6].mxu1 %vm398_vm0, %v12172_v29  ;;  %37036 = vmatmul.mubr.msk.f32.gmra.mrb[58].mxu0 %vm398_vm0, %v25520_v47  ;;  %v12204_v29 = vld [vmem:[%s39948_s10 + $0x4ec] sm:$0xff]  ;;  %v25552_v47 = vld [vmem:[%s39948_s10 + $0xa3a] sm:$0xff] }
 0x912   : > { %35040 = vmatprep.mubr.msk.f32.mxu1 %vm398_vm0, %v12173_v59  ;;  %37038 = vmatprep.mubr.msk.f32.mxu0 %vm398_vm0, %v25521_v52  ;;  %v12205_v59 = vld [vmem:[%s39948_s10 + $0x4f4] sm:$0xff]  ;;  %v25553_v52 = vld [vmem:[%s39948_s10 + $0xa42] sm:$0xff] }
 0x915   : > { %35041 = vmatmul.mubr.msk.f32.gmra.mrb[8].mxu1 %vm398_vm0, %v12174_v55  ;;  %37039 = vmatmul.mubr.msk.f32.gmra.mrb[60].mxu0 %vm398_vm0, %v25522_v61  ;;  %v12206_v55 = vld [vmem:[%s39948_s10 + $0x4fc] sm:$0xff]  ;;  %v25554_v61 = vld [vmem:[%s39948_s10 + $0xa4a] sm:$0xff] }
 0x916   : > { %35043 = vmatprep.mubr.msk.f32.mxu1 %vm398_vm0, %v12175_v3  ;;  %37041 = vmatprep.mubr.msk.f32.mxu0 %vm398_vm0, %v25523_v23  ;;  %v12207_v3 = vld [vmem:[%s39948_s10 + $0x504] sm:$0xff]  ;;  %v25555_v23 = vld [vmem:[%s39948_s10 + $0xa52] sm:$0xff] }
 0x919   : > { %35044 = vmatmul.mubr.msk.f32.gmra.mrb[10].mxu1 %vm398_vm0, %v12176_v18  ;;  %37042 = vmatmul.mubr.msk.f32.gmra.mrb[62].mxu0 %vm398_vm0, %v25524_v28  ;;  %v12208_v18 = vld [vmem:[%s39948_s10 + $0x50c] sm:$0xff]  ;;  %v25556_v28 = vld [vmem:[%s39948_s10 + $0xa5a] sm:$0xff] }
 0x91a   : > { %35046 = vmatprep.mubr.msk.f32.mxu1 %vm398_vm0, %v12177_v36  ;;  %37044 = vmatprep.mubr.msk.f32.mxu0 %vm398_vm0, %v25525_v7  ;;  %v12209_v36 = vld [vmem:[%s39948_s10 + $0x514] sm:$0xff]  ;;  %v25557_v7 = vld [vmem:[%s39948_s10 + $0xa62] sm:$0xff] }
 0x91d   : > { %35047 = vmatmul.mubr.msk.f32.gmra.mrb[12].mxu1 %vm398_vm0, %v12178_v41  ;;  %37045 = vmatmul.mubr.msk.f32.gmra.mrb[64].mxu0 %vm398_vm0, %v25526_v60  ;;  %v12210_v41 = vld [vmem:[%s39948_s10 + $0x51c] sm:$0xff]  ;;  %v25558_v60 = vld [vmem:[%s39948_s10 + $0xa6a] sm:$0xff] }
 0x91e   : > { %35049 = vmatprep.mubr.msk.f32.mxu1 %vm398_vm0, %v12179_v16  ;;  %37047 = vmatprep.mubr.msk.f32.mxu0 %vm398_vm0, %v25527_v51  ;;  %v12211_v16 = vld [vmem:[%s39948_s10 + $0x524] sm:$0xff]  ;;  %v25559_v51 = vld [vmem:[%s39948_s10 + $0xa72] sm:$0xff] }
 0x921   : > { %35050 = vmatmul.mubr.msk.f32.gmra.mrb[14].mxu1 %vm398_vm0, %v12180_v48  ;;  %37048 = vmatmul.mubr.msk.f32.gmra.mrb[66].mxu0 %vm398_vm0, %v25528_v38  ;;  %v12212_v48 = vld [vmem:[%s39948_s10 + $0x52c] sm:$0xff]  ;;  %v25560_v38 = vld [vmem:[%s39948_s10 + $0xa7a] sm:$0xff] }
 0x922   : > { %35052 = vmatprep.mubr.msk.f32.mxu1 %vm398_vm0, %v12181_v62  ;;  %37050 = vmatprep.mubr.msk.f32.mxu0 %vm398_vm0, %v25529_v21  ;;  %v12213_v62 = vld [vmem:[%s39948_s10 + $0x534] sm:$0xff]  ;;  %v25561_v21 = vld [vmem:[%s39948_s10 + $0xa82] sm:$0xff] }
 0x925   : > { %35053 = vmatmul.mubr.msk.f32.gmra.mrb[16].mxu1 %vm398_vm0, %v12182_v63  ;;  %37051 = vmatmul.mubr.msk.f32.gmra.mrb[68].mxu0 %vm398_vm0, %v25530_v0  ;;  %v12214_v63 = vld [vmem:[%s39948_s10 + $0x53c] sm:$0xff]  ;;  %v25562_v0 = vld [vmem:[%s39948_s10 + $0xa8a] sm:$0xff] }
 0x926   : > { %35055 = vmatprep.mubr.msk.f32.mxu1 %vm398_vm0, %v12183_v5  ;;  %37053 = vmatprep.mubr.msk.f32.mxu0 %vm398_vm0, %v25531_v6  ;;  %v12215_v5 = vld [vmem:[%s39948_s10 + $0x544] sm:$0xff]  ;;  %v25563_v6 = vld [vmem:[%s39948_s10 + $0xa92] sm:$0xff] }
 0x929   : > { %35056 = vmatmul.mubr.msk.f32.gmra.mrb[18].mxu1 %vm398_vm0, %v12184_v43  ;;  %37054 = vmatmul.mubr.msk.f32.gmra.mrb[70].mxu0 %vm398_vm0, %v25532_v13  ;;  %v12216_v43 = vld [vmem:[%s39948_s10 + $0x54c] sm:$0xff]  ;;  %v25564_v13 = vld [vmem:[%s39948_s10 + $0xa9a] sm:$0xff] }
 0x92a   : > { %35058 = vmatprep.mubr.msk.f32.mxu1 %vm398_vm0, %v12185_v1  ;;  %37056 = vmatprep.mubr.msk.f32.mxu0 %vm398_vm0, %v25533_v4  ;;  %v12217_v1 = vld [vmem:[%s39948_s10 + $0x554] sm:$0xff] }
 0x92b   : > { %v26569_v4 = vld [vmem:[%s39948_s10 + $0x774] sm:$0xff] }
 0x92d   : > { %35059 = vmatmul.mubr.msk.f32.gmra.mrb[20].mxu1 %vm398_vm0, %v12186_v22  ;;  %37057 = vmatmul.mubr.msk.f32.gmra.mrb[72].mxu0 %vm398_vm0, %v25534_v27  ;;  %v12218_v22 = vld [vmem:[%s39948_s10 + $0x55c] sm:$0xff] }
 0x92e   : > { %35061 = vmatprep.mubr.msk.f32.mxu1 %vm398_vm0, %v12187_v31  ;;  %37059 = vmatprep.mubr.msk.f32.mxu0 %vm398_vm0, %v25535_v12  ;;  %v26570_v27 = vld [vmem:[%s39948_s10 + $0x77c] sm:$0xff]  ;;  %v12219_v31 = vld [vmem:[%s39948_s10 + $0x564] sm:$0xff] }
 0x92f   : > { %v26571_v12 = vld [vmem:[%s39948_s10 + $0x784] sm:$0xff] }
 0x931   : > { %35062 = vmatmul.mubr.msk.f32.gmra.mrb[22].mxu1 %vm398_vm0, %v12188_v46  ;;  %37060 = vmatmul.mubr.msk.f32.gmra.mrb[74].mxu0 %vm398_vm0, %v25536_v58  ;;  %v12220_v46 = vld [vmem:[%s39948_s10 + $0x56c] sm:$0xff] }
 0x932   : > { %35064 = vmatprep.mubr.msk.f32.mxu1 %vm398_vm0, %v12189_v39  ;;  %37062 = vmatprep.mubr.msk.f32.mxu0 %vm398_vm0, %v25537_v44  ;;  %v26572_v58 = vld [vmem:[%s39948_s10 + $0x78c] sm:$0xff]  ;;  %v12221_v39 = vld [vmem:[%s39948_s10 + $0x574] sm:$0xff] }
 0x933   : > { %v26573_v44 = vld [vmem:[%s39948_s10 + $0x794] sm:$0xff] }
 0x935   : > { %35065 = vmatmul.mubr.msk.f32.gmra.mrb[24].mxu1 %vm398_vm0, %v12190_v49  ;;  %37063 = vmatmul.mubr.msk.f32.gmra.mrb[76].mxu0 %vm398_vm0, %v25538_v57  ;;  %v12222_v49 = vld [vmem:[%s39948_s10 + $0x57c] sm:$0xff] }
 0x936   : > { %35067 = vmatprep.mubr.msk.f32.mxu1 %vm398_vm0, %v12191_v8  ;;  %37065 = vmatprep.mubr.msk.f32.mxu0 %vm398_vm0, %v25539_v15  ;;  %v26574_v57 = vld [vmem:[%s39948_s10 + $0x79c] sm:$0xff]  ;;  %v12223_v8 = vld [vmem:[%s39948_s10 + $0x584] sm:$0xff] }
 0x937   : > { %v26575_v15 = vld [vmem:[%s39948_s10 + $0x7a4] sm:$0xff] }
 0x939   : > { %35068 = vmatmul.mubr.msk.f32.gmra.mrb[26].mxu1 %vm398_vm0, %v12192_v50  ;;  %37066 = vmatmul.mubr.msk.f32.gmra.mrb[78].mxu0 %vm398_vm0, %v25540_v33  ;;  %v12224_v50 = vld [vmem:[%s39948_s10 + $0x58c] sm:$0xff] }
 0x93a   : > { %35070 = vmatprep.mubr.msk.f32.mxu1 %vm398_vm0, %v12193_v56  ;;  %37068 = vmatprep.mubr.msk.f32.mxu0 %vm398_vm0, %v25541_v26  ;;  %v26576_v33 = vld [vmem:[%s39948_s10 + $0x7ac] sm:$0xff]  ;;  %v12225_v56 = vld [vmem:[%s39948_s10 + $0x594] sm:$0xff] }
 0x93b   : > { %v26577_v26 = vld [vmem:[%s39948_s10 + $0x7b4] sm:$0xff] }
 0x93d   : > { %35071 = vmatmul.mubr.msk.f32.gmra.mrb[28].mxu1 %vm398_vm0, %v12194_v30  ;;  %37069 = vmatmul.mubr.msk.f32.gmra.mrb[80].mxu0 %vm398_vm0, %v25542_v2  ;;  %v12226_v30 = vld [vmem:[%s39948_s10 + $0x59c] sm:$0xff] }
 0x93e   : > { %35073 = vmatprep.mubr.msk.f32.mxu1 %vm398_vm0, %v12195_v24  ;;  %37071 = vmatprep.mubr.msk.f32.mxu0 %vm398_vm0, %v25543_v9  ;;  %v26578_v2 = vld [vmem:[%s39948_s10 + $0x7bc] sm:$0xff]  ;;  %v12227_v24 = vld [vmem:[%s39948_s10 + $0x5a4] sm:$0xff] }
 0x93f   : > { %v26579_v9 = vld [vmem:[%s39948_s10 + $0x7c4] sm:$0xff] }
 0x941   : > { %35074 = vmatmul.mubr.msk.f32.gmra.mrb[30].mxu1 %vm398_vm0, %v12196_v14  ;;  %37072 = vmatmul.mubr.msk.f32.gmra.mrb[82].mxu0 %vm398_vm0, %v25544_v25  ;;  %v12228_v14 = vld [vmem:[%s39948_s10 + $0x5ac] sm:$0xff] }
 0x942   : > { %35076 = vmatprep.mubr.msk.f32.mxu1 %vm398_vm0, %v12197_v35  ;;  %37074 = vmatprep.mubr.msk.f32.mxu0 %vm398_vm0, %v25545_v34  ;;  %v26580_v25 = vld [vmem:[%s39948_s10 + $0x7cc] sm:$0xff]  ;;  %v12229_v35 = vld [vmem:[%s39948_s10 + $0x5b4] sm:$0xff] }
 0x943   : > { %v26581_v34 = vld [vmem:[%s39948_s10 + $0x7d4] sm:$0xff] }
 0x945   : > { %35077 = vmatmul.mubr.msk.f32.gmra.mrb[32].mxu1 %vm398_vm0, %v12198_v37  ;;  %37075 = vmatmul.mubr.msk.f32.gmra.mrb[84].mxu0 %vm398_vm0, %v25546_v42  ;;  %v12230_v37 = vld [vmem:[%s39948_s10 + $0x5bc] sm:$0xff] }
 0x946   : > { %35079 = vmatprep.mubr.msk.f32.mxu1 %vm398_vm0, %v12199_v53  ;;  %37077 = vmatprep.mubr.msk.f32.mxu0 %vm398_vm0, %v25547_v11  ;;  %v26582_v42 = vld [vmem:[%s39948_s10 + $0x7dc] sm:$0xff]  ;;  %v12231_v53 = vld [vmem:[%s39948_s10 + $0x5c4] sm:$0xff] }
 0x947   : > { %v26583_v11 = vld [vmem:[%s39948_s10 + $0x7e4] sm:$0xff] }
 0x949   : > { %35080 = vmatmul.mubr.msk.f32.gmra.mrb[34].mxu1 %vm398_vm0, %v12200_v40  ;;  %37078 = vmatmul.mubr.msk.f32.gmra.mrb[86].mxu0 %vm398_vm0, %v25548_v10  ;;  %v12232_v40 = vld [vmem:[%s39948_s10 + $0x5cc] sm:$0xff] }
 0x94a   : > { %35082 = vmatprep.mubr.msk.f32.mxu1 %vm398_vm0, %v12201_v20  ;;  %37080 = vmatprep.mubr.msk.f32.mxu0 %vm398_vm0, %v25549_v17  ;;  %v26584_v10 = vld [vmem:[%s39948_s10 + $0x7ec] sm:$0xff]  ;;  %v12233_v20 = vld [vmem:[%s39948_s10 + $0x5d4] sm:$0xff] }
 0x94b   : > { %v26585_v17 = vld [vmem:[%s39948_s10 + $0x7f4] sm:$0xff] }
 0x94d   : > { %35083 = vmatmul.mubr.msk.f32.gmra.mrb[36].mxu1 %vm398_vm0, %v12202_v32  ;;  %37081 = vmatmul.mubr.msk.f32.gmra.mrb[88].mxu0 %vm398_vm0, %v25550_v54  ;;  %v12234_v32 = vld [vmem:[%s39948_s10 + $0x5dc] sm:$0xff] }
 0x94e   : > { %35085 = vmatprep.mubr.msk.f32.mxu1 %vm398_vm0, %v12203_v19  ;;  %37083 = vmatprep.mubr.msk.f32.mxu0 %vm398_vm0, %v25551_v45  ;;  %v26586_v54 = vld [vmem:[%s39948_s10 + $0x7fc] sm:$0xff]  ;;  %v12235_v19 = vld [vmem:[%s39948_s10 + $0x5e4] sm:$0xff] }
 0x94f   : > { %v26587_v45 = vld [vmem:[%s39948_s10 + $0x804] sm:$0xff] }
 0x951   : > { %35086 = vmatmul.mubr.msk.f32.gmra.mrb[38].mxu1 %vm398_vm0, %v12204_v29  ;;  %37084 = vmatmul.mubr.msk.f32.gmra.mrb[90].mxu0 %vm398_vm0, %v25552_v47  ;;  %v12236_v29 = vld [vmem:[%s39948_s10 + $0x5ec] sm:$0xff] }
 0x952   : > { %35088 = vmatprep.mubr.msk.f32.mxu1 %vm398_vm0, %v12205_v59  ;;  %37086 = vmatprep.mubr.msk.f32.mxu0 %vm398_vm0, %v25553_v52  ;;  %v26588_v47 = vld [vmem:[%s39948_s10 + $0x80c] sm:$0xff]  ;;  %v12237_v59 = vld [vmem:[%s39948_s10 + $0x5f4] sm:$0xff] }
 0x953   : > { %v26589_v52 = vld [vmem:[%s39948_s10 + $0x814] sm:$0xff] }
 0x955   : > { %35089 = vmatmul.mubr.msk.f32.gmra.mrb[40].mxu1 %vm398_vm0, %v12206_v55  ;;  %37087 = vmatmul.mubr.msk.f32.gmra.mrb[92].mxu0 %vm398_vm0, %v25554_v61  ;;  %v12238_v55 = vld [vmem:[%s39948_s10 + $0x5fc] sm:$0xff] }
 0x956   : > { %35091 = vmatprep.mubr.msk.f32.mxu1 %vm398_vm0, %v12207_v3  ;;  %37089 = vmatprep.mubr.msk.f32.mxu0 %vm398_vm0, %v25555_v23  ;;  %v26590_v61 = vld [vmem:[%s39948_s10 + $0x81c] sm:$0xff]  ;;  %v12239_v3 = vld [vmem:[%s39948_s10 + $0x604] sm:$0xff] }
 0x957   : > { %v26591_v23 = vld [vmem:[%s39948_s10 + $0x824] sm:$0xff] }
 0x959   : > { %35092 = vmatmul.mubr.msk.f32.gmra.mrb[42].mxu1 %vm398_vm0, %v12208_v18  ;;  %37090 = vmatmul.mubr.msk.f32.gmra.mrb[94].mxu0 %vm398_vm0, %v25556_v28  ;;  %v12240_v18 = vld [vmem:[%s39948_s10 + $0x60c] sm:$0xff] }
 0x95a   : > { %35094 = vmatprep.mubr.msk.f32.mxu1 %vm398_vm0, %v12209_v36  ;;  %37092 = vmatprep.mubr.msk.f32.mxu0 %vm398_vm0, %v25557_v7  ;;  %v26592_v28 = vld [vmem:[%s39948_s10 + $0x82c] sm:$0xff]  ;;  %v12241_v36 = vld [vmem:[%s39948_s10 + $0x614] sm:$0xff] }
 0x95b   : > { %v26593_v7 = vld [vmem:[%s39948_s10 + $0x834] sm:$0xff] }
 0x95d   : > { %35095 = vmatmul.mubr.msk.f32.gmra.mrb[44].mxu1 %vm398_vm0, %v12210_v41  ;;  %37093 = vmatmul.mubr.msk.f32.gmra.mrb[96].mxu0 %vm398_vm0, %v25558_v60  ;;  %v12242_v41 = vld [vmem:[%s39948_s10 + $0x61c] sm:$0xff] }
 0x95e   : > { %35097 = vmatprep.mubr.msk.f32.mxu1 %vm398_vm0, %v12211_v16  ;;  %37095 = vmatprep.mubr.msk.f32.mxu0 %vm398_vm0, %v25559_v51  ;;  %v26594_v60 = vld [vmem:[%s39948_s10 + $0x83c] sm:$0xff]  ;;  %v12243_v16 = vld [vmem:[%s39948_s10 + $0x624] sm:$0xff] }
 0x95f   : > { %v26595_v51 = vld [vmem:[%s39948_s10 + $0x844] sm:$0xff] }
 0x961   : > { %35098 = vmatmul.mubr.msk.f32.gmra.mrb[46].mxu1 %vm398_vm0, %v12212_v48  ;;  %37096 = vmatmul.mubr.msk.f32.gmra.mrb[98].mxu0 %vm398_vm0, %v25560_v38  ;;  %v12244_v48 = vld [vmem:[%s39948_s10 + $0x62c] sm:$0xff] }
 0x962   : > { %35100 = vmatprep.mubr.msk.f32.mxu1 %vm398_vm0, %v12213_v62  ;;  %37098 = vmatprep.mubr.msk.f32.mxu0 %vm398_vm0, %v25561_v21  ;;  %v26596_v38 = vld [vmem:[%s39948_s10 + $0x84c] sm:$0xff]  ;;  %v12245_v62 = vld [vmem:[%s39948_s10 + $0x634] sm:$0xff] }
 0x963   : > { %v26597_v21 = vld [vmem:[%s39948_s10 + $0x854] sm:$0xff] }
 0x965   : > { %35101 = vmatmul.mubr.msk.f32.gmra.mrb[48].mxu1 %vm398_vm0, %v12214_v63  ;;  %37099 = vmatmul.mubr.msk.f32.gmra.mrb[100].mxu0 %vm398_vm0, %v25562_v0  ;;  %v12246_v63 = vld [vmem:[%s39948_s10 + $0x63c] sm:$0xff] }
 0x966   : > { %35103 = vmatprep.mubr.msk.f32.mxu1 %vm398_vm0, %v12215_v5  ;;  %37101 = vmatprep.mubr.msk.f32.mxu0 %vm398_vm0, %v25563_v6  ;;  %v26598_v0 = vld [vmem:[%s39948_s10 + $0x85c] sm:$0xff]  ;;  %v12247_v5 = vld [vmem:[%s39948_s10 + $0x644] sm:$0xff] }
 0x967   : > { %v26599_v6 = vld [vmem:[%s39948_s10 + $0x864] sm:$0xff] }
 0x969   : > { %35104 = vmatmul.mubr.msk.f32.gmra.mrb[50].mxu1 %vm398_vm0, %v12216_v43  ;;  %37102 = vmatmul.mubr.msk.f32.gmra.mrb[102].mxu0 %vm398_vm0, %v25564_v13  ;;  %v12248_v43 = vld [vmem:[%s39948_s10 + $0x64c] sm:$0xff] }
 0x96a   : > { %35106 = vmatprep.mubr.msk.f32.mxu1 %vm398_vm0, %v12217_v1  ;;  %37108 = vmatprep.mubr.msk.f32.mxu0 %vm398_vm0, %v26569_v4  ;;  %v26600_v13 = vld [vmem:[%s39948_s10 + $0x86c] sm:$0xff]  ;;  %v12249_v1 = vld [vmem:[%s39948_s10 + $0x654] sm:$0xff] }
 0x96b   : > { %v26601_v4 = vld [vmem:[%s39948_s10 + $0x874] sm:$0xff] }
 0x96d   : > { %35107 = vmatmul.mubr.msk.f32.gmra.mrb[52].mxu1 %vm398_vm0, %v12218_v22  ;;  %37109 = vmatmul.mubr.msk.f32.vlgmr.msra.gmra.mrb[0].mxu0 %vm398_vm0, %v26570_v27  ;;  %v12250_v22 = vld [vmem:[%s39948_s10 + $0x65c] sm:$0xff] }
 0x96e   : > { %35109 = vmatprep.mubr.msk.f32.mxu1 %vm398_vm0, %v12219_v31  ;;  %37111 = vmatprep.mubr.msk.f32.mxu0 %vm398_vm0, %v26571_v12  ;;  %v26602_v27 = vld [vmem:[%s39948_s10 + $0x87c] sm:$0xff]  ;;  %v12251_v31 = vld [vmem:[%s39948_s10 + $0x664] sm:$0xff] }
 0x96f   : > { %v26603_v12 = vld [vmem:[%s39948_s10 + $0x884] sm:$0xff] }
 0x971   : > { %35110 = vmatmul.mubr.msk.f32.gmra.mrb[54].mxu1 %vm398_vm0, %v12220_v46  ;;  %37112 = vmatmul.mubr.msk.f32.gmra.mrb[2].mxu0 %vm398_vm0, %v26572_v58  ;;  %v12252_v46 = vld [vmem:[%s39948_s10 + $0x66c] sm:$0xff] }
 0x972   : > { %35112 = vmatprep.mubr.msk.f32.mxu1 %vm398_vm0, %v12221_v39  ;;  %37114 = vmatprep.mubr.msk.f32.mxu0 %vm398_vm0, %v26573_v44  ;;  %v26604_v58 = vld [vmem:[%s39948_s10 + $0x88c] sm:$0xff]  ;;  %v12253_v39 = vld [vmem:[%s39948_s10 + $0x674] sm:$0xff] }
 0x973   : > { %v26605_v44 = vld [vmem:[%s39948_s10 + $0x894] sm:$0xff] }
 0x975   : > { %35113 = vmatmul.mubr.msk.f32.gmra.mrb[56].mxu1 %vm398_vm0, %v12222_v49  ;;  %37115 = vmatmul.mubr.msk.f32.gmra.mrb[4].mxu0 %vm398_vm0, %v26574_v57  ;;  %v12254_v49 = vld [vmem:[%s39948_s10 + $0x67c] sm:$0xff] }
 0x976   : > { %35115 = vmatprep.mubr.msk.f32.mxu1 %vm398_vm0, %v12223_v8  ;;  %37117 = vmatprep.mubr.msk.f32.mxu0 %vm398_vm0, %v26575_v15  ;;  %v26606_v57 = vld [vmem:[%s39948_s10 + $0x89c] sm:$0xff]  ;;  %v12255_v8 = vld [vmem:[%s39948_s10 + $0x684] sm:$0xff] }
 0x977   : > { %v26607_v15 = vld [vmem:[%s39948_s10 + $0x8a4] sm:$0xff] }
 0x979   : > { %35116 = vmatmul.mubr.msk.f32.gmra.mrb[58].mxu1 %vm398_vm0, %v12224_v50  ;;  %37118 = vmatmul.mubr.msk.f32.gmra.mrb[6].mxu0 %vm398_vm0, %v26576_v33  ;;  %v12256_v50 = vld [vmem:[%s39948_s10 + $0x68c] sm:$0xff] }
 0x97a   : > { %35118 = vmatprep.mubr.msk.f32.mxu1 %vm398_vm0, %v12225_v56  ;;  %37120 = vmatprep.mubr.msk.f32.mxu0 %vm398_vm0, %v26577_v26  ;;  %v26608_v33 = vld [vmem:[%s39948_s10 + $0x8ac] sm:$0xff]  ;;  %v12257_v56 = vld [vmem:[%s39948_s10 + $0x694] sm:$0xff] }
 0x97b   : > { %v26609_v26 = vld [vmem:[%s39948_s10 + $0x8b4] sm:$0xff] }
 0x97d   : > { %35119 = vmatmul.mubr.msk.f32.gmra.mrb[60].mxu1 %vm398_vm0, %v12226_v30  ;;  %37121 = vmatmul.mubr.msk.f32.gmra.mrb[8].mxu0 %vm398_vm0, %v26578_v2  ;;  %v12258_v30 = vld [vmem:[%s39948_s10 + $0x69c] sm:$0xff] }
 0x97e   : > { %35121 = vmatprep.mubr.msk.f32.mxu1 %vm398_vm0, %v12227_v24  ;;  %37123 = vmatprep.mubr.msk.f32.mxu0 %vm398_vm0, %v26579_v9  ;;  %v26610_v2 = vld [vmem:[%s39948_s10 + $0x8bc] sm:$0xff]  ;;  %v12259_v24 = vld [vmem:[%s39948_s10 + $0x6a4] sm:$0xff] }
 0x97f   : > { %v26611_v9 = vld [vmem:[%s39948_s10 + $0x8c4] sm:$0xff] }
 0x981   : > { %35122 = vmatmul.mubr.msk.f32.gmra.mrb[62].mxu1 %vm398_vm0, %v12228_v14  ;;  %37124 = vmatmul.mubr.msk.f32.gmra.mrb[10].mxu0 %vm398_vm0, %v26580_v25  ;;  %v12260_v14 = vld [vmem:[%s39948_s10 + $0x6ac] sm:$0xff] }
 0x982   : > { %35124 = vmatprep.mubr.msk.f32.mxu1 %vm398_vm0, %v12229_v35  ;;  %37126 = vmatprep.mubr.msk.f32.mxu0 %vm398_vm0, %v26581_v34  ;;  %v26612_v25 = vld [vmem:[%s39948_s10 + $0x8cc] sm:$0xff]  ;;  %v12261_v35 = vld [vmem:[%s39948_s10 + $0x6b4] sm:$0xff] }
 0x983   : > { %v26613_v34 = vld [vmem:[%s39948_s10 + $0x8d4] sm:$0xff] }
 0x985   : > { %35125 = vmatmul.mubr.msk.f32.gmra.mrb[64].mxu1 %vm398_vm0, %v12230_v37  ;;  %37127 = vmatmul.mubr.msk.f32.gmra.mrb[12].mxu0 %vm398_vm0, %v26582_v42  ;;  %v12262_v37 = vld [vmem:[%s39948_s10 + $0x6bc] sm:$0xff] }
 0x986   : > { %35127 = vmatprep.mubr.msk.f32.mxu1 %vm398_vm0, %v12231_v53  ;;  %37129 = vmatprep.mubr.msk.f32.mxu0 %vm398_vm0, %v26583_v11  ;;  %v26614_v42 = vld [vmem:[%s39948_s10 + $0x8dc] sm:$0xff]  ;;  %v12263_v53 = vld [vmem:[%s39948_s10 + $0x6c4] sm:$0xff] }
 0x987   : > { %v26615_v11 = vld [vmem:[%s39948_s10 + $0x8e4] sm:$0xff] }
 0x989   : > { %35128 = vmatmul.mubr.msk.f32.gmra.mrb[66].mxu1 %vm398_vm0, %v12232_v40  ;;  %37130 = vmatmul.mubr.msk.f32.gmra.mrb[14].mxu0 %vm398_vm0, %v26584_v10  ;;  %v12264_v40 = vld [vmem:[%s39948_s10 + $0x6cc] sm:$0xff] }
 0x98a   : > { %35130 = vmatprep.mubr.msk.f32.mxu1 %vm398_vm0, %v12233_v20  ;;  %37132 = vmatprep.mubr.msk.f32.mxu0 %vm398_vm0, %v26585_v17  ;;  %v26616_v10 = vld [vmem:[%s39948_s10 + $0x8ec] sm:$0xff]  ;;  %v12265_v20 = vld [vmem:[%s39948_s10 + $0x6d4] sm:$0xff] }
 0x98b   : > { %v26617_v17 = vld [vmem:[%s39948_s10 + $0x8f4] sm:$0xff] }
 0x98d   : > { %35131 = vmatmul.mubr.msk.f32.gmra.mrb[68].mxu1 %vm398_vm0, %v12234_v32  ;;  %37133 = vmatmul.mubr.msk.f32.gmra.mrb[16].mxu0 %vm398_vm0, %v26586_v54  ;;  %v12266_v32 = vld [vmem:[%s39948_s10 + $0x6dc] sm:$0xff] }
 0x98e   : > { %35133 = vmatprep.mubr.msk.f32.mxu1 %vm398_vm0, %v12235_v19  ;;  %37135 = vmatprep.mubr.msk.f32.mxu0 %vm398_vm0, %v26587_v45  ;;  %v26618_v54 = vld [vmem:[%s39948_s10 + $0x8fc] sm:$0xff]  ;;  %v12267_v19 = vld [vmem:[%s39948_s10 + $0x6e4] sm:$0xff] }
 0x98f   : > { %v26619_v45 = vld [vmem:[%s39948_s10 + $0x904] sm:$0xff] }
 0x991   : > { %35134 = vmatmul.mubr.msk.f32.gmra.mrb[70].mxu1 %vm398_vm0, %v12236_v29  ;;  %37136 = vmatmul.mubr.msk.f32.gmra.mrb[18].mxu0 %vm398_vm0, %v26588_v47  ;;  %v12268_v29 = vld [vmem:[%s39948_s10 + $0x6ec] sm:$0xff] }
 0x992   : > { %35136 = vmatprep.mubr.msk.f32.mxu1 %vm398_vm0, %v12237_v59  ;;  %37138 = vmatprep.mubr.msk.f32.mxu0 %vm398_vm0, %v26589_v52  ;;  %v26620_v47 = vld [vmem:[%s39948_s10 + $0x90c] sm:$0xff]  ;;  %v13325_v59 = vld [vmem:[%s39948_s10 + $0x55a] sm:$0xff] }
 0x993   : > { %v26621_v52 = vld [vmem:[%s39948_s10 + $0x914] sm:$0xff] }
 0x995   : > { %35137 = vmatmul.mubr.msk.f32.gmra.mrb[72].mxu1 %vm398_vm0, %v12238_v55  ;;  %37139 = vmatmul.mubr.msk.f32.gmra.mrb[20].mxu0 %vm398_vm0, %v26590_v61  ;;  %v13326_v55 = vld [vmem:[%s39948_s10 + $0x562] sm:$0xff] }
 0x996   : > { %35139 = vmatprep.mubr.msk.f32.mxu1 %vm398_vm0, %v12239_v3  ;;  %37141 = vmatprep.mubr.msk.f32.mxu0 %vm398_vm0, %v26591_v23  ;;  %v26622_v61 = vld [vmem:[%s39948_s10 + $0x91c] sm:$0xff]  ;;  %v13327_v3 = vld [vmem:[%s39948_s10 + $0x56a] sm:$0xff] }
 0x997   : > { %v26623_v23 = vld [vmem:[%s39948_s10 + $0x924] sm:$0xff] }
 0x999   : > { %35140 = vmatmul.mubr.msk.f32.gmra.mrb[74].mxu1 %vm398_vm0, %v12240_v18  ;;  %37142 = vmatmul.mubr.msk.f32.gmra.mrb[22].mxu0 %vm398_vm0, %v26592_v28  ;;  %v13328_v18 = vld [vmem:[%s39948_s10 + $0x572] sm:$0xff] }
 0x99a   : > { %35142 = vmatprep.mubr.msk.f32.mxu1 %vm398_vm0, %v12241_v36  ;;  %37144 = vmatprep.mubr.msk.f32.mxu0 %vm398_vm0, %v26593_v7  ;;  %v26624_v28 = vld [vmem:[%s39948_s10 + $0x92c] sm:$0xff]  ;;  %v13329_v36 = vld [vmem:[%s39948_s10 + $0x57a] sm:$0xff] }
 0x99b   : > { %v26625_v7 = vld [vmem:[%s39948_s10 + $0x934] sm:$0xff] }
 0x99d   : > { %35143 = vmatmul.mubr.msk.f32.gmra.mrb[76].mxu1 %vm398_vm0, %v12242_v41  ;;  %37145 = vmatmul.mubr.msk.f32.gmra.mrb[24].mxu0 %vm398_vm0, %v26594_v60 }
 0x99e   : > { %35145 = vmatprep.mubr.msk.f32.mxu1 %vm398_vm0, %v12243_v16  ;;  %37147 = vmatprep.mubr.msk.f32.mxu0 %vm398_vm0, %v26595_v51  ;;  %v13330_v16 = vld [vmem:[%s39948_s10 + $0x582] sm:$0xff] }
 0x99f   : > { %v26626_v51 = vld [vmem:[%s39948_s10 + $0x93c] sm:$0xff] }
 0x9a1   : > { %35146 = vmatmul.mubr.msk.f32.gmra.mrb[78].mxu1 %vm398_vm0, %v12244_v48  ;;  %37148 = vmatmul.mubr.msk.f32.gmra.mrb[26].mxu0 %vm398_vm0, %v26596_v38  ;;  %v13331_v48 = vld [vmem:[%s39948_s10 + $0x58a] sm:$0xff] }
 0x9a2   : > { %35148 = vmatprep.mubr.msk.f32.mxu1 %vm398_vm0, %v12245_v62  ;;  %37150 = vmatprep.mubr.msk.f32.mxu0 %vm398_vm0, %v26597_v21  ;;  %v26627_v38 = vld [vmem:[%s39948_s10 + $0x944] sm:$0xff] }
 0x9a5   : > { %35149 = vmatmul.mubr.msk.f32.gmra.mrb[80].mxu1 %vm398_vm0, %v12246_v63  ;;  %37151 = vmatmul.mubr.msk.f32.gmra.mrb[28].mxu0 %vm398_vm0, %v26598_v0  ;;  %v13332_v63 = vld [vmem:[%s39948_s10 + $0x592] sm:$0xff] }
 0x9a6   : > { %35151 = vmatprep.mubr.msk.f32.mxu1 %vm398_vm0, %v12247_v5  ;;  %37153 = vmatprep.mubr.msk.f32.mxu0 %vm398_vm0, %v26599_v6  ;;  %v26628_v0 = vld [vmem:[%s39948_s10 + $0x94c] sm:$0xff]  ;;  %v13333_v5 = vld [vmem:[%s39948_s10 + $0x59a] sm:$0xff] }
 0x9a7   : > { %v26629_v6 = vld [vmem:[%s39948_s10 + $0x954] sm:$0xff] }
 0x9a9   : > { %35152 = vmatmul.mubr.msk.f32.gmra.mrb[82].mxu1 %vm398_vm0, %v12248_v43  ;;  %37154 = vmatmul.mubr.msk.f32.gmra.mrb[30].mxu0 %vm398_vm0, %v26600_v13 }
 0x9aa   : > { %35154 = vmatprep.mubr.msk.f32.mxu1 %vm398_vm0, %v12249_v1  ;;  %37156 = vmatprep.mubr.msk.f32.mxu0 %vm398_vm0, %v26601_v4  ;;  %v13334_v1 = vld [vmem:[%s39948_s10 + $0x5a2] sm:$0xff] }
 0x9ab   : > { %v26630_v4 = vld [vmem:[%s39948_s10 + $0x95c] sm:$0xff] }
 0x9ad   : > { %35155 = vmatmul.mubr.msk.f32.gmra.mrb[84].mxu1 %vm398_vm0, %v12250_v22  ;;  %37157 = vmatmul.mubr.msk.f32.gmra.mrb[32].mxu0 %vm398_vm0, %v26602_v27  ;;  %v13335_v22 = vld [vmem:[%s39948_s10 + $0x5aa] sm:$0xff] }
 0x9ae   : > { %35157 = vmatprep.mubr.msk.f32.mxu1 %vm398_vm0, %v12251_v31  ;;  %37159 = vmatprep.mubr.msk.f32.mxu0 %vm398_vm0, %v26603_v12  ;;  %v26631_v27 = vld [vmem:[%s39948_s10 + $0x964] sm:$0xff] }
 0x9b1   : > { %35158 = vmatmul.mubr.msk.f32.gmra.mrb[86].mxu1 %vm398_vm0, %v12252_v46  ;;  %37160 = vmatmul.mubr.msk.f32.gmra.mrb[34].mxu0 %vm398_vm0, %v26604_v58  ;;  %v13336_v46 = vld [vmem:[%s39948_s10 + $0x5b2] sm:$0xff] }
 0x9b2   : > { %35160 = vmatprep.mubr.msk.f32.mxu1 %vm398_vm0, %v12253_v39  ;;  %37162 = vmatprep.mubr.msk.f32.mxu0 %vm398_vm0, %v26605_v44  ;;  %v26632_v58 = vld [vmem:[%s39948_s10 + $0x96c] sm:$0xff]  ;;  %v13337_v39 = vld [vmem:[%s39948_s10 + $0x5ba] sm:$0xff] }
 0x9b3   : > { %v26633_v44 = vld [vmem:[%s39948_s10 + $0x974] sm:$0xff] }
 0x9b5   : > { %35161 = vmatmul.mubr.msk.f32.gmra.mrb[88].mxu1 %vm398_vm0, %v12254_v49  ;;  %37163 = vmatmul.mubr.msk.f32.gmra.mrb[36].mxu0 %vm398_vm0, %v26606_v57 }
 0x9b6   : > { %35163 = vmatprep.mubr.msk.f32.mxu1 %vm398_vm0, %v12255_v8  ;;  %37165 = vmatprep.mubr.msk.f32.mxu0 %vm398_vm0, %v26607_v15  ;;  %v13338_v8 = vld [vmem:[%s39948_s10 + $0x5c2] sm:$0xff] }
 0x9b7   : > { %v26634_v15 = vld [vmem:[%s39948_s10 + $0x97c] sm:$0xff] }
 0x9b9   : > { %35164 = vmatmul.mubr.msk.f32.gmra.mrb[90].mxu1 %vm398_vm0, %v12256_v50  ;;  %37166 = vmatmul.mubr.msk.f32.gmra.mrb[38].mxu0 %vm398_vm0, %v26608_v33  ;;  %v13339_v50 = vld [vmem:[%s39948_s10 + $0x5ca] sm:$0xff] }
 0x9ba   : > { %35166 = vmatprep.mubr.msk.f32.mxu1 %vm398_vm0, %v12257_v56  ;;  %37168 = vmatprep.mubr.msk.f32.mxu0 %vm398_vm0, %v26609_v26  ;;  %v26635_v33 = vld [vmem:[%s39948_s10 + $0x984] sm:$0xff] }
 0x9bd   : > { %35167 = vmatmul.mubr.msk.f32.gmra.mrb[92].mxu1 %vm398_vm0, %v12258_v30  ;;  %37169 = vmatmul.mubr.msk.f32.gmra.mrb[40].mxu0 %vm398_vm0, %v26610_v2  ;;  %v13340_v30 = vld [vmem:[%s39948_s10 + $0x5d2] sm:$0xff] }
 0x9be   : > { %35169 = vmatprep.mubr.msk.f32.mxu1 %vm398_vm0, %v12259_v24  ;;  %37171 = vmatprep.mubr.msk.f32.mxu0 %vm398_vm0, %v26611_v9  ;;  %v26636_v2 = vld [vmem:[%s39948_s10 + $0x98c] sm:$0xff]  ;;  %v13341_v24 = vld [vmem:[%s39948_s10 + $0x5da] sm:$0xff] }
 0x9bf   : > { %v26637_v9 = vld [vmem:[%s39948_s10 + $0x994] sm:$0xff] }
 0x9c1   : > { %35170 = vmatmul.mubr.msk.f32.gmra.mrb[94].mxu1 %vm398_vm0, %v12260_v14  ;;  %37172 = vmatmul.mubr.msk.f32.gmra.mrb[42].mxu0 %vm398_vm0, %v26612_v25 }
 0x9c2   : > { %35172 = vmatprep.mubr.msk.f32.mxu1 %vm398_vm0, %v12261_v35  ;;  %37174 = vmatprep.mubr.msk.f32.mxu0 %vm398_vm0, %v26613_v34  ;;  %v13342_v35 = vld [vmem:[%s39948_s10 + $0x5e2] sm:$0xff] }
 0x9c3   : > { %v26638_v34 = vld [vmem:[%s39948_s10 + $0x99c] sm:$0xff] }
 0x9c5   : > { %35173 = vmatmul.mubr.msk.f32.gmra.mrb[96].mxu1 %vm398_vm0, %v12262_v37  ;;  %37175 = vmatmul.mubr.msk.f32.gmra.mrb[44].mxu0 %vm398_vm0, %v26614_v42  ;;  %v13343_v37 = vld [vmem:[%s39948_s10 + $0x5ea] sm:$0xff] }
 0x9c6   : > { %35175 = vmatprep.mubr.msk.f32.mxu1 %vm398_vm0, %v12263_v53  ;;  %37177 = vmatprep.mubr.msk.f32.mxu0 %vm398_vm0, %v26615_v11  ;;  %v26639_v42 = vld [vmem:[%s39948_s10 + $0x9a4] sm:$0xff] }
 0x9c9   : > { %35176 = vmatmul.mubr.msk.f32.gmra.mrb[98].mxu1 %vm398_vm0, %v12264_v40  ;;  %37178 = vmatmul.mubr.msk.f32.gmra.mrb[46].mxu0 %vm398_vm0, %v26616_v10  ;;  %v13344_v40 = vld [vmem:[%s39948_s10 + $0x5f2] sm:$0xff] }
 0x9ca   : > { %35178 = vmatprep.mubr.msk.f32.mxu1 %vm398_vm0, %v12265_v20  ;;  %37180 = vmatprep.mubr.msk.f32.mxu0 %vm398_vm0, %v26617_v17  ;;  %v26640_v10 = vld [vmem:[%s39948_s10 + $0x9ac] sm:$0xff]  ;;  %v13345_v20 = vld [vmem:[%s39948_s10 + $0x5fa] sm:$0xff] }
 0x9cb   : > { %v26641_v17 = vld [vmem:[%s39948_s10 + $0x9b4] sm:$0xff] }
 0x9cd   : > { %35179 = vmatmul.mubr.msk.f32.gmra.mrb[100].mxu1 %vm398_vm0, %v12266_v32  ;;  %37181 = vmatmul.mubr.msk.f32.gmra.mrb[48].mxu0 %vm398_vm0, %v26618_v54 }
 0x9ce   : > { %35181 = vmatprep.mubr.msk.f32.mxu1 %vm398_vm0, %v12267_v19  ;;  %37183 = vmatprep.mubr.msk.f32.mxu0 %vm398_vm0, %v26619_v45  ;;  %v13346_v19 = vld [vmem:[%s39948_s10 + $0x602] sm:$0xff] }
 0x9cf   : > { %v26642_v45 = vld [vmem:[%s39948_s10 + $0x9bc] sm:$0xff] }
 0x9d1   : > { %35182 = vmatmul.mubr.msk.f32.gmra.mrb[102].mxu1 %vm398_vm0, %v12268_v29  ;;  %37184 = vmatmul.mubr.msk.f32.gmra.mrb[50].mxu0 %vm398_vm0, %v26620_v47  ;;  %v13347_v29 = vld [vmem:[%s39948_s10 + $0x60a] sm:$0xff] }
 0x9d2   : > { %35266 = vmatprep.mubr.msk.f32.mxu1 %vm398_vm0, %v13325_v59  ;;  %37186 = vmatprep.mubr.msk.f32.mxu0 %vm398_vm0, %v26621_v52  ;;  %v26643_v47 = vld [vmem:[%s39948_s10 + $0x9c4] sm:$0xff] }
 0x9d5   : > { %35267 = vmatmul.mubr.msk.f32.vlgmr.msra.gmra.mrb[52].mxu1 %vm398_vm0, %v13326_v55  ;;  %37187 = vmatmul.mubr.msk.f32.gmra.mrb[52].mxu0 %vm398_vm0, %v26622_v61  ;;  %v13348_v55 = vld [vmem:[%s39948_s10 + $0x612] sm:$0xff] }
 0x9d6   : > { %35269 = vmatprep.mubr.msk.f32.mxu1 %vm398_vm0, %v13327_v3  ;;  %37189 = vmatprep.mubr.msk.f32.mxu0 %vm398_vm0, %v26623_v23  ;;  %v26644_v61 = vld [vmem:[%s39948_s10 + $0x9cc] sm:$0xff]  ;;  %v13349_v3 = vld [vmem:[%s39948_s10 + $0x61a] sm:$0xff] }
 0x9d7   : > { %v26645_v23 = vld [vmem:[%s39948_s10 + $0x9d4] sm:$0xff] }
 0x9d8   : > { %v45572_v41 = vpop.f32.mrb[0].mxu1 }
 0x9d9   : > { %v45574_v60 = vpop.f32.mrb[1].mxu1  ;;  %35270 = vmatmul.mubr.msk.f32.gmra.mrb[54].mxu1 %vm398_vm0, %v13328_v18  ;;  %37190 = vmatmul.mubr.msk.f32.gmra.mrb[54].mxu0 %vm398_vm0, %v26624_v28 }
 0x9da   : > { %35272 = vmatprep.mubr.msk.f32.mxu1 %vm398_vm0, %v13329_v36  ;;  %37192 = vmatprep.mubr.msk.f32.mxu0 %vm398_vm0, %v26625_v7  ;;  %v13350_v36 = vld [vmem:[%s39948_s10 + $0x622] sm:$0xff] }
 0x9db   : > { %v26646_v7 = vld [vmem:[%s39948_s10 + $0x9dc] sm:$0xff] }
 0x9dc   : > { %v45584_v62 = vpop.f32.mrb[2].mxu1 }
 0x9dd   : > { %v45586_v21 = vpop.f32.mrb[3].mxu1  ;;  %35273 = vmatmul.mubr.msk.f32.gmra.mrb[56].mxu1 %vm398_vm0, %v13330_v16  ;;  %37193 = vmatmul.mubr.msk.f32.gmra.mrb[56].mxu0 %vm398_vm0, %v26626_v51  ;;  %v13351_v16 = vld [vmem:[%s39948_s10 + $0x62a] sm:$0xff] }
 0x9de   : > { %35275 = vmatprep.mubr.msk.f32.mxu1 %vm398_vm0, %v13331_v48  ;;  %37195 = vmatprep.mubr.msk.f32.mxu0 %vm398_vm0, %v26627_v38  ;;  %v26647_v51 = vld [vmem:[%s39948_s10 + $0x9e4] sm:$0xff] }
 0x9e0   : > { %v45596_v43 = vpop.f32.mrb[4].mxu1 }
 0x9e1   : > { %v45598_v13 = vpop.f32.mrb[5].mxu1  ;;  %35276 = vmatmul.mubr.msk.f32.gmra.mrb[58].mxu1 %vm398_vm0, %v13332_v63  ;;  %37196 = vmatmul.mubr.msk.f32.gmra.mrb[58].mxu0 %vm398_vm0, %v26628_v0  ;;  %v13352_v63 = vld [vmem:[%s39948_s10 + $0x632] sm:$0xff] }
 0x9e2   : > { %35278 = vmatprep.mubr.msk.f32.mxu1 %vm398_vm0, %v13333_v5  ;;  %37198 = vmatprep.mubr.msk.f32.mxu0 %vm398_vm0, %v26629_v6  ;;  %v26648_v0 = vld [vmem:[%s39948_s10 + $0x9ec] sm:$0xff]  ;;  %v13353_v5 = vld [vmem:[%s39948_s10 + $0x63a] sm:$0xff] }
 0x9e3   : > { %v26649_v6 = vld [vmem:[%s39948_s10 + $0x9f4] sm:$0xff] }
 0x9e4   : > { %v45608_v31 = vpop.f32.mrb[6].mxu1 }
 0x9e5   : > { %v45610_v12 = vpop.f32.mrb[7].mxu1  ;;  %35279 = vmatmul.mubr.msk.f32.gmra.mrb[60].mxu1 %vm398_vm0, %v13334_v1  ;;  %37199 = vmatmul.mubr.msk.f32.gmra.mrb[60].mxu0 %vm398_vm0, %v26630_v4 }
 0x9e6   : > { %35281 = vmatprep.mubr.msk.f32.mxu1 %vm398_vm0, %v13335_v22  ;;  %37201 = vmatprep.mubr.msk.f32.mxu0 %vm398_vm0, %v26631_v27  ;;  %v13354_v22 = vld [vmem:[%s39948_s10 + $0x642] sm:$0xff] }
 0x9e7   : > { %v26650_v27 = vld [vmem:[%s39948_s10 + $0x9fc] sm:$0xff] }
 0x9e8   : > { %v45620_v49 = vpop.f32.mrb[8].mxu1 }
 0x9e9   : > { %v45622_v57 = vpop.f32.mrb[9].mxu1  ;;  %35282 = vmatmul.mubr.msk.f32.gmra.mrb[62].mxu1 %vm398_vm0, %v13336_v46  ;;  %37202 = vmatmul.mubr.msk.f32.gmra.mrb[62].mxu0 %vm398_vm0, %v26632_v58  ;;  %v13355_v46 = vld [vmem:[%s39948_s10 + $0x64a] sm:$0xff] }
 0x9ea   : > { %35284 = vmatprep.mubr.msk.f32.mxu1 %vm398_vm0, %v13337_v39  ;;  %37204 = vmatprep.mubr.msk.f32.mxu0 %vm398_vm0, %v26633_v44  ;;  %v26651_v58 = vld [vmem:[%s39948_s10 + $0xa04] sm:$0xff] }
 0x9ec   : > { %v45632_v56 = vpop.f32.mrb[10].mxu1 }
 0x9ed   : > { %v45634_v26 = vpop.f32.mrb[11].mxu1  ;;  %35285 = vmatmul.mubr.msk.f32.gmra.mrb[64].mxu1 %vm398_vm0, %v13338_v8  ;;  %37205 = vmatmul.mubr.msk.f32.gmra.mrb[64].mxu0 %vm398_vm0, %v26634_v15  ;;  %v13356_v8 = vld [vmem:[%s39948_s10 + $0x652] sm:$0xff] }
 0x9ee   : > { %35287 = vmatprep.mubr.msk.f32.mxu1 %vm398_vm0, %v13339_v50  ;;  %37207 = vmatprep.mubr.msk.f32.mxu0 %vm398_vm0, %v26635_v33  ;;  %v26652_v15 = vld [vmem:[%s39948_s10 + $0xa0c] sm:$0xff]  ;;  %v13357_v50 = vld [vmem:[%s39948_s10 + $0x65a] sm:$0xff] }
 0x9ef   : > { %v26653_v33 = vld [vmem:[%s39948_s10 + $0xa14] sm:$0xff] }
 0x9f0   : > { %v45644_v14 = vpop.f32.mrb[12].mxu1 }
 0x9f1   : > { %v45646_v25 = vpop.f32.mrb[13].mxu1  ;;  %35288 = vmatmul.mubr.msk.f32.gmra.mrb[66].mxu1 %vm398_vm0, %v13340_v30  ;;  %37208 = vmatmul.mubr.msk.f32.gmra.mrb[66].mxu0 %vm398_vm0, %v26636_v2 }
 0x9f2   : > { %35290 = vmatprep.mubr.msk.f32.mxu1 %vm398_vm0, %v13341_v24  ;;  %37210 = vmatprep.mubr.msk.f32.mxu0 %vm398_vm0, %v26637_v9  ;;  %v13358_v24 = vld [vmem:[%s39948_s10 + $0x662] sm:$0xff] }
 0x9f3   : > { %v26654_v9 = vld [vmem:[%s39948_s10 + $0xa1c] sm:$0xff] }
 0x9f4   : > { %v45656_v53 = vpop.f32.mrb[14].mxu1 }
 0x9f5   : > { %v45658_v11 = vpop.f32.mrb[15].mxu1  ;;  %35291 = vmatmul.mubr.msk.f32.gmra.mrb[68].mxu1 %vm398_vm0, %v13342_v35  ;;  %37211 = vmatmul.mubr.msk.f32.gmra.mrb[68].mxu0 %vm398_vm0, %v26638_v34  ;;  %v13359_v35 = vld [vmem:[%s39948_s10 + $0x66a] sm:$0xff] }
 0x9f6   : > { %35293 = vmatprep.mubr.msk.f32.mxu1 %vm398_vm0, %v13343_v37  ;;  %37213 = vmatprep.mubr.msk.f32.mxu0 %vm398_vm0, %v26639_v42  ;;  %v26655_v34 = vld [vmem:[%s39948_s10 + $0xa24] sm:$0xff] }
 0x9f8   : > { %v45668_v32 = vpop.f32.mrb[16].mxu1 }
 0x9f9   : > { %v45670_v54 = vpop.f32.mrb[17].mxu1  ;;  %35294 = vmatmul.mubr.msk.f32.gmra.mrb[70].mxu1 %vm398_vm0, %v13344_v40  ;;  %37214 = vmatmul.mubr.msk.f32.gmra.mrb[70].mxu0 %vm398_vm0, %v26640_v10  ;;  %v13360_v40 = vld [vmem:[%s39948_s10 + $0x672] sm:$0xff] }
 0x9fa   : > { %35296 = vmatprep.mubr.msk.f32.mxu1 %vm398_vm0, %v13345_v20  ;;  %37216 = vmatprep.mubr.msk.f32.mxu0 %vm398_vm0, %v26641_v17  ;;  %v26656_v10 = vld [vmem:[%s39948_s10 + $0xa2c] sm:$0xff]  ;;  %v13361_v20 = vld [vmem:[%s39948_s10 + $0x67a] sm:$0xff] }
 0x9fb   : > { %v26657_v17 = vld [vmem:[%s39948_s10 + $0xa34] sm:$0xff] }
 0x9fc   : > { %v45680_v59 = vpop.f32.mrb[18].mxu1 }
 0x9fd   : > { %v45682_v52 = vpop.f32.mrb[19].mxu1  ;;  %35297 = vmatmul.mubr.msk.f32.gmra.mrb[72].mxu1 %vm398_vm0, %v13346_v19  ;;  %37217 = vmatmul.mubr.msk.f32.gmra.mrb[72].mxu0 %vm398_vm0, %v26642_v45 }
 0x9fe   : > { %35299 = vmatprep.mubr.msk.f32.mxu1 %vm398_vm0, %v13347_v29  ;;  %37219 = vmatprep.mubr.msk.f32.mxu0 %vm398_vm0, %v26643_v47  ;;  %v13362_v29 = vld [vmem:[%s39948_s10 + $0x682] sm:$0xff] }
 0x9ff   : > { %v26658_v47 = vld [vmem:[%s39948_s10 + $0xa3c] sm:$0xff] }
 0xa00   : > { %v45692_v18 = vpop.f32.mrb[20].mxu1 }
 0xa01   : > { %v45694_v28 = vpop.f32.mrb[21].mxu1  ;;  %35300 = vmatmul.mubr.msk.f32.gmra.mrb[74].mxu1 %vm398_vm0, %v13348_v55  ;;  %37220 = vmatmul.mubr.msk.f32.gmra.mrb[74].mxu0 %vm398_vm0, %v26644_v61  ;;  %v13363_v55 = vld [vmem:[%s39948_s10 + $0x68a] sm:$0xff] }
 0xa02   : > { %35302 = vmatprep.mubr.msk.f32.mxu1 %vm398_vm0, %v13349_v3  ;;  %37222 = vmatprep.mubr.msk.f32.mxu0 %vm398_vm0, %v26645_v23  ;;  %v26659_v61 = vld [vmem:[%s39948_s10 + $0xa44] sm:$0xff] }
 0xa04   : > { %v45704_v48 = vpop.f32.mrb[22].mxu1 }
 0xa05   : > { %v45706_v38 = vpop.f32.mrb[23].mxu1  ;;  %35303 = vmatmul.mubr.msk.f32.gmra.mrb[76].mxu1 %vm398_vm0, %v13350_v36  ;;  %37223 = vmatmul.mubr.msk.f32.gmra.mrb[76].mxu0 %vm398_vm0, %v26646_v7  ;;  %v13364_v36 = vld [vmem:[%s39948_s10 + $0x692] sm:$0xff] }
 0xa06   : > { %35305 = vmatprep.mubr.msk.f32.mxu1 %vm398_vm0, %v13351_v16  ;;  %37225 = vmatprep.mubr.msk.f32.mxu0 %vm398_vm0, %v26647_v51  ;;  %v26660_v7 = vld [vmem:[%s39948_s10 + $0xa4c] sm:$0xff]  ;;  %v13365_v16 = vld [vmem:[%s39948_s10 + $0x69a] sm:$0xff] }
 0xa07   : > { %v26661_v51 = vld [vmem:[%s39948_s10 + $0xa54] sm:$0xff] }
 0xa08   : > { %v45716_v1 = vpop.f32.mrb[24].mxu1 }
 0xa09   : > { %v45718_v4 = vpop.f32.mrb[25].mxu1  ;;  %35306 = vmatmul.mubr.msk.f32.gmra.mrb[78].mxu1 %vm398_vm0, %v13352_v63  ;;  %37226 = vmatmul.mubr.msk.f32.gmra.mrb[78].mxu0 %vm398_vm0, %v26648_v0 }
 0xa0a   : > { %35308 = vmatprep.mubr.msk.f32.mxu1 %vm398_vm0, %v13353_v5  ;;  %37228 = vmatprep.mubr.msk.f32.mxu0 %vm398_vm0, %v26649_v6  ;;  %v13366_v5 = vld [vmem:[%s39948_s10 + $0x6a2] sm:$0xff] }
 0xa0b   : > { %v26662_v6 = vld [vmem:[%s39948_s10 + $0xa5c] sm:$0xff] }
 0xa0c   : > { %v45728_v39 = vpop.f32.mrb[26].mxu1 }
 0xa0d   : > { %v45730_v44 = vpop.f32.mrb[27].mxu1  ;;  %35309 = vmatmul.mubr.msk.f32.gmra.mrb[80].mxu1 %vm398_vm0, %v13354_v22  ;;  %37229 = vmatmul.mubr.msk.f32.gmra.mrb[80].mxu0 %vm398_vm0, %v26650_v27  ;;  %v13367_v22 = vld [vmem:[%s39948_s10 + $0x6aa] sm:$0xff] }
 0xa0e   : > { %35311 = vmatprep.mubr.msk.f32.mxu1 %vm398_vm0, %v13355_v46  ;;  %37231 = vmatprep.mubr.msk.f32.mxu0 %vm398_vm0, %v26651_v58  ;;  %v26663_v27 = vld [vmem:[%s39948_s10 + $0xa64] sm:$0xff] }
 0xa10   : > { %v45740_v30 = vpop.f32.mrb[28].mxu1 }
 0xa11   : > { %v45742_v2 = vpop.f32.mrb[29].mxu1  ;;  %35312 = vmatmul.mubr.msk.f32.gmra.mrb[82].mxu1 %vm398_vm0, %v13356_v8  ;;  %37232 = vmatmul.mubr.msk.f32.gmra.mrb[82].mxu0 %vm398_vm0, %v26652_v15  ;;  %v13368_v8 = vld [vmem:[%s39948_s10 + $0x6b2] sm:$0xff] }
 0xa12   : > { %35314 = vmatprep.mubr.msk.f32.mxu1 %vm398_vm0, %v13357_v50  ;;  %37234 = vmatprep.mubr.msk.f32.mxu0 %vm398_vm0, %v26653_v33  ;;  %v26664_v15 = vld [vmem:[%s39948_s10 + $0xa6c] sm:$0xff]  ;;  %v13369_v50 = vld [vmem:[%s39948_s10 + $0x6ba] sm:$0xff] }
 0xa13   : > { %v26665_v33 = vld [vmem:[%s39948_s10 + $0xa74] sm:$0xff] }
 0xa14   : > { %v45752_v37 = vpop.f32.mrb[30].mxu1 }
 0xa15   : > { %v45754_v42 = vpop.f32.mrb[31].mxu1  ;;  %35315 = vmatmul.mubr.msk.f32.gmra.mrb[84].mxu1 %vm398_vm0, %v13358_v24  ;;  %37235 = vmatmul.mubr.msk.f32.gmra.mrb[84].mxu0 %vm398_vm0, %v26654_v9 }
 0xa16   : > { %35317 = vmatprep.mubr.msk.f32.mxu1 %vm398_vm0, %v13359_v35  ;;  %37237 = vmatprep.mubr.msk.f32.mxu0 %vm398_vm0, %v26655_v34  ;;  %v13370_v35 = vld [vmem:[%s39948_s10 + $0x6c2] sm:$0xff] }
 0xa17   : > { %v26666_v34 = vld [vmem:[%s39948_s10 + $0xa7c] sm:$0xff] }
 0xa18   : > { %v45764_v19 = vpop.f32.mrb[32].mxu1 }
 0xa19   : > { %v45766_v45 = vpop.f32.mrb[33].mxu1  ;;  %35318 = vmatmul.mubr.msk.f32.gmra.mrb[86].mxu1 %vm398_vm0, %v13360_v40  ;;  %37238 = vmatmul.mubr.msk.f32.gmra.mrb[86].mxu0 %vm398_vm0, %v26656_v10  ;;  %v13371_v40 = vld [vmem:[%s39948_s10 + $0x6ca] sm:$0xff] }
 0xa1a   : > { %35320 = vmatprep.mubr.msk.f32.mxu1 %vm398_vm0, %v13361_v20  ;;  %37240 = vmatprep.mubr.msk.f32.mxu0 %vm398_vm0, %v26657_v17  ;;  %v26667_v10 = vld [vmem:[%s39948_s10 + $0xa84] sm:$0xff] }
 0xa1c   : > { %v45776_v3 = vpop.f32.mrb[34].mxu1 }
 0xa1d   : > { %v45778_v23 = vpop.f32.mrb[35].mxu1  ;;  %35321 = vmatmul.mubr.msk.f32.gmra.mrb[88].mxu1 %vm398_vm0, %v13362_v29  ;;  %37241 = vmatmul.mubr.msk.f32.gmra.mrb[88].mxu0 %vm398_vm0, %v26658_v47  ;;  %v13372_v29 = vld [vmem:[%s39948_s10 + $0x6d2] sm:$0xff] }
 0xa1e   : > { %35323 = vmatprep.mubr.msk.f32.mxu1 %vm398_vm0, %v13363_v55  ;;  %37243 = vmatprep.mubr.msk.f32.mxu0 %vm398_vm0, %v26659_v61  ;;  %v26668_v47 = vld [vmem:[%s39948_s10 + $0xa8c] sm:$0xff]  ;;  %v13373_v55 = vld [vmem:[%s39948_s10 + $0x6da] sm:$0xff] }
 0xa1f   : > { %v26669_v61 = vld [vmem:[%s39948_s10 + $0xa94] sm:$0xff] }
 0xa20   : > { %v45788_v63 = vpop.f32.mrb[36].mxu1 }
 0xa21   : > { %v45790_v0 = vpop.f32.mrb[37].mxu1  ;;  %35324 = vmatmul.mubr.msk.f32.gmra.mrb[90].mxu1 %vm398_vm0, %v13364_v36  ;;  %37244 = vmatmul.mubr.msk.f32.gmra.mrb[90].mxu0 %vm398_vm0, %v26660_v7 }
 0xa22   : > { %35326 = vmatprep.mubr.msk.f32.mxu1 %vm398_vm0, %v13365_v16  ;;  %37246 = vmatprep.mubr.msk.f32.mxu0 %vm398_vm0, %v26661_v51  ;;  %v13374_v16 = vld [vmem:[%s39948_s10 + $0x6e2] sm:$0xff] }
 0xa23   : > { %v26670_v51 = vld [vmem:[%s39948_s10 + $0xa9c] sm:$0xff] }
 0xa24   : > { %v45800_v46 = vpop.f32.mrb[38].mxu1 }
 0xa25   : > { %v45802_v58 = vpop.f32.mrb[39].mxu1  ;;  %35327 = vmatmul.mubr.msk.f32.gmra.mrb[92].mxu1 %vm398_vm0, %v13366_v5  ;;  %37247 = vmatmul.mubr.msk.f32.gmra.mrb[92].mxu0 %vm398_vm0, %v26662_v6  ;;  %v13375_v5 = vld [vmem:[%s39948_s10 + $0x6ea] sm:$0xff] }
 0xa26   : > { %35329 = vmatprep.mubr.msk.f32.mxu1 %vm398_vm0, %v13367_v22  ;;  %37249 = vmatprep.mubr.msk.f32.mxu0 %vm398_vm0, %v26663_v27  ;;  %v26671_v6 = vld [vmem:[%s39948_s10 + $0xaa4] sm:$0xff] }
 0xa28   : > { %v45812_v24 = vpop.f32.mrb[40].mxu1 }
 0xa29   : > { %v45814_v9 = vpop.f32.mrb[41].mxu1  ;;  %35330 = vmatmul.mubr.msk.f32.gmra.mrb[94].mxu1 %vm398_vm0, %v13368_v8  ;;  %37250 = vmatmul.mubr.msk.f32.gmra.mrb[94].mxu0 %vm398_vm0, %v26664_v15  ;;  %v13376_v8 = vld [vmem:[%s39948_s10 + $0x6f2] sm:$0xff] }
 0xa2a   : > { %35332 = vmatprep.mubr.msk.f32.mxu1 %vm398_vm0, %v13369_v50  ;;  %37252 = vmatprep.mubr.msk.f32.mxu0 %vm398_vm0, %v26665_v33  ;;  %v26672_v15 = vld [vmem:[%s39948_s10 + $0xaac] sm:$0xff] }
 0xa2c   : > { %v45824_v20 = vpop.f32.mrb[42].mxu1 }
 0xa2d   : > { %v45826_v17 = vpop.f32.mrb[43].mxu1  ;;  %35333 = vmatmul.mubr.msk.f32.gmra.mrb[96].mxu1 %vm398_vm0, %v13370_v35  ;;  %37253 = vmatmul.mubr.msk.f32.gmra.mrb[96].mxu0 %vm398_vm0, %v26666_v34 }
 0xa2e   : > { %35335 = vmatprep.mubr.msk.f32.mxu1 %vm398_vm0, %v13371_v40  ;;  %37255 = vmatprep.mubr.msk.f32.mxu0 %vm398_vm0, %v26667_v10  ;;  %v45873_v10 = vld [vmem:[%s174_s23] ss:$0 sm:$0xff] }
 0xa30   : > { %v45836_v36 = vpop.f32.mrb[44].mxu1 }
 0xa31   : > { %v45838_v7 = vpop.f32.mrb[45].mxu1  ;;  %35336 = vmatmul.mubr.msk.f32.gmra.mrb[98].mxu1 %vm398_vm0, %v13372_v29  ;;  %37256 = vmatmul.mubr.msk.f32.gmra.mrb[98].mxu0 %vm398_vm0, %v26668_v47 }
 0xa32   : > { %35338 = vmatprep.mubr.msk.f32.mxu1 %vm398_vm0, %v13373_v55  ;;  %37258 = vmatprep.mubr.msk.f32.mxu0 %vm398_vm0, %v26669_v61 }
 0xa34   : > { %v45848_v22 = vpop.f32.mrb[46].mxu1 }
 0xa35   : > { %v45850_v27 = vpop.f32.mrb[47].mxu1  ;;  %35339 = vmatmul.mubr.msk.f32.gmra.mrb[100].mxu1 %vm398_vm0, %v13374_v16  ;;  %37259 = vmatmul.mubr.msk.f32.gmra.mrb[100].mxu0 %vm398_vm0, %v26670_v51 }
 0xa36   : > { %35341 = vmatprep.mubr.msk.f32.mxu1 %vm398_vm0, %v13375_v5  ;;  %37261 = vmatprep.mubr.msk.f32.mxu0 %vm398_vm0, %v26671_v6 }
 0xa38   : > { %v45858_v50 = vpop.f32.mrb[48].mxu1 }
 0xa39   : > { %v45860_v33 = vpop.f32.mrb[49].mxu1  ;;  %35342 = vmatmul.mubr.msk.f32.gmra.mrb[102].mxu1 %vm398_vm0, %v13376_v8  ;;  %37262 = vmatmul.mubr.msk.f32.gmra.mrb[102].mxu0 %vm398_vm0, %v26672_v15 }
 0xa3c   : > { %v45864_v35 = vpop.f32.mrb[50].mxu1 }
 0xa3d   : > { %v45866_v34 = vpop.f32.mrb[51].mxu1 }
 0xa40   : > { %v37110_v40 = vpop.f32.mrb[0].mxu0 }
 0xa41   : > { %v37366_v29 = vadd.f32 %v37110_v40, %v45572_v41  ;;  %v27054_v47 = vpop.f32.mrb[1].mxu0 }
 0xa42   : > { %v37367_v55 = vadd.f32 %v27054_v47, %v45574_v60 }
 0xa43   : > { %v27685_v61 = vadd.f32 %v37366_v29, %v45873_v10 }
 0xa44   : > { %v27684_v16 = vadd.f32 %v37367_v55, %v45873_v10  ;;  %v37113_v51 = vpop.f32.mrb[2].mxu0 }
 0xa45   : > { %27789 = vst [vmem:[%s45879_s26 + $0x8] sm:$0xff] %v27685_v61  ;;  %v37368_v41 = vadd.f32 %v37113_v51, %v45584_v62  ;;  %v27064_v5 = vpop.f32.mrb[3].mxu0 }
 0xa46   : > { %27788 = vst [vmem:[%s45879_s26] sm:$0xff] %v27684_v16  ;;  %v37369_v6 = vadd.f32 %v27064_v5, %v45586_v21 }
 0xa47   : > { %v27687_v8 = vadd.f32 %v37368_v41, %v45873_v10 }
 0xa48   : > { %v27686_v15 = vadd.f32 %v37369_v6, %v45873_v10  ;;  %v37116_v40 = vpop.f32.mrb[4].mxu0 }
 0xa49   : > { %27791 = vst [vmem:[%s45879_s26 + $0x18] sm:$0xff] %v27687_v8  ;;  %v37370_v60 = vadd.f32 %v37116_v40, %v45596_v43  ;;  %v27074_v29 = vpop.f32.mrb[5].mxu0 }
 0xa4a   : > { %27790 = vst [vmem:[%s45879_s26 + $0x10] sm:$0xff] %v27686_v15  ;;  %v37371_v47 = vadd.f32 %v27074_v29, %v45598_v13 }
 0xa4b   : > { %v27689_v62 = vadd.f32 %v37370_v60, %v45873_v10 }
 0xa4c   : > { %v27688_v55 = vadd.f32 %v37371_v47, %v45873_v10  ;;  %v37119_v61 = vpop.f32.mrb[6].mxu0 }
 0xa4d   : > { %27793 = vst [vmem:[%s45879_s26 + $0x28] sm:$0xff] %v27689_v62  ;;  %v37372_v21 = vadd.f32 %v37119_v61, %v45608_v31  ;;  %v27084_v16 = vpop.f32.mrb[7].mxu0 }
 0xa4e   : > { %27792 = vst [vmem:[%s45879_s26 + $0x20] sm:$0xff] %v27688_v55  ;;  %v37373_v51 = vadd.f32 %v27084_v16, %v45610_v12 }
 0xa4f   : > { %v27691_v43 = vadd.f32 %v37372_v21, %v45873_v10 }
 0xa50   : > { %v27690_v41 = vadd.f32 %v37373_v51, %v45873_v10  ;;  %v37122_v5 = vpop.f32.mrb[8].mxu0 }
 0xa51   : > { %27795 = vst [vmem:[%s45879_s26 + $0x38] sm:$0xff] %v27691_v43  ;;  %v37374_v13 = vadd.f32 %v37122_v5, %v45620_v49  ;;  %v27094_v6 = vpop.f32.mrb[9].mxu0 }
 0xa52   : > { %27794 = vst [vmem:[%s45879_s26 + $0x30] sm:$0xff] %v27690_v41  ;;  %v37375_v8 = vadd.f32 %v27094_v6, %v45622_v57 }
 0xa53   : > { %v27693_v31 = vadd.f32 %v37374_v13, %v45873_v10 }
 0xa54   : > { %v27692_v15 = vadd.f32 %v37375_v8, %v45873_v10  ;;  %v37125_v40 = vpop.f32.mrb[10].mxu0 }
 0xa55   : > { %27797 = vst [vmem:[%s45879_s26 + $0x48] sm:$0xff] %v27693_v31  ;;  %v37376_v12 = vadd.f32 %v37125_v40, %v45632_v56  ;;  %v27104_v60 = vpop.f32.mrb[11].mxu0 }
 0xa56   : > { %27796 = vst [vmem:[%s45879_s26 + $0x40] sm:$0xff] %v27692_v15  ;;  %v37377_v29 = vadd.f32 %v27104_v60, %v45634_v26 }
 0xa57   : > { %v27695_v49 = vadd.f32 %v37376_v12, %v45873_v10 }
 0xa58   : > { %v27694_v47 = vadd.f32 %v37377_v29, %v45873_v10  ;;  %v37128_v62 = vpop.f32.mrb[12].mxu0 }
 0xa59   : > { %27799 = vst [vmem:[%s45879_s26 + $0x58] sm:$0xff] %v27695_v49  ;;  %v37378_v57 = vadd.f32 %v37128_v62, %v45644_v14  ;;  %v27114_v55 = vpop.f32.mrb[13].mxu0 }
 0xa5a   : > { %27798 = vst [vmem:[%s45879_s26 + $0x50] sm:$0xff] %v27694_v47  ;;  %v37379_v61 = vadd.f32 %v27114_v55, %v45646_v25 }
 0xa5b   : > { %v27697_v56 = vadd.f32 %v37378_v57, %v45873_v10 }
 0xa5c   : > { %v27696_v21 = vadd.f32 %v37379_v61, %v45873_v10  ;;  %v37131_v16 = vpop.f32.mrb[14].mxu0 }
 0xa5d   : > { %27801 = vst [vmem:[%s45879_s26 + $0x68] sm:$0xff] %v27697_v56  ;;  %v37380_v26 = vadd.f32 %v37131_v16, %v45656_v53  ;;  %v27124_v51 = vpop.f32.mrb[15].mxu0 }
 0xa5e   : > { %27800 = vst [vmem:[%s45879_s26 + $0x60] sm:$0xff] %v27696_v21  ;;  %v37381_v43 = vadd.f32 %v27124_v51, %v45658_v11 }
 0xa5f   : > { %v27699_v14 = vadd.f32 %v37380_v26, %v45873_v10 }
 0xa60   : > { %v27698_v41 = vadd.f32 %v37381_v43, %v45873_v10  ;;  %v37134_v5 = vpop.f32.mrb[16].mxu0 }
 0xa61   : > { %27803 = vst [vmem:[%s45879_s26 + $0x78] sm:$0xff] %v27699_v14  ;;  %v37382_v25 = vadd.f32 %v37134_v5, %v45668_v32  ;;  %v27134_v13 = vpop.f32.mrb[17].mxu0 }
 0xa62   : > { %27802 = vst [vmem:[%s45879_s26 + $0x70] sm:$0xff] %v27698_v41  ;;  %v37383_v6 = vadd.f32 %v27134_v13, %v45670_v54 }
 0xa63   : > { %v27701_v53 = vadd.f32 %v37382_v25, %v45873_v10 }
 0xa64   : > { %v27700_v8 = vadd.f32 %v37383_v6, %v45873_v10  ;;  %v37137_v31 = vpop.f32.mrb[18].mxu0 }
 0xa65   : > { %27805 = vst [vmem:[%s45879_s26 + $0x88] sm:$0xff] %v27701_v53  ;;  %v37384_v11 = vadd.f32 %v37137_v31, %v45680_v59  ;;  %v27144_v15 = vpop.f32.mrb[19].mxu0 }
 0xa66   : > { %27804 = vst [vmem:[%s45879_s26 + $0x80] sm:$0xff] %v27700_v8  ;;  %v37385_v40 = vadd.f32 %v27144_v15, %v45682_v52 }
 0xa67   : > { %v27703_v32 = vadd.f32 %v37384_v11, %v45873_v10 }
 0xa68   : > { %v27702_v12 = vadd.f32 %v37385_v40, %v45873_v10  ;;  %v37140_v60 = vpop.f32.mrb[20].mxu0 }
 0xa69   : > { %27807 = vst [vmem:[%s45879_s26 + $0x98] sm:$0xff] %v27703_v32  ;;  %v37386_v54 = vadd.f32 %v37140_v60, %v45692_v18  ;;  %v27154_v29 = vpop.f32.mrb[21].mxu0 }
 0xa6a   : > { %27806 = vst [vmem:[%s45879_s26 + $0x90] sm:$0xff] %v27702_v12  ;;  %v37387_v49 = vadd.f32 %v27154_v29, %v45694_v28 }
 0xa6b   : > { %v27705_v59 = vadd.f32 %v37386_v54, %v45873_v10 }
 0xa6c   : > { %v27704_v47 = vadd.f32 %v37387_v49, %v45873_v10  ;;  %v37143_v62 = vpop.f32.mrb[22].mxu0 }
 0xa6d   : > { %27809 = vst [vmem:[%s45879_s26 + $0xa8] sm:$0xff] %v27705_v59  ;;  %v37388_v52 = vadd.f32 %v37143_v62, %v45704_v48  ;;  %v27164_v57 = vpop.f32.mrb[23].mxu0 }
 0xa6e   : > { %27808 = vst [vmem:[%s45879_s26 + $0xa0] sm:$0xff] %v27704_v47  ;;  %v37389_v55 = vadd.f32 %v27164_v57, %v45706_v38 }
 0xa6f   : > { %v27707_v18 = vadd.f32 %v37388_v52, %v45873_v10 }
 0xa70   : > { %v27706_v61 = vadd.f32 %v37389_v55, %v45873_v10  ;;  %v37146_v56 = vpop.f32.mrb[24].mxu0 }
 0xa71   : > { %27811 = vst [vmem:[%s45879_s26 + $0xb8] sm:$0xff] %v27707_v18  ;;  %v37390_v28 = vadd.f32 %v37146_v56, %v45716_v1  ;;  %v27174_v21 = vpop.f32.mrb[25].mxu0 }
 0xa72   : > { %27810 = vst [vmem:[%s45879_s26 + $0xb0] sm:$0xff] %v27706_v61  ;;  %v37391_v16 = vadd.f32 %v27174_v21, %v45718_v4 }
 0xa73   : > { %v27709_v48 = vadd.f32 %v37390_v28, %v45873_v10 }
 0xa74   : > { %v27708_v26 = vadd.f32 %v37391_v16, %v45873_v10  ;;  %v37149_v51 = vpop.f32.mrb[26].mxu0 }
 0xa75   : > { %27813 = vst [vmem:[%s45879_s26 + $0xc8] sm:$0xff] %v27709_v48  ;;  %v37392_v38 = vadd.f32 %v37149_v51, %v45728_v39  ;;  %v27184_v43 = vpop.f32.mrb[27].mxu0 }
 0xa76   : > { %27812 = vst [vmem:[%s45879_s26 + $0xc0] sm:$0xff] %v27708_v26  ;;  %v37393_v14 = vadd.f32 %v27184_v43, %v45730_v44 }
 0xa77   : > { %v27711_v1 = vadd.f32 %v37392_v38, %v45873_v10 }
 0xa78   : > { %v27710_v41 = vadd.f32 %v37393_v14, %v45873_v10  ;;  %v37152_v5 = vpop.f32.mrb[28].mxu0 }
 0xa79   : > { %27815 = vst [vmem:[%s45879_s26 + $0xd8] sm:$0xff] %v27711_v1  ;;  %v37394_v4 = vadd.f32 %v37152_v5, %v45740_v30  ;;  %v27194_v25 = vpop.f32.mrb[29].mxu0 }
 0xa7a   : > { %27814 = vst [vmem:[%s45879_s26 + $0xd0] sm:$0xff] %v27710_v41  ;;  %v37395_v13 = vadd.f32 %v27194_v25, %v45742_v2 }
 0xa7b   : > { %v27713_v39 = vadd.f32 %v37394_v4, %v45873_v10 }
 0xa7c   : > { %v27712_v6 = vadd.f32 %v37395_v13, %v45873_v10  ;;  %v37155_v53 = vpop.f32.mrb[30].mxu0 }
 0xa7d   : > { %27817 = vst [vmem:[%s45879_s26 + $0xe8] sm:$0xff] %v27713_v39  ;;  %v37396_v44 = vadd.f32 %v37155_v53, %v45752_v37  ;;  %v27204_v8 = vpop.f32.mrb[31].mxu0 }
 0xa7e   : > { %27816 = vst [vmem:[%s45879_s26 + $0xe0] sm:$0xff] %v27712_v6  ;;  %v37397_v31 = vadd.f32 %v27204_v8, %v45754_v42 }
 0xa7f   : > { %v27715_v30 = vadd.f32 %v37396_v44, %v45873_v10 }
 0xa80   : > { %v27714_v11 = vadd.f32 %v37397_v31, %v45873_v10  ;;  %v37158_v15 = vpop.f32.mrb[32].mxu0 }
 0xa81   : > { %27819 = vst [vmem:[%s45879_s26 + $0xf8] sm:$0xff] %v27715_v30  ;;  %v37398_v2 = vadd.f32 %v37158_v15, %v45764_v19  ;;  %v27214_v40 = vpop.f32.mrb[33].mxu0 }
 0xa82   : > { %27818 = vst [vmem:[%s45879_s26 + $0xf0] sm:$0xff] %v27714_v11  ;;  %v37399_v32 = vadd.f32 %v27214_v40, %v45766_v45 }
 0xa83   : > { %v27717_v37 = vadd.f32 %v37398_v2, %v45873_v10 }
 0xa84   : > { %v27716_v12 = vadd.f32 %v37399_v32, %v45873_v10  ;;  %v37161_v60 = vpop.f32.mrb[34].mxu0 }
 0xa85   : > { %27821 = vst [vmem:[%s45879_s26 + $0x108] sm:$0xff] %v27717_v37  ;;  %v37400_v42 = vadd.f32 %v37161_v60, %v45776_v3  ;;  %v27224_v54 = vpop.f32.mrb[35].mxu0 }
 0xa86   : > { %27820 = vst [vmem:[%s45879_s26 + $0x100] sm:$0xff] %v27716_v12  ;;  %v37401_v29 = vadd.f32 %v27224_v54, %v45778_v23 }
 0xa87   : > { %v27719_v19 = vadd.f32 %v37400_v42, %v45873_v10 }
 0xa88   : > { %v27718_v49 = vadd.f32 %v37401_v29, %v45873_v10  ;;  %v37164_v59 = vpop.f32.mrb[36].mxu0 }
 0xa89   : > { %27823 = vst [vmem:[%s45879_s26 + $0x118] sm:$0xff] %v27719_v19  ;;  %v37402_v45 = vadd.f32 %v37164_v59, %v45788_v63  ;;  %v27234_v47 = vpop.f32.mrb[37].mxu0 }
 0xa8a   : > { %27822 = vst [vmem:[%s45879_s26 + $0x110] sm:$0xff] %v27718_v49  ;;  %v37403_v62 = vadd.f32 %v27234_v47, %v45790_v0 }
 0xa8b   : > { %v27721_v3 = vadd.f32 %v37402_v45, %v45873_v10 }
 0xa8c   : > { %v27720_v52 = vadd.f32 %v37403_v62, %v45873_v10  ;;  %v37167_v57 = vpop.f32.mrb[38].mxu0 }
 0xa8d   : > { %27825 = vst [vmem:[%s45879_s26 + $0x128] sm:$0xff] %v27721_v3  ;;  %v37404_v23 = vadd.f32 %v37167_v57, %v45800_v46  ;;  %v27244_v55 = vpop.f32.mrb[39].mxu0 }
 0xa8e   : > { %27824 = vst [vmem:[%s45879_s26 + $0x120] sm:$0xff] %v27720_v52  ;;  %v37405_v18 = vadd.f32 %v27244_v55, %v45802_v58 }
 0xa8f   : > { %v27723_v63 = vadd.f32 %v37404_v23, %v45873_v10 }
 0xa90   : > { %v27722_v61 = vadd.f32 %v37405_v18, %v45873_v10  ;;  %v37170_v56 = vpop.f32.mrb[40].mxu0 }
 0xa91   : > { %27827 = vst [vmem:[%s45879_s26 + $0x138] sm:$0xff] %v27723_v63  ;;  %v37406_v0 = vadd.f32 %v37170_v56, %v45812_v24  ;;  %v27254_v28 = vpop.f32.mrb[41].mxu0 }
 0xa92   : > { %27826 = vst [vmem:[%s45879_s26 + $0x130] sm:$0xff] %v27722_v61  ;;  %v37407_v21 = vadd.f32 %v27254_v28, %v45814_v9 }
 0xa93   : > { %v27725_v46 = vadd.f32 %v37406_v0, %v45873_v10 }
 0xa94   : > { %v27724_v16 = vadd.f32 %v37407_v21, %v45873_v10  ;;  %v37173_v48 = vpop.f32.mrb[42].mxu0 }
 0xa95   : > { %27829 = vst [vmem:[%s45879_s26 + $0x148] sm:$0xff] %v27725_v46  ;;  %v37408_v58 = vadd.f32 %v37173_v48, %v45824_v20  ;;  %v27264_v26 = vpop.f32.mrb[43].mxu0 }
 0xa96   : > { %27828 = vst [vmem:[%s45879_s26 + $0x140] sm:$0xff] %v27724_v16  ;;  %v37409_v51 = vadd.f32 %v27264_v26, %v45826_v17 }
 0xa97   : > { %v27727_v24 = vadd.f32 %v37408_v58, %v45873_v10 }
 0xa98   : > { %v27726_v38 = vadd.f32 %v37409_v51, %v45873_v10  ;;  %v37176_v43 = vpop.f32.mrb[44].mxu0 }
 0xa99   : > { %27831 = vst [vmem:[%s45879_s26 + $0x158] sm:$0xff] %v27727_v24  ;;  %v37410_v9 = vadd.f32 %v37176_v43, %v45836_v36  ;;  %v27274_v14 = vpop.f32.mrb[45].mxu0 }
 0xa9a   : > { %27830 = vst [vmem:[%s45879_s26 + $0x150] sm:$0xff] %v27726_v38  ;;  %v37411_v1 = vadd.f32 %v27274_v14, %v45838_v7 }
 0xa9b   : > { %v27729_v20 = vadd.f32 %v37410_v9, %v45873_v10 }
 0xa9c   : > { %v27728_v41 = vadd.f32 %v37411_v1, %v45873_v10  ;;  %v37179_v5 = vpop.f32.mrb[46].mxu0 }
 0xa9d   : > { %27833 = vst [vmem:[%s45879_s26 + $0x168] sm:$0xff] %v27729_v20  ;;  %v37412_v17 = vadd.f32 %v37179_v5, %v45848_v22  ;;  %v27284_v4 = vpop.f32.mrb[47].mxu0 }
 0xa9e   : > { %27832 = vst [vmem:[%s45879_s26 + $0x160] sm:$0xff] %v27728_v41  ;;  %v37413_v25 = vadd.f32 %v27284_v4, %v45850_v27 }
 0xa9f   : > { %v27731_v36 = vadd.f32 %v37412_v17, %v45873_v10 }
 0xaa0   : > { %v27730_v13 = vadd.f32 %v37413_v25, %v45873_v10  ;;  %v37182_v39 = vpop.f32.mrb[48].mxu0 }
 0xaa1   : > { %27835 = vst [vmem:[%s45879_s26 + $0x178] sm:$0xff] %v27731_v36  ;;  %v37414_v7 = vadd.f32 %v37182_v39, %v45858_v50  ;;  %v27294_v6 = vpop.f32.mrb[49].mxu0 }
 0xaa2   : > { %27834 = vst [vmem:[%s45879_s26 + $0x170] sm:$0xff] %v27730_v13  ;;  %v37415_v53 = vadd.f32 %v27294_v6, %v45860_v33 }
 0xaa3   : > { %v27733_v22 = vadd.f32 %v37414_v7, %v45873_v10 }
 0xaa4   : > { %v27732_v44 = vadd.f32 %v37415_v53, %v45873_v10  ;;  %v37185_v8 = vpop.f32.mrb[50].mxu0 }
 0xaa5   : > { %27837 = vst [vmem:[%s45879_s26 + $0x188] sm:$0xff] %v27733_v22  ;;  %v37416_v27 = vadd.f32 %v37185_v8, %v45864_v35  ;;  %v27304_v31 = vpop.f32.mrb[51].mxu0 }
 0xaa6   : > { %27836 = vst [vmem:[%s45879_s26 + $0x180] sm:$0xff] %v27732_v44  ;;  %v37417_v30 = vadd.f32 %v27304_v31, %v45866_v34 }
 0xaa7   : > { %v27735_v50 = vadd.f32 %v37416_v27, %v45873_v10 }
 0xaa8   : > { %v27734_v11 = vadd.f32 %v37417_v30, %v45873_v10  ;;  %v35268_v15 = vpop.f32.mrb[52].mxu1  ;;  %v37188_v33 = vpop.f32.mrb[52].mxu0 }
 0xaa9   : > { %27839 = vst [vmem:[%s45879_s26 + $0x198] sm:$0xff] %v27735_v50  ;;  %v37418_v2 = vadd.f32 %v37188_v33, %v35268_v15  ;;  %v14018_v40 = vpop.f32.mrb[53].mxu1  ;;  %v27314_v32 = vpop.f32.mrb[53].mxu0 }
 0xaaa   : > { %27838 = vst [vmem:[%s45879_s26 + $0x190] sm:$0xff] %v27734_v11  ;;  %v37419_v37 = vadd.f32 %v27314_v32, %v14018_v40 }
 0xaab   : > { %v27737_v35 = vadd.f32 %v37418_v2, %v45873_v10 }
 0xaac   : > { %v27736_v12 = vadd.f32 %v37419_v37, %v45873_v10  ;;  %v35271_v60 = vpop.f32.mrb[54].mxu1  ;;  %v37191_v34 = vpop.f32.mrb[54].mxu0 }
 0xaad   : > { %27841 = vst [vmem:[%s45879_s26 + $0x1a8] sm:$0xff] %v27737_v35  ;;  %v37420_v42 = vadd.f32 %v37191_v34, %v35271_v60  ;;  %v14028_v54 = vpop.f32.mrb[55].mxu1  ;;  %v27324_v29 = vpop.f32.mrb[55].mxu0 }
 0xaae   : > { %27840 = vst [vmem:[%s45879_s26 + $0x1a0] sm:$0xff] %v27736_v12  ;;  %v37421_v19 = vadd.f32 %v27324_v29, %v14028_v54 }
 0xaaf   : > { %v27739_v49 = vadd.f32 %v37420_v42, %v45873_v10 }
 0xab0   : > { %v27738_v59 = vadd.f32 %v37421_v19, %v45873_v10  ;;  %v35274_v45 = vpop.f32.mrb[56].mxu1  ;;  %v37194_v47 = vpop.f32.mrb[56].mxu0 }
 0xab1   : > { %27843 = vst [vmem:[%s45879_s26 + $0x1b8] sm:$0xff] %v27739_v49  ;;  %v37422_v62 = vadd.f32 %v37194_v47, %v35274_v45  ;;  %v14038_v3 = vpop.f32.mrb[57].mxu1  ;;  %v27334_v52 = vpop.f32.mrb[57].mxu0 }
 0xab2   : > { %27842 = vst [vmem:[%s45879_s26 + $0x1b0] sm:$0xff] %v27738_v59  ;;  %v37423_v57 = vadd.f32 %v27334_v52, %v14038_v3 }
 0xab3   : > { %v27741_v23 = vadd.f32 %v37422_v62, %v45873_v10 }
 0xab4   : > { %v27740_v55 = vadd.f32 %v37423_v57, %v45873_v10  ;;  %v35277_v18 = vpop.f32.mrb[58].mxu1  ;;  %v37197_v63 = vpop.f32.mrb[58].mxu0 }
 0xab5   : > { %27845 = vst [vmem:[%s45879_s26 + $0x1c8] sm:$0xff] %v27741_v23  ;;  %v37424_v61 = vadd.f32 %v37197_v63, %v35277_v18  ;;  %v14048_v56 = vpop.f32.mrb[59].mxu1  ;;  %v27344_v0 = vpop.f32.mrb[59].mxu0 }
 0xab6   : > { %27844 = vst [vmem:[%s45879_s26 + $0x1c0] sm:$0xff] %v27740_v55  ;;  %v37425_v28 = vadd.f32 %v27344_v0, %v14048_v56 }
 0xab7   : > { %v27743_v21 = vadd.f32 %v37424_v61, %v45873_v10 }
 0xab8   : > { %v27742_v46 = vadd.f32 %v37425_v28, %v45873_v10  ;;  %v35280_v16 = vpop.f32.mrb[60].mxu1  ;;  %v37200_v48 = vpop.f32.mrb[60].mxu0 }
 0xab9   : > { %27847 = vst [vmem:[%s45879_s26 + $0x1d8] sm:$0xff] %v27743_v21  ;;  %v37426_v58 = vadd.f32 %v37200_v48, %v35280_v16  ;;  %v14058_v26 = vpop.f32.mrb[61].mxu1  ;;  %v27354_v51 = vpop.f32.mrb[61].mxu0 }
 0xaba   : > { %27846 = vst [vmem:[%s45879_s26 + $0x1d0] sm:$0xff] %v27742_v46  ;;  %v37427_v24 = vadd.f32 %v27354_v51, %v14058_v26 }
 0xabb   : > { %v27745_v38 = vadd.f32 %v37426_v58, %v45873_v10 }
 0xabc   : > { %v27744_v43 = vadd.f32 %v37427_v24, %v45873_v10  ;;  %v35283_v9 = vpop.f32.mrb[62].mxu1  ;;  %v37203_v14 = vpop.f32.mrb[62].mxu0 }
 0xabd   : > { %27849 = vst [vmem:[%s45879_s26 + $0x1e8] sm:$0xff] %v27745_v38  ;;  %v37428_v1 = vadd.f32 %v37203_v14, %v35283_v9  ;;  %v14068_v20 = vpop.f32.mrb[63].mxu1  ;;  %v27364_v41 = vpop.f32.mrb[63].mxu0 }
 0xabe   : > { %27848 = vst [vmem:[%s45879_s26 + $0x1e0] sm:$0xff] %v27744_v43  ;;  %v37429_v5 = vadd.f32 %v27364_v41, %v14068_v20 }
 0xabf   : > { %v27747_v17 = vadd.f32 %v37428_v1, %v45873_v10 }
 0xac0   : > { %v27746_v4 = vadd.f32 %v37429_v5, %v45873_v10  ;;  %v35286_v25 = vpop.f32.mrb[64].mxu1  ;;  %v37206_v36 = vpop.f32.mrb[64].mxu0 }
 0xac1   : > { %27851 = vst [vmem:[%s45879_s26 + $0x1f8] sm:$0xff] %v27747_v17  ;;  %v37430_v13 = vadd.f32 %v37206_v36, %v35286_v25  ;;  %v14078_v39 = vpop.f32.mrb[65].mxu1  ;;  %v27374_v7 = vpop.f32.mrb[65].mxu0 }
 0xac2   : > { %27850 = vst [vmem:[%s45879_s26 + $0x1f0] sm:$0xff] %v27746_v4  ;;  %v37431_v6 = vadd.f32 %v27374_v7, %v14078_v39 }
 0xac3   : > { %v27749_v53 = vadd.f32 %v37430_v13, %v45873_v10 }
 0xac4   : > { %v27748_v22 = vadd.f32 %v37431_v6, %v45873_v10  ;;  %v35289_v44 = vpop.f32.mrb[66].mxu1  ;;  %v37209_v8 = vpop.f32.mrb[66].mxu0 }
 0xac5   : > { %27853 = vst [vmem:[%s45879_s26 + $0x208] sm:$0xff] %v27749_v53  ;;  %v37432_v27 = vadd.f32 %v37209_v8, %v35289_v44  ;;  %v14088_v31 = vpop.f32.mrb[67].mxu1  ;;  %v27384_v30 = vpop.f32.mrb[67].mxu0 }
 0xac6   : > { %27852 = vst [vmem:[%s45879_s26 + $0x200] sm:$0xff] %v27748_v22  ;;  %v37433_v50 = vadd.f32 %v27384_v30, %v14088_v31 }
 0xac7   : > { %v27751_v11 = vadd.f32 %v37432_v27, %v45873_v10 }
 0xac8   : > { %v27750_v15 = vadd.f32 %v37433_v50, %v45873_v10  ;;  %v35292_v33 = vpop.f32.mrb[68].mxu1  ;;  %v37212_v2 = vpop.f32.mrb[68].mxu0 }
 0xac9   : > { %27855 = vst [vmem:[%s45879_s26 + $0x218] sm:$0xff] %v27751_v11  ;;  %v37434_v40 = vadd.f32 %v37212_v2, %v35292_v33  ;;  %v14098_v32 = vpop.f32.mrb[69].mxu1  ;;  %v27394_v37 = vpop.f32.mrb[69].mxu0 }
 0xaca   : > { %27854 = vst [vmem:[%s45879_s26 + $0x210] sm:$0xff] %v27750_v15  ;;  %v37435_v35 = vadd.f32 %v27394_v37, %v14098_v32 }
 0xacb   : > { %v27753_v12 = vadd.f32 %v37434_v40, %v45873_v10 }
 0xacc   : > { %v27752_v60 = vadd.f32 %v37435_v35, %v45873_v10  ;;  %v35295_v34 = vpop.f32.mrb[70].mxu1  ;;  %v37215_v42 = vpop.f32.mrb[70].mxu0 }
 0xacd   : > { %27857 = vst [vmem:[%s45879_s26 + $0x228] sm:$0xff] %v27753_v12  ;;  %v37436_v54 = vadd.f32 %v37215_v42, %v35295_v34  ;;  %v14108_v29 = vpop.f32.mrb[71].mxu1  ;;  %v27404_v19 = vpop.f32.mrb[71].mxu0 }
 0xace   : > { %27856 = vst [vmem:[%s45879_s26 + $0x220] sm:$0xff] %v27752_v60  ;;  %v37437_v49 = vadd.f32 %v27404_v19, %v14108_v29 }
 0xacf   : > { %v27755_v59 = vadd.f32 %v37436_v54, %v45873_v10 }
 0xad0   : > { %v27754_v45 = vadd.f32 %v37437_v49, %v45873_v10  ;;  %v35298_v47 = vpop.f32.mrb[72].mxu1  ;;  %v37218_v62 = vpop.f32.mrb[72].mxu0 }
 0xad1   : > { %27859 = vst [vmem:[%s45879_s26 + $0x238] sm:$0xff] %v27755_v59  ;;  %v37438_v3 = vadd.f32 %v37218_v62, %v35298_v47  ;;  %v14118_v52 = vpop.f32.mrb[73].mxu1  ;;  %v27414_v57 = vpop.f32.mrb[73].mxu0 }
 0xad2   : > { %27858 = vst [vmem:[%s45879_s26 + $0x230] sm:$0xff] %v27754_v45  ;;  %v37439_v23 = vadd.f32 %v27414_v57, %v14118_v52 }
 0xad3   : > { %v27757_v55 = vadd.f32 %v37438_v3, %v45873_v10 }
 0xad4   : > { %v27756_v18 = vadd.f32 %v37439_v23, %v45873_v10  ;;  %v35301_v63 = vpop.f32.mrb[74].mxu1  ;;  %v37221_v61 = vpop.f32.mrb[74].mxu0 }
 0xad5   : > { %27861 = vst [vmem:[%s45879_s26 + $0x248] sm:$0xff] %v27757_v55  ;;  %v37440_v56 = vadd.f32 %v37221_v61, %v35301_v63  ;;  %v14128_v0 = vpop.f32.mrb[75].mxu1  ;;  %v27424_v28 = vpop.f32.mrb[75].mxu0 }
 0xad6   : > { %27860 = vst [vmem:[%s45879_s26 + $0x240] sm:$0xff] %v27756_v18  ;;  %v37441_v21 = vadd.f32 %v27424_v28, %v14128_v0 }
 0xad7   : > { %v27759_v46 = vadd.f32 %v37440_v56, %v45873_v10 }
 0xad8   : > { %v27758_v16 = vadd.f32 %v37441_v21, %v45873_v10  ;;  %v35304_v48 = vpop.f32.mrb[76].mxu1  ;;  %v37224_v58 = vpop.f32.mrb[76].mxu0 }
 0xad9   : > { %27863 = vst [vmem:[%s45879_s26 + $0x258] sm:$0xff] %v27759_v46  ;;  %v37442_v26 = vadd.f32 %v37224_v58, %v35304_v48  ;;  %v14138_v51 = vpop.f32.mrb[77].mxu1  ;;  %v27434_v24 = vpop.f32.mrb[77].mxu0 }
 0xada   : > { %27862 = vst [vmem:[%s45879_s26 + $0x250] sm:$0xff] %v27758_v16  ;;  %v37443_v38 = vadd.f32 %v27434_v24, %v14138_v51 }
 0xadb   : > { %v27761_v43 = vadd.f32 %v37442_v26, %v45873_v10 }
 0xadc   : > { %v27760_v9 = vadd.f32 %v37443_v38, %v45873_v10  ;;  %v35307_v14 = vpop.f32.mrb[78].mxu1  ;;  %v37227_v1 = vpop.f32.mrb[78].mxu0 }
 0xadd   : > { %27865 = vst [vmem:[%s45879_s26 + $0x268] sm:$0xff] %v27761_v43  ;;  %v37444_v20 = vadd.f32 %v37227_v1, %v35307_v14  ;;  %v14148_v41 = vpop.f32.mrb[79].mxu1  ;;  %v27444_v5 = vpop.f32.mrb[79].mxu0 }
 0xade   : > { %27864 = vst [vmem:[%s45879_s26 + $0x260] sm:$0xff] %v27760_v9  ;;  %v37445_v17 = vadd.f32 %v27444_v5, %v14148_v41 }
 0xadf   : > { %v27763_v4 = vadd.f32 %v37444_v20, %v45873_v10 }
 0xae0   : > { %v27762_v25 = vadd.f32 %v37445_v17, %v45873_v10  ;;  %v35310_v36 = vpop.f32.mrb[80].mxu1  ;;  %v37230_v13 = vpop.f32.mrb[80].mxu0 }
 0xae1   : > { %27867 = vst [vmem:[%s45879_s26 + $0x278] sm:$0xff] %v27763_v4  ;;  %v37446_v39 = vadd.f32 %v37230_v13, %v35310_v36  ;;  %v14158_v7 = vpop.f32.mrb[81].mxu1  ;;  %v27454_v6 = vpop.f32.mrb[81].mxu0 }
 0xae2   : > { %27866 = vst [vmem:[%s45879_s26 + $0x270] sm:$0xff] %v27762_v25  ;;  %v37447_v53 = vadd.f32 %v27454_v6, %v14158_v7 }
 0xae3   : > { %v27765_v22 = vadd.f32 %v37446_v39, %v45873_v10 }
 0xae4   : > { %v27764_v44 = vadd.f32 %v37447_v53, %v45873_v10  ;;  %v35313_v8 = vpop.f32.mrb[82].mxu1  ;;  %v37233_v27 = vpop.f32.mrb[82].mxu0 }
 0xae5   : > { %27869 = vst [vmem:[%s45879_s26 + $0x288] sm:$0xff] %v27765_v22  ;;  %v37448_v31 = vadd.f32 %v37233_v27, %v35313_v8  ;;  %v14168_v30 = vpop.f32.mrb[83].mxu1  ;;  %v27464_v50 = vpop.f32.mrb[83].mxu0 }
 0xae6   : > { %27868 = vst [vmem:[%s45879_s26 + $0x280] sm:$0xff] %v27764_v44  ;;  %v37449_v11 = vadd.f32 %v27464_v50, %v14168_v30 }
 0xae7   : > { %v27767_v15 = vadd.f32 %v37448_v31, %v45873_v10 }
 0xae8   : > { %v27766_v33 = vadd.f32 %v37449_v11, %v45873_v10  ;;  %v35316_v2 = vpop.f32.mrb[84].mxu1  ;;  %v37236_v40 = vpop.f32.mrb[84].mxu0 }
 0xae9   : > { %27871 = vst [vmem:[%s45879_s26 + $0x298] sm:$0xff] %v27767_v15  ;;  %v37450_v32 = vadd.f32 %v37236_v40, %v35316_v2  ;;  %v14178_v37 = vpop.f32.mrb[85].mxu1  ;;  %v27474_v35 = vpop.f32.mrb[85].mxu0 }
 0xaea   : > { %27870 = vst [vmem:[%s45879_s26 + $0x290] sm:$0xff] %v27766_v33  ;;  %v37451_v12 = vadd.f32 %v27474_v35, %v14178_v37 }
 0xaeb   : > { %v27769_v60 = vadd.f32 %v37450_v32, %v45873_v10 }
 0xaec   : > { %v27768_v34 = vadd.f32 %v37451_v12, %v45873_v10  ;;  %v35319_v42 = vpop.f32.mrb[86].mxu1  ;;  %v37239_v54 = vpop.f32.mrb[86].mxu0 }
 0xaed   : > { %27873 = vst [vmem:[%s45879_s26 + $0x2a8] sm:$0xff] %v27769_v60  ;;  %v37452_v29 = vadd.f32 %v37239_v54, %v35319_v42  ;;  %v14188_v19 = vpop.f32.mrb[87].mxu1  ;;  %v27484_v49 = vpop.f32.mrb[87].mxu0 }
 0xaee   : > { %27872 = vst [vmem:[%s45879_s26 + $0x2a0] sm:$0xff] %v27768_v34  ;;  %v37453_v59 = vadd.f32 %v27484_v49, %v14188_v19 }
 0xaef   : > { %v27771_v45 = vadd.f32 %v37452_v29, %v45873_v10 }
 0xaf0   : > { %v27770_v47 = vadd.f32 %v37453_v59, %v45873_v10  ;;  %v35322_v62 = vpop.f32.mrb[88].mxu1  ;;  %v37242_v3 = vpop.f32.mrb[88].mxu0 }
 0xaf1   : > { %27875 = vst [vmem:[%s45879_s26 + $0x2b8] sm:$0xff] %v27771_v45  ;;  %v37454_v52 = vadd.f32 %v37242_v3, %v35322_v62  ;;  %v14198_v57 = vpop.f32.mrb[89].mxu1  ;;  %v27494_v23 = vpop.f32.mrb[89].mxu0 }
 0xaf2   : > { %27874 = vst [vmem:[%s45879_s26 + $0x2b0] sm:$0xff] %v27770_v47  ;;  %v37455_v55 = vadd.f32 %v27494_v23, %v14198_v57 }
 0xaf3   : > { %v27773_v18 = vadd.f32 %v37454_v52, %v45873_v10 }
 0xaf4   : > { %v27772_v63 = vadd.f32 %v37455_v55, %v45873_v10  ;;  %v35325_v61 = vpop.f32.mrb[90].mxu1  ;;  %v37245_v56 = vpop.f32.mrb[90].mxu0 }
 0xaf5   : > { %27877 = vst [vmem:[%s45879_s26 + $0x2c8] sm:$0xff] %v27773_v18  ;;  %v37456_v0 = vadd.f32 %v37245_v56, %v35325_v61  ;;  %v14208_v28 = vpop.f32.mrb[91].mxu1  ;;  %v27504_v21 = vpop.f32.mrb[91].mxu0 }
 0xaf6   : > { %27876 = vst [vmem:[%s45879_s26 + $0x2c0] sm:$0xff] %v27772_v63  ;;  %v37457_v46 = vadd.f32 %v27504_v21, %v14208_v28 }
 0xaf7   : > { %v27775_v16 = vadd.f32 %v37456_v0, %v45873_v10 }
 0xaf8   : > { %v27774_v48 = vadd.f32 %v37457_v46, %v45873_v10  ;;  %v35328_v58 = vpop.f32.mrb[92].mxu1  ;;  %v37248_v26 = vpop.f32.mrb[92].mxu0 }
 0xaf9   : > { %27879 = vst [vmem:[%s45879_s26 + $0x2d8] sm:$0xff] %v27775_v16  ;;  %v37458_v51 = vadd.f32 %v37248_v26, %v35328_v58  ;;  %v14218_v24 = vpop.f32.mrb[93].mxu1  ;;  %v27514_v38 = vpop.f32.mrb[93].mxu0 }
 0xafa   : > { %27878 = vst [vmem:[%s45879_s26 + $0x2d0] sm:$0xff] %v27774_v48  ;;  %v37459_v43 = vadd.f32 %v27514_v38, %v14218_v24 }
 0xafb   : > { %v27777_v9 = vadd.f32 %v37458_v51, %v45873_v10 }
 0xafc   : > { %v27776_v14 = vadd.f32 %v37459_v43, %v45873_v10  ;;  %v35331_v1 = vpop.f32.mrb[94].mxu1  ;;  %v37251_v20 = vpop.f32.mrb[94].mxu0 }
 0xafd   : > { %27881 = vst [vmem:[%s45879_s26 + $0x2e8] sm:$0xff] %v27777_v9  ;;  %v37460_v41 = vadd.f32 %v37251_v20, %v35331_v1  ;;  %v14228_v5 = vpop.f32.mrb[95].mxu1  ;;  %v27524_v17 = vpop.f32.mrb[95].mxu0 }
 0xafe   : > { %27880 = vst [vmem:[%s45879_s26 + $0x2e0] sm:$0xff] %v27776_v14  ;;  %v37461_v4 = vadd.f32 %v27524_v17, %v14228_v5 }
 0xaff   : > { %v27779_v25 = vadd.f32 %v37460_v41, %v45873_v10 }
 0xb00   : > { %v27778_v36 = vadd.f32 %v37461_v4, %v45873_v10  ;;  %v35334_v13 = vpop.f32.mrb[96].mxu1  ;;  %v37254_v39 = vpop.f32.mrb[96].mxu0 }
 0xb01   : > { %27883 = vst [vmem:[%s45879_s26 + $0x2f8] sm:$0xff] %v27779_v25  ;;  %v37462_v7 = vadd.f32 %v37254_v39, %v35334_v13  ;;  %v14238_v6 = vpop.f32.mrb[97].mxu1  ;;  %v27534_v53 = vpop.f32.mrb[97].mxu0 }
 0xb02   : > { %27882 = vst [vmem:[%s45879_s26 + $0x2f0] sm:$0xff] %v27778_v36  ;;  %v37463_v22 = vadd.f32 %v27534_v53, %v14238_v6 }
 0xb03   : > { %v27781_v44 = vadd.f32 %v37462_v7, %v45873_v10 }
 0xb04   : > { %v27780_v8 = vadd.f32 %v37463_v22, %v45873_v10  ;;  %v35337_v27 = vpop.f32.mrb[98].mxu1  ;;  %v37257_v31 = vpop.f32.mrb[98].mxu0 }
 0xb05   : > { %27885 = vst [vmem:[%s45879_s26 + $0x308] sm:$0xff] %v27781_v44  ;;  %v37464_v30 = vadd.f32 %v37257_v31, %v35337_v27  ;;  %v14248_v50 = vpop.f32.mrb[99].mxu1  ;;  %v27544_v11 = vpop.f32.mrb[99].mxu0 }
 0xb06   : > { %27884 = vst [vmem:[%s45879_s26 + $0x300] sm:$0xff] %v27780_v8  ;;  %v37465_v15 = vadd.f32 %v27544_v11, %v14248_v50 }
 0xb07   : > { %v27783_v33 = vadd.f32 %v37464_v30, %v45873_v10 }
 0xb08   : > { %v27782_v2 = vadd.f32 %v37465_v15, %v45873_v10  ;;  %v35340_v40 = vpop.f32.mrb[100].mxu1  ;;  %v37260_v32 = vpop.f32.mrb[100].mxu0 }
 0xb09   : > { %27887 = vst [vmem:[%s45879_s26 + $0x318] sm:$0xff] %v27783_v33  ;;  %v37466_v37 = vadd.f32 %v37260_v32, %v35340_v40  ;;  %v14258_v35 = vpop.f32.mrb[101].mxu1  ;;  %v27554_v12 = vpop.f32.mrb[101].mxu0 }
 0xb0a   : > { %27886 = vst [vmem:[%s45879_s26 + $0x310] sm:$0xff] %v27782_v2  ;;  %v37467_v60 = vadd.f32 %v27554_v12, %v14258_v35 }
 0xb0b   : > { %v27785_v34 = vadd.f32 %v37466_v37, %v45873_v10 }
 0xb0c   : > { %v27784_v42 = vadd.f32 %v37467_v60, %v45873_v10  ;;  %v35343_v54 = vpop.f32.mrb[102].mxu1  ;;  %v37263_v29 = vpop.f32.mrb[102].mxu0 }
 0xb0d   : > { %27889 = vst [vmem:[%s45879_s26 + $0x328] sm:$0xff] %v27785_v34  ;;  %v37468_v19 = vadd.f32 %v37263_v29, %v35343_v54  ;;  %v14268_v49 = vpop.f32.mrb[103].mxu1  ;;  %v27564_v59 = vpop.f32.mrb[103].mxu0 }
 0xb0e   : > { %27888 = vst [vmem:[%s45879_s26 + $0x320] sm:$0xff] %v27784_v42  ;;  %v37469_v45 = vadd.f32 %v27564_v59, %v14268_v49 }
 0xb0f   : > { %v27787_v47 = vadd.f32 %v37468_v19, %v45873_v10 }
 0xb10   : > { %v27786_v62 = vadd.f32 %v37469_v45, %v45873_v10 }
 0xb11   : > { %27891 = vst [vmem:[%s45879_s26 + $0x338] sm:$0xff] %v27787_v47 }
 0xb12   : > { %27890 = vst [vmem:[%s45879_s26 + $0x330] sm:$0xff] %v27786_v62 }
 0xb13 PF: > { %s13_s12 = sadd.s32 1, %s39878_s12  }
 0xb14   : > { %p10_p4 = scmp.ge.s32.totalorder %s13_s12, 4  }
 0xb16   :  { %12 = sbr.rel (!%p10_p4) target bundleno = 1 (0x1), region = 89 }

</bundles_post_ra>
